<compile_context>
chip_gen: v5e
topology: v5e:2x2
jax: 0.10.0
libtpu: 0.0.40
codegen_flags: <defaults>
</compile_context>

<pallas_src>
import functools

import jax
import jax.numpy as jnp
import numpy as np
from jax.experimental import pallas as pl
from jax.experimental.pallas import tpu as pltpu

IMAGENET_MEAN = (0.485, 0.456, 0.406)
IMAGENET_STD = (0.229, 0.224, 0.225)

# GEMM operand dtype inside the conv kernels.  Set to jnp.bfloat16 on
# v5e/v6e/v7x for native-MXU throughput and half the conv-input DMA bytes
# (accumulation stays f32 via preferred_element_type).  Kept f32 here so the
# self-test below tracks the Precision.HIGHEST XLA reference tightly.
COMPUTE_DTYPE = jnp.float32


# ----------------------------- Pallas kernels -----------------------------

def _conv3x3_fused_kernel(xp_ref, w_ref, b_ref, y_ref, *pool_ref,
                          apply_relu, with_pool):
    """One batch element: 3x3 conv (stride 1, pad 1) + bias [+ReLU] [+2x2 maxpool].

    xp_ref      : (H+2, W+2, Cin)   zero-padded NHWC input tile (VMEM)
    w_ref       : (9, Cin, Cout)    taps ordered (kh, kw)
    b_ref       : (1, Cout)
    y_ref       : (H, W, Cout)      conv(+ReLU) output (the hooked activation)
    pool_ref[0] : (H/2, W/2, Cout)  optional fused 2x2 max-pool output
    """
    h, w, cout = y_ref.shape
    cin = xp_ref.shape[-1]
    xp = xp_ref[...]  # single load; taps are sliced in-register below

    # In-kernel im2col: 9 shifted (H*W, Cin) x (Cin, Cout) MXU dots, f32 acc.
    # (No jnp.zeros init -- Pallas rejects captured array constants -- so the
    # accumulator starts from tap 0.)
    acc = None
    for t in range(9):
        kh, kw = divmod(t, 3)
        tap = xp[kh:kh + h, kw:kw + w, :].reshape(h * w, cin)
        d = jnp.dot(tap, w_ref[t], preferred_element_type=jnp.float32)
        acc = d if acc is None else acc + d

    y = acc + b_ref[...]
    if apply_relu:
        y = jnp.maximum(y, 0.0)                       # fused ReLU epilogue
    y_ref[...] = y.reshape(h, w, cout).astype(y_ref.dtype)

    if with_pool:
        p_ref, = pool_ref
        # 2x2/2 max-pool fused on the in-register value (row-major view reshape,
        # then two small reductions) -- no extra HBM round trip of the activation.
        y4 = y.reshape(h // 2, 2, w // 2, 2, cout)
        p_ref[...] = jnp.max(jnp.max(y4, axis=3), axis=1).astype(p_ref.dtype)


def _relu_kernel(x_ref, o_ref):
    o_ref[...] = jnp.maximum(x_ref[...], 0.0)


def _maxpool2x2_kernel(x_ref, o_ref):
    n, ho, wo, c = o_ref.shape
    x4 = x_ref[...].reshape(n, ho, 2, wo, 2, c)        # row-major view, no transpose
    o_ref[...] = jnp.max(jnp.max(x4, axis=4), axis=2)


# ----------------------------- wrappers -----------------------------

def conv3x3_fused_pallas(x_nhwc, w_oihw, bias, *, apply_relu=True,
                         with_pool=False, compute_dtype=COMPUTE_DTYPE):
    """3x3 conv, stride 1, pad 1 (PyTorch Conv2d semantics), fused bias/ReLU/pool."""
    n, h, w, cin = x_nhwc.shape
    cout = w_oihw.shape[0]

    # The only XLA-side prep is the zero pad (required anyway).  Any elementwise
    # producer of x (e.g. the ImageNet mean subtraction before conv #0) fuses
    # into this single pass -- no standalone normalization kernel.
    xp = jnp.pad(x_nhwc, ((0, 0), (1, 1), (1, 1), (0, 0))).astype(compute_dtype)
    # weights -> (tap, Cin, Cout):  wt[kh*3+kw, ci, co] = w_oihw[co, ci, kh, kw]
    wt = jnp.transpose(w_oihw, (2, 3, 1, 0)).reshape(9, cin, cout).astype(compute_dtype)
    bm = bias.reshape(1, cout).astype(jnp.float32)

    kernel = functools.partial(_conv3x3_fused_kernel,
                               apply_relu=apply_relu, with_pool=with_pool)

    out_shape = (jax.ShapeDtypeStruct((n, h, w, cout), jnp.float32),)
    out_specs = (pl.BlockSpec((None, h, w, cout), lambda b: (b, 0, 0, 0)),)
    if with_pool:
        out_shape += (jax.ShapeDtypeStruct((n, h // 2, w // 2, cout), jnp.float32),)
        out_specs += (pl.BlockSpec((None, h // 2, w // 2, cout),
                                   lambda b: (b, 0, 0, 0)),)

    # TODO(synk): at real VGG sizes (224^2, C<=512) also tile M = H*W rows with
    # an f32 acc scratch + pl.when init/finalize so blocks stay well under
    # v7x's 64 MiB VMEM; whole images fit trivially at these test shapes.
    return pl.pallas_call(
        kernel,
        out_shape=out_shape,
        grid=(n,),
        in_specs=[
            pl.BlockSpec((None, h + 2, w + 2, cin), lambda b: (b, 0, 0, 0)),
            pl.BlockSpec((9, cin, cout), lambda b: (0, 0, 0)),  # resident weights
            pl.BlockSpec((1, cout), lambda b: (0, 0)),          # resident bias
        ],
        out_specs=out_specs,
        compiler_params=pltpu.CompilerParams(
            dimension_semantics=("parallel",),   # megacore: batch across TCs (v7x)
            vmem_limit_bytes=32 * 1024 * 1024,
        ),
    )(xp, wt, bm)


def relu_pallas(x):
    """Standalone ReLU (only used when it could not be fused into a conv)."""
    shape = x.shape
    lanes = 128 if x.size % 128 == 0 else shape[-1]    # lane-dense 2-D view
    x2 = x.reshape(x.size // lanes, lanes)
    y = pl.pallas_call(
        _relu_kernel,
        out_shape=jax.ShapeDtypeStruct(x2.shape, x.dtype),
    )(x2)
    return y.reshape(shape)


def maxpool2x2_pallas(x_nhwc):
    """Standalone 2x2/2 max-pool (only used when not fused into the previous conv)."""
    n, h, w, c = x_nhwc.shape
    return pl.pallas_call(
        _maxpool2x2_kernel,
        out_shape=jax.ShapeDtypeStruct((n, h // 2, w // 2, c), x_nhwc.dtype),
    )(x_nhwc)


# ----------------------------- "module" -----------------------------

class VGGActivationsPallas:
    """Pallas equivalent of VGG_Activations: normalize, run `features`, collect hooks."""

    def __init__(self, layers, feature_idx):
        self.layers = layers                  # [("conv", w, b) | ("relu",) | ("pool",)]
        self.feature_idx = frozenset(feature_idx)
        self._forward = jax.jit(self._forward_impl)

    def __call__(self, x_nchw):
        return self._forward(x_nchw)

    def _forward_impl(self, x_nchw):
        layers, hooks = self.layers, self.feature_idx
        captured = {}

        x = jnp.transpose(x_nchw, (0, 2, 3, 1))         # NCHW -> NHWC
        mean = jnp.asarray(IMAGENET_MEAN, jnp.float32).reshape(1, 1, 1, 3)
        inv_std = 1.0 / jnp.asarray(IMAGENET_STD, jnp.float32)
        # Mean subtraction fuses (in XLA) into the first conv's pad pass; the
        # 1/std scale is folded into the first conv's weights below.
        x = x - mean
        std_pending = True

        i, n_layers = 0, len(layers)
        while i < n_layers:
            kind = layers[i][0]
            if kind == "conv":
                w, b = layers[i][1], layers[i][2]
                if std_pending:
                    w = w * inv_std.reshape(1, -1, 1, 1)     # fold 1/std (Cin=3)
                    std_pending = False
                # Fuse the following ReLU unless the conv's *pre-activation*
                # output itself is hooked; fuse a following pool too.
                fuse_relu = (i + 1 < n_layers and layers[i + 1][0] == "relu"
                             and i not in hooks)
                fuse_pool = (fuse_relu and i + 2 < n_layers
                             and layers[i + 2][0] == "pool")
                res = conv3x3_fused_pallas(x, w, b, apply_relu=fuse_relu,
                                           with_pool=fuse_pool)
                y = res[0]
                if i in hooks:                 # pre-activation hook (unfused path)
                    captured[i] = y
                if fuse_relu and (i + 1) in hooks:
                    captured[i + 1] = y
                if fuse_pool:
                    pooled = res[1]
                    if (i + 2) in hooks:
                        captured[i + 2] = pooled
                    x = pooled
                    i += 3
                else:
                    x = y
                    i += 2 if fuse_relu else 1
            elif kind == "relu":
                if std_pending:                # degenerate: net starts without conv
                    x = x * inv_std.reshape(1, 1, 1, -1)
                    std_pending = False
                x = relu_pallas(x)
                if i in hooks:
                    captured[i] = x
                i += 1
            elif kind == "pool":
                if std_pending:
                    x = x * inv_std.reshape(1, 1, 1, -1)
                    std_pending = False
                x = maxpool2x2_pallas(x)
                if i in hooks:
                    captured[i] = x
                i += 1
            else:
                raise ValueError(f"unknown layer kind: {kind}")

        # Hooks fire in layer-index order; convert only the captured set back to
        # NCHW, once, at the end (matches what the torch forward hooks observe).
        return [jnp.transpose(captured[idx], (0, 3, 1, 2))
                for idx in sorted(captured)]


def init_vgg_params(key):
    # TODO(synk): synthetic deterministic weights; not a torchvision checkpoint.
    def conv_init(k, cout, cin):
        kw, kb = jax.random.split(k)
        w = jax.random.normal(kw, (cout, cin, 3, 3), jnp.float32) / np.sqrt(9 * cin)
        b = 0.01 * jax.random.normal(kb, (cout,), jnp.float32)
        return w, b

    k0, k1, k2 = jax.random.split(key, 3)
    w0, b0 = conv_init(k0, 8, 3)
    w1, b1 = conv_init(k1, 8, 8)
    w2, b2 = conv_init(k2, 16, 8)
    layers = [
        ("conv", w0, b0),  # 0
        ("relu",),         # 1  <- hook
        ("conv", w1, b1),  # 2
        ("relu",),         # 3  <- hook
        ("pool",),         # 4
        ("conv", w2, b2),  # 5
        ("relu",),         # 6  <- hook
    ]
    return layers


def reference_forward(x_nchw, layers, feature_idx):
    mean = jnp.array(IMAGENET_MEAN, jnp.float32).reshape(1, 3, 1, 1)
    std = jnp.array(IMAGENET_STD, jnp.float32).reshape(1, 3, 1, 1)
    x = (x_nchw - mean) / std
    outs = []
    for idx, layer in enumerate(layers):
        if layer[0] == "conv":
            w, b = layer[1], layer[2]
            x = jax.lax.conv_general_dilated(
                x, w, (1, 1), ((1, 1), (1, 1)),
                dimension_numbers=("NCHW", "OIHW", "NCHW"),
                precision=jax.lax.Precision.HIGHEST,
            ) + b.reshape(1, -1, 1, 1)
        elif layer[0] == "relu":
            x = jnp.maximum(x, 0.0)
        elif layer[0] == "pool":
            x = jax.lax.reduce_window(
                x, -jnp.inf, jax.lax.max, (1, 1, 2, 2), (1, 1, 2, 2), "VALID")
        if idx in feature_idx:
            outs.append(x)
    return outs


if __name__ == "__main__":
    key = jax.random.PRNGKey(0)
    k_in, k_par = jax.random.split(key)

    # batch=2, channels=3 (forced by ImageNet mean/std), spatial=16
    x = jax.random.normal(k_in, (2, 3, 16, 16), jnp.float32)

    layers = init_vgg_params(k_par)
    feature_idx = (1, 3, 6)
    model = VGGActivationsPallas(layers, feature_idx)

    acts = model(x)
    acts = [jax.block_until_ready(a) for a in acts]

    refs = reference_forward(x, layers, feature_idx)
    assert len(acts) == len(refs), (len(acts), len(refs))
    for a, r in zip(acts, refs):
        assert a.shape == r.shape, (a.shape, r.shape)
        # atol 2e-2 absorbs TPU-default MXU matmul rounding vs the
        # Precision.HIGHEST conv reference (activation scale is ~2-4).
        np.testing.assert_allclose(np.asarray(a), np.asarray(r),
                                   rtol=1e-2, atol=2e-2)

    print("KERNEL_OK")
</pallas_src>

<mosaic_0001>
module attributes {stable_mosaic.version = 11 : i64} {
  func.func @_conv3x3_fused_kernel(%arg0: i32, %arg1: memref<1x18x18x3xf32, #tpu.memory_space<vmem>>, %arg2: memref<9x3x8xf32, #tpu.memory_space<vmem>>, %arg3: memref<1x8xf32, #tpu.memory_space<vmem>>, %arg4: memref<1x16x16x8xf32, #tpu.memory_space<vmem>>) attributes {dimension_semantics = [#tpu.dimension_semantics<parallel>], iteration_bounds = array<i64: 2>, scalar_prefetch = 0 : i64, scratch_operands = 0 : i64, tpu.core_type = #tpu.core_type<tc>, window_params = [{transform_indices = @transform_0, window_bounds = array<i64: 1, 18, 18, 3>}, {pipeline_mode = #tpu.pipeline_mode<synchronous>, transform_indices = @transform_1, window_bounds = array<i64: 9, 3, 8>}, {pipeline_mode = #tpu.pipeline_mode<synchronous>, transform_indices = @transform_2, window_bounds = array<i64: 1, 8>}, {transform_indices = @transform_3, window_bounds = array<i64: 1, 16, 16, 8>}]} {
    %c0 = arith.constant 0 : index
    %c0_0 = arith.constant 0 : index
    %c0_1 = arith.constant 0 : index
    %c0_2 = arith.constant 0 : index
    %0 = vector.load %arg1[%c0, %c0_0, %c0_1, %c0_2] : memref<1x18x18x3xf32, #tpu.memory_space<vmem>>, vector<1x18x18x3xf32>
    %1 = vector.shape_cast %0 : vector<1x18x18x3xf32> to vector<18x18x3xf32>
    %2 = vector.extract_strided_slice %1 {offsets = [0, 0, 0], sizes = [16, 16, 3], strides = [1, 1, 1]} : vector<18x18x3xf32> to vector<16x16x3xf32>
    %3 = vector.shape_cast %2 : vector<16x16x3xf32> to vector<256x3xf32>
    %c0_3 = arith.constant 0 : index
    %c0_4 = arith.constant 0 : index
    %c0_5 = arith.constant 0 : index
    %4 = vector.load %arg2[%c0_3, %c0_4, %c0_5] : memref<9x3x8xf32, #tpu.memory_space<vmem>>, vector<1x3x8xf32>
    %5 = vector.shape_cast %4 : vector<1x3x8xf32> to vector<3x8xf32>
    %cst = arith.constant dense<0.000000e+00> : vector<256x8xf32>
    %6 = tpu.matmul %3, %5, %cst {dimension_numbers = #tpu.dot_dimension_numbers<[1], [0], [0], [1], [0, 0, 1, 1], [], []>} : vector<256x3xf32>, vector<3x8xf32>, vector<256x8xf32> -> vector<256x8xf32>
    %7 = vector.extract_strided_slice %1 {offsets = [0, 1, 0], sizes = [16, 16, 3], strides = [1, 1, 1]} : vector<18x18x3xf32> to vector<16x16x3xf32>
    %8 = vector.shape_cast %7 : vector<16x16x3xf32> to vector<256x3xf32>
    %c1 = arith.constant 1 : index
    %c0_6 = arith.constant 0 : index
    %c0_7 = arith.constant 0 : index
    %9 = vector.load %arg2[%c1, %c0_6, %c0_7] : memref<9x3x8xf32, #tpu.memory_space<vmem>>, vector<1x3x8xf32>
    %10 = vector.shape_cast %9 : vector<1x3x8xf32> to vector<3x8xf32>
    %cst_8 = arith.constant dense<0.000000e+00> : vector<256x8xf32>
    %11 = tpu.matmul %8, %10, %cst_8 {dimension_numbers = #tpu.dot_dimension_numbers<[1], [0], [0], [1], [0, 0, 1, 1], [], []>} : vector<256x3xf32>, vector<3x8xf32>, vector<256x8xf32> -> vector<256x8xf32>
    %12 = arith.addf %6, %11 : vector<256x8xf32>
    %13 = vector.extract_strided_slice %1 {offsets = [0, 2, 0], sizes = [16, 16, 3], strides = [1, 1, 1]} : vector<18x18x3xf32> to vector<16x16x3xf32>
    %14 = vector.shape_cast %13 : vector<16x16x3xf32> to vector<256x3xf32>
    %c2 = arith.constant 2 : index
    %c0_9 = arith.constant 0 : index
    %c0_10 = arith.constant 0 : index
    %15 = vector.load %arg2[%c2, %c0_9, %c0_10] : memref<9x3x8xf32, #tpu.memory_space<vmem>>, vector<1x3x8xf32>
    %16 = vector.shape_cast %15 : vector<1x3x8xf32> to vector<3x8xf32>
    %cst_11 = arith.constant dense<0.000000e+00> : vector<256x8xf32>
    %17 = tpu.matmul %14, %16, %cst_11 {dimension_numbers = #tpu.dot_dimension_numbers<[1], [0], [0], [1], [0, 0, 1, 1], [], []>} : vector<256x3xf32>, vector<3x8xf32>, vector<256x8xf32> -> vector<256x8xf32>
    %18 = arith.addf %12, %17 : vector<256x8xf32>
    %19 = vector.extract_strided_slice %1 {offsets = [1, 0, 0], sizes = [16, 16, 3], strides = [1, 1, 1]} : vector<18x18x3xf32> to vector<16x16x3xf32>
    %20 = vector.shape_cast %19 : vector<16x16x3xf32> to vector<256x3xf32>
    %c3 = arith.constant 3 : index
    %c0_12 = arith.constant 0 : index
    %c0_13 = arith.constant 0 : index
    %21 = vector.load %arg2[%c3, %c0_12, %c0_13] : memref<9x3x8xf32, #tpu.memory_space<vmem>>, vector<1x3x8xf32>
    %22 = vector.shape_cast %21 : vector<1x3x8xf32> to vector<3x8xf32>
    %cst_14 = arith.constant dense<0.000000e+00> : vector<256x8xf32>
    %23 = tpu.matmul %20, %22, %cst_14 {dimension_numbers = #tpu.dot_dimension_numbers<[1], [0], [0], [1], [0, 0, 1, 1], [], []>} : vector<256x3xf32>, vector<3x8xf32>, vector<256x8xf32> -> vector<256x8xf32>
    %24 = arith.addf %18, %23 : vector<256x8xf32>
    %25 = vector.extract_strided_slice %1 {offsets = [1, 1, 0], sizes = [16, 16, 3], strides = [1, 1, 1]} : vector<18x18x3xf32> to vector<16x16x3xf32>
    %26 = vector.shape_cast %25 : vector<16x16x3xf32> to vector<256x3xf32>
    %c4 = arith.constant 4 : index
    %c0_15 = arith.constant 0 : index
    %c0_16 = arith.constant 0 : index
    %27 = vector.load %arg2[%c4, %c0_15, %c0_16] : memref<9x3x8xf32, #tpu.memory_space<vmem>>, vector<1x3x8xf32>
    %28 = vector.shape_cast %27 : vector<1x3x8xf32> to vector<3x8xf32>
    %cst_17 = arith.constant dense<0.000000e+00> : vector<256x8xf32>
    %29 = tpu.matmul %26, %28, %cst_17 {dimension_numbers = #tpu.dot_dimension_numbers<[1], [0], [0], [1], [0, 0, 1, 1], [], []>} : vector<256x3xf32>, vector<3x8xf32>, vector<256x8xf32> -> vector<256x8xf32>
    %30 = arith.addf %24, %29 : vector<256x8xf32>
    %31 = vector.extract_strided_slice %1 {offsets = [1, 2, 0], sizes = [16, 16, 3], strides = [1, 1, 1]} : vector<18x18x3xf32> to vector<16x16x3xf32>
    %32 = vector.shape_cast %31 : vector<16x16x3xf32> to vector<256x3xf32>
    %c5 = arith.constant 5 : index
    %c0_18 = arith.constant 0 : index
    %c0_19 = arith.constant 0 : index
    %33 = vector.load %arg2[%c5, %c0_18, %c0_19] : memref<9x3x8xf32, #tpu.memory_space<vmem>>, vector<1x3x8xf32>
    %34 = vector.shape_cast %33 : vector<1x3x8xf32> to vector<3x8xf32>
    %cst_20 = arith.constant dense<0.000000e+00> : vector<256x8xf32>
    %35 = tpu.matmul %32, %34, %cst_20 {dimension_numbers = #tpu.dot_dimension_numbers<[1], [0], [0], [1], [0, 0, 1, 1], [], []>} : vector<256x3xf32>, vector<3x8xf32>, vector<256x8xf32> -> vector<256x8xf32>
    %36 = arith.addf %30, %35 : vector<256x8xf32>
    %37 = vector.extract_strided_slice %1 {offsets = [2, 0, 0], sizes = [16, 16, 3], strides = [1, 1, 1]} : vector<18x18x3xf32> to vector<16x16x3xf32>
    %38 = vector.shape_cast %37 : vector<16x16x3xf32> to vector<256x3xf32>
    %c6 = arith.constant 6 : index
    %c0_21 = arith.constant 0 : index
    %c0_22 = arith.constant 0 : index
    %39 = vector.load %arg2[%c6, %c0_21, %c0_22] : memref<9x3x8xf32, #tpu.memory_space<vmem>>, vector<1x3x8xf32>
    %40 = vector.shape_cast %39 : vector<1x3x8xf32> to vector<3x8xf32>
    %cst_23 = arith.constant dense<0.000000e+00> : vector<256x8xf32>
    %41 = tpu.matmul %38, %40, %cst_23 {dimension_numbers = #tpu.dot_dimension_numbers<[1], [0], [0], [1], [0, 0, 1, 1], [], []>} : vector<256x3xf32>, vector<3x8xf32>, vector<256x8xf32> -> vector<256x8xf32>
    %42 = arith.addf %36, %41 : vector<256x8xf32>
    %43 = vector.extract_strided_slice %1 {offsets = [2, 1, 0], sizes = [16, 16, 3], strides = [1, 1, 1]} : vector<18x18x3xf32> to vector<16x16x3xf32>
    %44 = vector.shape_cast %43 : vector<16x16x3xf32> to vector<256x3xf32>
    %c7 = arith.constant 7 : index
    %c0_24 = arith.constant 0 : index
    %c0_25 = arith.constant 0 : index
    %45 = vector.load %arg2[%c7, %c0_24, %c0_25] : memref<9x3x8xf32, #tpu.memory_space<vmem>>, vector<1x3x8xf32>
    %46 = vector.shape_cast %45 : vector<1x3x8xf32> to vector<3x8xf32>
    %cst_26 = arith.constant dense<0.000000e+00> : vector<256x8xf32>
    %47 = tpu.matmul %44, %46, %cst_26 {dimension_numbers = #tpu.dot_dimension_numbers<[1], [0], [0], [1], [0, 0, 1, 1], [], []>} : vector<256x3xf32>, vector<3x8xf32>, vector<256x8xf32> -> vector<256x8xf32>
    %48 = arith.addf %42, %47 : vector<256x8xf32>
    %49 = vector.extract_strided_slice %1 {offsets = [2, 2, 0], sizes = [16, 16, 3], strides = [1, 1, 1]} : vector<18x18x3xf32> to vector<16x16x3xf32>
    %50 = vector.shape_cast %49 : vector<16x16x3xf32> to vector<256x3xf32>
    %c8 = arith.constant 8 : index
    %c0_27 = arith.constant 0 : index
    %c0_28 = arith.constant 0 : index
    %51 = vector.load %arg2[%c8, %c0_27, %c0_28] : memref<9x3x8xf32, #tpu.memory_space<vmem>>, vector<1x3x8xf32>
    %52 = vector.shape_cast %51 : vector<1x3x8xf32> to vector<3x8xf32>
    %cst_29 = arith.constant dense<0.000000e+00> : vector<256x8xf32>
    %53 = tpu.matmul %50, %52, %cst_29 {dimension_numbers = #tpu.dot_dimension_numbers<[1], [0], [0], [1], [0, 0, 1, 1], [], []>} : vector<256x3xf32>, vector<3x8xf32>, vector<256x8xf32> -> vector<256x8xf32>
    %54 = arith.addf %48, %53 : vector<256x8xf32>
    %c0_30 = arith.constant 0 : index
    %c0_31 = arith.constant 0 : index
    %55 = vector.load %arg3[%c0_30, %c0_31] : memref<1x8xf32, #tpu.memory_space<vmem>>, vector<1x8xf32>
    %56 = vector.broadcast %55 : vector<1x8xf32> to vector<256x8xf32>
    %57 = arith.addf %54, %56 : vector<256x8xf32>
    %cst_32 = arith.constant 0.000000e+00 : f32
    %58 = vector.broadcast %cst_32 : f32 to vector<256x8xf32>
    %59 = arith.maximumf %57, %58 : vector<256x8xf32>
    %60 = vector.shape_cast %59 : vector<256x8xf32> to vector<16x16x8xf32>
    %c0_33 = arith.constant 0 : index
    %c0_34 = arith.constant 0 : index
    %c0_35 = arith.constant 0 : index
    %c0_36 = arith.constant 0 : index
    %61 = vector.load %arg4[%c0_33, %c0_34, %c0_35, %c0_36] : memref<1x16x16x8xf32, #tpu.memory_space<vmem>>, vector<1x16x16x8xf32>
    %62 = vector.shape_cast %61 : vector<1x16x16x8xf32> to vector<16x16x8xf32>
    %63 = vector.shape_cast %60 : vector<16x16x8xf32> to vector<1x16x16x8xf32>
    tpu.vector_store %arg4[%c0_33, %c0_34, %c0_35, %c0_36], %63 {strides = array<i32>} : memref<1x16x16x8xf32, #tpu.memory_space<vmem>>, vector<1x16x16x8xf32>,
    return
  }
  func.func @transform_0(%arg0: i32) -> (i32, i32, i32, i32) {
    %c0_i32 = arith.constant 0 : i32
    %c0_i32_0 = arith.constant 0 : i32
    %c0_i32_1 = arith.constant 0 : i32
    %c0_i32_2 = arith.constant 0 : i32
    return %arg0, %c0_i32, %c0_i32_0, %c0_i32_1 : i32, i32, i32, i32
  }
  func.func @transform_1(%arg0: i32) -> (i32, i32, i32) {
    %c0_i32 = arith.constant 0 : i32
    %c0_i32_0 = arith.constant 0 : i32
    %c0_i32_1 = arith.constant 0 : i32
    %c0_i32_2 = arith.constant 0 : i32
    return %c0_i32, %c0_i32_0, %c0_i32_1 : i32, i32, i32
  }
  func.func @transform_2(%arg0: i32) -> (i32, i32) {
    %c0_i32 = arith.constant 0 : i32
    %c0_i32_0 = arith.constant 0 : i32
    %c0_i32_1 = arith.constant 0 : i32
    return %c0_i32, %c0_i32_0 : i32, i32
  }
  func.func @transform_3(%arg0: i32) -> (i32, i32, i32, i32) {
    %c0_i32 = arith.constant 0 : i32
    %c0_i32_0 = arith.constant 0 : i32
    %c0_i32_1 = arith.constant 0 : i32
    %c0_i32_2 = arith.constant 0 : i32
    return %arg0, %c0_i32, %c0_i32_0, %c0_i32_1 : i32, i32, i32, i32
  }
}

module attributes {stable_mosaic.version = 11 : i64} {
  func.func @_conv3x3_fused_kernel(%arg0: i32, %arg1: memref<1x18x18x8xf32, #tpu.memory_space<vmem>>, %arg2: memref<9x8x8xf32, #tpu.memory_space<vmem>>, %arg3: memref<1x8xf32, #tpu.memory_space<vmem>>, %arg4: memref<1x16x16x8xf32, #tpu.memory_space<vmem>>, %arg5: memref<1x8x8x8xf32, #tpu.memory_space<vmem>>) attributes {dimension_semantics = [#tpu.dimension_semantics<parallel>], iteration_bounds = array<i64: 2>, scalar_prefetch = 0 : i64, scratch_operands = 0 : i64, tpu.core_type = #tpu.core_type<tc>, window_params = [{transform_indices = @transform_0, window_bounds = array<i64: 1, 18, 18, 8>}, {pipeline_mode = #tpu.pipeline_mode<synchronous>, transform_indices = @transform_1, window_bounds = array<i64: 9, 8, 8>}, {pipeline_mode = #tpu.pipeline_mode<synchronous>, transform_indices = @transform_2, window_bounds = array<i64: 1, 8>}, {transform_indices = @transform_3, window_bounds = array<i64: 1, 16, 16, 8>}, {transform_indices = @transform_4, window_bounds = array<i64: 1, 8, 8, 8>}]} {
    %c0 = arith.constant 0 : index
    %c0_0 = arith.constant 0 : index
    %c0_1 = arith.constant 0 : index
    %c0_2 = arith.constant 0 : index
    %0 = vector.load %arg1[%c0, %c0_0, %c0_1, %c0_2] : memref<1x18x18x8xf32, #tpu.memory_space<vmem>>, vector<1x18x18x8xf32>
    %1 = vector.shape_cast %0 : vector<1x18x18x8xf32> to vector<18x18x8xf32>
    %2 = vector.extract_strided_slice %1 {offsets = [0, 0, 0], sizes = [16, 16, 8], strides = [1, 1, 1]} : vector<18x18x8xf32> to vector<16x16x8xf32>
    %3 = vector.shape_cast %2 : vector<16x16x8xf32> to vector<256x8xf32>
    %c0_3 = arith.constant 0 : index
    %c0_4 = arith.constant 0 : index
    %c0_5 = arith.constant 0 : index
    %4 = vector.load %arg2[%c0_3, %c0_4, %c0_5] : memref<9x8x8xf32, #tpu.memory_space<vmem>>, vector<1x8x8xf32>
    %5 = vector.shape_cast %4 : vector<1x8x8xf32> to vector<8x8xf32>
    %cst = arith.constant dense<0.000000e+00> : vector<256x8xf32>
    %6 = tpu.matmul %3, %5, %cst {dimension_numbers = #tpu.dot_dimension_numbers<[1], [0], [0], [1], [0, 0, 1, 1], [], []>} : vector<256x8xf32>, vector<8x8xf32>, vector<256x8xf32> -> vector<256x8xf32>
    %7 = vector.extract_strided_slice %1 {offsets = [0, 1, 0], sizes = [16, 16, 8], strides = [1, 1, 1]} : vector<18x18x8xf32> to vector<16x16x8xf32>
    %8 = vector.shape_cast %7 : vector<16x16x8xf32> to vector<256x8xf32>
    %c1 = arith.constant 1 : index
    %c0_6 = arith.constant 0 : index
    %c0_7 = arith.constant 0 : index
    %9 = vector.load %arg2[%c1, %c0_6, %c0_7] : memref<9x8x8xf32, #tpu.memory_space<vmem>>, vector<1x8x8xf32>
    %10 = vector.shape_cast %9 : vector<1x8x8xf32> to vector<8x8xf32>
    %cst_8 = arith.constant dense<0.000000e+00> : vector<256x8xf32>
    %11 = tpu.matmul %8, %10, %cst_8 {dimension_numbers = #tpu.dot_dimension_numbers<[1], [0], [0], [1], [0, 0, 1, 1], [], []>} : vector<256x8xf32>, vector<8x8xf32>, vector<256x8xf32> -> vector<256x8xf32>
    %12 = arith.addf %6, %11 : vector<256x8xf32>
    %13 = vector.extract_strided_slice %1 {offsets = [0, 2, 0], sizes = [16, 16, 8], strides = [1, 1, 1]} : vector<18x18x8xf32> to vector<16x16x8xf32>
    %14 = vector.shape_cast %13 : vector<16x16x8xf32> to vector<256x8xf32>
    %c2 = arith.constant 2 : index
    %c0_9 = arith.constant 0 : index
    %c0_10 = arith.constant 0 : index
    %15 = vector.load %arg2[%c2, %c0_9, %c0_10] : memref<9x8x8xf32, #tpu.memory_space<vmem>>, vector<1x8x8xf32>
    %16 = vector.shape_cast %15 : vector<1x8x8xf32> to vector<8x8xf32>
    %cst_11 = arith.constant dense<0.000000e+00> : vector<256x8xf32>
    %17 = tpu.matmul %14, %16, %cst_11 {dimension_numbers = #tpu.dot_dimension_numbers<[1], [0], [0], [1], [0, 0, 1, 1], [], []>} : vector<256x8xf32>, vector<8x8xf32>, vector<256x8xf32> -> vector<256x8xf32>
    %18 = arith.addf %12, %17 : vector<256x8xf32>
    %19 = vector.extract_strided_slice %1 {offsets = [1, 0, 0], sizes = [16, 16, 8], strides = [1, 1, 1]} : vector<18x18x8xf32> to vector<16x16x8xf32>
    %20 = vector.shape_cast %19 : vector<16x16x8xf32> to vector<256x8xf32>
    %c3 = arith.constant 3 : index
    %c0_12 = arith.constant 0 : index
    %c0_13 = arith.constant 0 : index
    %21 = vector.load %arg2[%c3, %c0_12, %c0_13] : memref<9x8x8xf32, #tpu.memory_space<vmem>>, vector<1x8x8xf32>
    %22 = vector.shape_cast %21 : vector<1x8x8xf32> to vector<8x8xf32>
    %cst_14 = arith.constant dense<0.000000e+00> : vector<256x8xf32>
    %23 = tpu.matmul %20, %22, %cst_14 {dimension_numbers = #tpu.dot_dimension_numbers<[1], [0], [0], [1], [0, 0, 1, 1], [], []>} : vector<256x8xf32>, vector<8x8xf32>, vector<256x8xf32> -> vector<256x8xf32>
    %24 = arith.addf %18, %23 : vector<256x8xf32>
    %25 = vector.extract_strided_slice %1 {offsets = [1, 1, 0], sizes = [16, 16, 8], strides = [1, 1, 1]} : vector<18x18x8xf32> to vector<16x16x8xf32>
    %26 = vector.shape_cast %25 : vector<16x16x8xf32> to vector<256x8xf32>
    %c4 = arith.constant 4 : index
    %c0_15 = arith.constant 0 : index
    %c0_16 = arith.constant 0 : index
    %27 = vector.load %arg2[%c4, %c0_15, %c0_16] : memref<9x8x8xf32, #tpu.memory_space<vmem>>, vector<1x8x8xf32>
    %28 = vector.shape_cast %27 : vector<1x8x8xf32> to vector<8x8xf32>
    %cst_17 = arith.constant dense<0.000000e+00> : vector<256x8xf32>
    %29 = tpu.matmul %26, %28, %cst_17 {dimension_numbers = #tpu.dot_dimension_numbers<[1], [0], [0], [1], [0, 0, 1, 1], [], []>} : vector<256x8xf32>, vector<8x8xf32>, vector<256x8xf32> -> vector<256x8xf32>
    %30 = arith.addf %24, %29 : vector<256x8xf32>
    %31 = vector.extract_strided_slice %1 {offsets = [1, 2, 0], sizes = [16, 16, 8], strides = [1, 1, 1]} : vector<18x18x8xf32> to vector<16x16x8xf32>
    %32 = vector.shape_cast %31 : vector<16x16x8xf32> to vector<256x8xf32>
    %c5 = arith.constant 5 : index
    %c0_18 = arith.constant 0 : index
    %c0_19 = arith.constant 0 : index
    %33 = vector.load %arg2[%c5, %c0_18, %c0_19] : memref<9x8x8xf32, #tpu.memory_space<vmem>>, vector<1x8x8xf32>
    %34 = vector.shape_cast %33 : vector<1x8x8xf32> to vector<8x8xf32>
    %cst_20 = arith.constant dense<0.000000e+00> : vector<256x8xf32>
    %35 = tpu.matmul %32, %34, %cst_20 {dimension_numbers = #tpu.dot_dimension_numbers<[1], [0], [0], [1], [0, 0, 1, 1], [], []>} : vector<256x8xf32>, vector<8x8xf32>, vector<256x8xf32> -> vector<256x8xf32>
    %36 = arith.addf %30, %35 : vector<256x8xf32>
    %37 = vector.extract_strided_slice %1 {offsets = [2, 0, 0], sizes = [16, 16, 8], strides = [1, 1, 1]} : vector<18x18x8xf32> to vector<16x16x8xf32>
    %38 = vector.shape_cast %37 : vector<16x16x8xf32> to vector<256x8xf32>
    %c6 = arith.constant 6 : index
    %c0_21 = arith.constant 0 : index
    %c0_22 = arith.constant 0 : index
    %39 = vector.load %arg2[%c6, %c0_21, %c0_22] : memref<9x8x8xf32, #tpu.memory_space<vmem>>, vector<1x8x8xf32>
    %40 = vector.shape_cast %39 : vector<1x8x8xf32> to vector<8x8xf32>
    %cst_23 = arith.constant dense<0.000000e+00> : vector<256x8xf32>
    %41 = tpu.matmul %38, %40, %cst_23 {dimension_numbers = #tpu.dot_dimension_numbers<[1], [0], [0], [1], [0, 0, 1, 1], [], []>} : vector<256x8xf32>, vector<8x8xf32>, vector<256x8xf32> -> vector<256x8xf32>
    %42 = arith.addf %36, %41 : vector<256x8xf32>
    %43 = vector.extract_strided_slice %1 {offsets = [2, 1, 0], sizes = [16, 16, 8], strides = [1, 1, 1]} : vector<18x18x8xf32> to vector<16x16x8xf32>
    %44 = vector.shape_cast %43 : vector<16x16x8xf32> to vector<256x8xf32>
    %c7 = arith.constant 7 : index
    %c0_24 = arith.constant 0 : index
    %c0_25 = arith.constant 0 : index
    %45 = vector.load %arg2[%c7, %c0_24, %c0_25] : memref<9x8x8xf32, #tpu.memory_space<vmem>>, vector<1x8x8xf32>
    %46 = vector.shape_cast %45 : vector<1x8x8xf32> to vector<8x8xf32>
    %cst_26 = arith.constant dense<0.000000e+00> : vector<256x8xf32>
    %47 = tpu.matmul %44, %46, %cst_26 {dimension_numbers = #tpu.dot_dimension_numbers<[1], [0], [0], [1], [0, 0, 1, 1], [], []>} : vector<256x8xf32>, vector<8x8xf32>, vector<256x8xf32> -> vector<256x8xf32>
    %48 = arith.addf %42, %47 : vector<256x8xf32>
    %49 = vector.extract_strided_slice %1 {offsets = [2, 2, 0], sizes = [16, 16, 8], strides = [1, 1, 1]} : vector<18x18x8xf32> to vector<16x16x8xf32>
    %50 = vector.shape_cast %49 : vector<16x16x8xf32> to vector<256x8xf32>
    %c8 = arith.constant 8 : index
    %c0_27 = arith.constant 0 : index
    %c0_28 = arith.constant 0 : index
    %51 = vector.load %arg2[%c8, %c0_27, %c0_28] : memref<9x8x8xf32, #tpu.memory_space<vmem>>, vector<1x8x8xf32>
    %52 = vector.shape_cast %51 : vector<1x8x8xf32> to vector<8x8xf32>
    %cst_29 = arith.constant dense<0.000000e+00> : vector<256x8xf32>
    %53 = tpu.matmul %50, %52, %cst_29 {dimension_numbers = #tpu.dot_dimension_numbers<[1], [0], [0], [1], [0, 0, 1, 1], [], []>} : vector<256x8xf32>, vector<8x8xf32>, vector<256x8xf32> -> vector<256x8xf32>
    %54 = arith.addf %48, %53 : vector<256x8xf32>
    %c0_30 = arith.constant 0 : index
    %c0_31 = arith.constant 0 : index
    %55 = vector.load %arg3[%c0_30, %c0_31] : memref<1x8xf32, #tpu.memory_space<vmem>>, vector<1x8xf32>
    %56 = vector.broadcast %55 : vector<1x8xf32> to vector<256x8xf32>
    %57 = arith.addf %54, %56 : vector<256x8xf32>
    %cst_32 = arith.constant 0.000000e+00 : f32
    %58 = vector.broadcast %cst_32 : f32 to vector<256x8xf32>
    %59 = arith.maximumf %57, %58 : vector<256x8xf32>
    %60 = vector.shape_cast %59 : vector<256x8xf32> to vector<16x16x8xf32>
    %c0_33 = arith.constant 0 : index
    %c0_34 = arith.constant 0 : index
    %c0_35 = arith.constant 0 : index
    %c0_36 = arith.constant 0 : index
    %61 = vector.load %arg4[%c0_33, %c0_34, %c0_35, %c0_36] : memref<1x16x16x8xf32, #tpu.memory_space<vmem>>, vector<1x16x16x8xf32>
    %62 = vector.shape_cast %61 : vector<1x16x16x8xf32> to vector<16x16x8xf32>
    %63 = vector.shape_cast %60 : vector<16x16x8xf32> to vector<1x16x16x8xf32>
    tpu.vector_store %arg4[%c0_33, %c0_34, %c0_35, %c0_36], %63 {strides = array<i32>} : memref<1x16x16x8xf32, #tpu.memory_space<vmem>>, vector<1x16x16x8xf32>,
    %64 = vector.shape_cast %59 : vector<256x8xf32> to vector<8x2x8x2x8xf32>
    %cst_37 = arith.constant dense<0xFF800000> : vector<8x2x8x8xf32>
    %65 = vector.multi_reduction <maximumf>, %64, %cst_37 [3] : vector<8x2x8x2x8xf32> to vector<8x2x8x8xf32>
    %cst_38 = arith.constant dense<0xFF800000> : vector<8x8x8xf32>
    %66 = vector.multi_reduction <maximumf>, %65, %cst_38 [1] : vector<8x2x8x8xf32> to vector<8x8x8xf32>
    %c0_39 = arith.constant 0 : index
    %c0_40 = arith.constant 0 : index
    %c0_41 = arith.constant 0 : index
    %c0_42 = arith.constant 0 : index
    %67 = vector.load %arg5[%c0_39, %c0_40, %c0_41, %c0_42] : memref<1x8x8x8xf32, #tpu.memory_space<vmem>>, vector<1x8x8x8xf32>
    %68 = vector.shape_cast %67 : vector<1x8x8x8xf32> to vector<8x8x8xf32>
    %69 = vector.shape_cast %66 : vector<8x8x8xf32> to vector<1x8x8x8xf32>
    tpu.vector_store %arg5[%c0_39, %c0_40, %c0_41, %c0_42], %69 {strides = array<i32>} : memref<1x8x8x8xf32, #tpu.memory_space<vmem>>, vector<1x8x8x8xf32>,
    return
  }
  func.func @transform_0(%arg0: i32) -> (i32, i32, i32, i32) {
    %c0_i32 = arith.constant 0 : i32
    %c0_i32_0 = arith.constant 0 : i32
    %c0_i32_1 = arith.constant 0 : i32
    %c0_i32_2 = arith.constant 0 : i32
    return %arg0, %c0_i32, %c0_i32_0, %c0_i32_1 : i32, i32, i32, i32
  }
  func.func @transform_1(%arg0: i32) -> (i32, i32, i32) {
    %c0_i32 = arith.constant 0 : i32
    %c0_i32_0 = arith.constant 0 : i32
    %c0_i32_1 = arith.constant 0 : i32
    %c0_i32_2 = arith.constant 0 : i32
    return %c0_i32, %c0_i32_0, %c0_i32_1 : i32, i32, i32
  }
  func.func @transform_2(%arg0: i32) -> (i32, i32) {
    %c0_i32 = arith.constant 0 : i32
    %c0_i32_0 = arith.constant 0 : i32
    %c0_i32_1 = arith.constant 0 : i32
    return %c0_i32, %c0_i32_0 : i32, i32
  }
  func.func @transform_3(%arg0: i32) -> (i32, i32, i32, i32) {
    %c0_i32 = arith.constant 0 : i32
    %c0_i32_0 = arith.constant 0 : i32
    %c0_i32_1 = arith.constant 0 : i32
    %c0_i32_2 = arith.constant 0 : i32
    return %arg0, %c0_i32, %c0_i32_0, %c0_i32_1 : i32, i32, i32, i32
  }
  func.func @transform_4(%arg0: i32) -> (i32, i32, i32, i32) {
    %c0_i32 = arith.constant 0 : i32
    %c0_i32_0 = arith.constant 0 : i32
    %c0_i32_1 = arith.constant 0 : i32
    %c0_i32_2 = arith.constant 0 : i32
    return %arg0, %c0_i32, %c0_i32_0, %c0_i32_1 : i32, i32, i32, i32
  }
}

module attributes {stable_mosaic.version = 11 : i64} {
  func.func @_conv3x3_fused_kernel(%arg0: i32, %arg1: memref<1x10x10x8xf32, #tpu.memory_space<vmem>>, %arg2: memref<9x8x16xf32, #tpu.memory_space<vmem>>, %arg3: memref<1x16xf32, #tpu.memory_space<vmem>>, %arg4: memref<1x8x8x16xf32, #tpu.memory_space<vmem>>) attributes {dimension_semantics = [#tpu.dimension_semantics<parallel>], iteration_bounds = array<i64: 2>, scalar_prefetch = 0 : i64, scratch_operands = 0 : i64, tpu.core_type = #tpu.core_type<tc>, window_params = [{transform_indices = @transform_0, window_bounds = array<i64: 1, 10, 10, 8>}, {pipeline_mode = #tpu.pipeline_mode<synchronous>, transform_indices = @transform_1, window_bounds = array<i64: 9, 8, 16>}, {pipeline_mode = #tpu.pipeline_mode<synchronous>, transform_indices = @transform_2, window_bounds = array<i64: 1, 16>}, {transform_indices = @transform_3, window_bounds = array<i64: 1, 8, 8, 16>}]} {
    %c0 = arith.constant 0 : index
    %c0_0 = arith.constant 0 : index
    %c0_1 = arith.constant 0 : index
    %c0_2 = arith.constant 0 : index
    %0 = vector.load %arg1[%c0, %c0_0, %c0_1, %c0_2] : memref<1x10x10x8xf32, #tpu.memory_space<vmem>>, vector<1x10x10x8xf32>
    %1 = vector.shape_cast %0 : vector<1x10x10x8xf32> to vector<10x10x8xf32>
    %2 = vector.extract_strided_slice %1 {offsets = [0, 0, 0], sizes = [8, 8, 8], strides = [1, 1, 1]} : vector<10x10x8xf32> to vector<8x8x8xf32>
    %3 = vector.shape_cast %2 : vector<8x8x8xf32> to vector<64x8xf32>
    %c0_3 = arith.constant 0 : index
    %c0_4 = arith.constant 0 : index
    %c0_5 = arith.constant 0 : index
    %4 = vector.load %arg2[%c0_3, %c0_4, %c0_5] : memref<9x8x16xf32, #tpu.memory_space<vmem>>, vector<1x8x16xf32>
    %5 = vector.shape_cast %4 : vector<1x8x16xf32> to vector<8x16xf32>
    %cst = arith.constant dense<0.000000e+00> : vector<64x16xf32>
    %6 = tpu.matmul %3, %5, %cst {dimension_numbers = #tpu.dot_dimension_numbers<[1], [0], [0], [1], [0, 0, 1, 1], [], []>} : vector<64x8xf32>, vector<8x16xf32>, vector<64x16xf32> -> vector<64x16xf32>
    %7 = vector.extract_strided_slice %1 {offsets = [0, 1, 0], sizes = [8, 8, 8], strides = [1, 1, 1]} : vector<10x10x8xf32> to vector<8x8x8xf32>
    %8 = vector.shape_cast %7 : vector<8x8x8xf32> to vector<64x8xf32>
    %c1 = arith.constant 1 : index
    %c0_6 = arith.constant 0 : index
    %c0_7 = arith.constant 0 : index
    %9 = vector.load %arg2[%c1, %c0_6, %c0_7] : memref<9x8x16xf32, #tpu.memory_space<vmem>>, vector<1x8x16xf32>
    %10 = vector.shape_cast %9 : vector<1x8x16xf32> to vector<8x16xf32>
    %cst_8 = arith.constant dense<0.000000e+00> : vector<64x16xf32>
    %11 = tpu.matmul %8, %10, %cst_8 {dimension_numbers = #tpu.dot_dimension_numbers<[1], [0], [0], [1], [0, 0, 1, 1], [], []>} : vector<64x8xf32>, vector<8x16xf32>, vector<64x16xf32> -> vector<64x16xf32>
    %12 = arith.addf %6, %11 : vector<64x16xf32>
    %13 = vector.extract_strided_slice %1 {offsets = [0, 2, 0], sizes = [8, 8, 8], strides = [1, 1, 1]} : vector<10x10x8xf32> to vector<8x8x8xf32>
    %14 = vector.shape_cast %13 : vector<8x8x8xf32> to vector<64x8xf32>
    %c2 = arith.constant 2 : index
    %c0_9 = arith.constant 0 : index
    %c0_10 = arith.constant 0 : index
    %15 = vector.load %arg2[%c2, %c0_9, %c0_10] : memref<9x8x16xf32, #tpu.memory_space<vmem>>, vector<1x8x16xf32>
    %16 = vector.shape_cast %15 : vector<1x8x16xf32> to vector<8x16xf32>
    %cst_11 = arith.constant dense<0.000000e+00> : vector<64x16xf32>
    %17 = tpu.matmul %14, %16, %cst_11 {dimension_numbers = #tpu.dot_dimension_numbers<[1], [0], [0], [1], [0, 0, 1, 1], [], []>} : vector<64x8xf32>, vector<8x16xf32>, vector<64x16xf32> -> vector<64x16xf32>
    %18 = arith.addf %12, %17 : vector<64x16xf32>
    %19 = vector.extract_strided_slice %1 {offsets = [1, 0, 0], sizes = [8, 8, 8], strides = [1, 1, 1]} : vector<10x10x8xf32> to vector<8x8x8xf32>
    %20 = vector.shape_cast %19 : vector<8x8x8xf32> to vector<64x8xf32>
    %c3 = arith.constant 3 : index
    %c0_12 = arith.constant 0 : index
    %c0_13 = arith.constant 0 : index
    %21 = vector.load %arg2[%c3, %c0_12, %c0_13] : memref<9x8x16xf32, #tpu.memory_space<vmem>>, vector<1x8x16xf32>
    %22 = vector.shape_cast %21 : vector<1x8x16xf32> to vector<8x16xf32>
    %cst_14 = arith.constant dense<0.000000e+00> : vector<64x16xf32>
    %23 = tpu.matmul %20, %22, %cst_14 {dimension_numbers = #tpu.dot_dimension_numbers<[1], [0], [0], [1], [0, 0, 1, 1], [], []>} : vector<64x8xf32>, vector<8x16xf32>, vector<64x16xf32> -> vector<64x16xf32>
    %24 = arith.addf %18, %23 : vector<64x16xf32>
    %25 = vector.extract_strided_slice %1 {offsets = [1, 1, 0], sizes = [8, 8, 8], strides = [1, 1, 1]} : vector<10x10x8xf32> to vector<8x8x8xf32>
    %26 = vector.shape_cast %25 : vector<8x8x8xf32> to vector<64x8xf32>
    %c4 = arith.constant 4 : index
    %c0_15 = arith.constant 0 : index
    %c0_16 = arith.constant 0 : index
    %27 = vector.load %arg2[%c4, %c0_15, %c0_16] : memref<9x8x16xf32, #tpu.memory_space<vmem>>, vector<1x8x16xf32>
    %28 = vector.shape_cast %27 : vector<1x8x16xf32> to vector<8x16xf32>
    %cst_17 = arith.constant dense<0.000000e+00> : vector<64x16xf32>
    %29 = tpu.matmul %26, %28, %cst_17 {dimension_numbers = #tpu.dot_dimension_numbers<[1], [0], [0], [1], [0, 0, 1, 1], [], []>} : vector<64x8xf32>, vector<8x16xf32>, vector<64x16xf32> -> vector<64x16xf32>
    %30 = arith.addf %24, %29 : vector<64x16xf32>
    %31 = vector.extract_strided_slice %1 {offsets = [1, 2, 0], sizes = [8, 8, 8], strides = [1, 1, 1]} : vector<10x10x8xf32> to vector<8x8x8xf32>
    %32 = vector.shape_cast %31 : vector<8x8x8xf32> to vector<64x8xf32>
    %c5 = arith.constant 5 : index
    %c0_18 = arith.constant 0 : index
    %c0_19 = arith.constant 0 : index
    %33 = vector.load %arg2[%c5, %c0_18, %c0_19] : memref<9x8x16xf32, #tpu.memory_space<vmem>>, vector<1x8x16xf32>
    %34 = vector.shape_cast %33 : vector<1x8x16xf32> to vector<8x16xf32>
    %cst_20 = arith.constant dense<0.000000e+00> : vector<64x16xf32>
    %35 = tpu.matmul %32, %34, %cst_20 {dimension_numbers = #tpu.dot_dimension_numbers<[1], [0], [0], [1], [0, 0, 1, 1], [], []>} : vector<64x8xf32>, vector<8x16xf32>, vector<64x16xf32> -> vector<64x16xf32>
    %36 = arith.addf %30, %35 : vector<64x16xf32>
    %37 = vector.extract_strided_slice %1 {offsets = [2, 0, 0], sizes = [8, 8, 8], strides = [1, 1, 1]} : vector<10x10x8xf32> to vector<8x8x8xf32>
    %38 = vector.shape_cast %37 : vector<8x8x8xf32> to vector<64x8xf32>
    %c6 = arith.constant 6 : index
    %c0_21 = arith.constant 0 : index
    %c0_22 = arith.constant 0 : index
    %39 = vector.load %arg2[%c6, %c0_21, %c0_22] : memref<9x8x16xf32, #tpu.memory_space<vmem>>, vector<1x8x16xf32>
    %40 = vector.shape_cast %39 : vector<1x8x16xf32> to vector<8x16xf32>
    %cst_23 = arith.constant dense<0.000000e+00> : vector<64x16xf32>
    %41 = tpu.matmul %38, %40, %cst_23 {dimension_numbers = #tpu.dot_dimension_numbers<[1], [0], [0], [1], [0, 0, 1, 1], [], []>} : vector<64x8xf32>, vector<8x16xf32>, vector<64x16xf32> -> vector<64x16xf32>
    %42 = arith.addf %36, %41 : vector<64x16xf32>
    %43 = vector.extract_strided_slice %1 {offsets = [2, 1, 0], sizes = [8, 8, 8], strides = [1, 1, 1]} : vector<10x10x8xf32> to vector<8x8x8xf32>
    %44 = vector.shape_cast %43 : vector<8x8x8xf32> to vector<64x8xf32>
    %c7 = arith.constant 7 : index
    %c0_24 = arith.constant 0 : index
    %c0_25 = arith.constant 0 : index
    %45 = vector.load %arg2[%c7, %c0_24, %c0_25] : memref<9x8x16xf32, #tpu.memory_space<vmem>>, vector<1x8x16xf32>
    %46 = vector.shape_cast %45 : vector<1x8x16xf32> to vector<8x16xf32>
    %cst_26 = arith.constant dense<0.000000e+00> : vector<64x16xf32>
    %47 = tpu.matmul %44, %46, %cst_26 {dimension_numbers = #tpu.dot_dimension_numbers<[1], [0], [0], [1], [0, 0, 1, 1], [], []>} : vector<64x8xf32>, vector<8x16xf32>, vector<64x16xf32> -> vector<64x16xf32>
    %48 = arith.addf %42, %47 : vector<64x16xf32>
    %49 = vector.extract_strided_slice %1 {offsets = [2, 2, 0], sizes = [8, 8, 8], strides = [1, 1, 1]} : vector<10x10x8xf32> to vector<8x8x8xf32>
    %50 = vector.shape_cast %49 : vector<8x8x8xf32> to vector<64x8xf32>
    %c8 = arith.constant 8 : index
    %c0_27 = arith.constant 0 : index
    %c0_28 = arith.constant 0 : index
    %51 = vector.load %arg2[%c8, %c0_27, %c0_28] : memref<9x8x16xf32, #tpu.memory_space<vmem>>, vector<1x8x16xf32>
    %52 = vector.shape_cast %51 : vector<1x8x16xf32> to vector<8x16xf32>
    %cst_29 = arith.constant dense<0.000000e+00> : vector<64x16xf32>
    %53 = tpu.matmul %50, %52, %cst_29 {dimension_numbers = #tpu.dot_dimension_numbers<[1], [0], [0], [1], [0, 0, 1, 1], [], []>} : vector<64x8xf32>, vector<8x16xf32>, vector<64x16xf32> -> vector<64x16xf32>
    %54 = arith.addf %48, %53 : vector<64x16xf32>
    %c0_30 = arith.constant 0 : index
    %c0_31 = arith.constant 0 : index
    %55 = vector.load %arg3[%c0_30, %c0_31] : memref<1x16xf32, #tpu.memory_space<vmem>>, vector<1x16xf32>
    %56 = vector.broadcast %55 : vector<1x16xf32> to vector<64x16xf32>
    %57 = arith.addf %54, %56 : vector<64x16xf32>
    %cst_32 = arith.constant 0.000000e+00 : f32
    %58 = vector.broadcast %cst_32 : f32 to vector<64x16xf32>
    %59 = arith.maximumf %57, %58 : vector<64x16xf32>
    %60 = vector.shape_cast %59 : vector<64x16xf32> to vector<8x8x16xf32>
    %c0_33 = arith.constant 0 : index
    %c0_34 = arith.constant 0 : index
    %c0_35 = arith.constant 0 : index
    %c0_36 = arith.constant 0 : index
    %61 = vector.load %arg4[%c0_33, %c0_34, %c0_35, %c0_36] : memref<1x8x8x16xf32, #tpu.memory_space<vmem>>, vector<1x8x8x16xf32>
    %62 = vector.shape_cast %61 : vector<1x8x8x16xf32> to vector<8x8x16xf32>
    %63 = vector.shape_cast %60 : vector<8x8x16xf32> to vector<1x8x8x16xf32>
    tpu.vector_store %arg4[%c0_33, %c0_34, %c0_35, %c0_36], %63 {strides = array<i32>} : memref<1x8x8x16xf32, #tpu.memory_space<vmem>>, vector<1x8x8x16xf32>,
    return
  }
  func.func @transform_0(%arg0: i32) -> (i32, i32, i32, i32) {
    %c0_i32 = arith.constant 0 : i32
    %c0_i32_0 = arith.constant 0 : i32
    %c0_i32_1 = arith.constant 0 : i32
    %c0_i32_2 = arith.constant 0 : i32
    return %arg0, %c0_i32, %c0_i32_0, %c0_i32_1 : i32, i32, i32, i32
  }
  func.func @transform_1(%arg0: i32) -> (i32, i32, i32) {
    %c0_i32 = arith.constant 0 : i32
    %c0_i32_0 = arith.constant 0 : i32
    %c0_i32_1 = arith.constant 0 : i32
    %c0_i32_2 = arith.constant 0 : i32
    return %c0_i32, %c0_i32_0, %c0_i32_1 : i32, i32, i32
  }
  func.func @transform_2(%arg0: i32) -> (i32, i32) {
    %c0_i32 = arith.constant 0 : i32
    %c0_i32_0 = arith.constant 0 : i32
    %c0_i32_1 = arith.constant 0 : i32
    return %c0_i32, %c0_i32_0 : i32, i32
  }
  func.func @transform_3(%arg0: i32) -> (i32, i32, i32, i32) {
    %c0_i32 = arith.constant 0 : i32
    %c0_i32_0 = arith.constant 0 : i32
    %c0_i32_1 = arith.constant 0 : i32
    %c0_i32_2 = arith.constant 0 : i32
    return %arg0, %c0_i32, %c0_i32_0, %c0_i32_1 : i32, i32, i32, i32
  }
}

</mosaic_0001>

<bundles_post_ra>
// kernel: _forward_impl.5
= control target key start
LH: loop header
LB: loop body
LE: loop exit
PB: predicated region body
PF: predicated region fallthrough
CT: control target
= control target key end

     0   :  { %8 = vsyncpa [#allocation3], 0  ;;  %s1532_s0 = inlined_call_operand.vmem [shape: f32[2,10,10,8], index: 0, kind: input, shape index: {}]   ;;  %s1533_s1 = inlined_call_operand.vmem [shape: f32[9,8,16], index: 1, kind: input, shape index: {}]   ;;  %s1534_s2 = inlined_call_operand.vmem [shape: f32[1,16], index: 2, kind: input, shape index: {}]   ;;  %s1535_s3 = inlined_call_operand.hbm [shape: f32[2,8,8,16], index: 3, kind: output, shape index: {}]  }
   0x1   :  { %10 = vsyncpa [#allocation3 + $0x1], 0  ;;  %s1105_s12 = smov 0   ;;  %s1107_s13 = smov 0  }
   0x2   :  { %s1109_s14 = smov 0   ;;  %s1111_s15 = smov 0  }
   0x3 LB: > { %s1126_s16 = sadd.s32 4294967295, %s1081_s15   ;;  %s881_s17 = sadd.s32 4294967294, %s1081_s15   ;;  %s1081_s15 = sphi %s1111_s15, %s1541_s15   ;;  %s1077_s14 = sphi %s1109_s14, %s1540_s14   ;;  %s1073_s13 = sphi %s1107_s13, %s1539_s13   ;;  %s1069_s12 = sphi %s1105_s12, %s1538_s12  }
   0x4   : > { %s1130_s18 = sadd.s32 1, %s1081_s15   ;;  %s91_s19 = sadd.s32 1, %s1077_s14 }
   0x5   : > { %s88_s20 = ssub.s32 %s1081_s15, %s1130_s18  ;;  %p101_p0 = scmp.ne.s32.totalorder %s1077_s14, %s1073_s13 }
   0x6   : > { %p89_p1 = scmp.eq.s32.totalorder %s88_s20, 0  ;;  %p102_p2 = scmp.eq.s32.totalorder %s1126_s16, 1 }
   0x7   : > { %p107_p3 = scmp.ne.s32.totalorder %s1073_s13, %s1069_s12  ;;  %p108_p4 = scmp.eq.s32.totalorder %s881_s17, 1 }
   0x8   : > { %s1141_s21 = scalar_select %p89_p1, %s1077_s14, %s91_s19  }
   0x9   : > { %p1143_p5 = por %p102_p2, %p101_p0  ;;  %p1147_p6 = por %p108_p4, %p107_p3 }
   0xa   : > { %p884_p7 = scmp.ge.s32.totalorder %s1081_s15, 1  ;;  %p140_p8 = scmp.lt.s32.totalorder %s1081_s15, 3 }
   0xc   : > { %p141_p9 = pnand %p884_p7, %p140_p8 }
   0xd   : > { %p164_p10 = scmp.lt.s32.totalorder (!%p141_p9), %s1126_s16, 1  ;;  %s161_s29 = sand.u32 (!%p141_p9), 1, %s1073_s13  }
   0xe   : > { %144 = sbr.rel (%p141_p9) target bundleno = 311 (0x137), region = 32  ;;  %s972_s7 = sshll.u32 (!%p141_p9), %s1126_s16, 6 }
   0xf   : > { %s815_s10 = scalar_lea.hbm (!%p141_p9), %s1535_s3, %s972_s7  ;;  %s1039_s26 = scalar_lea.hbm (!%p141_p9), %s1535_s3, 128 }
  0x10   : > { %s818_s17 = sshll.u32 (!%p141_p9), %s815_s10, 4  ;;  %s819_s17 = int_to_ptr.hbm [resolvable:$true] %s818_s17 }
  0x11   : > { %s1033_s19 = sshra.s32 (!%p141_p9), %s819_s17, 4  ;;  %s1034_s19 = int_to_ptr.hbm [resolvable:$true] %s1033_s19 }
  0x12   : > { %s1035_s20 = scalar_lea.hbm (!%p141_p9), %s1034_s19, 64  ;;  %p1040_p0 = scmp.lt.s32.totalorder (!%p141_p9), %s1034_s19, %s1535_s3 }
  0x13   : > { %v887_v0 = vld [vmem:[%s1533_s1 + $0x8] sm:$0xff]  ;;  %v904_v1 = vld [vmem:[%s1533_s1 + $0x10] sm:$0xff]  ;;  %v913_v2 = vld [vmem:[%s1533_s1 + $0x18] sm:$0xff]  ;;  %s165_s5 = scalar_select %p164_p10, %s1126_s16, 1  ;;  %vm206_vm0 = vcmask 1046528   ;;  %vm233_vm1 = vcmask 64512  }
  0x14   : > { %973 = vmatpush.msra.mxu1 %v887_v0  ;;  %974 = vmatpush.msra.mxu2 %v887_v0  ;;  %v189_v3 = vld [vmem:[%s1533_s1] sm:$0xff]  ;;  %v940_v13 = vld [vmem:[%s1533_s1 + $0x30] sm:$0xff]  ;;  %v931_v18 = vld [vmem:[%s1533_s1 + $0x28] sm:$0xff]  ;;  %vm348_vm2 = vcmask 1045504   ;;  %vm794_vm3 = vcmask 130048   ;;  %s804_s16 = scalar_lea.sflag [#allocation3], %s161_s29  ;;  %p1036_p11 = scmp.ne.s32.totalorder %s1034_s19, %s1035_s20 }
  0x15   : > { %975 = vmatpush.msra.mxu3 %v887_v0  ;;  %v922_v4 = vld [vmem:[%s1533_s1 + $0x20] sm:$0xff]  ;;  %s976_s8 = smul.u32 160, %s165_s5  ;;  %265 = vmatpush.msra.mxu0 %v887_v0  ;;  %v949_v28 = vld [vmem:[%s1533_s1 + $0x38] sm:$0xff]  ;;  %s885_s5 = sshll.u32 %s161_s29, 6 }
  0x16   : > { %406 = vmatpush.msrb.mxu2 %v904_v1  ;;  %322 = vmatpush.msrb.mxu1 %v189_v3  ;;  %v958_v39 = vld [vmem:[%s1533_s1 + $0x40] sm:$0xff]  ;;  %s1452_s6 = scalar_lea.vmem [#allocation2], %s885_s5  ;;  %p1037_p12 = pnand %p1036_p11, %p1143_p5 }
  0x17   : > { %460 = vmatpush.msrb.mxu3 %v913_v2  ;;  %517 = vmatpush.msrb.mxu0 %v922_v4  ;;  %s1173_s11 = scalar_lea.vmem %s1532_s0, %s976_s8  ;;  %p1041_p1 = scmp.lt.s32.totalorder %s1039_s26, %s1035_s20 }
  0x18   : > { %v1176_v5 = vld [vmem:[%s1173_s11 + $0x20] sm:$0xff]  ;;  %v1179_v6 = vld [vmem:[%s1173_s11 + $0x28] sm:$0x3]  ;;  %v1202_v17 = vld [vmem:[%s1173_s11 + $0x30] sm:$0xff]  ;;  %p1038_p13 = pneg %p1037_p12 }
  0x19   : > { %v1182_v7 = vld [vmem:[%s1173_s11 + $0x40] sm:$0xff]  ;;  %v213_v8 = vrot.slane %v1176_v5, 1  ;;  %v214_v9 = vrot.slane %v1179_v6, 1  ;;  %v1187_v10 = vld [vmem:[%s1173_s11 + $0x48] sm:$0x3]  ;;  %v1215_v22 = vld [vmem:[%s1173_s11 + $0x50] sm:$0xff]  ;;  %p1042_p2 = por %p1041_p1, %p1040_p0 }
  0x1a   : > { %v219_v11 = vrot.slane %v1182_v7, 1  ;;  %v1191_v12 = vld [vmem:[%s1173_s11 + $0x60] sm:$0xff]  ;;  %v220_v14 = vrot.slane %v1187_v10, 1  ;;  %v1198_v15 = vld [vmem:[%s1173_s11 + $0x68] sm:$0x3]  ;;  %v216_v25 = vrot.slane %v1202_v17, 1 }
  0x1b   : > { %v225_v16 = vrot.slane %v1191_v12, 1  ;;  %v1208_v19 = vsel %vm206_vm0, %v213_v8, %v214_v9  ;;  %v226_v20 = vrot.slane %v1198_v15, 1  ;;  %v1212_v21 = vld [vmem:[%s1173_s11 + $0x38] sm:$0x3]  ;;  %v169_v26 = vld [vmem:[%s1173_s11] sm:$0xff]  ;;  %v1238_v33 = vld [vmem:[%s1173_s11 + $0x70] sm:$0xff]  ;;  %p1043_p3 = pnand %p1042_p2, %p1038_p13 }
  0x1c   : > { %v1218_v23 = vld [vmem:[%s1173_s11 + $0x58] sm:$0x3]  ;;  %890 = vmatmul.msk.f32.vlgmr.msra.gmra.mxu1 %vm233_vm1, %v1208_v19  ;;  %v1223_v24 = vsel %vm206_vm0, %v219_v11, %v220_v14  ;;  %v170_v27 = vld [vmem:[%s1173_s11 + $0x8] sm:$0x3]  ;;  %v217_v30 = vrot.slane %v1212_v21, 1  ;;  %v207_v31 = vrot.slane %v169_v26, 1 }
  0x1d   : > { %892 = vmatmul.msk.f32.vlgmr.msra.gmra.mxu2 %vm233_vm1, %v1223_v24  ;;  %v1234_v29 = vsel %vm206_vm0, %v225_v16, %v226_v20  ;;  %v208_v32 = vrot.slane %v170_v27, 1  ;;  %v1241_v34 = vld [vmem:[%s1173_s11 + $0x78] sm:$0x3]  ;;  %573 = vmatpush.msra.mxu1 %v931_v18  ;;  %v222_v35 = vrot.slane %v1215_v22, 1  ;;  %v223_v36 = vrot.slane %v1218_v23, 1  ;;  %v171_v37 = vld [vmem:[%s1173_s11 + $0x10] sm:$0xff] }
  0x1e   : > { %894 = vmatmul.msk.f32.vlgmr.msra.gmra.mxu3 %vm233_vm1, %v1234_v29  ;;  %627 = vmatpush.msra.mxu2 %v940_v13  ;;  %v172_v38 = vld [vmem:[%s1173_s11 + $0x18] sm:$0x3]  ;;  %v228_v41 = vrot.slane %v1238_v33, 1  ;;  %v229_v42 = vrot.slane %v1241_v34, 1  ;;  %v1257_v43 = vsel %vm206_vm0, %v216_v25, %v217_v30  ;;  %v210_v44 = vrot.slane %v171_v37, 1  ;;  %v185_v11 = vld [vmem:[%s1173_s11 + $0x80] sm:$0xff] }
  0x1f   : > { %v209_v40 = vsel %vm206_vm0, %v207_v31, %v208_v32  ;;  %684 = vmatpush.msra.mxu3 %v949_v28  ;;  %v211_v45 = vrot.slane %v172_v38, 1  ;;  %v1260_v46 = vsel %vm206_vm0, %v222_v35, %v223_v36  ;;  %v349_v49 = vrot.slane %v169_v26, 2  ;;  %v188_v18 = vld [vmem:[%s1173_s11 + $0x98] sm:$0x3] }
  0x20   : > { %888 = vmatmul.msk.f32.vlgmr.msra.gmra.mxu0 %vm233_vm1, %v209_v40  ;;  %v1263_v47 = vsel %vm206_vm0, %v228_v41, %v229_v42  ;;  %v350_v50 = vrot.slane %v170_v27, 2  ;;  %v352_v52 = vrot.slane %v171_v37, 2  ;;  %v353_v53 = vrot.slane %v172_v38, 2 }
  0x21   : > { %740 = vmatpush.msra.mxu0 %v958_v39  ;;  %v212_v48 = vsel %vm206_vm0, %v210_v44, %v211_v45  ;;  %v355_v55 = vrot.slane %v1176_v5, 2  ;;  %v356_v56 = vrot.slane %v1179_v6, 2  ;;  %v358_v58 = vrot.slane %v1202_v17, 2 }
  0x22   : > { %v351_v51 = vsel %vm348_vm2, %v349_v49, %v350_v50  ;;  %v354_v54 = vsel %vm348_vm2, %v352_v52, %v353_v53  ;;  %v359_v59 = vrot.slane %v1212_v21, 2  ;;  %v361_v61 = vrot.slane %v1182_v7, 2 }
  0x23   : > { %v357_v57 = vsel %vm348_vm2, %v355_v55, %v356_v56  ;;  %v362_v62 = vrot.slane %v1187_v10, 2  ;;  %v364_v0 = vrot.slane %v1215_v22, 2  ;;  %v365_v1 = vrot.slane %v1218_v23, 2  ;;  %v186_v10 = vld [vmem:[%s1173_s11 + $0x88] sm:$0x3] }
  0x24   : > { %891 = vmatmul.msk.f32.gmra.mxu1 %vm233_vm1, %v1257_v43  ;;  %v360_v60 = vsel %vm348_vm2, %v358_v58, %v359_v59  ;;  %v367_v3 = vrot.slane %v1191_v12, 2  ;;  %v368_v4 = vrot.slane %v1198_v15, 2  ;;  %v370_v8 = vrot.slane %v1238_v33, 2 }
  0x25   : > { %893 = vmatmul.msk.f32.gmra.mxu2 %vm233_vm1, %v1260_v46  ;;  %v363_v63 = vsel %vm348_vm2, %v361_v61, %v362_v62  ;;  %v366_v2 = vsel %vm348_vm2, %v364_v0, %v365_v1  ;;  %v371_v9 = vrot.slane %v1241_v34, 2  ;;  %v495_v13 = vrot.slane %v185_v11, 1 }
  0x26   : > { %895 = vmatmul.msk.f32.gmra.mxu3 %vm233_vm1, %v1263_v47  ;;  %v369_v6 = vsel %vm348_vm2, %v367_v3, %v368_v4  ;;  %v496_v14 = vrot.slane %v186_v10, 1  ;;  %v719_v27 = vrot.slane %v188_v18, 2 }
  0x27   : > { %v372_v15 = vsel %vm348_vm2, %v370_v8, %v371_v9 }
  0x28   : > { %889 = vmatmul.msk.f32.gmra.mxu0 %vm233_vm1, %v212_v48  ;;  %v497_v16 = vsel %vm206_vm0, %v495_v13, %v496_v14 }
  0x2c   : > { %896 = vmatmul.msk.f32.vlgmr.msrb.gmra.mxu1 %vm233_vm1, %v169_v26 }
  0x2d   : > { %905 = vmatmul.msk.f32.vlgmr.msrb.gmra.mxu2 %vm233_vm1, %v351_v51 }
  0x2e   : > { %914 = vmatmul.msk.f32.vlgmr.msrb.gmra.mxu3 %vm233_vm1, %v171_v37 }
  0x30   : > { %923 = vmatmul.msk.f32.vlgmr.msrb.gmra.mxu0 %vm233_vm1, %v212_v48 }
  0x34   : > { %897 = vmatmul.msk.f32.gmra.mxu1 %vm233_vm1, %v171_v37 }
  0x35   : > { %906 = vmatmul.msk.f32.gmra.mxu2 %vm233_vm1, %v354_v54 }
  0x36   : > { %915 = vmatmul.msk.f32.gmra.mxu3 %vm233_vm1, %v1176_v5 }
  0x38   : > { %924 = vmatmul.msk.f32.gmra.mxu0 %vm233_vm1, %v1208_v19 }
  0x3c   : > { %898 = vmatmul.msk.f32.gmra.mxu1 %vm233_vm1, %v1176_v5 }
  0x3d   : > { %907 = vmatmul.msk.f32.gmra.mxu2 %vm233_vm1, %v357_v57 }
  0x3e   : > { %916 = vmatmul.msk.f32.gmra.mxu3 %vm233_vm1, %v1202_v17 }
  0x40   : > { %925 = vmatmul.msk.f32.gmra.mxu0 %vm233_vm1, %v1257_v43 }
  0x44   : > { %899 = vmatmul.msk.f32.gmra.mxu1 %vm233_vm1, %v1202_v17 }
  0x45   : > { %908 = vmatmul.msk.f32.gmra.mxu2 %vm233_vm1, %v360_v60 }
  0x46   : > { %917 = vmatmul.msk.f32.gmra.mxu3 %vm233_vm1, %v1182_v7 }
  0x48   : > { %926 = vmatmul.msk.f32.gmra.mxu0 %vm233_vm1, %v1223_v24 }
  0x4c   : > { %900 = vmatmul.msk.f32.gmra.mxu1 %vm233_vm1, %v1182_v7 }
  0x4d   : > { %909 = vmatmul.msk.f32.gmra.mxu2 %vm233_vm1, %v363_v63 }
  0x4e   : > { %918 = vmatmul.msk.f32.gmra.mxu3 %vm233_vm1, %v1215_v22 }
  0x50   : > { %927 = vmatmul.msk.f32.gmra.mxu0 %vm233_vm1, %v1260_v46 }
  0x54   : > { %901 = vmatmul.msk.f32.gmra.mxu1 %vm233_vm1, %v1215_v22 }
  0x55   : > { %910 = vmatmul.msk.f32.gmra.mxu2 %vm233_vm1, %v366_v2 }
  0x56   : > { %919 = vmatmul.msk.f32.gmra.mxu3 %vm233_vm1, %v1191_v12 }
  0x58   : > { %928 = vmatmul.msk.f32.gmra.mxu0 %vm233_vm1, %v1234_v29 }
  0x5c   : > { %902 = vmatmul.msk.f32.gmra.mxu1 %vm233_vm1, %v1191_v12 }
  0x5d   : > { %911 = vmatmul.msk.f32.gmra.mxu2 %vm233_vm1, %v369_v6 }
  0x5e   : > { %920 = vmatmul.msk.f32.gmra.mxu3 %vm233_vm1, %v1238_v33 }
  0x60   : > { %929 = vmatmul.msk.f32.gmra.mxu0 %vm233_vm1, %v1263_v47 }
  0x64   : > { %903 = vmatmul.msk.f32.gmra.mxu1 %vm233_vm1, %v1238_v33 }
  0x65   : > { %912 = vmatmul.msk.f32.gmra.mxu2 %vm233_vm1, %v372_v15 }
  0x66   : > { %921 = vmatmul.msk.f32.gmra.mxu3 %vm233_vm1, %v185_v11 }
  0x68   : > { %930 = vmatmul.msk.f32.gmra.mxu0 %vm233_vm1, %v497_v16 }
  0x6c   : > { %932 = vmatmul.msk.f32.vlgmr.msra.gmra.mxu1 %vm233_vm1, %v354_v54 }
  0x6d   : > { %941 = vmatmul.msk.f32.vlgmr.msra.gmra.mxu2 %vm233_vm1, %v1176_v5 }
  0x6e   : > { %950 = vmatmul.msk.f32.vlgmr.msra.gmra.mxu3 %vm233_vm1, %v1208_v19 }
  0x70   : > { %959 = vmatmul.msk.f32.vlgmr.msra.gmra.mxu0 %vm233_vm1, %v357_v57 }
  0x74   : > { %933 = vmatmul.msk.f32.gmra.mxu1 %vm233_vm1, %v357_v57 }
  0x75   : > { %942 = vmatmul.msk.f32.gmra.mxu2 %vm233_vm1, %v1202_v17  ;;  %v552_v17 = vrot.slane %v186_v10, 2 }
  0x76   : > { %951 = vmatmul.msk.f32.gmra.mxu3 %vm233_vm1, %v1257_v43 }
  0x78   : > { %960 = vmatmul.msk.f32.gmra.mxu0 %vm233_vm1, %v360_v60 }
  0x7c   : > { %934 = vmatmul.msk.f32.gmra.mxu1 %vm233_vm1, %v360_v60 }
  0x7d   : > { %943 = vmatmul.msk.f32.gmra.mxu2 %vm233_vm1, %v1182_v7  ;;  %v551_v7 = vrot.slane %v185_v11, 2 }
  0x7e   : > { %952 = vmatmul.msk.f32.gmra.mxu3 %vm233_vm1, %v1223_v24 }
  0x7f   : > { %v553_v20 = vsel %vm348_vm2, %v551_v7, %v552_v17 }
  0x80   : > { %961 = vmatmul.msk.f32.gmra.mxu0 %vm233_vm1, %v363_v63 }
  0x84   : > { %935 = vmatmul.msk.f32.gmra.mxu1 %vm233_vm1, %v363_v63 }
  0x85   : > { %944 = vmatmul.msk.f32.gmra.mxu2 %vm233_vm1, %v1215_v22  ;;  %v663_v22 = vrot.slane %v188_v18, 1  ;;  %v1446_v18 = vld [vmem:[%s1534_s2] ss:$0 sm:$0xff] }
  0x86   : > { %953 = vmatmul.msk.f32.gmra.mxu3 %vm233_vm1, %v1260_v46 }
  0x88   : > { %962 = vmatmul.msk.f32.gmra.mxu0 %vm233_vm1, %v366_v2 }
  0x8c   : > { %936 = vmatmul.msk.f32.gmra.mxu1 %vm233_vm1, %v366_v2 }
  0x8d   : > { %945 = vmatmul.msk.f32.gmra.mxu2 %vm233_vm1, %v1191_v12  ;;  %v187_v12 = vld [vmem:[%s1173_s11 + $0x90] sm:$0xff]  ;;  %s816_s11 = sshll.u32 %s1452_s6, 4  ;;  %s817_s11 = int_to_ptr.vmem [resolvable:$true] %s816_s11 }
  0x8e   : > { %954 = vmatmul.msk.f32.gmra.mxu3 %vm233_vm1, %v1234_v29  ;;  %v662_v21 = vrot.slane %v187_v12, 1  ;;  %v718_v26 = vrot.slane %v187_v12, 2 }
  0x90   : > { %963 = vmatmul.msk.f32.gmra.mxu0 %vm233_vm1, %v369_v6  ;;  %v664_v28 = vsel %vm206_vm0, %v662_v21, %v663_v22  ;;  %v720_v30 = vsel %vm348_vm2, %v718_v26, %v719_v27 }
  0x94   : > { %937 = vmatmul.msk.f32.gmra.mxu1 %vm233_vm1, %v369_v6 }
  0x95   : > { %946 = vmatmul.msk.f32.gmra.mxu2 %vm233_vm1, %v1238_v33 }
  0x96   : > { %955 = vmatmul.msk.f32.gmra.mxu3 %vm233_vm1, %v1263_v47 }
  0x98   : > { %964 = vmatmul.msk.f32.gmra.mxu0 %vm233_vm1, %v372_v15 }
  0x99   : > { %v1382_v5 = vpop.f32.mrf.mxu1 }
  0x9c   : > { %938 = vmatmul.msk.f32.gmra.mxu1 %vm233_vm1, %v372_v15 }
  0x9d   : > { %947 = vmatmul.msk.f32.gmra.mxu2 %vm233_vm1, %v185_v11  ;;  %v267_v19 = vpop.f32.mrf.mxu0 }
  0x9e   : > { %956 = vmatmul.msk.f32.gmra.mxu3 %vm233_vm1, %v497_v16 }
  0xa0   : > { %v1390_v23 = vpop.f32.mrf.mxu2  ;;  %965 = vmatmul.msk.f32.gmra.mxu0 %vm233_vm1, %v553_v20 }
  0xa1   : > { %v1393_v24 = vpop.f32.mrf.mxu1  ;;  %v1395_v25 = vpop.f32.mrf.mxu3 }
  0xa4   : > { %939 = vmatmul.msk.f32.gmra.mxu1 %vm233_vm1, %v553_v20 }
  0xa5   : > { %948 = vmatmul.msk.f32.gmra.mxu2 %vm233_vm1, %v187_v12  ;;  %v270_v29 = vpop.f32.mrf.mxu0 }
  0xa6   : > { %957 = vmatmul.msk.f32.gmra.mxu3 %vm233_vm1, %v664_v28 }
  0xa8   : > { %v1402_v31 = vpop.f32.mrf.mxu2  ;;  %966 = vmatmul.msk.f32.gmra.mxu0 %vm233_vm1, %v720_v30 }
  0xa9   : > { %v1405_v32 = vpop.f32.mrf.mxu3  ;;  %v324_v33 = vpop.f32.mrf.mxu1 }
  0xaa   : > { %v325_v62 = vadd.f32 %v324_v33, %v267_v19 }
  0xad   : > { %v519_v34 = vpop.f32.mrf.mxu0 }
  0xb0   : > { %v408_v35 = vpop.f32.mrf.mxu2 }
  0xb1   : > { %v327_v36 = vpop.f32.mrf.mxu1  ;;  %v462_v37 = vpop.f32.mrf.mxu3  ;;  %v432_v63 = vadd.f32 %v408_v35, %v325_v62 }
  0xb2   : > { %v328_v6 = vadd.f32 %v327_v36, %v270_v29 }
  0xb3   : > { %v486_v2 = vadd.f32 %v462_v37, %v432_v63 }
  0xb5   : > { %v522_v38 = vpop.f32.mrf.mxu0  ;;  %v543_v8 = vadd.f32 %v519_v34, %v486_v2 }
  0xb8   : > { %v411_v39 = vpop.f32.mrf.mxu2 }
  0xb9   : > { %v330_v40 = vpop.f32.mrf.mxu1  ;;  %v465_v41 = vpop.f32.mrf.mxu3  ;;  %v433_v9 = vadd.f32 %v411_v39, %v328_v6 }
  0xba   : > { %v331_v17 = vadd.f32 %v330_v40, %v1382_v5 }
  0xbb   : > { %v487_v14 = vadd.f32 %v465_v41, %v433_v9 }
  0xbd   : > { %v525_v42 = vpop.f32.mrf.mxu0  ;;  %v544_v19 = vadd.f32 %v522_v38, %v487_v14 }
  0xc0   : > { %v414_v43 = vpop.f32.mrf.mxu2 }
  0xc1   : > { %v333_v44 = vpop.f32.mrf.mxu1  ;;  %v468_v45 = vpop.f32.mrf.mxu3  ;;  %v434_v20 = vadd.f32 %v414_v43, %v331_v17 }
  0xc2   : > { %v334_v35 = vadd.f32 %v333_v44, %v1393_v24 }
  0xc3   : > { %v488_v29 = vadd.f32 %v468_v45, %v434_v20 }
  0xc5   : > { %v1407_v46 = vpop.f32.mrf.mxu0  ;;  %v545_v37 = vadd.f32 %v525_v42, %v488_v29 }
  0xc8   : > { %v417_v47 = vpop.f32.mrf.mxu2 }
  0xc9   : > { %v1409_v48 = vpop.f32.mrf.mxu1  ;;  %v471_v49 = vpop.f32.mrf.mxu3  ;;  %v435_v38 = vadd.f32 %v417_v47, %v334_v35 }
  0xca   : > { %v337_v44 = vadd.f32 %v1409_v48, %v1390_v23 }
  0xcb   : > { %v489_v62 = vadd.f32 %v471_v49, %v435_v38 }
  0xcd   : > { %v1411_v50 = vpop.f32.mrf.mxu0  ;;  %v546_v42 = vadd.f32 %v1407_v46, %v489_v62 }
  0xd0   : > { %v1413_v51 = vpop.f32.mrf.mxu2 }
  0xd1   : > { %v1415_v52 = vpop.f32.mrf.mxu1  ;;  %v1417_v53 = vpop.f32.mrf.mxu3  ;;  %v436_v47 = vadd.f32 %v1413_v51, %v337_v44 }
  0xd2   : > { %v340_v48 = vadd.f32 %v1415_v52, %v1402_v31 }
  0xd5   : > { %v1419_v54 = vpop.f32.mrf.mxu0 }
  0xd8   : > { %v1421_v55 = vpop.f32.mrf.mxu2 }
  0xd9   : > { %v1423_v56 = vpop.f32.mrf.mxu1  ;;  %v1425_v57 = vpop.f32.mrf.mxu3 }
  0xda   : > { %v343_v52 = vadd.f32 %v1423_v56, %v1395_v25 }
  0xdd   : > { %v1427_v58 = vpop.f32.mrf.mxu0 }
  0xe0   : > { %v1429_v59 = vpop.f32.mrf.mxu2 }
  0xe1   : > { %v1431_v60 = vpop.f32.mrf.mxu1  ;;  %v1433_v61 = vpop.f32.mrf.mxu3 }
  0xe2   : > { %v346_v56 = vadd.f32 %v1431_v60, %v1405_v32 }
  0xe5   : > { %v1435_v0 = vpop.f32.mrf.mxu0 }
  0xe8   : > { %v1437_v1 = vpop.f32.mrf.mxu2 }
  0xe9   : > { %v1439_v3 = vpop.f32.mrf.mxu3  ;;  %v575_v4 = vpop.f32.mrf.mxu1  ;;  %v439_v38 = vadd.f32 %v1437_v1, %v346_v56 }
  0xea   : > { %v599_v11 = vadd.f32 %v575_v4, %v543_v8 }
  0xed   : > { %v742_v10 = vpop.f32.mrf.mxu0 }
  0xf0   : > { %v629_v13 = vpop.f32.mrf.mxu2 }
  0xf1   : > { %v653_v15 = vadd.f32 %v629_v13, %v599_v11  ;;  %v578_v16 = vpop.f32.mrf.mxu1  ;;  %v686_v7 = vpop.f32.mrf.mxu3  ;;  %v490_v13 = vadd.f32 %v1417_v53, %v436_v47 }
  0xf2   : > { %v600_v26 = vadd.f32 %v578_v16, %v544_v19 }
  0xf3   : > { %v710_v12 = vadd.f32 %v686_v7, %v653_v15  ;;  %v547_v51 = vadd.f32 %v1411_v50, %v490_v13  ;;  %v437_v7 = vadd.f32 %v1421_v55, %v340_v48 }
  0xf5   : > { %v766_v21 = vadd.f32 %v742_v10, %v710_v12  ;;  %v745_v22 = vpop.f32.mrf.mxu0 }
  0xf7   : > { %v778_v27 = vadd.f32 %v1446_v18, %v766_v21  ;;  %v491_v21 = vadd.f32 %v1425_v57, %v437_v7 }
  0xf8   : > { %v632_v28 = vpop.f32.mrf.mxu2 }
  0xf9   : > { %v786_v30 = vmax.f32 %v778_v27, 0.0  ;;  %v654_v5 = vadd.f32 %v632_v28, %v600_v26  ;;  %v581_v33 = vpop.f32.mrf.mxu1  ;;  %v689_v34 = vpop.f32.mrf.mxu3  ;;  %v548_v55 = vadd.f32 %v1419_v54, %v491_v21  ;;  %v438_v28 = vadd.f32 %v1429_v59, %v343_v52 }
  0xfa   : > { %v601_v41 = vadd.f32 %v581_v33, %v545_v37 }
  0xfb   : > { %795 = vst.msk [vmem:[%s1452_s6] sm:$0xff] %vm794_vm3, %v786_v30  ;;  %v711_v36 = vadd.f32 %v689_v34, %v654_v5  ;;  %v492_v34 = vadd.f32 %v1433_v61, %v438_v28 }
  0xfd   : > { %v767_v39 = vadd.f32 %v745_v22, %v711_v36  ;;  %v748_v40 = vpop.f32.mrf.mxu0  ;;  %v549_v59 = vadd.f32 %v1427_v58, %v492_v34 }
  0xff   : > { %v779_v43 = vadd.f32 %v1446_v18, %v767_v39 }
 0x100   : > { %v635_v45 = vpop.f32.mrf.mxu2 }
 0x101   : > { %v787_v63 = vmax.f32 %v779_v43, 0.0  ;;  %v655_v2 = vadd.f32 %v635_v45, %v601_v41  ;;  %v584_v4 = vpop.f32.mrf.mxu1  ;;  %v692_v24 = vpop.f32.mrf.mxu3  ;;  %v493_v45 = vadd.f32 %v1439_v3, %v439_v38 }
 0x102   : > { %v602_v10 = vadd.f32 %v584_v4, %v546_v42 }
 0x103   : > { %796 = vst.msk [vmem:[%s1452_s6 + $0x8] sm:$0xff] %vm794_vm3, %v787_v63  ;;  %v712_v6 = vadd.f32 %v692_v24, %v655_v2  ;;  %v550_v1 = vadd.f32 %v1435_v0, %v493_v45 }
 0x105   : > { %v768_v8 = vadd.f32 %v748_v40, %v712_v6  ;;  %v751_v9 = vpop.f32.mrf.mxu0 }
 0x107   : > { %v780_v49 = vadd.f32 %v1446_v18, %v768_v8 }
 0x108   : > { %v638_v11 = vpop.f32.mrf.mxu2 }
 0x109   : > { %v788_v14 = vmax.f32 %v780_v49, 0.0  ;;  %v656_v15 = vadd.f32 %v638_v11, %v602_v10  ;;  %v587_v16 = vpop.f32.mrf.mxu1  ;;  %v695_v23 = vpop.f32.mrf.mxu3 }
 0x10a   : > { %v603_v19 = vadd.f32 %v587_v16, %v547_v51 }
 0x10b   : > { %797 = vst.msk [vmem:[%s1452_s6 + $0x10] sm:$0xff] %vm794_vm3, %v788_v14  ;;  %v713_v46 = vadd.f32 %v695_v23, %v656_v15 }
 0x10d   : > { %v769_v17 = vadd.f32 %v751_v9, %v713_v46  ;;  %v754_v12 = vpop.f32.mrf.mxu0 }
 0x10f   : > { %v781_v53 = vadd.f32 %v1446_v18, %v769_v17 }
 0x110   : > { %v641_v20 = vpop.f32.mrf.mxu2 }
 0x111   : > { %v789_v22 = vmax.f32 %v781_v53, 0.0  ;;  %v657_v26 = vadd.f32 %v641_v20, %v603_v19  ;;  %v590_v27 = vpop.f32.mrf.mxu1  ;;  %v698_v31 = vpop.f32.mrf.mxu3 }
 0x112   : > { %v604_v5 = vadd.f32 %v590_v27, %v548_v55 }
 0x113   : > { %798 = vst.msk [vmem:[%s1452_s6 + $0x18] sm:$0xff] %vm794_vm3, %v789_v22  ;;  %v714_v50 = vadd.f32 %v698_v31, %v657_v26 }
 0x115   : > { %v770_v29 = vadd.f32 %v754_v12, %v714_v50  ;;  %v757_v30 = vpop.f32.mrf.mxu0 }
 0x117   : > { %v782_v57 = vadd.f32 %v1446_v18, %v770_v29 }
 0x118   : > { %v644_v33 = vpop.f32.mrf.mxu2 }
 0x119   : > { %v790_v35 = vmax.f32 %v782_v57, 0.0  ;;  %v658_v36 = vadd.f32 %v644_v33, %v604_v5  ;;  %v701_v37 = vpop.f32.mrf.mxu3  ;;  %v593_v25 = vpop.f32.mrf.mxu1 }
 0x11a   : > { %v605_v40 = vadd.f32 %v593_v25, %v549_v59 }
 0x11b   : > { %799 = vst.msk [vmem:[%s1452_s6 + $0x20] sm:$0xff] %vm794_vm3, %v790_v35  ;;  %v715_v54 = vadd.f32 %v701_v37, %v658_v36 }
 0x11d   : > { %v771_v39 = vadd.f32 %v757_v30, %v715_v54  ;;  %v760_v43 = vpop.f32.mrf.mxu0 }
 0x11f   : > { %v783_v61 = vadd.f32 %v1446_v18, %v771_v39 }
 0x120   : > { %v647_v41 = vpop.f32.mrf.mxu2 }
 0x121   : > { %v791_v62 = vmax.f32 %v783_v61, 0.0  ;;  %v659_v63 = vadd.f32 %v647_v41, %v605_v40  ;;  %v704_v32 = vpop.f32.mrf.mxu3  ;;  %v596_v58 = vpop.f32.mrf.mxu1 }
 0x122   : > { %v606_v4 = vadd.f32 %v596_v58, %v550_v1 }
 0x123   : > { %800 = vst.msk [vmem:[%s1452_s6 + $0x28] sm:$0xff] %vm794_vm3, %v791_v62  ;;  %v716_v60 = vadd.f32 %v704_v32, %v659_v63 }
 0x125   : > { %v772_v2 = vadd.f32 %v760_v43, %v716_v60  ;;  %v763_v47 = vpop.f32.mrf.mxu0 }
 0x127   : > { %v784_v24 = vadd.f32 %v1446_v18, %v772_v2 }
 0x128   : > { %v650_v44 = vpop.f32.mrf.mxu2 }
 0x129   : > { %v792_v3 = vmax.f32 %v784_v24, 0.0  ;;  %v660_v6 = vadd.f32 %v650_v44, %v606_v4  ;;  %v707_v42 = vpop.f32.mrf.mxu3 }
 0x12b   : > { %801 = vst.msk [vmem:[%s1452_s6 + $0x30] sm:$0xff] %vm794_vm3, %v792_v3  ;;  %v717_v0 = vadd.f32 %v707_v42, %v660_v6 }
 0x12d   : > { %v773_v8 = vadd.f32 %v763_v47, %v717_v0 }
 0x12f   : > { %v785_v9 = vadd.f32 %v1446_v18, %v773_v8 }
 0x131   : > { %v793_v10 = vmax.f32 %v785_v9, 0.0 }
 0x133   : > { %802 = vst.msk [vmem:[%s1452_s6 + $0x38] sm:$0xff] %vm794_vm3, %v793_v10 }
 0x134   : > { %1046 = shalt.err (!%p1043_p3)
}
 0x135   : > { %s1083_s29 = smov 128   ;;  %s1084_s30 = smov 8  }
 0x136   : > { %977 = dma.vmem_to_hbm [thread:$0]  (%p1143_p5), %s817_s11, 1024, %s819_s17, %s804_s16, %s1083_s29, %s1083_s29, %s1084_s30  }
 0x137 PF: > { %p983_p4 = scmp.ge.s32.totalorder %s1081_s15, 2  ;;  %s833_s4 = sand.u32 1, %s1069_s12  }
 0x138   : > { %s834_s5 = scalar_lea.sflag [#allocation3], %s833_s4 }
 0x139   : > { %p980_p7 = pnand %p983_p4, %p1147_p6 }
 0x13b   : > { %p981_p8 = pneg %p980_p7 }
 0x13d   : > { %1064 = dma.done.wait (%p981_p8), %s834_s5, 1024  }
 0x13e   : > { %1066 = vsyncadd (%p981_p8), %s834_s5, 4294966272  ;;  %p13_p9 = scmp.ge.s32.totalorder %s1130_s18, 4   ;;  %s1538_s12 = smov %s1073_s13 }
 0x13f   : > { %s1539_s13 = smov %s1077_s14  ;;  %s1540_s14 = smov %s1141_s21 }
 0x140   : > { %s1541_s15 = smov %s1130_s18  ;;  %15 = sbr.rel (!%p13_p9) target bundleno = 3 (0x3), region = 75 }
 0x145   :  { %840 = vsyncpa [#allocation3], 1 }
 0x146   :  { %842 = vsyncpa [#allocation3 + $0x1], 1 }

// kernel: _forward_impl.3
= control target key start
LH: loop header
LB: loop body
LE: loop exit
PB: predicated region body
PF: predicated region fallthrough
CT: control target
= control target key end

     0   :  { %s2501_s12 = smov 0   ;;  %s3874_s0 = inlined_call_operand.vmem [shape: f32[2,18,18,3], index: 0, kind: input, shape index: {}]   ;;  %s3875_s1 = inlined_call_operand.vmem [shape: f32[9,3,8], index: 1, kind: input, shape index: {}]   ;;  %s3876_s2 = inlined_call_operand.vmem [shape: f32[1,8], index: 2, kind: input, shape index: {}]   ;;  %s3877_s3 = inlined_call_operand.vmem [shape: f32[2,16,16,8], index: 3, kind: output, shape index: {}]  }
   0x1 LB: > { %s2120_s13 = sadd.s32 4294967295, %s2479_s12   ;;  %p2124_p0 = scmp.ge.s32.totalorder %s2479_s12, 1  ;;  %s2479_s12 = sphi %s2501_s12, %s13_s12  }
   0x2   : > { %p137_p1 = scmp.lt.s32.totalorder %s2479_s12, 3 }
   0x4   : > { %p138_p2 = pnand %p2124_p0, %p137_p1 }
   0x6   : > { %141 = sbr.rel (%p138_p2) target bundleno = 733 (0x2dd), region = 32 }
   0xb   : > { %v2128_v0 = vld [vmem:[%s3875_s1 + $0x4] sm:$0x7]  ;;  %vm422_vm0 = vcmask 1042432   ;;  %p161_p3 = scmp.lt.s32.totalorder %s2120_s13, 1  ;;  %v2195_v1 = vld [vmem:[%s3875_s1 + $0x8] sm:$0x7] }
   0xc   : > { %2436 = vmatpush.msk.msra.mxu1 %vm422_vm0, %v2128_v0  ;;  %2437 = vmatpush.msk.msra.mxu2 %vm422_vm0, %v2128_v0  ;;  %v2229_v2 = vld [vmem:[%s3875_s1 + $0xc] sm:$0x7]  ;;  %v225_v3 = vld [vmem:[%s3875_s1] sm:$0x7]  ;;  %v2263_v4 = vld [vmem:[%s3875_s1 + $0x10] sm:$0x7] }
   0xd   : > { %s4092_s13 = smov (!%p161_p3, %s2120_s13), 1  ;;  %2438 = vmatpush.msk.msra.mxu3 %vm422_vm0, %v2128_v0  ;;  %2129 = vmatpush.msk.msra.mxu0 %vm422_vm0, %v2128_v0  ;;  %vm274_vm1 = vcmask 1046528   ;;  %vm357_vm2 = vcmask 23552   ;;  %vm719_vm3 = vcmask 1045504   ;;  %vm2032_vm4 = vcmask 64512  }
   0xe   : > { %2196 = vmatpush.msk.msrb.mxu2 %vm422_vm0, %v2195_v1  ;;  %2162 = vmatpush.msk.msrb.mxu1 %vm422_vm0, %v225_v3  ;;  %s2439_s24 = smul.u32 432, %s4092_s13  ;;  %s2435_s11 = sshll.u32 %s4092_s13, 8 }
   0xf   : > { %2230 = vmatpush.msk.msrb.mxu3 %vm422_vm0, %v2229_v2  ;;  %2264 = vmatpush.msk.msrb.mxu0 %vm422_vm0, %v2263_v4  ;;  %s3630_s16 = scalar_lea.vmem %s3877_s3, %s2435_s11 }
  0x10   : > { %s2538_s27 = scalar_lea.vmem %s3874_s0, %s2439_s24 }
  0x11   : > { %v2541_v5 = vld [vmem:[%s2538_s27 + $0x60] sm:$0xff]  ;;  %v2544_v6 = vld [vmem:[%s2538_s27 + $0x68] sm:$0xff]  ;;  %v2565_v17 = vld [vmem:[%s2538_s27 + $0x70] sm:$0x3] }
  0x12   : > { %v2547_v7 = vld [vmem:[%s2538_s27 + $0xc0] sm:$0xff]  ;;  %v295_v8 = vrot.slane %v2541_v5, 1  ;;  %v296_v9 = vrot.slane %v2544_v6, 1  ;;  %v2552_v10 = vld [vmem:[%s2538_s27 + $0xc8] sm:$0xff]  ;;  %v2574_v20 = vld [vmem:[%s2538_s27 + $0xd0] sm:$0x3] }
  0x13   : > { %v315_v11 = vrot.slane %v2547_v7, 1  ;;  %v2556_v12 = vld [vmem:[%s2538_s27 + $0x120] sm:$0xff]  ;;  %v2559_v13 = vld [vmem:[%s2538_s27 + $0x128] sm:$0xff]  ;;  %v316_v14 = vrot.slane %v2552_v10, 1  ;;  %v2590_v26 = vld [vmem:[%s2538_s27 + $0x130] sm:$0x3] }
  0x14   : > { %3953 = vst [vmem:[#allocation2_spill] sm:$0xff] %v2556_v12  ;;  %v335_v15 = vrot.slane %v2556_v12, 1  ;;  %v336_v16 = vrot.slane %v2559_v13, 1  ;;  %v2568_v18 = vld [vmem:[%s2538_s27] sm:$0xff]  ;;  %v2571_v19 = vsel %vm274_vm1, %v295_v8, %v296_v9  ;;  %v2577_v21 = vld [vmem:[%s2538_s27 + $0x8] sm:$0xff]  ;;  %v298_v27 = vrot.slane %v2565_v17, 1 }
  0x15   : > { %3954 = vst [vmem:[#allocation3_spill] sm:$0xff] %v2559_v13  ;;  %v275_v22 = vrot.slane %v2568_v18, 1  ;;  %2138 = vmatmul.msk.f32.vlgmr.msra.gmra.mxu1 %vm357_vm2, %v2571_v19  ;;  %v2583_v23 = vsel %vm274_vm1, %v315_v11, %v316_v14  ;;  %v276_v25 = vrot.slane %v2577_v21, 1  ;;  %v2598_v28 = vld [vmem:[%s2538_s27 + $0x10] sm:$0x3]  ;;  %v318_v29 = vrot.slane %v2574_v20, 1 }
  0x16   : > { %3955 = vst [vmem:[#allocation4_spill] sm:$0xff] %v2583_v23  ;;  %v2586_v24 = vsel %vm274_vm1, %v335_v15, %v336_v16  ;;  %2146 = vmatmul.msk.f32.vlgmr.msra.gmra.mxu2 %vm357_vm2, %v2583_v23  ;;  %v338_v31 = vrot.slane %v2590_v26, 1  ;;  %v278_v32 = vrot.slane %v2598_v28, 1  ;;  %v2606_v33 = vsel %vm274_vm1, %v296_v9, %v298_v27  ;;  %v2615_v36 = vld [vmem:[%s2538_s27 + $0x78] sm:$0xff]  ;;  %v2618_v37 = vld [vmem:[%s2538_s27 + $0x80] sm:$0xff]  ;;  %v2700_v4 = vld [vmem:[%s2538_s27 + $0x90] sm:$0xff] }
  0x17   : > { %3956 = vst [vmem:[#allocation5_spill] sm:$0xff] %v2586_v24  ;;  %2154 = vmatmul.msk.f32.vlgmr.msra.gmra.mxu3 %vm357_vm2, %v2586_v24  ;;  %v277_v30 = vsel %vm274_vm1, %v275_v22, %v276_v25  ;;  %v2609_v34 = vsel %vm274_vm1, %v316_v14, %v318_v29  ;;  %v2621_v38 = vld [vmem:[%s2538_s27 + $0xd8] sm:$0xff]  ;;  %v2624_v39 = vld [vmem:[%s2538_s27 + $0xe0] sm:$0xff]  ;;  %v300_v43 = vrot.slane %v2615_v36, 1  ;;  %v301_v44 = vrot.slane %v2618_v37, 1  ;;  %v2706_v9 = vld [vmem:[%s2538_s27 + $0xf0] sm:$0xff] }
  0x18   : > { %3957 = vst [vmem:[#allocation6_spill] sm:$0xff] %v2590_v26  ;;  %2130 = vmatmul.msk.f32.vlgmr.msra.gmra.mxu0 %vm357_vm2, %v277_v30  ;;  %v2612_v35 = vsel %vm274_vm1, %v336_v16, %v338_v31  ;;  %v2627_v40 = vld [vmem:[%s2538_s27 + $0x138] sm:$0xff]  ;;  %v2630_v41 = vld [vmem:[%s2538_s27 + $0x140] sm:$0xff]  ;;  %v279_v42 = vsel %vm274_vm1, %v276_v25, %v278_v32  ;;  %v320_v47 = vrot.slane %v2621_v38, 1  ;;  %v321_v48 = vrot.slane %v2624_v39, 1  ;;  %v2712_v14 = vld [vmem:[%s2538_s27 + $0x150] sm:$0xff] }
  0x19   : > { %3958 = vst [vmem:[#allocation7_spill] sm:$0xff] %v2606_v33  ;;  %v2642_v45 = vld [vmem:[%s2538_s27 + $0x18] sm:$0xff]  ;;  %v2645_v46 = vld [vmem:[%s2538_s27 + $0x20] sm:$0xff]  ;;  %v340_v49 = vrot.slane %v2627_v40, 1  ;;  %v341_v50 = vrot.slane %v2630_v41, 1  ;;  %v2655_v53 = vsel %vm274_vm1, %v300_v43, %v301_v44  ;;  %v305_v22 = vrot.slane %v2700_v4, 1 }
  0x1a   : > { %3959 = vst [vmem:[#allocation8_spill] sm:$0xff] %v2609_v34  ;;  %v280_v51 = vrot.slane %v2642_v45, 1  ;;  %v281_v52 = vrot.slane %v2645_v46, 1  ;;  %v2658_v54 = vsel %vm274_vm1, %v320_v47, %v321_v48  ;;  %v2664_v56 = vld [vmem:[%s2538_s27 + $0x88] sm:$0x3]  ;;  %v2703_v8 = vld [vmem:[%s2538_s27 + $0x98] sm:$0xff] }
  0x1b   : > { %3960 = vst [vmem:[#allocation9_spill] sm:$0xff] %v2612_v35  ;;  %v2661_v55 = vsel %vm274_vm1, %v340_v49, %v341_v50  ;;  %v2667_v57 = vld [vmem:[%s2538_s27 + $0xe8] sm:$0x3]  ;;  %v303_v60 = vrot.slane %v2664_v56, 1  ;;  %v2709_v11 = vld [vmem:[%s2538_s27 + $0xf8] sm:$0xff]  ;;  %v306_v25 = vrot.slane %v2703_v8, 1 }
  0x1c   : > { %3961 = vst [vmem:[#allocation10_spill] sm:$0xff] %v2627_v40  ;;  %v2670_v58 = vld [vmem:[%s2538_s27 + $0x148] sm:$0x3]  ;;  %v2675_v59 = vsel %vm274_vm1, %v280_v51, %v281_v52  ;;  %v323_v62 = vrot.slane %v2667_v57, 1  ;;  %v2715_v15 = vld [vmem:[%s2538_s27 + $0x158] sm:$0xff]  ;;  %v2729_v27 = vld [vmem:[%s2538_s27 + $0x30] sm:$0xff] }
  0x1d   : > { %3962 = vst [vmem:[#allocation11_spill] sm:$0xff] %v2630_v41  ;;  %2139 = vmatmul.msk.f32.gmra.mxu1 %vm357_vm2, %v2606_v33  ;;  %v2683_v61 = vld [vmem:[%s2538_s27 + $0x28] sm:$0x3]  ;;  %v343_v63 = vrot.slane %v2670_v58, 1  ;;  %v2691_v1 = vsel %vm274_vm1, %v301_v44, %v303_v60  ;;  %v2732_v29 = vld [vmem:[%s2538_s27 + $0x38] sm:$0xff]  ;;  %v325_v30 = vrot.slane %v2706_v9, 1  ;;  %v2743_v47 = vsel %vm274_vm1, %v305_v22, %v306_v25 }
  0x1e   : > { %2147 = vmatmul.msk.f32.gmra.mxu2 %vm357_vm2, %v2609_v34  ;;  %3963 = vst [vmem:[#allocation12_spill] sm:$0xff] %v2655_v53  ;;  %v283_v0 = vrot.slane %v2683_v61, 1  ;;  %v2694_v2 = vsel %vm274_vm1, %v321_v48, %v323_v62  ;;  %v326_v31 = vrot.slane %v2709_v11, 1  ;;  %v345_v32 = vrot.slane %v2712_v14, 1  ;;  %v2746_v48 = vld [vmem:[%s2538_s27 + $0xa0] sm:$0x3] }
  0x1f   : > { %2155 = vmatmul.msk.f32.gmra.mxu3 %vm357_vm2, %v2612_v35  ;;  %3964 = vst [vmem:[#allocation13_spill] sm:$0xff] %v2661_v55  ;;  %v2697_v3 = vsel %vm274_vm1, %v341_v50, %v343_v63  ;;  %v285_v43 = vrot.slane %v2729_v27, 1  ;;  %v286_v44 = vrot.slane %v2732_v29, 1  ;;  %v2755_v51 = vld [vmem:[%s2538_s27 + $0x100] sm:$0x3]  ;;  %v308_v60 = vrot.slane %v2746_v48, 1 }
  0x20   : > { %2131 = vmatmul.msk.f32.gmra.mxu0 %vm357_vm2, %v279_v42  ;;  %3965 = vst [vmem:[#allocation14_spill] sm:$0xff] %v2670_v58  ;;  %v2720_v16 = vsel %vm274_vm1, %v281_v52, %v283_v0  ;;  %v346_v42 = vrot.slane %v2715_v15, 1  ;;  %v2749_v49 = vsel %vm274_vm1, %v325_v30, %v326_v31  ;;  %v2758_v52 = vld [vmem:[%s2538_s27 + $0x160] sm:$0x3]  ;;  %v2331_v0 = vld [vmem:[%s3875_s1 + $0x18] sm:$0x7] }
  0x21   : > { %3966 = vst [vmem:[#allocation15_spill] sm:$0xff] %v2691_v1  ;;  %v2764_v62 = vsel %vm274_vm1, %v285_v43, %v286_v44  ;;  %v2767_v63 = vld [vmem:[%s2538_s27 + $0x40] sm:$0x3]  ;;  %v2365_v22 = vld [vmem:[%s3875_s1 + $0x1c] sm:$0x7]  ;;  %v348_v43 = vrot.slane %v2758_v52, 1  ;;  %2332 = vmatpush.msk.msra.mxu2 %vm422_vm0, %v2331_v0 }
  0x22   : > { %3967 = vst [vmem:[#allocation16_spill] sm:$0xff] %v2697_v3  ;;  %v2752_v50 = vsel %vm274_vm1, %v345_v32, %v346_v42  ;;  %v2297_v30 = vld [vmem:[%s3875_s1 + $0x14] sm:$0x7]  ;;  %v328_v32 = vrot.slane %v2755_v51, 1  ;;  %2366 = vmatpush.msk.msra.mxu3 %vm422_vm0, %v2365_v22  ;;  %v2800_v0 = vld [vmem:[%s2538_s27 + $0xa8] sm:$0xff] }
  0x23   : > { %3968 = vst [vmem:[#allocation17_spill] sm:$0xff] %v2712_v14  ;;  %2298 = vmatpush.msk.msra.mxu1 %vm422_vm0, %v2297_v30  ;;  %v2803_v22 = vld [vmem:[%s2538_s27 + $0xb0] sm:$0xff]  ;;  %v2806_v14 = vld [vmem:[%s2538_s27 + $0x108] sm:$0xff]  ;;  %v2859_v24 = vld [vmem:[%s2538_s27 + $0x118] sm:$0x3] }
  0x24   : > { %3969 = vst [vmem:[#allocation18_spill] sm:$0xff] %v2715_v15  ;;  %v288_v15 = vrot.slane %v2767_v63, 1  ;;  %v2794_v58 = vsel %vm274_vm1, %v326_v31, %v328_v32  ;;  %v2809_v30 = vld [vmem:[%s2538_s27 + $0x110] sm:$0xff]  ;;  %v310_v31 = vrot.slane %v2800_v0, 1 }
  0x25   : > { %2140 = vmatmul.msk.f32.gmra.mxu1 %vm357_vm2, %v2655_v53  ;;  %3970 = vst [vmem:[#allocation19_spill] sm:$0xff] %v2743_v47  ;;  %v2815_v41 = vld [vmem:[%s2538_s27 + $0x170] sm:$0xff] }
  0x26   : > { %2148 = vmatmul.msk.f32.gmra.mxu2 %vm357_vm2, %v2658_v54  ;;  %3971 = vst [vmem:[#allocation20_spill] sm:$0xff] %v2752_v50  ;;  %v2832_v32 = vld [vmem:[%s2538_s27 + $0x50] sm:$0xff] }
  0x27   : > { %2156 = vmatmul.msk.f32.gmra.mxu3 %vm357_vm2, %v2661_v55  ;;  %3972 = vst [vmem:[#allocation21_spill] sm:$0xff] %v2755_v51  ;;  %v351_v55 = vrot.slane %v2815_v41, 1  ;;  %v291_v40 = vrot.slane %v2832_v32, 1 }
  0x28   : > { %2132 = vmatmul.msk.f32.gmra.mxu0 %vm357_vm2, %v2675_v59  ;;  %3973 = vst [vmem:[#allocation22_spill] sm:$0xff] %v2758_v52  ;;  %v2797_v52 = vsel %vm274_vm1, %v346_v42, %v348_v43  ;;  %v311_v42 = vrot.slane %v2803_v22, 1  ;;  %v331_v43 = vrot.slane %v2809_v30, 1 }
  0x29   : > { %3975 = vst [vmem:[#allocation24_spill] sm:$0xff] %v2797_v52 }
  0x2a   : > { %3976 = vst [vmem:[#allocation25_spill] sm:$0xff] %v2809_v30  ;;  %v2847_v35 = vsel %vm274_vm1, %v310_v31, %v311_v42  ;;  %v2875_v31 = vld [vmem:[%s2538_s27 + $0x58] sm:$0x3] }
  0x2b   : > { %3978 = vst [vmem:[#allocation27_spill] sm:$0xff] %v2815_v41  ;;  %v2856_v41 = vld [vmem:[%s2538_s27 + $0xb8] sm:$0x3] }
  0x2c   : > { %3979 = vst [vmem:[#allocation28_spill] sm:$0xff] %v2847_v35 }
  0x2d   : > { %2141 = vmatmul.msk.f32.gmra.mxu1 %vm357_vm2, %v2691_v1  ;;  %3982 = vst [vmem:[#allocation31_spill] sm:$0xff] %v2859_v24 }
  0x2e   : > { %2149 = vmatmul.msk.f32.gmra.mxu2 %vm357_vm2, %v2694_v2 }
  0x2f   : > { %2157 = vmatmul.msk.f32.gmra.mxu3 %vm357_vm2, %v2697_v3  ;;  %v2812_v3 = vld [vmem:[%s2538_s27 + $0x168] sm:$0xff] }
  0x30   : > { %2133 = vmatmul.msk.f32.gmra.mxu0 %vm357_vm2, %v2720_v16  ;;  %3977 = vst [vmem:[#allocation26_spill] sm:$0xff] %v2812_v3 }
  0x35   : > { %2142 = vmatmul.msk.f32.gmra.mxu1 %vm357_vm2, %v2743_v47 }
  0x36   : > { %2150 = vmatmul.msk.f32.gmra.mxu2 %vm357_vm2, %v2749_v49 }
  0x37   : > { %2158 = vmatmul.msk.f32.gmra.mxu3 %vm357_vm2, %v2752_v50  ;;  %v2791_v50 = vsel %vm274_vm1, %v306_v25, %v308_v60  ;;  %v2820_v25 = vsel %vm274_vm1, %v286_v44, %v288_v15  ;;  %v2829_v60 = vld [vmem:[%s2538_s27 + $0x48] sm:$0xff]  ;;  %v2399_v15 = vld [vmem:[%s3875_s1 + $0x20] sm:$0x7]  ;;  %v330_v44 = vrot.slane %v2806_v14, 1 }
  0x38   : > { %2134 = vmatmul.msk.f32.gmra.mxu0 %vm357_vm2, %v2764_v62  ;;  %3974 = vst [vmem:[#allocation23_spill] sm:$0xff] %v2791_v50  ;;  %v290_v26 = vrot.slane %v2829_v60, 1 }
  0x39   : > { %2400 = vmatpush.msk.msra.mxu0 %vm422_vm0, %v2399_v15  ;;  %v2850_v13 = vsel %vm274_vm1, %v330_v44, %v331_v43  ;;  %v2862_v15 = vld [vmem:[%s2538_s27 + $0x178] sm:$0x3]  ;;  %v333_v44 = vrot.slane %v2859_v24, 1 }
  0x3a   : > { %3980 = vst [vmem:[#allocation29_spill] sm:$0xff] %v2850_v13  ;;  %v2867_v12 = vsel %vm274_vm1, %v290_v26, %v291_v40  ;;  %v353_v30 = vrot.slane %v2862_v15, 1  ;;  %v293_v26 = vrot.slane %v2875_v31, 1 }
  0x3c   : > { %v2894_v24 = vsel %vm274_vm1, %v291_v40, %v293_v26  ;;  %v723_v40 = vrot.slane %v2598_v28, 2  ;;  %v735_v26 = vrot.slane %v2829_v60, 2 }
  0x3d   : > { %2143 = vmatmul.msk.f32.gmra.mxu1 %vm357_vm2, %v2791_v50 }
  0x3e   : > { %2151 = vmatmul.msk.f32.gmra.mxu2 %vm357_vm2, %v2794_v58 }
  0x3f   : > { %2159 = vmatmul.msk.f32.gmra.mxu3 %vm357_vm2, %v2797_v52  ;;  %v350_v52 = vrot.slane %v2812_v3, 1 }
  0x40   : > { %2135 = vmatmul.msk.f32.gmra.mxu0 %vm357_vm2, %v2820_v25 }
  0x41   : > { %v2853_v3 = vsel %vm274_vm1, %v350_v52, %v351_v55  ;;  %v313_v52 = vrot.slane %v2856_v41, 1 }
  0x42   : > { %3981 = vst [vmem:[#allocation30_spill] sm:$0xff] %v2853_v3 }
  0x43   : > { %v2883_v51 = vsel %vm274_vm1, %v311_v42, %v313_v52  ;;  %v720_v42 = vrot.slane %v2568_v18, 2  ;;  %v726_v52 = vrot.slane %v2645_v46, 2 }
  0x44   : > { %3983 = vst [vmem:[#allocation32_spill] sm:$0xff] %v2883_v51 }
  0x45   : > { %2144 = vmatmul.msk.f32.gmra.mxu1 %vm357_vm2, %v2847_v35 }
  0x46   : > { %2152 = vmatmul.msk.f32.gmra.mxu2 %vm357_vm2, %v2850_v13  ;;  %v2886_v13 = vsel %vm274_vm1, %v331_v43, %v333_v44  ;;  %v721_v43 = vrot.slane %v2577_v21, 2 }
  0x47   : > { %2160 = vmatmul.msk.f32.gmra.mxu3 %vm357_vm2, %v2853_v3  ;;  %v2889_v3 = vsel %vm274_vm1, %v351_v55, %v353_v30 }
  0x48   : > { %2136 = vmatmul.msk.f32.gmra.mxu0 %vm357_vm2, %v2867_v12  ;;  %3984 = vst [vmem:[#allocation33_spill] sm:$0xff] %v2889_v3  ;;  %v722_v55 = vsel %vm719_vm3, %v720_v42, %v721_v43  ;;  %v724_v30 = vsel %vm719_vm3, %v721_v43, %v723_v40  ;;  %v736_v42 = vrot.slane %v2832_v32, 2  ;;  %v738_v43 = vrot.slane %v2875_v31, 2 }
  0x49   : > { %v740_v40 = vrot.slane %v2541_v5, 2 }
  0x4d   : > { %2145 = vmatmul.msk.f32.gmra.mxu1 %vm357_vm2, %v2883_v51 }
  0x4e   : > { %2153 = vmatmul.msk.f32.gmra.mxu2 %vm357_vm2, %v2886_v13 }
  0x4f   : > { %2161 = vmatmul.msk.f32.gmra.mxu3 %vm357_vm2, %v2889_v3 }
  0x50   : > { %2137 = vmatmul.msk.f32.gmra.mxu0 %vm357_vm2, %v2894_v24 }
  0x55   : > { %2163 = vmatmul.msk.f32.vlgmr.msrb.gmra.mxu1 %vm357_vm2, %v2568_v18  ;;  %v725_v18 = vrot.slane %v2642_v45, 2 }
  0x56   : > { %2197 = vmatmul.msk.f32.vlgmr.msrb.gmra.mxu2 %vm357_vm2, %v722_v55  ;;  %v2986_v55 = vsel %vm719_vm3, %v736_v42, %v738_v43 }
  0x57   : > { %2231 = vmatmul.msk.f32.vlgmr.msrb.gmra.mxu3 %vm357_vm2, %v2642_v45  ;;  %v2924_v28 = vsel %vm719_vm3, %v725_v18, %v726_v52 }
  0x58   : > { %2265 = vmatmul.msk.f32.vlgmr.msrb.gmra.mxu0 %vm357_vm2, %v2675_v59 }
  0x5d   : > { %2164 = vmatmul.msk.f32.gmra.mxu1 %vm357_vm2, %v2577_v21  ;;  %v728_v21 = vrot.slane %v2683_v61, 2 }
  0x5e   : > { %2198 = vmatmul.msk.f32.gmra.mxu2 %vm357_vm2, %v724_v30  ;;  %v741_v30 = vrot.slane %v2544_v6, 2 }
  0x5f   : > { %2232 = vmatmul.msk.f32.gmra.mxu3 %vm357_vm2, %v2645_v46  ;;  %v2936_v59 = vsel %vm719_vm3, %v726_v52, %v728_v21  ;;  %v743_v21 = vrot.slane %v2565_v17, 2  ;;  %v745_v17 = vrot.slane %v2615_v36, 2 }
  0x60   : > { %2266 = vmatmul.msk.f32.gmra.mxu0 %vm357_vm2, %v2720_v16  ;;  %v731_v16 = vrot.slane %v2732_v29, 2  ;;  %v3001_v18 = vsel %vm719_vm3, %v740_v40, %v741_v30 }
  0x61   : > { %3985 = vst [vmem:[#allocation34_spill] sm:$0xff] %v3001_v18 }
  0x65   : > { %2165 = vmatmul.msk.f32.gmra.mxu1 %vm357_vm2, %v2642_v45  ;;  %v730_v45 = vrot.slane %v2729_v27, 2 }
  0x66   : > { %2199 = vmatmul.msk.f32.gmra.mxu2 %vm357_vm2, %v2924_v28 }
  0x67   : > { %2233 = vmatmul.msk.f32.gmra.mxu3 %vm357_vm2, %v2729_v27  ;;  %v2949_v61 = vsel %vm719_vm3, %v730_v45, %v731_v16 }
  0x68   : > { %2267 = vmatmul.msk.f32.gmra.mxu0 %vm357_vm2, %v2764_v62 }
  0x6d   : > { %2166 = vmatmul.msk.f32.gmra.mxu1 %vm357_vm2, %v2645_v46  ;;  %v733_v46 = vrot.slane %v2767_v63, 2  ;;  %v2974_v63 = vsel %vm719_vm3, %v735_v26, %v736_v42  ;;  %v746_v42 = vrot.slane %v2618_v37, 2 }
  0x6e   : > { %2200 = vmatmul.msk.f32.gmra.mxu2 %vm357_vm2, %v2936_v59 }
  0x6f   : > { %2234 = vmatmul.msk.f32.gmra.mxu3 %vm357_vm2, %v2732_v29  ;;  %v2961_v44 = vsel %vm719_vm3, %v731_v16, %v733_v46 }
  0x70   : > { %2268 = vmatmul.msk.f32.gmra.mxu0 %vm357_vm2, %v2820_v25 }
  0x75   : > { %2167 = vmatmul.msk.f32.gmra.mxu1 %vm357_vm2, %v2729_v27 }
  0x76   : > { %2201 = vmatmul.msk.f32.gmra.mxu2 %vm357_vm2, %v2949_v61 }
  0x77   : > { %2235 = vmatmul.msk.f32.gmra.mxu3 %vm357_vm2, %v2829_v60 }
  0x78   : > { %2269 = vmatmul.msk.f32.gmra.mxu0 %vm357_vm2, %v2867_v12 }
  0x7d   : > { %2168 = vmatmul.msk.f32.gmra.mxu1 %vm357_vm2, %v2732_v29 }
  0x7e   : > { %2202 = vmatmul.msk.f32.gmra.mxu2 %vm357_vm2, %v2961_v44 }
  0x7f   : > { %2236 = vmatmul.msk.f32.gmra.mxu3 %vm357_vm2, %v2832_v32 }
  0x80   : > { %2270 = vmatmul.msk.f32.gmra.mxu0 %vm357_vm2, %v2894_v24 }
  0x85   : > { %2169 = vmatmul.msk.f32.gmra.mxu1 %vm357_vm2, %v2829_v60 }
  0x86   : > { %2203 = vmatmul.msk.f32.gmra.mxu2 %vm357_vm2, %v2974_v63 }
  0x87   : > { %2237 = vmatmul.msk.f32.gmra.mxu3 %vm357_vm2, %v2541_v5 }
  0x88   : > { %2271 = vmatmul.msk.f32.gmra.mxu0 %vm357_vm2, %v2571_v19 }
  0x8d   : > { %2170 = vmatmul.msk.f32.gmra.mxu1 %vm357_vm2, %v2832_v32 }
  0x8e   : > { %2204 = vmatmul.msk.f32.gmra.mxu2 %vm357_vm2, %v2986_v55 }
  0x8f   : > { %2238 = vmatmul.msk.f32.gmra.mxu3 %vm357_vm2, %v2544_v6 }
  0x90   : > { %2272 = vmatmul.msk.f32.gmra.mxu0 %vm357_vm2, %v2606_v33 }
  0x92   : > { %v2998_v31 = vpop.f32.mrf.mxu1 }
  0x95   : > { %2171 = vmatmul.msk.f32.gmra.mxu1 %vm357_vm2, %v2541_v5  ;;  %v3005_v52 = vpop.f32.mrf.mxu0  ;;  %v3021_v5 = vsel %vm719_vm3, %v741_v30, %v743_v21  ;;  %v3042_v30 = vsel %vm719_vm3, %v745_v17, %v746_v42 }
  0x96   : > { %2205 = vmatmul.msk.f32.gmra.mxu2 %vm357_vm2, %v3001_v18  ;;  %3987 = vst [vmem:[#allocation36_spill] sm:$0xff] %v3021_v5 }
  0x97   : > { %2239 = vmatmul.msk.f32.gmra.mxu3 %vm357_vm2, %v2615_v36  ;;  %3989 = vst [vmem:[#allocation38_spill] sm:$0xff] %v3042_v30 }
  0x98   : > { %2273 = vmatmul.msk.f32.gmra.mxu0 %vm357_vm2, %v2655_v53 }
  0x99   : > { %v3014_v45 = vpop.f32.mrf.mxu2 }
  0x9a   : > { %v3016_v16 = vpop.f32.mrf.mxu3  ;;  %v3018_v46 = vpop.f32.mrf.mxu1 }
  0x9b   : > { %3986 = vst [vmem:[#allocation35_spill] sm:$0xff] %v3016_v16  ;;  %v748_v16 = vrot.slane %v2664_v56, 2  ;;  %v750_v56 = vrot.slane %v2700_v4, 2 }
  0x9d   : > { %2172 = vmatmul.msk.f32.gmra.mxu1 %vm357_vm2, %v2544_v6  ;;  %v3025_v26 = vpop.f32.mrf.mxu0 }
  0x9e   : > { %2206 = vmatmul.msk.f32.gmra.mxu2 %vm357_vm2, %v3021_v5 }
  0x9f   : > { %2240 = vmatmul.msk.f32.gmra.mxu3 %vm357_vm2, %v2618_v37 }
  0xa0   : > { %2274 = vmatmul.msk.f32.gmra.mxu0 %vm357_vm2, %v2691_v1 }
  0xa1   : > { %v3035_v43 = vpop.f32.mrf.mxu2 }
  0xa2   : > { %v3037_v40 = vpop.f32.mrf.mxu3  ;;  %v3039_v6 = vpop.f32.mrf.mxu1 }
  0xa3   : > { %3988 = vst [vmem:[#allocation37_spill] sm:$0xff] %v3037_v40 }
  0xa5   : > { %2173 = vmatmul.msk.f32.gmra.mxu1 %vm357_vm2, %v2615_v36  ;;  %v3046_v21 = vpop.f32.mrf.mxu0  ;;  %v3062_v36 = vsel %vm719_vm3, %v746_v42, %v748_v16 }
  0xa6   : > { %2207 = vmatmul.msk.f32.gmra.mxu2 %vm357_vm2, %v3042_v30  ;;  %3991 = vst [vmem:[#allocation40_spill] sm:$0xff] %v3062_v36 }
  0xa7   : > { %2241 = vmatmul.msk.f32.gmra.mxu3 %vm357_vm2, %v2700_v4 }
  0xa8   : > { %2275 = vmatmul.msk.f32.gmra.mxu0 %vm357_vm2, %v2743_v47 }
  0xa9   : > { %v3055_v40 = vpop.f32.mrf.mxu2 }
  0xaa   : > { %v3057_v17 = vpop.f32.mrf.mxu3  ;;  %v3059_v1 = vpop.f32.mrf.mxu1 }
  0xab   : > { %3990 = vst [vmem:[#allocation39_spill] sm:$0xff] %v3057_v17  ;;  %v751_v17 = vrot.slane %v2703_v8, 2 }
  0xad   : > { %2174 = vmatmul.msk.f32.gmra.mxu1 %vm357_vm2, %v2618_v37  ;;  %v3066_v30 = vpop.f32.mrf.mxu0  ;;  %v3083_v47 = vsel %vm719_vm3, %v750_v56, %v751_v17 }
  0xae   : > { %2208 = vmatmul.msk.f32.gmra.mxu2 %vm357_vm2, %v3062_v36  ;;  %3993 = vst [vmem:[#allocation42_spill] sm:$0xff] %v3083_v47 }
  0xaf   : > { %2242 = vmatmul.msk.f32.gmra.mxu3 %vm357_vm2, %v2703_v8 }
  0xb0   : > { %2276 = vmatmul.msk.f32.gmra.mxu0 %vm357_vm2, %v2791_v50  ;;  %v753_v50 = vrot.slane %v2746_v48, 2  ;;  %v755_v48 = vrot.slane %v2800_v0, 2 }
  0xb1   : > { %v3076_v16 = vpop.f32.mrf.mxu2 }
  0xb2   : > { %v3078_v42 = vpop.f32.mrf.mxu3  ;;  %v3080_v37 = vpop.f32.mrf.mxu1 }
  0xb3   : > { %3992 = vst [vmem:[#allocation41_spill] sm:$0xff] %v3078_v42 }
  0xb5   : > { %2175 = vmatmul.msk.f32.gmra.mxu1 %vm357_vm2, %v2700_v4  ;;  %v3087_v36 = vpop.f32.mrf.mxu0  ;;  %v3103_v4 = vsel %vm719_vm3, %v751_v17, %v753_v50 }
  0xb6   : > { %2209 = vmatmul.msk.f32.gmra.mxu2 %vm357_vm2, %v3083_v47  ;;  %3995 = vst [vmem:[#allocation44_spill] sm:$0xff] %v3103_v4 }
  0xb7   : > { %2243 = vmatmul.msk.f32.gmra.mxu3 %vm357_vm2, %v2800_v0 }
  0xb8   : > { %2277 = vmatmul.msk.f32.gmra.mxu0 %vm357_vm2, %v2847_v35 }
  0xb9   : > { %v3096_v42 = vpop.f32.mrf.mxu2 }
  0xba   : > { %v3098_v56 = vpop.f32.mrf.mxu3  ;;  %v3100_v53 = vpop.f32.mrf.mxu1 }
  0xbb   : > { %3994 = vst [vmem:[#allocation43_spill] sm:$0xff] %v3098_v56  ;;  %v756_v56 = vrot.slane %v2803_v22, 2 }
  0xbd   : > { %2176 = vmatmul.msk.f32.gmra.mxu1 %vm357_vm2, %v2703_v8  ;;  %v3107_v47 = vpop.f32.mrf.mxu0  ;;  %v3124_v35 = vsel %vm719_vm3, %v755_v48, %v756_v56 }
  0xbe   : > { %2210 = vmatmul.msk.f32.gmra.mxu2 %vm357_vm2, %v3103_v4  ;;  %3998 = vst [vmem:[#allocation47_spill] sm:$0xff] %v3124_v35 }
  0xbf   : > { %2244 = vmatmul.msk.f32.gmra.mxu3 %vm357_vm2, %v2803_v22 }
  0xc0   : > { %2278 = vmatmul.msk.f32.gmra.mxu0 %vm357_vm2, %v2883_v51  ;;  %v758_v51 = vrot.slane %v2856_v41, 2  ;;  %v760_v41 = vrot.slane %v2547_v7, 2 }
  0xc1   : > { %v3117_v50 = vpop.f32.mrf.mxu2 }
  0xc2   : > { %3996 = vst [vmem:[#allocation45_spill] sm:$0xff] %v3117_v50  ;;  %v3119_v17 = vpop.f32.mrf.mxu3  ;;  %v3121_v8 = vpop.f32.mrf.mxu1 }
  0xc3   : > { %3997 = vst [vmem:[#allocation46_spill] sm:$0xff] %v3119_v17 }
  0xc5   : > { %2177 = vmatmul.msk.f32.gmra.mxu1 %vm357_vm2, %v2800_v0  ;;  %v3128_v4 = vpop.f32.mrf.mxu0  ;;  %v3144_v0 = vsel %vm719_vm3, %v756_v56, %v758_v51 }
  0xc6   : > { %2211 = vmatmul.msk.f32.gmra.mxu2 %vm357_vm2, %v3124_v35  ;;  %4001 = vst [vmem:[#allocation50_spill] sm:$0xff] %v3144_v0 }
  0xc7   : > { %2245 = vmatmul.msk.f32.gmra.mxu3 %vm357_vm2, %v2547_v7 }
  0xc8   : > { %2279 = vmatmul.msk.f32.gmra.mxu0 %vm357_vm2, %v2583_v23 }
  0xc9   : > { %v3137_v17 = vpop.f32.mrf.mxu2 }
  0xca   : > { %3999 = vst [vmem:[#allocation48_spill] sm:$0xff] %v3137_v17  ;;  %v3139_v48 = vpop.f32.mrf.mxu3  ;;  %v3141_v5 = vpop.f32.mrf.mxu1 }
  0xcb   : > { %4000 = vst [vmem:[#allocation49_spill] sm:$0xff] %v3139_v48  ;;  %v761_v48 = vrot.slane %v2552_v10, 2 }
  0xcd   : > { %2178 = vmatmul.msk.f32.gmra.mxu1 %vm357_vm2, %v2803_v22  ;;  %v3148_v35 = vpop.f32.mrf.mxu0  ;;  %v3163_v23 = vsel %vm719_vm3, %v760_v41, %v761_v48 }
  0xce   : > { %2212 = vmatmul.msk.f32.gmra.mxu2 %vm357_vm2, %v3144_v0  ;;  %4004 = vst [vmem:[#allocation53_spill] sm:$0xff] %v3163_v23 }
  0xcf   : > { %2246 = vmatmul.msk.f32.gmra.mxu3 %vm357_vm2, %v2552_v10 }
  0xd0   : > { %2280 = vmatmul.msk.f32.gmra.mxu0 %vm357_vm2, %v2609_v34  ;;  %v763_v34 = vrot.slane %v2574_v20, 2  ;;  %v765_v20 = vrot.slane %v2621_v38, 2 }
  0xd1   : > { %v3158_v51 = vpop.f32.mrf.mxu2 }
  0xd2   : > { %4002 = vst [vmem:[#allocation51_spill] sm:$0xff] %v3158_v51  ;;  %v3160_v56 = vpop.f32.mrf.mxu3  ;;  %v623_v22 = vpop.f32.mrf.mxu1 }
  0xd3   : > { %4003 = vst [vmem:[#allocation52_spill] sm:$0xff] %v3160_v56  ;;  %v624_v51 = vadd.f32 %v623_v22, %v3005_v52  ;;  %v766_v52 = vrot.slane %v2624_v39, 2 }
  0xd5   : > { %2179 = vmatmul.msk.f32.gmra.mxu1 %vm357_vm2, %v2547_v7  ;;  %v1202_v0 = vpop.f32.mrf.mxu0  ;;  %v3176_v7 = vsel %vm719_vm3, %v761_v48, %v763_v34 }
  0xd6   : > { %2213 = vmatmul.msk.f32.gmra.mxu2 %vm357_vm2, %v3163_v23 }
  0xd7   : > { %2247 = vmatmul.msk.f32.gmra.mxu3 %vm357_vm2, %v2621_v38 }
  0xd8   : > { %2281 = vmatmul.msk.f32.gmra.mxu0 %vm357_vm2, %v2658_v54 }
  0xd9   : > { %v886_v56 = vpop.f32.mrf.mxu2 }
  0xda   : > { %v1042_v41 = vpop.f32.mrf.mxu3  ;;  %v982_v17 = vadd.f32 %v886_v56, %v624_v51  ;;  %v626_v50 = vpop.f32.mrf.mxu1 }
  0xdb   : > { %v627_v34 = vadd.f32 %v626_v50, %v3025_v26  ;;  %v768_v26 = vrot.slane %v2667_v57, 2  ;;  %v770_v57 = vrot.slane %v2706_v9, 2 }
  0xdc   : > { %v1138_v33 = vadd.f32 %v1042_v41, %v982_v17 }
  0xdd   : > { %2180 = vmatmul.msk.f32.gmra.mxu1 %vm357_vm2, %v2552_v10  ;;  %v1205_v23 = vpop.f32.mrf.mxu0 }
  0xde   : > { %v3180_v18 = vadd.f32 %v1202_v0, %v1138_v33  ;;  %2214 = vmatmul.msk.f32.gmra.mxu2 %vm357_vm2, %v3176_v7  ;;  %v3192_v0 = vsel %vm719_vm3, %v765_v20, %v766_v52 }
  0xdf   : > { %2248 = vmatmul.msk.f32.gmra.mxu3 %vm357_vm2, %v2624_v39 }
  0xe0   : > { %2282 = vmatmul.msk.f32.gmra.mxu0 %vm357_vm2, %v2694_v2 }
  0xe1   : > { %v889_v17 = vpop.f32.mrf.mxu2 }
  0xe2   : > { %v1045_v10 = vpop.f32.mrf.mxu3  ;;  %v983_v48 = vadd.f32 %v889_v17, %v627_v34  ;;  %v629_v33 = vpop.f32.mrf.mxu1 }
  0xe3   : > { %v630_v50 = vadd.f32 %v629_v33, %v3046_v21  ;;  %v771_v21 = vrot.slane %v2709_v11, 2 }
  0xe4   : > { %v1139_v51 = vadd.f32 %v1045_v10, %v983_v48 }
  0xe5   : > { %2181 = vmatmul.msk.f32.gmra.mxu1 %vm357_vm2, %v2621_v38  ;;  %v1208_v56 = vpop.f32.mrf.mxu0 }
  0xe6   : > { %v3196_v22 = vadd.f32 %v1205_v23, %v1139_v51  ;;  %2215 = vmatmul.msk.f32.gmra.mxu2 %vm357_vm2, %v3192_v0  ;;  %v3207_v23 = vsel %vm719_vm3, %v766_v52, %v768_v26  ;;  %v3223_v26 = vsel %vm719_vm3, %v770_v57, %v771_v21 }
  0xe7   : > { %2249 = vmatmul.msk.f32.gmra.mxu3 %vm357_vm2, %v2706_v9 }
  0xe8   : > { %2283 = vmatmul.msk.f32.gmra.mxu0 %vm357_vm2, %v2749_v49 }
  0xe9   : > { %v892_v41 = vpop.f32.mrf.mxu2 }
  0xea   : > { %v1048_v20 = vpop.f32.mrf.mxu3  ;;  %v984_v34 = vadd.f32 %v892_v41, %v630_v50  ;;  %v632_v38 = vpop.f32.mrf.mxu1 }
  0xeb   : > { %v633_v52 = vadd.f32 %v632_v38, %v3066_v30  ;;  %v4006_v30 = vld [vmem:[#allocation21_spill] sm:$0xff] }
  0xec   : > { %v1140_v17 = vadd.f32 %v1048_v20, %v984_v34  ;;  %v773_v34 = vrot.slane %v4006_v30, 2 }
  0xed   : > { %2182 = vmatmul.msk.f32.gmra.mxu1 %vm357_vm2, %v2624_v39  ;;  %v1211_v10 = vpop.f32.mrf.mxu0 }
  0xee   : > { %v3211_v48 = vadd.f32 %v1208_v56, %v1140_v17  ;;  %2216 = vmatmul.msk.f32.gmra.mxu2 %vm357_vm2, %v3207_v23  ;;  %v4007_v17 = vld [vmem:[#allocation29_spill] sm:$0xff] }
  0xef   : > { %2250 = vmatmul.msk.f32.gmra.mxu3 %vm357_vm2, %v2709_v11 }
  0xf0   : > { %2284 = vmatmul.msk.f32.gmra.mxu0 %vm357_vm2, %v2794_v58 }
  0xf1   : > { %v895_v33 = vpop.f32.mrf.mxu2 }
  0xf2   : > { %v1051_v39 = vpop.f32.mrf.mxu3  ;;  %v985_v51 = vadd.f32 %v895_v33, %v633_v52  ;;  %v635_v56 = vpop.f32.mrf.mxu1 }
  0xf3   : > { %v636_v38 = vadd.f32 %v635_v56, %v3087_v36  ;;  %v4009_v36 = vld [vmem:[#allocation25_spill] sm:$0xff]  ;;  %v775_v56 = vrot.slane %v2806_v14, 2 }
  0xf4   : > { %v1141_v50 = vadd.f32 %v1051_v39, %v985_v51  ;;  %v776_v30 = vrot.slane %v4009_v36, 2 }
  0xf5   : > { %2183 = vmatmul.msk.f32.gmra.mxu1 %vm357_vm2, %v2706_v9  ;;  %v1214_v41 = vpop.f32.mrf.mxu0 }
  0xf6   : > { %v3227_v20 = vadd.f32 %v1211_v10, %v1141_v50  ;;  %2217 = vmatmul.msk.f32.gmra.mxu2 %vm357_vm2, %v3223_v26  ;;  %v3238_v10 = vsel %vm719_vm3, %v771_v21, %v773_v34 }
  0xf7   : > { %2251 = vmatmul.msk.f32.gmra.mxu3 %vm357_vm2, %v2806_v14 }
  0xf8   : > { %4005 = vst [vmem:[#allocation54_spill] sm:$0xff] %v3227_v20  ;;  %2285 = vmatmul.msk.f32.gmra.mxu0 %vm357_vm2, %v4007_v17 }
  0xf9   : > { %v898_v57 = vpop.f32.mrf.mxu2 }
  0xfa   : > { %v1054_v52 = vpop.f32.mrf.mxu3  ;;  %v986_v33 = vadd.f32 %v898_v57, %v636_v38  ;;  %v638_v9 = vpop.f32.mrf.mxu1  ;;  %v3254_v57 = vsel %vm719_vm3, %v775_v56, %v776_v30 }
  0xfb   : > { %v639_v21 = vadd.f32 %v638_v9, %v3107_v47  ;;  %v4011_v47 = vld [vmem:[#allocation2_spill] sm:$0xff]  ;;  %v4012_v9 = vld [vmem:[#allocation31_spill] sm:$0xff] }
  0xfc   : > { %v1142_v39 = vadd.f32 %v1054_v52, %v986_v33 }
  0xfd   : > { %2184 = vmatmul.msk.f32.gmra.mxu1 %vm357_vm2, %v2709_v11  ;;  %v1217_v51 = vpop.f32.mrf.mxu0 }
  0xfe   : > { %v3242_v50 = vadd.f32 %v1214_v41, %v1142_v39  ;;  %2218 = vmatmul.msk.f32.gmra.mxu2 %vm357_vm2, %v3238_v10 }
  0xff   : > { %2252 = vmatmul.msk.f32.gmra.mxu3 %vm357_vm2, %v4009_v36 }
 0x100   : > { %4008 = vst [vmem:[#allocation21_spill] sm:$0xff] %v3242_v50  ;;  %2286 = vmatmul.msk.f32.gmra.mxu0 %vm357_vm2, %v2886_v13  ;;  %v778_v50 = vrot.slane %v4012_v9, 2 }
 0x101   : > { %v901_v34 = vpop.f32.mrf.mxu2 }
 0x102   : > { %v1057_v11 = vpop.f32.mrf.mxu3  ;;  %v987_v38 = vadd.f32 %v901_v34, %v639_v21  ;;  %v641_v41 = vpop.f32.mrf.mxu1  ;;  %v4013_v34 = vld [vmem:[#allocation5_spill] sm:$0xff] }
 0x103   : > { %v642_v21 = vadd.f32 %v641_v41, %v3128_v4  ;;  %v4015_v4 = vld [vmem:[#allocation3_spill] sm:$0xff]  ;;  %v780_v41 = vrot.slane %v4011_v47, 2 }
 0x104   : > { %v1143_v52 = vadd.f32 %v1057_v11, %v987_v38  ;;  %v781_v9 = vrot.slane %v4015_v4, 2 }
 0x105   : > { %2185 = vmatmul.msk.f32.gmra.mxu1 %vm357_vm2, %v2806_v14  ;;  %v1220_v33 = vpop.f32.mrf.mxu0 }
 0x106   : > { %v3258_v39 = vadd.f32 %v1217_v51, %v1143_v52  ;;  %2219 = vmatmul.msk.f32.gmra.mxu2 %vm357_vm2, %v3254_v57  ;;  %v3269_v51 = vsel %vm719_vm3, %v776_v30, %v778_v50  ;;  %v4016_v30 = vld [vmem:[#allocation9_spill] sm:$0xff] }
 0x107   : > { %2253 = vmatmul.msk.f32.gmra.mxu3 %vm357_vm2, %v4011_v47 }
 0x108   : > { %4010 = vst [vmem:[#allocation29_spill] sm:$0xff] %v3258_v39  ;;  %2287 = vmatmul.msk.f32.gmra.mxu0 %vm357_vm2, %v4013_v34 }
 0x109   : > { %v904_v56 = vpop.f32.mrf.mxu2 }
 0x10a   : > { %v1060_v11 = vpop.f32.mrf.mxu3  ;;  %v988_v38 = vadd.f32 %v904_v56, %v642_v21  ;;  %v644_v14 = vpop.f32.mrf.mxu1 }
 0x10b   : > { %v645_v50 = vadd.f32 %v644_v14, %v3148_v35  ;;  %v4019_v35 = vld [vmem:[#allocation10_spill] sm:$0xff] }
 0x10c   : > { %v1144_v52 = vadd.f32 %v1060_v11, %v988_v38  ;;  %v3285_v11 = vsel %vm719_vm3, %v780_v41, %v781_v9  ;;  %v4020_v14 = vld [vmem:[#allocation6_spill] sm:$0xff] }
 0x10d   : > { %2186 = vmatmul.msk.f32.gmra.mxu1 %vm357_vm2, %v4009_v36  ;;  %v1223_v39 = vpop.f32.mrf.mxu0  ;;  %4017 = vst [vmem:[#allocation2_spill] sm:$0xff] %v3285_v11 }
 0x10e   : > { %v3273_v20 = vadd.f32 %v1220_v33, %v1144_v52  ;;  %2220 = vmatmul.msk.f32.gmra.mxu2 %vm357_vm2, %v3269_v51 }
 0x10f   : > { %2254 = vmatmul.msk.f32.gmra.mxu3 %vm357_vm2, %v4015_v4 }
 0x110   : > { %4014 = vst [vmem:[#allocation25_spill] sm:$0xff] %v3273_v20  ;;  %2288 = vmatmul.msk.f32.gmra.mxu0 %vm357_vm2, %v4016_v30  ;;  %v783_v30 = vrot.slane %v4020_v14, 2 }
 0x111   : > { %v907_v21 = vpop.f32.mrf.mxu2 }
 0x112   : > { %v1063_v36 = vpop.f32.mrf.mxu3  ;;  %v989_v56 = vadd.f32 %v907_v21, %v645_v50  ;;  %v647_v33 = vpop.f32.mrf.mxu1  ;;  %v4021_v21 = vld [vmem:[#allocation13_spill] sm:$0xff] }
 0x113   : > { %v648_v50 = vadd.f32 %v647_v33, %v2998_v31  ;;  %v4023_v31 = vld [vmem:[#allocation11_spill] sm:$0xff]  ;;  %v785_v33 = vrot.slane %v4019_v35, 2 }
 0x114   : > { %v1145_v38 = vadd.f32 %v1063_v36, %v989_v56  ;;  %v786_v14 = vrot.slane %v4023_v31, 2 }
 0x115   : > { %2187 = vmatmul.msk.f32.gmra.mxu1 %vm357_vm2, %v4011_v47  ;;  %v1226_v52 = vpop.f32.mrf.mxu0 }
 0x116   : > { %v3289_v20 = vadd.f32 %v1223_v39, %v1145_v38  ;;  %2221 = vmatmul.msk.f32.gmra.mxu2 %vm357_vm2, %v3285_v11  ;;  %v3300_v39 = vsel %vm719_vm3, %v781_v9, %v783_v30  ;;  %v4024_v30 = vld [vmem:[#allocation16_spill] sm:$0xff] }
 0x117   : > { %2255 = vmatmul.msk.f32.gmra.mxu3 %vm357_vm2, %v4019_v35 }
 0x118   : > { %4018 = vst [vmem:[#allocation31_spill] sm:$0xff] %v3289_v20  ;;  %2289 = vmatmul.msk.f32.gmra.mxu0 %vm357_vm2, %v4021_v21 }
 0x119   : > { %v910_v41 = vpop.f32.mrf.mxu2 }
 0x11a   : > { %v1066_v36 = vpop.f32.mrf.mxu3  ;;  %v990_v56 = vadd.f32 %v910_v41, %v648_v50  ;;  %v650_v47 = vpop.f32.mrf.mxu1 }
 0x11b   : > { %v651_v9 = vadd.f32 %v650_v47, %v3018_v46  ;;  %v4027_v46 = vld [vmem:[#allocation17_spill] sm:$0xff]  ;;  %v4028_v47 = vld [vmem:[#allocation14_spill] sm:$0xff] }
 0x11c   : > { %v1146_v38 = vadd.f32 %v1066_v36, %v990_v56  ;;  %v3316_v36 = vsel %vm719_vm3, %v785_v33, %v786_v14 }
 0x11d   : > { %2188 = vmatmul.msk.f32.gmra.mxu1 %vm357_vm2, %v4015_v4  ;;  %v1229_v20 = vpop.f32.mrf.mxu0  ;;  %4025 = vst [vmem:[#allocation3_spill] sm:$0xff] %v3316_v36 }
 0x11e   : > { %v3304_v11 = vadd.f32 %v1226_v52, %v1146_v38  ;;  %2222 = vmatmul.msk.f32.gmra.mxu2 %vm357_vm2, %v3300_v39 }
 0x11f   : > { %2256 = vmatmul.msk.f32.gmra.mxu3 %vm357_vm2, %v4023_v31 }
 0x120   : > { %4022 = vst [vmem:[#allocation5_spill] sm:$0xff] %v3304_v11  ;;  %2290 = vmatmul.msk.f32.gmra.mxu0 %vm357_vm2, %v4024_v30  ;;  %v788_v30 = vrot.slane %v4028_v47, 2 }
 0x121   : > { %v913_v50 = vpop.f32.mrf.mxu2 }
 0x122   : > { %v1069_v4 = vpop.f32.mrf.mxu3  ;;  %v991_v41 = vadd.f32 %v913_v50, %v651_v9  ;;  %v653_v52 = vpop.f32.mrf.mxu1  ;;  %v4029_v50 = vld [vmem:[#allocation20_spill] sm:$0xff] }
 0x123   : > { %v654_v9 = vadd.f32 %v653_v52, %v3039_v6  ;;  %v4031_v6 = vld [vmem:[#allocation18_spill] sm:$0xff]  ;;  %v790_v52 = vrot.slane %v4027_v46, 2 }
 0x124   : > { %v1147_v56 = vadd.f32 %v1069_v4, %v991_v41  ;;  %v791_v47 = vrot.slane %v4031_v6, 2 }
 0x125   : > { %2189 = vmatmul.msk.f32.gmra.mxu1 %vm357_vm2, %v4019_v35  ;;  %v1232_v38 = vpop.f32.mrf.mxu0 }
 0x126   : > { %v3320_v11 = vadd.f32 %v1229_v20, %v1147_v56  ;;  %2223 = vmatmul.msk.f32.gmra.mxu2 %vm357_vm2, %v3316_v36  ;;  %v3331_v20 = vsel %vm719_vm3, %v786_v14, %v788_v30  ;;  %v4032_v30 = vld [vmem:[#allocation24_spill] sm:$0xff] }
 0x127   : > { %2257 = vmatmul.msk.f32.gmra.mxu3 %vm357_vm2, %v4027_v46 }
 0x128   : > { %4026 = vst [vmem:[#allocation10_spill] sm:$0xff] %v3320_v11  ;;  %2291 = vmatmul.msk.f32.gmra.mxu0 %vm357_vm2, %v4029_v50 }
 0x129   : > { %v916_v33 = vpop.f32.mrf.mxu2 }
 0x12a   : > { %v1072_v4 = vpop.f32.mrf.mxu3  ;;  %v992_v41 = vadd.f32 %v916_v33, %v654_v9  ;;  %v656_v35 = vpop.f32.mrf.mxu1 }
 0x12b   : > { %v657_v14 = vadd.f32 %v656_v35, %v3059_v1  ;;  %v4035_v1 = vld [vmem:[#allocation26_spill] sm:$0xff] }
 0x12c   : > { %v1148_v56 = vadd.f32 %v1072_v4, %v992_v41  ;;  %v3347_v4 = vsel %vm719_vm3, %v790_v52, %v791_v47  ;;  %v4036_v35 = vld [vmem:[#allocation22_spill] sm:$0xff] }
 0x12d   : > { %2190 = vmatmul.msk.f32.gmra.mxu1 %vm357_vm2, %v4023_v31  ;;  %v1235_v11 = vpop.f32.mrf.mxu0  ;;  %4033 = vst [vmem:[#allocation13_spill] sm:$0xff] %v3347_v4  ;;  %v4037_v52 = vld [vmem:[#allocation30_spill] sm:$0xff] }
 0x12e   : > { %v3335_v36 = vadd.f32 %v1232_v38, %v1148_v56  ;;  %2224 = vmatmul.msk.f32.gmra.mxu2 %vm357_vm2, %v3331_v20 }
 0x12f   : > { %2258 = vmatmul.msk.f32.gmra.mxu3 %vm357_vm2, %v4031_v6 }
 0x130   : > { %4030 = vst [vmem:[#allocation6_spill] sm:$0xff] %v3335_v36  ;;  %2292 = vmatmul.msk.f32.gmra.mxu0 %vm357_vm2, %v4032_v30 }
 0x131   : > { %v919_v9 = vpop.f32.mrf.mxu2 }
 0x132   : > { %v1075_v31 = vpop.f32.mrf.mxu3  ;;  %v993_v33 = vadd.f32 %v919_v9, %v657_v14  ;;  %v659_v38 = vpop.f32.mrf.mxu1  ;;  %v793_v14 = vrot.slane %v4036_v35, 2  ;;  %v795_v35 = vrot.slane %v4035_v1, 2 }
 0x133   : > { %v660_v9 = vadd.f32 %v659_v38, %v3080_v37  ;;  %v4039_v37 = vld [vmem:[#allocation27_spill] sm:$0xff] }
 0x134   : > { %v1149_v41 = vadd.f32 %v1075_v31, %v993_v33  ;;  %v3373_v38 = vld [vmem:[%s2538_s27 + $0x188] sm:$0xff] }
 0x135   : > { %2191 = vmatmul.msk.f32.gmra.mxu1 %vm357_vm2, %v4027_v46  ;;  %v1238_v56 = vpop.f32.mrf.mxu0 }
 0x136   : > { %v3351_v36 = vadd.f32 %v1235_v11, %v1149_v41  ;;  %2225 = vmatmul.msk.f32.gmra.mxu2 %vm357_vm2, %v3347_v4  ;;  %v3362_v41 = vsel %vm719_vm3, %v791_v47, %v793_v14  ;;  %v796_v47 = vrot.slane %v4039_v37, 2 }
 0x137   : > { %2259 = vmatmul.msk.f32.gmra.mxu3 %vm357_vm2, %v4035_v1 }
 0x138   : > { %4034 = vst [vmem:[#allocation11_spill] sm:$0xff] %v3351_v36  ;;  %2293 = vmatmul.msk.f32.gmra.mxu0 %vm357_vm2, %v4037_v52 }
 0x139   : > { %v922_v31 = vpop.f32.mrf.mxu2 }
 0x13a   : > { %v1078_v46 = vpop.f32.mrf.mxu3  ;;  %v994_v33 = vadd.f32 %v922_v31, %v660_v9  ;;  %v662_v11 = vpop.f32.mrf.mxu1  ;;  %v3379_v9 = vld [vmem:[%s2538_s27 + $0x180] sm:$0xff]  ;;  %v1172_v31 = vrot.slane %v3373_v38, 1 }
 0x13b   : > { %v663_v14 = vadd.f32 %v662_v11, %v3100_v53  ;;  %4040 = vst [vmem:[#allocation14_spill] sm:$0xff] %v3379_v9 }
 0x13c   : > { %v1150_v36 = vadd.f32 %v1078_v46, %v994_v33 }
 0x13d   : > { %2192 = vmatmul.msk.f32.gmra.mxu1 %vm357_vm2, %v4031_v6  ;;  %v1241_v30 = vpop.f32.mrf.mxu0 }
 0x13e   : > { %v3366_v4 = vadd.f32 %v1238_v56, %v1150_v36  ;;  %2226 = vmatmul.msk.f32.gmra.mxu2 %vm357_vm2, %v3362_v41  ;;  %v1171_v56 = vrot.slane %v3379_v9, 1 }
 0x13f   : > { %2260 = vmatmul.msk.f32.gmra.mxu3 %vm357_vm2, %v4039_v37 }
 0x140   : > { %4038 = vst [vmem:[#allocation17_spill] sm:$0xff] %v3366_v4  ;;  %2294 = vmatmul.msk.f32.gmra.mxu0 %vm357_vm2, %v2889_v3  ;;  %v3386_v4 = vsel %vm719_vm3, %v795_v35, %v796_v47  ;;  %v3391_v11 = vsel %vm274_vm1, %v1171_v56, %v1172_v31  ;;  %v798_v35 = vrot.slane %v2862_v15, 2 }
 0x141   : > { %v925_v36 = vpop.f32.mrf.mxu2 }
 0x142   : > { %v1081_v6 = vpop.f32.mrf.mxu3  ;;  %v995_v46 = vadd.f32 %v925_v36, %v663_v14  ;;  %v665_v33 = vpop.f32.mrf.mxu1  ;;  %v3400_v14 = vld [vmem:[%s2538_s27 + $0x190] sm:$0x3] }
 0x143   : > { %v666_v36 = vadd.f32 %v665_v33, %v3121_v8 }
 0x144   : > { %v1151_v52 = vadd.f32 %v1081_v6, %v995_v46  ;;  %v3408_v46 = vsel %vm719_vm3, %v796_v47, %v798_v35 }
 0x145   : > { %2193 = vmatmul.msk.f32.gmra.mxu1 %vm357_vm2, %v4035_v1  ;;  %v1244_v53 = vpop.f32.mrf.mxu0 }
 0x146   : > { %v3393_v3 = vadd.f32 %v1241_v30, %v1151_v52  ;;  %2227 = vmatmul.msk.f32.gmra.mxu2 %vm357_vm2, %v3386_v4  ;;  %v1174_v30 = vrot.slane %v3400_v14, 1 }
 0x147   : > { %2261 = vmatmul.msk.f32.gmra.mxu3 %vm357_vm2, %v3379_v9 }
 0x148   : > { %4041 = vst [vmem:[#allocation20_spill] sm:$0xff] %v3393_v3  ;;  %2295 = vmatmul.msk.f32.gmra.mxu0 %vm357_vm2, %v3391_v11  ;;  %v3413_v15 = vsel %vm274_vm1, %v1172_v31, %v1174_v30 }
 0x149   : > { %v928_v1 = vpop.f32.mrf.mxu2 }
 0x14a   : > { %v1084_v6 = vpop.f32.mrf.mxu3  ;;  %v996_v52 = vadd.f32 %v928_v1, %v666_v36  ;;  %v668_v56 = vpop.f32.mrf.mxu1 }
 0x14b   : > { %v669_v33 = vadd.f32 %v668_v56, %v3141_v5 }
 0x14c   : > { %v1152_v3 = vadd.f32 %v1084_v6, %v996_v52 }
 0x14d   : > { %2194 = vmatmul.msk.f32.gmra.mxu1 %vm357_vm2, %v4039_v37  ;;  %v1247_v9 = vpop.f32.mrf.mxu0 }
 0x14e   : > { %v3415_v8 = vadd.f32 %v1244_v53, %v1152_v3  ;;  %2228 = vmatmul.msk.f32.gmra.mxu2 %vm357_vm2, %v3408_v46 }
 0x14f   : > { %2262 = vmatmul.msk.f32.gmra.mxu3 %vm357_vm2, %v3373_v38 }
 0x150   : > { %2296 = vmatmul.msk.f32.gmra.mxu0 %vm357_vm2, %v3413_v15 }
 0x151   : > { %v931_v47 = vpop.f32.mrf.mxu2 }
 0x152   : > { %v1087_v35 = vpop.f32.mrf.mxu3  ;;  %v997_v37 = vadd.f32 %v931_v47, %v669_v33  ;;  %v671_v36 = vpop.f32.mrf.mxu1 }
 0x153   : > { %v672_v5 = vadd.f32 %v671_v36, %v3014_v45 }
 0x154   : > { %v1153_v1 = vadd.f32 %v1087_v35, %v997_v37 }
 0x155   : > { %2299 = vmatmul.msk.f32.vlgmr.msra.gmra.mxu1 %vm357_vm2, %v2924_v28  ;;  %v1250_v3 = vpop.f32.mrf.mxu0 }
 0x156   : > { %v3426_v31 = vadd.f32 %v1247_v9, %v1153_v1  ;;  %2333 = vmatmul.msk.f32.vlgmr.msra.gmra.mxu2 %vm357_vm2, %v2729_v27 }
 0x157   : > { %2367 = vmatmul.msk.f32.vlgmr.msra.gmra.mxu3 %vm357_vm2, %v2764_v62 }
 0x158   : > { %2401 = vmatmul.msk.f32.vlgmr.msra.gmra.mxu0 %vm357_vm2, %v2949_v61 }
 0x159   : > { %v934_v53 = vpop.f32.mrf.mxu2 }
 0x15a   : > { %v1090_v6 = vpop.f32.mrf.mxu3  ;;  %v998_v30 = vadd.f32 %v934_v53, %v672_v5  ;;  %v674_v52 = vpop.f32.mrf.mxu1 }
 0x15b   : > { %v675_v27 = vadd.f32 %v674_v52, %v3035_v43 }
 0x15c   : > { %v1154_v56 = vadd.f32 %v1090_v6, %v998_v30 }
 0x15d   : > { %2300 = vmatmul.msk.f32.gmra.mxu1 %vm357_vm2, %v2936_v59  ;;  %v1253_v28 = vpop.f32.mrf.mxu0 }
 0x15e   : > { %v3437_v9 = vadd.f32 %v1250_v3, %v1154_v56  ;;  %2334 = vmatmul.msk.f32.gmra.mxu2 %vm357_vm2, %v2732_v29 }
 0x15f   : > { %2368 = vmatmul.msk.f32.gmra.mxu3 %vm357_vm2, %v2820_v25 }
 0x160   : > { %2402 = vmatmul.msk.f32.gmra.mxu0 %vm357_vm2, %v2961_v44 }
 0x161   : > { %v937_v62 = vpop.f32.mrf.mxu2 }
 0x162   : > { %v1093_v45 = vpop.f32.mrf.mxu3  ;;  %v999_v33 = vadd.f32 %v937_v62, %v675_v27  ;;  %v677_v47 = vpop.f32.mrf.mxu1 }
 0x163   : > { %v678_v29 = vadd.f32 %v677_v47, %v3055_v40  ;;  %v2450_v47 = vld [vmem:[%s2538_s27 + $0x68] sm:$0xff] }
 0x164   : > { %v1155_v35 = vadd.f32 %v1093_v45, %v999_v33 }
 0x165   : > { %2301 = vmatmul.msk.f32.gmra.mxu1 %vm357_vm2, %v2949_v61  ;;  %v1256_v59 = vpop.f32.mrf.mxu0 }
 0x166   : > { %v3448_v37 = vadd.f32 %v1253_v28, %v1155_v35  ;;  %2335 = vmatmul.msk.f32.gmra.mxu2 %vm357_vm2, %v2829_v60 }
 0x167   : > { %2369 = vmatmul.msk.f32.gmra.mxu3 %vm357_vm2, %v2867_v12 }
 0x168   : > { %2403 = vmatmul.msk.f32.gmra.mxu0 %vm357_vm2, %v2974_v63 }
 0x169   : > { %v940_v25 = vpop.f32.mrf.mxu2 }
 0x16a   : > { %v1096_v43 = vpop.f32.mrf.mxu3  ;;  %v1000_v36 = vadd.f32 %v940_v25, %v678_v29  ;;  %v680_v1 = vpop.f32.mrf.mxu1 }
 0x16b   : > { %v681_v12 = vadd.f32 %v680_v1, %v3076_v16  ;;  %v4042_v16 = vld [vmem:[#allocation34_spill] sm:$0xff] }
 0x16c   : > { %v1156_v3 = vadd.f32 %v1096_v43, %v1000_v36 }
 0x16d   : > { %2302 = vmatmul.msk.f32.gmra.mxu1 %vm357_vm2, %v2961_v44  ;;  %v1259_v61 = vpop.f32.mrf.mxu0 }
 0x16e   : > { %v3459_v5 = vadd.f32 %v1256_v59, %v1156_v3  ;;  %2336 = vmatmul.msk.f32.gmra.mxu2 %vm357_vm2, %v2832_v32  ;;  %v2449_v32 = vld [vmem:[%s2538_s27 + $0x60] sm:$0xff]  ;;  %v4045_v59 = vld [vmem:[#allocation36_spill] sm:$0xff] }
 0x16f   : > { %2370 = vmatmul.msk.f32.gmra.mxu3 %vm357_vm2, %v2894_v24 }
 0x170   : > { %2404 = vmatmul.msk.f32.gmra.mxu0 %vm357_vm2, %v2986_v55 }
 0x171   : > { %v943_v60 = vpop.f32.mrf.mxu2 }
 0x172   : > { %v1099_v40 = vpop.f32.mrf.mxu3  ;;  %v1001_v53 = vadd.f32 %v943_v60, %v681_v12  ;;  %v683_v6 = vpop.f32.mrf.mxu1  ;;  %v4046_v12 = vld [vmem:[#allocation12_spill] sm:$0xff] }
 0x173   : > { %v684_v24 = vadd.f32 %v683_v6, %v3096_v42  ;;  %v4044_v42 = vld [vmem:[#allocation45_spill] sm:$0xff]  ;;  %v4047_v60 = vld [vmem:[#allocation48_spill] sm:$0xff] }
 0x174   : > { %v1157_v30 = vadd.f32 %v1099_v40, %v1001_v53  ;;  %v4048_v53 = vld [vmem:[#allocation38_spill] sm:$0xff] }
 0x175   : > { %2303 = vmatmul.msk.f32.gmra.mxu1 %vm357_vm2, %v2974_v63  ;;  %v1262_v44 = vpop.f32.mrf.mxu0 }
 0x176   : > { %v3470_v52 = vadd.f32 %v1259_v61, %v1157_v30  ;;  %2337 = vmatmul.msk.f32.gmra.mxu2 %vm357_vm2, %v2449_v32  ;;  %v2451_v61 = vld [vmem:[%s2538_s27 + $0x78] sm:$0xff] }
 0x177   : > { %2371 = vmatmul.msk.f32.gmra.mxu3 %vm357_vm2, %v2571_v19  ;;  %v4043_v19 = vld [vmem:[#allocation7_spill] sm:$0xff] }
 0x178   : > { %2405 = vmatmul.msk.f32.gmra.mxu0 %vm357_vm2, %v4042_v16 }
 0x179   : > { %v946_v56 = vpop.f32.mrf.mxu2 }
 0x17a   : > { %v1102_v28 = vpop.f32.mrf.mxu3  ;;  %v1002_v27 = vadd.f32 %v946_v56, %v684_v24  ;;  %v686_v62 = vpop.f32.mrf.mxu1 }
 0x17b   : > { %v687_v35 = vadd.f32 %v686_v62, %v4044_v42  ;;  %v4050_v62 = vld [vmem:[#allocation51_spill] sm:$0xff] }
 0x17c   : > { %v1158_v63 = vadd.f32 %v1102_v28, %v1002_v27  ;;  %v2452_v28 = vld [vmem:[%s2538_s27 + $0x80] sm:$0xff]  ;;  %v4049_v27 = vld [vmem:[#allocation15_spill] sm:$0xff] }
 0x17d   : > { %2304 = vmatmul.msk.f32.gmra.mxu1 %vm357_vm2, %v2986_v55  ;;  %v1265_v45 = vpop.f32.mrf.mxu0 }
 0x17e   : > { %v3481_v33 = vadd.f32 %v1262_v44, %v1158_v63  ;;  %2338 = vmatmul.msk.f32.gmra.mxu2 %vm357_vm2, %v2450_v47 }
 0x17f   : > { %2372 = vmatmul.msk.f32.gmra.mxu3 %vm357_vm2, %v4043_v19 }
 0x180   : > { %2406 = vmatmul.msk.f32.gmra.mxu0 %vm357_vm2, %v4045_v59 }
 0x181   : > { %v949_v29 = vpop.f32.mrf.mxu2 }
 0x182   : > { %v1105_v25 = vpop.f32.mrf.mxu3  ;;  %v1003_v43 = vadd.f32 %v949_v29, %v687_v35  ;;  %v689_v36 = vpop.f32.mrf.mxu1 }
 0x183   : > { %v690_v40 = vadd.f32 %v689_v36, %v4047_v60  ;;  %v4052_v36 = vld [vmem:[#allocation19_spill] sm:$0xff] }
 0x184   : > { %v1159_v55 = vadd.f32 %v1105_v25, %v1003_v43  ;;  %v2453_v43 = vld [vmem:[%s2538_s27 + $0x90] sm:$0xff] }
 0x185   : > { %2305 = vmatmul.msk.f32.gmra.mxu1 %vm357_vm2, %v4042_v16  ;;  %v1268_v1 = vpop.f32.mrf.mxu0 }
 0x186   : > { %v3492_v3 = vadd.f32 %v1265_v45, %v1159_v55  ;;  %2339 = vmatmul.msk.f32.gmra.mxu2 %vm357_vm2, %v2451_v61  ;;  %v4051_v45 = vld [vmem:[#allocation40_spill] sm:$0xff]  ;;  %v4053_v55 = vld [vmem:[#allocation35_spill] sm:$0xff]  ;;  %v4054_v61 = vld [vmem:[#allocation42_spill] sm:$0xff] }
 0x187   : > { %2373 = vmatmul.msk.f32.gmra.mxu3 %vm357_vm2, %v4046_v12 }
 0x188   : > { %2407 = vmatmul.msk.f32.gmra.mxu0 %vm357_vm2, %v4048_v53 }
 0x189   : > { %v952_v6 = vpop.f32.mrf.mxu2 }
 0x18a   : > { %v1108_v30 = vpop.f32.mrf.mxu3  ;;  %v1004_v44 = vadd.f32 %v952_v6, %v690_v40  ;;  %v692_v32 = vpop.f32.mrf.mxu1 }
 0x18b   : > { %v693_v63 = vadd.f32 %v692_v32, %v4050_v62  ;;  %v2454_v32 = vld [vmem:[%s2538_s27 + $0x98] sm:$0xff] }
 0x18c   : > { %v1160_v24 = vadd.f32 %v1108_v30, %v1004_v44 }
 0x18d   : > { %2306 = vmatmul.msk.f32.gmra.mxu1 %vm357_vm2, %v4045_v59  ;;  %v1271_v16 = vpop.f32.mrf.mxu0 }
 0x18e   : > { %v3503_v56 = vadd.f32 %v1268_v1, %v1160_v24  ;;  %2340 = vmatmul.msk.f32.gmra.mxu2 %vm357_vm2, %v2452_v28  ;;  %v4055_v24 = vld [vmem:[#allocation23_spill] sm:$0xff] }
 0x18f   : > { %2374 = vmatmul.msk.f32.gmra.mxu3 %vm357_vm2, %v4049_v27  ;;  %v4057_v27 = vld [vmem:[#allocation44_spill] sm:$0xff] }
 0x190   : > { %2408 = vmatmul.msk.f32.gmra.mxu0 %vm357_vm2, %v4051_v45 }
 0x191   : > { %v955_v47 = vpop.f32.mrf.mxu2 }
 0x192   : > { %v1111_v19 = vpop.f32.mrf.mxu3  ;;  %v1005_v42 = vadd.f32 %v955_v47, %v693_v63  ;;  %v695_v35 = vpop.f32.mrf.mxu1 }
 0x193   : > { %v696_v1 = vadd.f32 %v695_v35, %v4053_v55  ;;  %v4060_v55 = vld [vmem:[#allocation47_spill] sm:$0xff] }
 0x194   : > { %v1161_v59 = vadd.f32 %v1111_v19, %v1005_v42 }
 0x195   : > { %2307 = vmatmul.msk.f32.gmra.mxu1 %vm357_vm2, %v4048_v53  ;;  %v1274_v29 = vpop.f32.mrf.mxu0 }
 0x196   : > { %v3514_v25 = vadd.f32 %v1271_v16, %v1161_v59  ;;  %2341 = vmatmul.msk.f32.gmra.mxu2 %vm357_vm2, %v2453_v43  ;;  %v4056_v16 = vld [vmem:[#allocation37_spill] sm:$0xff]  ;;  %v2455_v59 = vld [vmem:[%s2538_s27 + $0xa8] sm:$0xff] }
 0x197   : > { %2375 = vmatmul.msk.f32.gmra.mxu3 %vm357_vm2, %v4052_v36  ;;  %v4059_v43 = vld [vmem:[#allocation39_spill] sm:$0xff] }
 0x198   : > { %2409 = vmatmul.msk.f32.gmra.mxu0 %vm357_vm2, %v4054_v61 }
 0x199   : > { %v958_v12 = vpop.f32.mrf.mxu2 }
 0x19a   : > { %v1114_v60 = vpop.f32.mrf.mxu3  ;;  %v1006_v40 = vadd.f32 %v958_v12, %v696_v1  ;;  %v698_v6 = vpop.f32.mrf.mxu1 }
 0x19b   : > { %v699_v28 = vadd.f32 %v698_v6, %v4056_v16 }
 0x19c   : > { %v1162_v53 = vadd.f32 %v1114_v60, %v1006_v40 }
 0x19d   : > { %2308 = vmatmul.msk.f32.gmra.mxu1 %vm357_vm2, %v4051_v45  ;;  %v1277_v30 = vpop.f32.mrf.mxu0 }
 0x19e   : > { %v3525_v44 = vadd.f32 %v1274_v29, %v1162_v53  ;;  %2342 = vmatmul.msk.f32.gmra.mxu2 %vm357_vm2, %v2454_v32  ;;  %v4058_v29 = vld [vmem:[#allocation28_spill] sm:$0xff] }
 0x19f   : > { %2376 = vmatmul.msk.f32.gmra.mxu3 %vm357_vm2, %v4055_v24  ;;  %v4061_v32 = vld [vmem:[#allocation32_spill] sm:$0xff]  ;;  %v4062_v24 = vld [vmem:[#allocation41_spill] sm:$0xff] }
 0x1a0   : > { %2410 = vmatmul.msk.f32.gmra.mxu0 %vm357_vm2, %v4057_v27 }
 0x1a1   : > { %v961_v62 = vpop.f32.mrf.mxu2 }
 0x1a2   : > { %v1117_v63 = vpop.f32.mrf.mxu3  ;;  %v1007_v47 = vadd.f32 %v961_v62, %v699_v28  ;;  %v701_v19 = vpop.f32.mrf.mxu1  ;;  %v4063_v28 = vld [vmem:[#allocation50_spill] sm:$0xff] }
 0x1a3   : > { %v702_v36 = vadd.f32 %v701_v19, %v4059_v43  ;;  %v4065_v43 = vld [vmem:[#allocation43_spill] sm:$0xff] }
 0x1a4   : > { %v1163_v45 = vadd.f32 %v1117_v63, %v1007_v47 }
 0x1a5   : > { %2309 = vmatmul.msk.f32.gmra.mxu1 %vm357_vm2, %v4054_v61  ;;  %v1280_v42 = vpop.f32.mrf.mxu0 }
 0x1a6   : > { %v3536_v35 = vadd.f32 %v1277_v30, %v1163_v45  ;;  %2343 = vmatmul.msk.f32.gmra.mxu2 %vm357_vm2, %v2455_v59  ;;  %v2456_v30 = vld [vmem:[%s2538_s27 + $0xb0] sm:$0xff]  ;;  %v2457_v59 = vld [vmem:[%s2538_s27 + $0xc0] sm:$0xff] }
 0x1a7   : > { %2377 = vmatmul.msk.f32.gmra.mxu3 %vm357_vm2, %v4058_v29  ;;  %v4064_v29 = vld [vmem:[#allocation4_spill] sm:$0xff] }
 0x1a8   : > { %2411 = vmatmul.msk.f32.gmra.mxu0 %vm357_vm2, %v4060_v55 }
 0x1a9   : > { %v964_v1 = vpop.f32.mrf.mxu2 }
 0x1aa   : > { %v1120_v12 = vpop.f32.mrf.mxu3  ;;  %v1008_v60 = vadd.f32 %v964_v1, %v702_v36  ;;  %v704_v40 = vpop.f32.mrf.mxu1  ;;  %v4066_v1 = vld [vmem:[#allocation53_spill] sm:$0xff] }
 0x1ab   : > { %v705_v16 = vadd.f32 %v704_v40, %v4062_v24  ;;  %v4067_v24 = vld [vmem:[#allocation8_spill] sm:$0xff] }
 0x1ac   : > { %v1164_v61 = vadd.f32 %v1120_v12, %v1008_v60 }
 0x1ad   : > { %2310 = vmatmul.msk.f32.gmra.mxu1 %vm357_vm2, %v4057_v27  ;;  %v1283_v6 = vpop.f32.mrf.mxu0 }
 0x1ae   : > { %v3547_v53 = vadd.f32 %v1280_v42, %v1164_v61  ;;  %2344 = vmatmul.msk.f32.gmra.mxu2 %vm357_vm2, %v2456_v30 }
 0x1af   : > { %2378 = vmatmul.msk.f32.gmra.mxu3 %vm357_vm2, %v4061_v32  ;;  %v2458_v32 = vld [vmem:[%s2538_s27 + $0xc8] sm:$0xff] }
 0x1b0   : > { %2412 = vmatmul.msk.f32.gmra.mxu0 %vm357_vm2, %v4063_v28 }
 0x1b1   : > { %v967_v62 = vpop.f32.mrf.mxu2 }
 0x1b2   : > { %v1123_v63 = vpop.f32.mrf.mxu3  ;;  %v1009_v47 = vadd.f32 %v967_v62, %v705_v16  ;;  %v707_v19 = vpop.f32.mrf.mxu1  ;;  %v4068_v16 = vld [vmem:[#allocation46_spill] sm:$0xff] }
 0x1b3   : > { %v708_v36 = vadd.f32 %v707_v19, %v4065_v43  ;;  %v4069_v43 = vld [vmem:[#allocation49_spill] sm:$0xff] }
 0x1b4   : > { %v1165_v27 = vadd.f32 %v1123_v63, %v1009_v47 }
 0x1b5   : > { %2311 = vmatmul.msk.f32.gmra.mxu1 %vm357_vm2, %v4060_v55  ;;  %v1286_v45 = vpop.f32.mrf.mxu0 }
 0x1b6   : > { %v3558_v42 = vadd.f32 %v1283_v6, %v1165_v27  ;;  %2345 = vmatmul.msk.f32.gmra.mxu2 %vm357_vm2, %v2457_v59 }
 0x1b7   : > { %2379 = vmatmul.msk.f32.gmra.mxu3 %vm357_vm2, %v4064_v29  ;;  %v2459_v29 = vld [vmem:[%s2538_s27 + $0xd8] sm:$0xff] }
 0x1b8   : > { %2413 = vmatmul.msk.f32.gmra.mxu0 %vm357_vm2, %v4066_v1 }
 0x1b9   : > { %v970_v12 = vpop.f32.mrf.mxu2 }
 0x1ba   : > { %v1126_v60 = vpop.f32.mrf.mxu3  ;;  %v1010_v40 = vadd.f32 %v970_v12, %v708_v36  ;;  %v710_v61 = vpop.f32.mrf.mxu1 }
 0x1bb   : > { %v711_v62 = vadd.f32 %v710_v61, %v4068_v16 }
 0x1bc   : > { %v1166_v55 = vadd.f32 %v1126_v60, %v1010_v40 }
 0x1bd   : > { %2312 = vmatmul.msk.f32.gmra.mxu1 %vm357_vm2, %v4063_v28  ;;  %v1289_v6 = vpop.f32.mrf.mxu0 }
 0x1be   : > { %v3569_v30 = vadd.f32 %v1286_v45, %v1166_v55  ;;  %2346 = vmatmul.msk.f32.gmra.mxu2 %vm357_vm2, %v2458_v32  ;;  %v2460_v32 = vld [vmem:[%s2538_s27 + $0xe0] sm:$0xff] }
 0x1bf   : > { %2380 = vmatmul.msk.f32.gmra.mxu3 %vm357_vm2, %v4067_v24 }
 0x1c0   : > { %2414 = vmatmul.msk.f32.gmra.mxu0 %vm357_vm2, %v3176_v7 }
 0x1c1   : > { %v973_v63 = vpop.f32.mrf.mxu2 }
 0x1c2   : > { %v1129_v47 = vpop.f32.mrf.mxu3  ;;  %v1011_v19 = vadd.f32 %v973_v63, %v711_v62  ;;  %v713_v27 = vpop.f32.mrf.mxu1 }
 0x1c3   : > { %v714_v36 = vadd.f32 %v713_v27, %v4069_v43 }
 0x1c4   : > { %v1167_v28 = vadd.f32 %v1129_v47, %v1011_v19 }
 0x1c5   : > { %2313 = vmatmul.msk.f32.gmra.mxu1 %vm357_vm2, %v4066_v1  ;;  %v1292_v45 = vpop.f32.mrf.mxu0 }
 0x1c6   : > { %v3580_v59 = vadd.f32 %v1289_v6, %v1167_v28  ;;  %2347 = vmatmul.msk.f32.gmra.mxu2 %vm357_vm2, %v2459_v29  ;;  %v2461_v28 = vld [vmem:[%s2538_s27 + $0xf0] sm:$0xff] }
 0x1c7   : > { %2381 = vmatmul.msk.f32.gmra.mxu3 %vm357_vm2, %v2658_v54  ;;  %v4070_v54 = vld [vmem:[#allocation52_spill] sm:$0xff] }
 0x1c8   : > { %2415 = vmatmul.msk.f32.gmra.mxu0 %vm357_vm2, %v3192_v0 }
 0x1c9   : > { %v976_v12 = vpop.f32.mrf.mxu2 }
 0x1ca   : > { %v1132_v60 = vpop.f32.mrf.mxu3  ;;  %v1012_v40 = vadd.f32 %v976_v12, %v714_v36  ;;  %v716_v61 = vpop.f32.mrf.mxu1  ;;  %v3614_v12 = vld [vmem:[%s3876_s2] ss:$0 sm:$0xff] }
 0x1cb   : > { %v717_v24 = vadd.f32 %v716_v61, %v4070_v54 }
 0x1cc   : > { %v1168_v1 = vadd.f32 %v1132_v60, %v1012_v40 }
 0x1cd   : > { %2314 = vmatmul.msk.f32.gmra.mxu1 %vm357_vm2, %v3176_v7  ;;  %v1295_v55 = vpop.f32.mrf.mxu0 }
 0x1ce   : > { %v3591_v6 = vadd.f32 %v1292_v45, %v1168_v1  ;;  %2348 = vmatmul.msk.f32.gmra.mxu2 %vm357_vm2, %v2460_v32 }
 0x1cf   : > { %2382 = vmatmul.msk.f32.gmra.mxu3 %vm357_vm2, %v2694_v2 }
 0x1d0   : > { %2416 = vmatmul.msk.f32.gmra.mxu0 %vm357_vm2, %v3207_v23 }
 0x1d1   : > { %v979_v16 = vpop.f32.mrf.mxu2 }
 0x1d2   : > { %v1135_v62 = vpop.f32.mrf.mxu3  ;;  %v1013_v63 = vadd.f32 %v979_v16, %v717_v24  ;;  %v1361_v47 = vpop.f32.mrf.mxu1  ;;  %v2463_v16 = vld [vmem:[%s2538_s27 + $0x108] sm:$0xff] }
 0x1d3   : > { %v1457_v2 = vadd.f32 %v1361_v47, %v3180_v18  ;;  %v2462_v18 = vld [vmem:[%s2538_s27 + $0xf8] sm:$0xff] }
 0x1d4   : > { %v1169_v7 = vadd.f32 %v1135_v62, %v1013_v63 }
 0x1d5   : > { %2315 = vmatmul.msk.f32.gmra.mxu1 %vm357_vm2, %v3192_v0  ;;  %v1836_v19 = vpop.f32.mrf.mxu0 }
 0x1d6   : > { %v3602_v27 = vadd.f32 %v1295_v55, %v1169_v7  ;;  %2349 = vmatmul.msk.f32.gmra.mxu2 %vm357_vm2, %v2461_v28 }
 0x1d7   : > { %2383 = vmatmul.msk.f32.gmra.mxu3 %vm357_vm2, %v2749_v49 }
 0x1d8   : > { %2417 = vmatmul.msk.f32.gmra.mxu0 %vm357_vm2, %v3223_v26 }
 0x1d9   : > { %v1517_v45 = vpop.f32.mrf.mxu2 }
 0x1da   : > { %v1677_v29 = vpop.f32.mrf.mxu3  ;;  %v1613_v43 = vadd.f32 %v1517_v45, %v1457_v2  ;;  %v1364_v0 = vpop.f32.mrf.mxu1 }
 0x1db   : > { %v1458_v40 = vadd.f32 %v1364_v0, %v3196_v22 }
 0x1dc   : > { %v1773_v36 = vadd.f32 %v1677_v29, %v1613_v43  ;;  %v4071_v29 = vld [vmem:[#allocation54_spill] sm:$0xff] }
 0x1dd   : > { %2316 = vmatmul.msk.f32.gmra.mxu1 %vm357_vm2, %v3207_v23  ;;  %v1839_v60 = vpop.f32.mrf.mxu0 }
 0x1de   : > { %v1932_v49 = vadd.f32 %v1836_v19, %v1773_v36  ;;  %2350 = vmatmul.msk.f32.gmra.mxu2 %vm357_vm2, %v2462_v18 }
 0x1df   : > { %2384 = vmatmul.msk.f32.gmra.mxu3 %vm357_vm2, %v2794_v58 }
 0x1e0   : > { %v1968_v61 = vadd.f32 %v3614_v12, %v1932_v49  ;;  %2418 = vmatmul.msk.f32.gmra.mxu0 %vm357_vm2, %v3238_v10 }
 0x1e1   : > { %v1520_v23 = vpop.f32.mrf.mxu2 }
 0x1e2   : > { %v1680_v1 = vpop.f32.mrf.mxu3  ;;  %v2000_v55 = vmax.f32 %v1968_v61, 0.0  ;;  %v1614_v32 = vadd.f32 %v1520_v23, %v1458_v40  ;;  %v1367_v58 = vpop.f32.mrf.mxu1  ;;  %v2465_v23 = vld [vmem:[%s2538_s27 + $0x120] sm:$0xff] }
 0x1e3   : > { %v1459_v62 = vadd.f32 %v1367_v58, %v3211_v48  ;;  %v2464_v48 = vld [vmem:[%s2538_s27 + $0x110] sm:$0xff]  ;;  %v4073_v58 = vld [vmem:[#allocation2_spill] sm:$0xff] }
 0x1e4   : > { %2033 = vst.msk [vmem:[%s3630_s16] sm:$0xff] %vm2032_vm4, %v2000_v55  ;;  %v1774_v22 = vadd.f32 %v1680_v1, %v1614_v32  ;;  %v4072_v1 = vld [vmem:[#allocation21_spill] sm:$0xff] }
 0x1e5   : > { %2317 = vmatmul.msk.f32.gmra.mxu1 %vm357_vm2, %v3223_v26  ;;  %v1842_v54 = vpop.f32.mrf.mxu0 }
 0x1e6   : > { %v1933_v24 = vadd.f32 %v1839_v60, %v1774_v22  ;;  %2351 = vmatmul.msk.f32.gmra.mxu2 %vm357_vm2, %v2463_v16 }
 0x1e7   : > { %2385 = vmatmul.msk.f32.gmra.mxu3 %vm357_vm2, %v4007_v17 }
 0x1e8   : > { %v1969_v63 = vadd.f32 %v3614_v12, %v1933_v24  ;;  %2419 = vmatmul.msk.f32.gmra.mxu0 %vm357_vm2, %v3254_v57 }
 0x1e9   : > { %v1523_v47 = vpop.f32.mrf.mxu2 }
 0x1ea   : > { %v1683_v7 = vpop.f32.mrf.mxu3  ;;  %v2001_v19 = vmax.f32 %v1969_v63, 0.0  ;;  %v1615_v26 = vadd.f32 %v1523_v47, %v1459_v62  ;;  %v1370_v28 = vpop.f32.mrf.mxu1  ;;  %v2466_v47 = vld [vmem:[%s2538_s27 + $0x128] sm:$0xff] }
 0x1eb   : > { %v1460_v43 = vadd.f32 %v1370_v28, %v4071_v29 }
 0x1ec   : > { %2034 = vst.msk [vmem:[%s3630_s16 + $0x8] sm:$0xff] %vm2032_vm4, %v2001_v19  ;;  %v1775_v2 = vadd.f32 %v1683_v7, %v1615_v26  ;;  %v4074_v7 = vld [vmem:[#allocation9_spill] sm:$0xff] }
 0x1ed   : > { %2318 = vmatmul.msk.f32.gmra.mxu1 %vm357_vm2, %v3238_v10  ;;  %v1845_v17 = vpop.f32.mrf.mxu0  ;;  %v4075_v19 = vld [vmem:[#allocation29_spill] sm:$0xff] }
 0x1ee   : > { %v1934_v45 = vadd.f32 %v1842_v54, %v1775_v2  ;;  %2352 = vmatmul.msk.f32.gmra.mxu2 %vm357_vm2, %v2464_v48 }
 0x1ef   : > { %2386 = vmatmul.msk.f32.gmra.mxu3 %vm357_vm2, %v2886_v13 }
 0x1f0   : > { %v1970_v0 = vadd.f32 %v3614_v12, %v1934_v45  ;;  %2420 = vmatmul.msk.f32.gmra.mxu0 %vm357_vm2, %v3269_v51 }
 0x1f1   : > { %v1526_v36 = vpop.f32.mrf.mxu2 }
 0x1f2   : > { %v1686_v60 = vpop.f32.mrf.mxu3  ;;  %v2002_v49 = vmax.f32 %v1970_v0, 0.0  ;;  %v1616_v10 = vadd.f32 %v1526_v36, %v1460_v43  ;;  %v1373_v18 = vpop.f32.mrf.mxu1  ;;  %v2467_v36 = vld [vmem:[%s2538_s27 + $0x138] sm:$0xff] }
 0x1f3   : > { %v1461_v55 = vadd.f32 %v1373_v18, %v4072_v1  ;;  %v4077_v18 = vld [vmem:[#allocation3_spill] sm:$0xff] }
 0x1f4   : > { %2035 = vst.msk [vmem:[%s3630_s16 + $0x10] sm:$0xff] %vm2032_vm4, %v2002_v49  ;;  %v1776_v40 = vadd.f32 %v1686_v60, %v1616_v10  ;;  %v4076_v60 = vld [vmem:[#allocation25_spill] sm:$0xff] }
 0x1f5   : > { %2319 = vmatmul.msk.f32.gmra.mxu1 %vm357_vm2, %v3254_v57  ;;  %v1848_v13 = vpop.f32.mrf.mxu0 }
 0x1f6   : > { %v1935_v61 = vadd.f32 %v1845_v17, %v1776_v40  ;;  %2353 = vmatmul.msk.f32.gmra.mxu2 %vm357_vm2, %v2465_v23 }
 0x1f7   : > { %2387 = vmatmul.msk.f32.gmra.mxu3 %vm357_vm2, %v4013_v34 }
 0x1f8   : > { %v1971_v32 = vadd.f32 %v3614_v12, %v1935_v61  ;;  %2421 = vmatmul.msk.f32.gmra.mxu0 %vm357_vm2, %v4073_v58 }
 0x1f9   : > { %v1529_v22 = vpop.f32.mrf.mxu2 }
 0x1fa   : > { %v1689_v54 = vpop.f32.mrf.mxu3  ;;  %v2003_v24 = vmax.f32 %v1971_v32, 0.0  ;;  %v1617_v57 = vadd.f32 %v1529_v22, %v1461_v55  ;;  %v1376_v16 = vpop.f32.mrf.mxu1  ;;  %v4078_v22 = vld [vmem:[#allocation16_spill] sm:$0xff] }
 0x1fb   : > { %v1462_v26 = vadd.f32 %v1376_v16, %v4075_v19 }
 0x1fc   : > { %2036 = vst.msk [vmem:[%s3630_s16 + $0x18] sm:$0xff] %vm2032_vm4, %v2003_v24  ;;  %v1777_v62 = vadd.f32 %v1689_v54, %v1617_v57  ;;  %v4079_v54 = vld [vmem:[#allocation31_spill] sm:$0xff] }
 0x1fd   : > { %2320 = vmatmul.msk.f32.gmra.mxu1 %vm357_vm2, %v3269_v51  ;;  %v1851_v34 = vpop.f32.mrf.mxu0 }
 0x1fe   : > { %v1936_v63 = vadd.f32 %v1848_v13, %v1777_v62  ;;  %2354 = vmatmul.msk.f32.gmra.mxu2 %vm357_vm2, %v2466_v47 }
 0x1ff   : > { %2388 = vmatmul.msk.f32.gmra.mxu3 %vm357_vm2, %v4074_v7 }
 0x200   : > { %v1972_v28 = vadd.f32 %v3614_v12, %v1936_v63  ;;  %2422 = vmatmul.msk.f32.gmra.mxu0 %vm357_vm2, %v3300_v39 }
 0x201   : > { %v1532_v2 = vpop.f32.mrf.mxu2 }
 0x202   : > { %v1692_v17 = vpop.f32.mrf.mxu3  ;;  %v2004_v45 = vmax.f32 %v1972_v28, 0.0  ;;  %v1618_v51 = vadd.f32 %v1532_v2, %v1462_v26  ;;  %v1379_v48 = vpop.f32.mrf.mxu1  ;;  %v2469_v26 = vld [vmem:[%s2538_s27 + $0x150] sm:$0xff]  ;;  %v4080_v28 = vld [vmem:[#allocation5_spill] sm:$0xff] }
 0x203   : > { %v1463_v49 = vadd.f32 %v1379_v48, %v4076_v60 }
 0x204   : > { %2037 = vst.msk [vmem:[%s3630_s16 + $0x20] sm:$0xff] %vm2032_vm4, %v2004_v45  ;;  %v1778_v29 = vadd.f32 %v1692_v17, %v1618_v51  ;;  %v4081_v45 = vld [vmem:[#allocation13_spill] sm:$0xff] }
 0x205   : > { %2321 = vmatmul.msk.f32.gmra.mxu1 %vm357_vm2, %v4073_v58  ;;  %v1854_v43 = vpop.f32.mrf.mxu0  ;;  %v2468_v58 = vld [vmem:[%s2538_s27 + $0x140] sm:$0xff] }
 0x206   : > { %v1937_v0 = vadd.f32 %v1851_v34, %v1778_v29  ;;  %2355 = vmatmul.msk.f32.gmra.mxu2 %vm357_vm2, %v2467_v36 }
 0x207   : > { %2389 = vmatmul.msk.f32.gmra.mxu3 %vm357_vm2, %v4021_v21 }
 0x208   : > { %v1973_v10 = vadd.f32 %v3614_v12, %v1937_v0  ;;  %2423 = vmatmul.msk.f32.gmra.mxu0 %vm357_vm2, %v4077_v18 }
 0x209   : > { %v1535_v40 = vpop.f32.mrf.mxu2 }
 0x20a   : > { %v1695_v13 = vpop.f32.mrf.mxu3  ;;  %v2005_v61 = vmax.f32 %v1973_v10, 0.0  ;;  %v1619_v23 = vadd.f32 %v1535_v40, %v1463_v49  ;;  %v1382_v1 = vpop.f32.mrf.mxu1  ;;  %v2470_v49 = vld [vmem:[%s2538_s27 + $0x158] sm:$0xff]  ;;  %v4082_v10 = vld [vmem:[#allocation24_spill] sm:$0xff] }
 0x20b   : > { %v1464_v24 = vadd.f32 %v1382_v1, %v4079_v54  ;;  %v4084_v54 = vld [vmem:[#allocation30_spill] sm:$0xff] }
 0x20c   : > { %2038 = vst.msk [vmem:[%s3630_s16 + $0x28] sm:$0xff] %vm2032_vm4, %v2005_v61  ;;  %v1779_v55 = vadd.f32 %v1695_v13, %v1619_v23 }
 0x20d   : > { %2322 = vmatmul.msk.f32.gmra.mxu1 %vm357_vm2, %v3300_v39  ;;  %v1857_v21 = vpop.f32.mrf.mxu0 }
 0x20e   : > { %v1938_v32 = vadd.f32 %v1854_v43, %v1779_v55  ;;  %2356 = vmatmul.msk.f32.gmra.mxu2 %vm357_vm2, %v2468_v58 }
 0x20f   : > { %2390 = vmatmul.msk.f32.gmra.mxu3 %vm357_vm2, %v4078_v22  ;;  %v2471_v22 = vld [vmem:[%s2538_s27 + $0x168] sm:$0xff] }
 0x210   : > { %v1974_v57 = vadd.f32 %v3614_v12, %v1938_v32  ;;  %2424 = vmatmul.msk.f32.gmra.mxu0 %vm357_vm2, %v3331_v20 }
 0x211   : > { %v1538_v16 = vpop.f32.mrf.mxu2 }
 0x212   : > { %v1698_v62 = vpop.f32.mrf.mxu3  ;;  %v2006_v34 = vmax.f32 %v1974_v57, 0.0  ;;  %v1620_v39 = vadd.f32 %v1538_v16, %v1464_v24  ;;  %v1385_v63 = vpop.f32.mrf.mxu1  ;;  %v4085_v24 = vld [vmem:[#allocation6_spill] sm:$0xff] }
 0x213   : > { %v1465_v2 = vadd.f32 %v1385_v63, %v4080_v28  ;;  %v2472_v28 = vld [vmem:[%s2538_s27 + $0x170] sm:$0xff] }
 0x214   : > { %2039 = vst.msk [vmem:[%s3630_s16 + $0x30] sm:$0xff] %vm2032_vm4, %v2006_v34  ;;  %v1780_v47 = vadd.f32 %v1698_v62, %v1620_v39 }
 0x215   : > { %2323 = vmatmul.msk.f32.gmra.mxu1 %vm357_vm2, %v4077_v18  ;;  %v1860_v7 = vpop.f32.mrf.mxu0  ;;  %v4083_v18 = vld [vmem:[#allocation10_spill] sm:$0xff] }
 0x216   : > { %v1939_v19 = vadd.f32 %v1857_v21, %v1780_v47  ;;  %2357 = vmatmul.msk.f32.gmra.mxu2 %vm357_vm2, %v2469_v26 }
 0x217   : > { %2391 = vmatmul.msk.f32.gmra.mxu3 %vm357_vm2, %v4029_v50 }
 0x218   : > { %v1975_v17 = vadd.f32 %v3614_v12, %v1939_v19  ;;  %2425 = vmatmul.msk.f32.gmra.mxu0 %vm357_vm2, %v4081_v45 }
 0x219   : > { %v1541_v51 = vpop.f32.mrf.mxu2 }
 0x21a   : > { %v1701_v48 = vpop.f32.mrf.mxu3  ;;  %v2007_v29 = vmax.f32 %v1975_v17, 0.0  ;;  %v1621_v43 = vadd.f32 %v1541_v51, %v1465_v2  ;;  %v1388_v0 = vpop.f32.mrf.mxu1  ;;  %v4086_v2 = vld [vmem:[#allocation33_spill] sm:$0xff]  ;;  %v4087_v17 = vld [vmem:[#allocation11_spill] sm:$0xff] }
 0x21b   : > { %v1466_v40 = vadd.f32 %v1388_v0, %v4083_v18 }
 0x21c   : > { %2040 = vst.msk [vmem:[%s3630_s16 + $0x38] sm:$0xff] %vm2032_vm4, %v2007_v29  ;;  %v1781_v36 = vadd.f32 %v1701_v48, %v1621_v43  ;;  %v4088_v48 = vld [vmem:[#allocation14_spill] sm:$0xff] }
 0x21d   : > { %2324 = vmatmul.msk.f32.gmra.mxu1 %vm357_vm2, %v3331_v20  ;;  %v1863_v50 = vpop.f32.mrf.mxu0  ;;  %v1330_v29 = vrot.slane %v4088_v48, 2 }
 0x21e   : > { %v1940_v60 = vadd.f32 %v1860_v7, %v1781_v36  ;;  %2358 = vmatmul.msk.f32.gmra.mxu2 %vm357_vm2, %v2470_v49 }
 0x21f   : > { %2392 = vmatmul.msk.f32.gmra.mxu3 %vm357_vm2, %v4082_v10 }
 0x220   : > { %v1976_v13 = vadd.f32 %v3614_v12, %v1940_v60  ;;  %2426 = vmatmul.msk.f32.gmra.mxu0 %vm357_vm2, %v3362_v41 }
 0x221   : > { %v1544_v61 = vpop.f32.mrf.mxu2 }
 0x222   : > { %v1704_v23 = vpop.f32.mrf.mxu3  ;;  %v2008_v1 = vmax.f32 %v1976_v13, 0.0  ;;  %v1622_v20 = vadd.f32 %v1544_v61, %v1466_v40  ;;  %v1391_v55 = vpop.f32.mrf.mxu1  ;;  %v4089_v13 = vld [vmem:[#allocation17_spill] sm:$0xff] }
 0x223   : > { %v1467_v57 = vadd.f32 %v1391_v55, %v4085_v24 }
 0x224   : > { %2041 = vst.msk [vmem:[%s3630_s16 + $0x40] sm:$0xff] %vm2032_vm4, %v2008_v1  ;;  %v1782_v21 = vadd.f32 %v1704_v23, %v1622_v20  ;;  %v1333_v20 = vrot.slane %v3400_v14, 2 }
 0x225   : > { %2325 = vmatmul.msk.f32.gmra.mxu1 %vm357_vm2, %v4081_v45  ;;  %v1866_v32 = vpop.f32.mrf.mxu0 }
 0x226   : > { %v1941_v58 = vadd.f32 %v1863_v50, %v1782_v21  ;;  %2359 = vmatmul.msk.f32.gmra.mxu2 %vm357_vm2, %v2471_v22  ;;  %v222_v22 = vld [vmem:[%s2538_s27 + $0x198] sm:$0xff] }
 0x227   : > { %2393 = vmatmul.msk.f32.gmra.mxu3 %vm357_vm2, %v4084_v54  ;;  %v223_v54 = vld [vmem:[%s2538_s27 + $0x1a0] sm:$0xff]  ;;  %v1646_v14 = vrot.slane %v222_v22, 1 }
 0x228   : > { %v1977_v16 = vadd.f32 %v3614_v12, %v1941_v58  ;;  %2427 = vmatmul.msk.f32.gmra.mxu0 %vm357_vm2, %v3386_v4 }
 0x229   : > { %v1547_v62 = vpop.f32.mrf.mxu2 }
 0x22a   : > { %v1707_v34 = vpop.f32.mrf.mxu3  ;;  %v2009_v39 = vmax.f32 %v1977_v16, 0.0  ;;  %v1623_v63 = vadd.f32 %v1547_v62, %v1467_v57  ;;  %v1394_v47 = vpop.f32.mrf.mxu1  ;;  %v1647_v16 = vrot.slane %v223_v54, 1  ;;  %v4090_v62 = vld [vmem:[#allocation20_spill] sm:$0xff] }
 0x22b   : > { %v1468_v45 = vadd.f32 %v1394_v47, %v4087_v17  ;;  %v1805_v47 = vrot.slane %v222_v22, 2 }
 0x22c   : > { %2042 = vst.msk [vmem:[%s3630_s16 + $0x48] sm:$0xff] %vm2032_vm4, %v2009_v39  ;;  %v1783_v7 = vadd.f32 %v1707_v34, %v1623_v63 }
 0x22d   : > { %2326 = vmatmul.msk.f32.gmra.mxu1 %vm357_vm2, %v3362_v41  ;;  %v1869_v19 = vpop.f32.mrf.mxu0  ;;  %v1331_v41 = vrot.slane %v3373_v38, 2 }
 0x22e   : > { %v1942_v26 = vadd.f32 %v1866_v32, %v1783_v7  ;;  %2360 = vmatmul.msk.f32.gmra.mxu2 %vm357_vm2, %v2472_v28  ;;  %v1806_v7 = vrot.slane %v223_v54, 2 }
 0x22f   : > { %2394 = vmatmul.msk.f32.gmra.mxu3 %vm357_vm2, %v4086_v2  ;;  %v1332_v18 = vsel %vm719_vm3, %v1330_v29, %v1331_v41  ;;  %v1334_v24 = vsel %vm719_vm3, %v1331_v41, %v1333_v20  ;;  %v224_v2 = vld [vmem:[%s2538_s27 + $0x1a8] sm:$0x3] }
 0x230   : > { %v1978_v51 = vadd.f32 %v3614_v12, %v1942_v26  ;;  %2428 = vmatmul.msk.f32.gmra.mxu0 %vm357_vm2, %v3408_v46 }
 0x231   : > { %v1550_v43 = vpop.f32.mrf.mxu2 }
 0x232   : > { %v1710_v0 = vpop.f32.mrf.mxu3  ;;  %v2010_v36 = vmax.f32 %v1978_v51, 0.0  ;;  %v1624_v50 = vadd.f32 %v1550_v43, %v1468_v45  ;;  %v1397_v60 = vpop.f32.mrf.mxu1  ;;  %v1807_v45 = vsel %vm719_vm3, %v1805_v47, %v1806_v7 }
 0x233   : > { %v1469_v61 = vadd.f32 %v1397_v60, %v4089_v13 }
 0x234   : > { %2043 = vst.msk [vmem:[%s3630_s16 + $0x50] sm:$0xff] %vm2032_vm4, %v2010_v36  ;;  %v1784_v49 = vadd.f32 %v1710_v0, %v1624_v50  ;;  %v1808_v36 = vrot.slane %v224_v2, 2 }
 0x235   : > { %2327 = vmatmul.msk.f32.gmra.mxu1 %vm357_vm2, %v3386_v4  ;;  %v1872_v10 = vpop.f32.mrf.mxu0 }
 0x236   : > { %v1943_v40 = vadd.f32 %v1869_v19, %v1784_v49  ;;  %2361 = vmatmul.msk.f32.gmra.mxu2 %vm357_vm2, %v4088_v48  ;;  %v1649_v48 = vrot.slane %v224_v2, 1 }
 0x237   : > { %2395 = vmatmul.msk.f32.gmra.mxu3 %vm357_vm2, %v3391_v11 }
 0x238   : > { %v1979_v23 = vadd.f32 %v3614_v12, %v1943_v40  ;;  %2429 = vmatmul.msk.f32.gmra.mxu0 %vm357_vm2, %v1332_v18 }
 0x239   : > { %v1553_v1 = vpop.f32.mrf.mxu2 }
 0x23a   : > { %v1713_v4 = vpop.f32.mrf.mxu3  ;;  %v2011_v55 = vmax.f32 %v1979_v23, 0.0  ;;  %v1625_v21 = vadd.f32 %v1553_v1, %v1469_v61  ;;  %v1400_v32 = vpop.f32.mrf.mxu1 }
 0x23b   : > { %v1470_v34 = vadd.f32 %v1400_v32, %v4090_v62 }
 0x23c   : > { %2044 = vst.msk [vmem:[%s3630_s16 + $0x58] sm:$0xff] %vm2032_vm4, %v2011_v55  ;;  %v1785_v58 = vadd.f32 %v1713_v4, %v1625_v21 }
 0x23d   : > { %2328 = vmatmul.msk.f32.gmra.mxu1 %vm357_vm2, %v3408_v46  ;;  %v1875_v11 = vpop.f32.mrf.mxu0 }
 0x23e   : > { %v1944_v57 = vadd.f32 %v1872_v10, %v1785_v58  ;;  %2362 = vmatmul.msk.f32.gmra.mxu2 %vm357_vm2, %v3373_v38  ;;  %v1648_v38 = vsel %vm274_vm1, %v1646_v14, %v1647_v16  ;;  %v1650_v10 = vsel %vm274_vm1, %v1647_v16, %v1649_v48 }
 0x23f   : > { %2396 = vmatmul.msk.f32.gmra.mxu3 %vm357_vm2, %v3413_v15 }
 0x240   : > { %v1980_v39 = vadd.f32 %v3614_v12, %v1944_v57  ;;  %2430 = vmatmul.msk.f32.gmra.mxu0 %vm357_vm2, %v1334_v24 }
 0x241   : > { %v1556_v46 = vpop.f32.mrf.mxu2 }
 0x242   : > { %v1716_v63 = vpop.f32.mrf.mxu3  ;;  %v2012_v19 = vmax.f32 %v1980_v39, 0.0  ;;  %v1626_v26 = vadd.f32 %v1556_v46, %v1470_v34  ;;  %v1403_v28 = vpop.f32.mrf.mxu1 }
 0x243   : > { %v1471_v29 = vadd.f32 %v1403_v28, %v3415_v8  ;;  %v1809_v8 = vsel %vm719_vm3, %v1806_v7, %v1808_v36 }
 0x244   : > { %2045 = vst.msk [vmem:[%s3630_s16 + $0x60] sm:$0xff] %vm2032_vm4, %v2012_v19  ;;  %v1786_v15 = vadd.f32 %v1716_v63, %v1626_v26 }
 0x245   : > { %2329 = vmatmul.msk.f32.gmra.mxu1 %vm357_vm2, %v1332_v18  ;;  %v1878_v17 = vpop.f32.mrf.mxu0 }
 0x246   : > { %v1945_v51 = vadd.f32 %v1875_v11, %v1786_v15  ;;  %2363 = vmatmul.msk.f32.gmra.mxu2 %vm357_vm2, %v222_v22 }
 0x247   : > { %2397 = vmatmul.msk.f32.gmra.mxu3 %vm357_vm2, %v1648_v38 }
 0x248   : > { %v1981_v41 = vadd.f32 %v3614_v12, %v1945_v51  ;;  %2431 = vmatmul.msk.f32.gmra.mxu0 %vm357_vm2, %v1807_v45 }
 0x249   : > { %v1559_v43 = vpop.f32.mrf.mxu2 }
 0x24a   : > { %v1719_v0 = vpop.f32.mrf.mxu3  ;;  %v2013_v50 = vmax.f32 %v1981_v41, 0.0  ;;  %v1627_v60 = vadd.f32 %v1559_v43, %v1471_v29  ;;  %v1406_v49 = vpop.f32.mrf.mxu1 }
 0x24b   : > { %v1472_v61 = vadd.f32 %v1406_v49, %v3426_v31 }
 0x24c   : > { %2046 = vst.msk [vmem:[%s3630_s16 + $0x68] sm:$0xff] %vm2032_vm4, %v2013_v50  ;;  %v1787_v18 = vadd.f32 %v1719_v0, %v1627_v60 }
 0x24d   : > { %2330 = vmatmul.msk.f32.gmra.mxu1 %vm357_vm2, %v1334_v24  ;;  %v1881_v40 = vpop.f32.mrf.mxu0 }
 0x24e   : > { %v1946_v13 = vadd.f32 %v1878_v17, %v1787_v18  ;;  %2364 = vmatmul.msk.f32.gmra.mxu2 %vm357_vm2, %v223_v54 }
 0x24f   : > { %2398 = vmatmul.msk.f32.gmra.mxu3 %vm357_vm2, %v1650_v10 }
 0x250   : > { %v1982_v23 = vadd.f32 %v3614_v12, %v1946_v13  ;;  %2432 = vmatmul.msk.f32.gmra.mxu0 %vm357_vm2, %v1809_v8 }
 0x251   : > { %v1562_v1 = vpop.f32.mrf.mxu2 }
 0x252   : > { %v1722_v4 = vpop.f32.mrf.mxu3  ;;  %v2014_v20 = vmax.f32 %v1982_v23, 0.0  ;;  %v1628_v55 = vadd.f32 %v1562_v1, %v1472_v61  ;;  %v1409_v21 = vpop.f32.mrf.mxu1 }
 0x253   : > { %v1473_v54 = vadd.f32 %v1409_v21, %v3437_v9 }
 0x254   : > { %2047 = vst.msk [vmem:[%s3630_s16 + $0x70] sm:$0xff] %vm2032_vm4, %v2014_v20  ;;  %v1788_v32 = vadd.f32 %v1722_v4, %v1628_v55 }
 0x255   : > { %v1884_v58 = vpop.f32.mrf.mxu0 }
 0x256   : > { %v1947_v22 = vadd.f32 %v1881_v40, %v1788_v32 }
 0x258   : > { %v1983_v11 = vadd.f32 %v3614_v12, %v1947_v22 }
 0x259   : > { %v1565_v31 = vpop.f32.mrf.mxu2 }
 0x25a   : > { %v1725_v24 = vpop.f32.mrf.mxu3  ;;  %v2015_v57 = vmax.f32 %v1983_v11, 0.0  ;;  %v1629_v14 = vadd.f32 %v1565_v31, %v1473_v54  ;;  %v1412_v16 = vpop.f32.mrf.mxu1 }
 0x25b   : > { %v1474_v46 = vadd.f32 %v1412_v16, %v3448_v37 }
 0x25c   : > { %2048 = vst.msk [vmem:[%s3630_s16 + $0x78] sm:$0xff] %vm2032_vm4, %v2015_v57  ;;  %v1789_v62 = vadd.f32 %v1725_v24, %v1629_v14 }
 0x25d   : > { %v1887_v34 = vpop.f32.mrf.mxu0 }
 0x25e   : > { %v1948_v39 = vadd.f32 %v1884_v58, %v1789_v62 }
 0x260   : > { %v1984_v63 = vadd.f32 %v3614_v12, %v1948_v39 }
 0x261   : > { %v1568_v47 = vpop.f32.mrf.mxu2 }
 0x262   : > { %v1728_v9 = vpop.f32.mrf.mxu3  ;;  %v2016_v7 = vmax.f32 %v1984_v63, 0.0  ;;  %v1630_v19 = vadd.f32 %v1568_v47, %v1474_v46  ;;  %v1415_v26 = vpop.f32.mrf.mxu1 }
 0x263   : > { %v1475_v2 = vadd.f32 %v1415_v26, %v3459_v5 }
 0x264   : > { %2049 = vst.msk [vmem:[%s3630_s16 + $0x80] sm:$0xff] %vm2032_vm4, %v2016_v7  ;;  %v1790_v28 = vadd.f32 %v1728_v9, %v1630_v19 }
 0x265   : > { %v1890_v38 = vpop.f32.mrf.mxu0 }
 0x266   : > { %v1949_v15 = vadd.f32 %v1887_v34, %v1790_v28 }
 0x268   : > { %v1985_v17 = vadd.f32 %v3614_v12, %v1949_v15 }
 0x269   : > { %v1571_v45 = vpop.f32.mrf.mxu2 }
 0x26a   : > { %v1731_v37 = vpop.f32.mrf.mxu3  ;;  %v2017_v51 = vmax.f32 %v1985_v17, 0.0  ;;  %v1631_v48 = vadd.f32 %v1571_v45, %v1475_v2  ;;  %v1418_v29 = vpop.f32.mrf.mxu1 }
 0x26b   : > { %v1476_v36 = vadd.f32 %v1418_v29, %v3470_v52 }
 0x26c   : > { %2050 = vst.msk [vmem:[%s3630_s16 + $0x88] sm:$0xff] %vm2032_vm4, %v2017_v51  ;;  %v1791_v41 = vadd.f32 %v1731_v37, %v1631_v48 }
 0x26d   : > { %v1893_v43 = vpop.f32.mrf.mxu0 }
 0x26e   : > { %v1950_v0 = vadd.f32 %v1890_v38, %v1791_v41 }
 0x270   : > { %v1986_v50 = vadd.f32 %v3614_v12, %v1950_v0 }
 0x271   : > { %v1574_v60 = vpop.f32.mrf.mxu2 }
 0x272   : > { %v1734_v5 = vpop.f32.mrf.mxu3  ;;  %v2018_v49 = vmax.f32 %v1986_v50, 0.0  ;;  %v1632_v10 = vadd.f32 %v1574_v60, %v1476_v36  ;;  %v1421_v18 = vpop.f32.mrf.mxu1 }
 0x273   : > { %v1477_v61 = vadd.f32 %v1421_v18, %v3481_v33 }
 0x274   : > { %2051 = vst.msk [vmem:[%s3630_s16 + $0x90] sm:$0xff] %vm2032_vm4, %v2018_v49  ;;  %v1792_v40 = vadd.f32 %v1734_v5, %v1632_v10 }
 0x275   : > { %v1896_v8 = vpop.f32.mrf.mxu0 }
 0x276   : > { %v1951_v13 = vadd.f32 %v1893_v43, %v1792_v40 }
 0x278   : > { %v1987_v23 = vadd.f32 %v3614_v12, %v1951_v13 }
 0x279   : > { %v1577_v1 = vpop.f32.mrf.mxu2 }
 0x27a   : > { %v1737_v52 = vpop.f32.mrf.mxu3  ;;  %v2019_v4 = vmax.f32 %v1987_v23, 0.0  ;;  %v1633_v20 = vadd.f32 %v1577_v1, %v1477_v61  ;;  %v1424_v55 = vpop.f32.mrf.mxu1 }
 0x27b   : > { %v1478_v22 = vadd.f32 %v1424_v55, %v3492_v3 }
 0x27c   : > { %2052 = vst.msk [vmem:[%s3630_s16 + $0x98] sm:$0xff] %vm2032_vm4, %v2019_v4  ;;  %v1793_v21 = vadd.f32 %v1737_v52, %v1633_v20 }
 0x27d   : > { %v1899_v32 = vpop.f32.mrf.mxu0 }
 0x27e   : > { %v1952_v58 = vadd.f32 %v1896_v8, %v1793_v21 }
 0x280   : > { %v1988_v54 = vadd.f32 %v3614_v12, %v1952_v58 }
 0x281   : > { %v1580_v11 = vpop.f32.mrf.mxu2 }
 0x282   : > { %v1740_v33 = vpop.f32.mrf.mxu3  ;;  %v2020_v31 = vmax.f32 %v1988_v54, 0.0  ;;  %v1634_v24 = vadd.f32 %v1580_v11, %v1478_v22  ;;  %v1427_v57 = vpop.f32.mrf.mxu1 }
 0x283   : > { %v1479_v34 = vadd.f32 %v1427_v57, %v3503_v56 }
 0x284   : > { %2053 = vst.msk [vmem:[%s3630_s16 + $0xa0] sm:$0xff] %vm2032_vm4, %v2020_v31  ;;  %v1794_v14 = vadd.f32 %v1740_v33, %v1634_v24 }
 0x285   : > { %v1902_v16 = vpop.f32.mrf.mxu0 }
 0x286   : > { %v1953_v62 = vadd.f32 %v1899_v32, %v1794_v14 }
 0x288   : > { %v1989_v39 = vadd.f32 %v3614_v12, %v1953_v62 }
 0x289   : > { %v1583_v46 = vpop.f32.mrf.mxu2 }
 0x28a   : > { %v1743_v3 = vpop.f32.mrf.mxu3  ;;  %v2021_v63 = vmax.f32 %v1989_v39, 0.0  ;;  %v1635_v47 = vadd.f32 %v1583_v46, %v1479_v34  ;;  %v1430_v9 = vpop.f32.mrf.mxu1 }
 0x28b   : > { %v1480_v28 = vadd.f32 %v1430_v9, %v3514_v25 }
 0x28c   : > { %2054 = vst.msk [vmem:[%s3630_s16 + $0xa8] sm:$0xff] %vm2032_vm4, %v2021_v63  ;;  %v1795_v7 = vadd.f32 %v1743_v3, %v1635_v47 }
 0x28d   : > { %v1905_v19 = vpop.f32.mrf.mxu0 }
 0x28e   : > { %v1954_v26 = vadd.f32 %v1902_v16, %v1795_v7 }
 0x290   : > { %v1990_v38 = vadd.f32 %v3614_v12, %v1954_v26 }
 0x291   : > { %v1586_v15 = vpop.f32.mrf.mxu2 }
 0x292   : > { %v1746_v56 = vpop.f32.mrf.mxu3  ;;  %v2022_v2 = vmax.f32 %v1990_v38, 0.0  ;;  %v1636_v17 = vadd.f32 %v1586_v15, %v1480_v28  ;;  %v1433_v45 = vpop.f32.mrf.mxu1 }
 0x293   : > { %v1481_v29 = vadd.f32 %v1433_v45, %v3525_v44 }
 0x294   : > { %2055 = vst.msk [vmem:[%s3630_s16 + $0xb0] sm:$0xff] %vm2032_vm4, %v2022_v2  ;;  %v1796_v37 = vadd.f32 %v1746_v56, %v1636_v17 }
 0x295   : > { %v1908_v51 = vpop.f32.mrf.mxu0 }
 0x296   : > { %v1955_v48 = vadd.f32 %v1905_v19, %v1796_v37 }
 0x298   : > { %v1991_v41 = vadd.f32 %v3614_v12, %v1955_v48 }
 0x299   : > { %v1589_v43 = vpop.f32.mrf.mxu2 }
 0x29a   : > { %v1749_v25 = vpop.f32.mrf.mxu3  ;;  %v2023_v0 = vmax.f32 %v1991_v41, 0.0  ;;  %v1637_v36 = vadd.f32 %v1589_v43, %v1481_v29  ;;  %v1436_v50 = vpop.f32.mrf.mxu1 }
 0x29b   : > { %v1482_v10 = vadd.f32 %v1436_v50, %v3536_v35 }
 0x29c   : > { %2056 = vst.msk [vmem:[%s3630_s16 + $0xb8] sm:$0xff] %vm2032_vm4, %v2023_v0  ;;  %v1797_v60 = vadd.f32 %v1749_v25, %v1637_v36 }
 0x29d   : > { %v1911_v5 = vpop.f32.mrf.mxu0 }
 0x29e   : > { %v1956_v49 = vadd.f32 %v1908_v51, %v1797_v60 }
 0x2a0   : > { %v1992_v18 = vadd.f32 %v3614_v12, %v1956_v49 }
 0x2a1   : > { %v1592_v40 = vpop.f32.mrf.mxu2 }
 0x2a2   : > { %v1752_v44 = vpop.f32.mrf.mxu3  ;;  %v2024_v8 = vmax.f32 %v1992_v18, 0.0  ;;  %v1638_v13 = vadd.f32 %v1592_v40, %v1482_v10  ;;  %v1439_v61 = vpop.f32.mrf.mxu1 }
 0x2a3   : > { %v1483_v4 = vadd.f32 %v1439_v61, %v3547_v53 }
 0x2a4   : > { %2057 = vst.msk [vmem:[%s3630_s16 + $0xc0] sm:$0xff] %vm2032_vm4, %v2024_v8  ;;  %v1798_v23 = vadd.f32 %v1752_v44, %v1638_v13 }
 0x2a5   : > { %v1914_v1 = vpop.f32.mrf.mxu0 }
 0x2a6   : > { %v1957_v52 = vadd.f32 %v1911_v5, %v1798_v23 }
 0x2a8   : > { %v1993_v20 = vadd.f32 %v3614_v12, %v1957_v52 }
 0x2a9   : > { %v1595_v55 = vpop.f32.mrf.mxu2 }
 0x2aa   : > { %v1755_v35 = vpop.f32.mrf.mxu3  ;;  %v2025_v21 = vmax.f32 %v1993_v20, 0.0  ;;  %v1639_v32 = vadd.f32 %v1595_v55, %v1483_v4  ;;  %v1442_v58 = vpop.f32.mrf.mxu1 }
 0x2ab   : > { %v1484_v33 = vadd.f32 %v1442_v58, %v3558_v42 }
 0x2ac   : > { %2058 = vst.msk [vmem:[%s3630_s16 + $0xc8] sm:$0xff] %vm2032_vm4, %v2025_v21  ;;  %v1799_v22 = vadd.f32 %v1755_v35, %v1639_v32 }
 0x2ad   : > { %v1917_v54 = vpop.f32.mrf.mxu0 }
 0x2ae   : > { %v1958_v11 = vadd.f32 %v1914_v1, %v1799_v22 }
 0x2b0   : > { %v1994_v31 = vadd.f32 %v3614_v12, %v1958_v11 }
 0x2b1   : > { %v1598_v24 = vpop.f32.mrf.mxu2 }
 0x2b2   : > { %v1758_v53 = vpop.f32.mrf.mxu3  ;;  %v2026_v57 = vmax.f32 %v1994_v31, 0.0  ;;  %v1640_v14 = vadd.f32 %v1598_v24, %v1484_v33  ;;  %v1445_v16 = vpop.f32.mrf.mxu1 }
 0x2b3   : > { %v1485_v46 = vadd.f32 %v1445_v16, %v3569_v30 }
 0x2b4   : > { %2059 = vst.msk [vmem:[%s3630_s16 + $0xd0] sm:$0xff] %vm2032_vm4, %v2026_v57  ;;  %v1800_v62 = vadd.f32 %v1758_v53, %v1640_v14 }
 0x2b5   : > { %v1920_v34 = vpop.f32.mrf.mxu0 }
 0x2b6   : > { %v1959_v39 = vadd.f32 %v1917_v54, %v1800_v62 }
 0x2b8   : > { %v1995_v3 = vadd.f32 %v3614_v12, %v1959_v39 }
 0x2b9   : > { %v1601_v63 = vpop.f32.mrf.mxu2 }
 0x2ba   : > { %v1761_v42 = vpop.f32.mrf.mxu3  ;;  %v2027_v47 = vmax.f32 %v1995_v3, 0.0  ;;  %v1641_v9 = vadd.f32 %v1601_v63, %v1485_v46  ;;  %v1448_v7 = vpop.f32.mrf.mxu1 }
 0x2bb   : > { %v1486_v38 = vadd.f32 %v1448_v7, %v3580_v59 }
 0x2bc   : > { %2060 = vst.msk [vmem:[%s3630_s16 + $0xd8] sm:$0xff] %vm2032_vm4, %v2027_v47  ;;  %v1801_v19 = vadd.f32 %v1761_v42, %v1641_v9 }
 0x2bd   : > { %v1923_v28 = vpop.f32.mrf.mxu0 }
 0x2be   : > { %v1960_v26 = vadd.f32 %v1920_v34, %v1801_v19 }
 0x2c0   : > { %v1996_v15 = vadd.f32 %v3614_v12, %v1960_v26 }
 0x2c1   : > { %v1604_v56 = vpop.f32.mrf.mxu2 }
 0x2c2   : > { %v1764_v30 = vpop.f32.mrf.mxu3  ;;  %v2028_v2 = vmax.f32 %v1996_v15, 0.0  ;;  %v1642_v17 = vadd.f32 %v1604_v56, %v1486_v38  ;;  %v1451_v45 = vpop.f32.mrf.mxu1 }
 0x2c3   : > { %v1487_v48 = vadd.f32 %v1451_v45, %v3591_v6 }
 0x2c4   : > { %2061 = vst.msk [vmem:[%s3630_s16 + $0xe0] sm:$0xff] %vm2032_vm4, %v2028_v2  ;;  %v1802_v37 = vadd.f32 %v1764_v30, %v1642_v17 }
 0x2c5   : > { %v1926_v41 = vpop.f32.mrf.mxu0 }
 0x2c6   : > { %v1961_v51 = vadd.f32 %v1923_v28, %v1802_v37 }
 0x2c8   : > { %v1997_v29 = vadd.f32 %v3614_v12, %v1961_v51 }
 0x2c9   : > { %v1607_v43 = vpop.f32.mrf.mxu2 }
 0x2ca   : > { %v1767_v59 = vpop.f32.mrf.mxu3  ;;  %v2029_v25 = vmax.f32 %v1997_v29, 0.0  ;;  %v1643_v0 = vadd.f32 %v1607_v43, %v1487_v48  ;;  %v1454_v50 = vpop.f32.mrf.mxu1 }
 0x2cb   : > { %v1488_v5 = vadd.f32 %v1454_v50, %v3602_v27 }
 0x2cc   : > { %2062 = vst.msk [vmem:[%s3630_s16 + $0xe8] sm:$0xff] %vm2032_vm4, %v2029_v25  ;;  %v1803_v36 = vadd.f32 %v1767_v59, %v1643_v0 }
 0x2cd   : > { %v1929_v44 = vpop.f32.mrf.mxu0 }
 0x2ce   : > { %v1962_v60 = vadd.f32 %v1926_v41, %v1803_v36 }
 0x2d0   : > { %v1998_v49 = vadd.f32 %v3614_v12, %v1962_v60 }
 0x2d1   : > { %v1610_v10 = vpop.f32.mrf.mxu2 }
 0x2d2   : > { %v1770_v6 = vpop.f32.mrf.mxu3  ;;  %v2030_v18 = vmax.f32 %v1998_v49, 0.0  ;;  %v1644_v40 = vadd.f32 %v1610_v10, %v1488_v5 }
 0x2d4   : > { %2063 = vst.msk [vmem:[%s3630_s16 + $0xf0] sm:$0xff] %vm2032_vm4, %v2030_v18  ;;  %v1804_v8 = vadd.f32 %v1770_v6, %v1644_v40 }
 0x2d6   : > { %v1963_v13 = vadd.f32 %v1929_v44, %v1804_v8 }
 0x2d8   : > { %v1999_v61 = vadd.f32 %v3614_v12, %v1963_v13 }
 0x2da   : > { %v2031_v23 = vmax.f32 %v1999_v61, 0.0 }
 0x2dc   : > { %2064 = vst.msk [vmem:[%s3630_s16 + $0xf8] sm:$0xff] %vm2032_vm4, %v2031_v23 }
 0x2dd PF: > { %s13_s12 = sadd.s32 1, %s2479_s12  }
 0x2de   : > { %p10_p4 = scmp.ge.s32.totalorder %s13_s12, 4  }
 0x2e0   :  { %12 = sbr.rel (!%p10_p4) target bundleno = 1 (0x1), region = 70 }

// kernel: _forward_impl.4
= control target key start
LH: loop header
LB: loop body
LE: loop exit
PB: predicated region body
PF: predicated region fallthrough
CT: control target
= control target key end

     0   :  { %s4005_s15 = smov 0   ;;  %s6009_s0 = inlined_call_operand.vmem [shape: f32[2,18,18,8], index: 0, kind: input, shape index: {}]   ;;  %s6010_s1 = inlined_call_operand.vmem [shape: f32[9,8,8], index: 1, kind: input, shape index: {}]   ;;  %s6011_s2 = inlined_call_operand.vmem [shape: f32[1,8], index: 2, kind: input, shape index: {}]   ;;  %s6012_s3 = inlined_call_operand.vmem [shape: f32[2,16,16,8], index: 3, kind: output, shape index: {0}]   ;;  %s6013_s4 = inlined_call_operand.vmem [shape: f32[2,8,8,8], index: 4, kind: output, shape index: {1}]  }
   0x1 LB: > { %s3620_s16 = sadd.s32 4294967295, %s3978_s15   ;;  %p3624_p0 = scmp.ge.s32.totalorder %s3978_s15, 1  ;;  %s3978_s15 = sphi %s4005_s15, %s15_s15  }
   0x2   : > { %p165_p1 = scmp.lt.s32.totalorder %s3978_s15, 3 }
   0x4   : > { %p166_p2 = pnand %p3624_p0, %p165_p1 }
   0x6   : > { %169 = sbr.rel (%p166_p2) target bundleno = 854 (0x356), region = 32 }
   0xb   : > { %v3630_v0 = vld [vmem:[%s6010_s1 + $0x8] sm:$0xff]  ;;  %p196_p3 = scmp.lt.s32.totalorder %s3620_s16, 1  ;;  %v3695_v1 = vld [vmem:[%s6010_s1 + $0x10] sm:$0xff]  ;;  %v3728_v2 = vld [vmem:[%s6010_s1 + $0x18] sm:$0xff]  ;;  %vm314_vm0 = vcmask 1046528   ;;  %vm397_vm1 = vcmask 64512  }
   0xc   : > { %3930 = vmatpush.msra.mxu1 %v3630_v0  ;;  %3931 = vmatpush.msra.mxu2 %v3630_v0  ;;  %v265_v3 = vld [vmem:[%s6010_s1] sm:$0xff]  ;;  %vm752_vm2 = vcmask 1045504   ;;  %vm2300_vm3 = vcmask 58368   ;;  %vm3453_vm4 = vcmask 1041409   ;;  %vm3455_vm5 = vcmask 1042434  }
   0xd   : > { %s6235_s16 = smov (!%p196_p3, %s3620_s16), 1  ;;  %3932 = vmatpush.msra.mxu3 %v3630_v0  ;;  %v3761_v4 = vld [vmem:[%s6010_s1 + $0x20] sm:$0xff]  ;;  %477 = vmatpush.msra.mxu0 %v3630_v0  ;;  %vm3457_vm6 = vcmask 1043459   ;;  %vm3459_vm7 = vcmask 1044484   ;;  %vm3461_vm8 = vcmask 1045509   ;;  %vm3463_vm9 = vcmask 1046534  }
   0xe   : > { %914 = vmatpush.msrb.mxu2 %v3695_v1  ;;  %654 = vmatpush.msrb.mxu1 %v265_v3  ;;  %s3933_s27 = smul.u32 432, %s6235_s16  ;;  %s3928_s17 = sshll.u32 %s6235_s16, 8  ;;  %vm3465_vm10 = vcmask 1047559  }
   0xf   : > { %1067 = vmatpush.msrb.mxu3 %v3728_v2  ;;  %1224 = vmatpush.msrb.mxu0 %v3761_v4  ;;  %s5115_s20 = scalar_lea.vmem %s6012_s3, %s3928_s17  ;;  %s3929_s21 = sshll.u32 %s6235_s16, 6 }
  0x10   : > { %s4034_s30 = scalar_lea.vmem %s6009_s0, %s3933_s27  ;;  %s5261_s23 = scalar_lea.vmem %s6013_s4, %s3929_s21 }
  0x11   : > { %v4037_v5 = vld [vmem:[%s4034_s30 + $0x60] sm:$0xff]  ;;  %v4040_v6 = vld [vmem:[%s4034_s30 + $0x68] sm:$0xff]  ;;  %v4061_v17 = vld [vmem:[%s4034_s30 + $0x70] sm:$0x3] }
  0x12   : > { %v4043_v7 = vld [vmem:[%s4034_s30 + $0xc0] sm:$0xff]  ;;  %v335_v8 = vrot.slane %v4037_v5, 1  ;;  %v336_v9 = vrot.slane %v4040_v6, 1  ;;  %v4048_v10 = vld [vmem:[%s4034_s30 + $0xc8] sm:$0xff]  ;;  %v4070_v20 = vld [vmem:[%s4034_s30 + $0xd0] sm:$0x3] }
  0x13   : > { %v355_v11 = vrot.slane %v4043_v7, 1  ;;  %v4052_v12 = vld [vmem:[%s4034_s30 + $0x120] sm:$0xff]  ;;  %v4055_v13 = vld [vmem:[%s4034_s30 + $0x128] sm:$0xff]  ;;  %v356_v14 = vrot.slane %v4048_v10, 1  ;;  %v4086_v26 = vld [vmem:[%s4034_s30 + $0x130] sm:$0x3] }
  0x14   : > { %6089 = vst [vmem:[#allocation2_spill] sm:$0xff] %v4052_v12  ;;  %v375_v15 = vrot.slane %v4052_v12, 1  ;;  %v376_v16 = vrot.slane %v4055_v13, 1  ;;  %v4064_v18 = vld [vmem:[%s4034_s30] sm:$0xff]  ;;  %v4067_v19 = vsel %vm314_vm0, %v335_v8, %v336_v9  ;;  %v4073_v21 = vld [vmem:[%s4034_s30 + $0x8] sm:$0xff]  ;;  %v338_v27 = vrot.slane %v4061_v17, 1 }
  0x15   : > { %6090 = vst [vmem:[#allocation3_spill] sm:$0xff] %v4055_v13  ;;  %v315_v22 = vrot.slane %v4064_v18, 1  ;;  %3639 = vmatmul.msk.f32.vlgmr.msra.gmra.mxu1 %vm397_vm1, %v4067_v19  ;;  %v4079_v23 = vsel %vm314_vm0, %v355_v11, %v356_v14  ;;  %v316_v25 = vrot.slane %v4073_v21, 1  ;;  %v4094_v28 = vld [vmem:[%s4034_s30 + $0x10] sm:$0x3]  ;;  %v358_v29 = vrot.slane %v4070_v20, 1 }
  0x16   : > { %6091 = vst [vmem:[#allocation4_spill] sm:$0xff] %v4079_v23  ;;  %v4082_v24 = vsel %vm314_vm0, %v375_v15, %v376_v16  ;;  %3647 = vmatmul.msk.f32.vlgmr.msra.gmra.mxu2 %vm397_vm1, %v4079_v23  ;;  %v378_v31 = vrot.slane %v4086_v26, 1  ;;  %v318_v32 = vrot.slane %v4094_v28, 1  ;;  %v4102_v33 = vsel %vm314_vm0, %v336_v9, %v338_v27  ;;  %v4111_v36 = vld [vmem:[%s4034_s30 + $0x78] sm:$0xff]  ;;  %v4114_v37 = vld [vmem:[%s4034_s30 + $0x80] sm:$0xff]  ;;  %v4196_v4 = vld [vmem:[%s4034_s30 + $0x90] sm:$0xff] }
  0x17   : > { %6092 = vst [vmem:[#allocation5_spill] sm:$0xff] %v4082_v24  ;;  %3655 = vmatmul.msk.f32.vlgmr.msra.gmra.mxu3 %vm397_vm1, %v4082_v24  ;;  %v317_v30 = vsel %vm314_vm0, %v315_v22, %v316_v25  ;;  %v4105_v34 = vsel %vm314_vm0, %v356_v14, %v358_v29  ;;  %v4117_v38 = vld [vmem:[%s4034_s30 + $0xd8] sm:$0xff]  ;;  %v4120_v39 = vld [vmem:[%s4034_s30 + $0xe0] sm:$0xff]  ;;  %v340_v43 = vrot.slane %v4111_v36, 1  ;;  %v341_v44 = vrot.slane %v4114_v37, 1  ;;  %v4202_v9 = vld [vmem:[%s4034_s30 + $0xf0] sm:$0xff] }
  0x18   : > { %6093 = vst [vmem:[#allocation6_spill] sm:$0xff] %v4086_v26  ;;  %3631 = vmatmul.msk.f32.vlgmr.msra.gmra.mxu0 %vm397_vm1, %v317_v30  ;;  %v4108_v35 = vsel %vm314_vm0, %v376_v16, %v378_v31  ;;  %v4123_v40 = vld [vmem:[%s4034_s30 + $0x138] sm:$0xff]  ;;  %v4126_v41 = vld [vmem:[%s4034_s30 + $0x140] sm:$0xff]  ;;  %v319_v42 = vsel %vm314_vm0, %v316_v25, %v318_v32  ;;  %v360_v47 = vrot.slane %v4117_v38, 1  ;;  %v361_v48 = vrot.slane %v4120_v39, 1  ;;  %v4208_v14 = vld [vmem:[%s4034_s30 + $0x150] sm:$0xff] }
  0x19   : > { %6094 = vst [vmem:[#allocation7_spill] sm:$0xff] %v4102_v33  ;;  %v4138_v45 = vld [vmem:[%s4034_s30 + $0x18] sm:$0xff]  ;;  %v4141_v46 = vld [vmem:[%s4034_s30 + $0x20] sm:$0xff]  ;;  %v380_v49 = vrot.slane %v4123_v40, 1  ;;  %v381_v50 = vrot.slane %v4126_v41, 1  ;;  %v4151_v53 = vsel %vm314_vm0, %v340_v43, %v341_v44  ;;  %v345_v22 = vrot.slane %v4196_v4, 1 }
  0x1a   : > { %6095 = vst [vmem:[#allocation8_spill] sm:$0xff] %v4105_v34  ;;  %v320_v51 = vrot.slane %v4138_v45, 1  ;;  %v321_v52 = vrot.slane %v4141_v46, 1  ;;  %v4154_v54 = vsel %vm314_vm0, %v360_v47, %v361_v48  ;;  %v4160_v56 = vld [vmem:[%s4034_s30 + $0x88] sm:$0x3]  ;;  %v4199_v8 = vld [vmem:[%s4034_s30 + $0x98] sm:$0xff] }
  0x1b   : > { %6096 = vst [vmem:[#allocation9_spill] sm:$0xff] %v4108_v35  ;;  %v4157_v55 = vsel %vm314_vm0, %v380_v49, %v381_v50  ;;  %v4163_v57 = vld [vmem:[%s4034_s30 + $0xe8] sm:$0x3]  ;;  %v343_v60 = vrot.slane %v4160_v56, 1  ;;  %v4205_v11 = vld [vmem:[%s4034_s30 + $0xf8] sm:$0xff]  ;;  %v346_v25 = vrot.slane %v4199_v8, 1 }
  0x1c   : > { %6097 = vst [vmem:[#allocation10_spill] sm:$0xff] %v4123_v40  ;;  %v4166_v58 = vld [vmem:[%s4034_s30 + $0x148] sm:$0x3]  ;;  %v4171_v59 = vsel %vm314_vm0, %v320_v51, %v321_v52  ;;  %v363_v62 = vrot.slane %v4163_v57, 1  ;;  %v4211_v15 = vld [vmem:[%s4034_s30 + $0x158] sm:$0xff]  ;;  %v4225_v27 = vld [vmem:[%s4034_s30 + $0x30] sm:$0xff] }
  0x1d   : > { %6098 = vst [vmem:[#allocation11_spill] sm:$0xff] %v4126_v41  ;;  %3640 = vmatmul.msk.f32.gmra.mxu1 %vm397_vm1, %v4102_v33  ;;  %v4179_v61 = vld [vmem:[%s4034_s30 + $0x28] sm:$0x3]  ;;  %v383_v63 = vrot.slane %v4166_v58, 1  ;;  %v4187_v1 = vsel %vm314_vm0, %v341_v44, %v343_v60  ;;  %v4228_v29 = vld [vmem:[%s4034_s30 + $0x38] sm:$0xff]  ;;  %v365_v30 = vrot.slane %v4202_v9, 1  ;;  %v4239_v47 = vsel %vm314_vm0, %v345_v22, %v346_v25 }
  0x1e   : > { %3648 = vmatmul.msk.f32.gmra.mxu2 %vm397_vm1, %v4105_v34  ;;  %6099 = vst [vmem:[#allocation12_spill] sm:$0xff] %v4151_v53  ;;  %v323_v0 = vrot.slane %v4179_v61, 1  ;;  %v4190_v2 = vsel %vm314_vm0, %v361_v48, %v363_v62  ;;  %v366_v31 = vrot.slane %v4205_v11, 1  ;;  %v385_v32 = vrot.slane %v4208_v14, 1  ;;  %v4251_v51 = vld [vmem:[%s4034_s30 + $0x100] sm:$0x3] }
  0x1f   : > { %3656 = vmatmul.msk.f32.gmra.mxu3 %vm397_vm1, %v4108_v35  ;;  %6100 = vst [vmem:[#allocation13_spill] sm:$0xff] %v4157_v55  ;;  %v4193_v3 = vsel %vm314_vm0, %v381_v50, %v383_v63  ;;  %v325_v43 = vrot.slane %v4225_v27, 1  ;;  %v326_v44 = vrot.slane %v4228_v29, 1  ;;  %v4248_v50 = vld [vmem:[%s4034_s30 + $0xa0] sm:$0x3]  ;;  %v3860_v22 = vld [vmem:[%s6010_s1 + $0x38] sm:$0xff] }
  0x20   : > { %3632 = vmatmul.msk.f32.gmra.mxu0 %vm397_vm1, %v319_v42  ;;  %6101 = vst [vmem:[#allocation14_spill] sm:$0xff] %v4166_v58  ;;  %v4216_v16 = vsel %vm314_vm0, %v321_v52, %v323_v0  ;;  %v386_v42 = vrot.slane %v4211_v15, 1  ;;  %v4242_v48 = vsel %vm314_vm0, %v365_v30, %v366_v31  ;;  %v4254_v52 = vld [vmem:[%s4034_s30 + $0x160] sm:$0x3]  ;;  %v348_v63 = vrot.slane %v4248_v50, 1  ;;  %v3827_v0 = vld [vmem:[%s6010_s1 + $0x30] sm:$0xff]  ;;  %1690 = vmatpush.msra.mxu3 %v3860_v22 }
  0x21   : > { %6102 = vst [vmem:[#allocation15_spill] sm:$0xff] %v4187_v1  ;;  %v4259_v60 = vsel %vm314_vm0, %v325_v43, %v326_v44  ;;  %v4262_v62 = vld [vmem:[%s4034_s30 + $0x40] sm:$0x3]  ;;  %v3794_v30 = vld [vmem:[%s6010_s1 + $0x28] sm:$0xff]  ;;  %v388_v43 = vrot.slane %v4254_v52, 1  ;;  %1533 = vmatpush.msra.mxu2 %v3827_v0  ;;  %v4296_v0 = vld [vmem:[%s4034_s30 + $0xb0] sm:$0xff] }
  0x22   : > { %6103 = vst [vmem:[#allocation16_spill] sm:$0xff] %v4193_v3  ;;  %v4245_v49 = vsel %vm314_vm0, %v385_v32, %v386_v42  ;;  %v368_v32 = vrot.slane %v4251_v51, 1  ;;  %1380 = vmatpush.msra.mxu1 %v3794_v30  ;;  %v4299_v22 = vld [vmem:[%s4034_s30 + $0x108] sm:$0xff]  ;;  %v4302_v30 = vld [vmem:[%s4034_s30 + $0x110] sm:$0xff] }
  0x23   : > { %6104 = vst [vmem:[#allocation17_spill] sm:$0xff] %v4208_v14  ;;  %v4290_v14 = vsel %vm314_vm0, %v386_v42, %v388_v43  ;;  %v4308_v41 = vld [vmem:[%s4034_s30 + $0x170] sm:$0xff]  ;;  %v351_v42 = vrot.slane %v4296_v0, 1  ;;  %v371_v43 = vrot.slane %v4302_v30, 1 }
  0x24   : > { %6105 = vst [vmem:[#allocation18_spill] sm:$0xff] %v4211_v15  ;;  %v328_v15 = vrot.slane %v4262_v62, 1  ;;  %v4287_v58 = vsel %vm314_vm0, %v366_v31, %v368_v32  ;;  %v4325_v32 = vld [vmem:[%s4034_s30 + $0x50] sm:$0xff] }
  0x25   : > { %3641 = vmatmul.msk.f32.gmra.mxu1 %vm397_vm1, %v4151_v53  ;;  %6106 = vst [vmem:[#allocation19_spill] sm:$0xff] %v4239_v47  ;;  %v331_v40 = vrot.slane %v4325_v32, 1 }
  0x26   : > { %3649 = vmatmul.msk.f32.gmra.mxu2 %vm397_vm1, %v4154_v54  ;;  %6107 = vst [vmem:[#allocation20_spill] sm:$0xff] %v4245_v49 }
  0x27   : > { %3657 = vmatmul.msk.f32.gmra.mxu3 %vm397_vm1, %v4157_v55  ;;  %6108 = vst [vmem:[#allocation21_spill] sm:$0xff] %v4251_v51  ;;  %v391_v55 = vrot.slane %v4308_v41, 1 }
  0x28   : > { %3633 = vmatmul.msk.f32.gmra.mxu0 %vm397_vm1, %v4171_v59  ;;  %6109 = vst [vmem:[#allocation22_spill] sm:$0xff] %v4254_v52  ;;  %v4293_v52 = vld [vmem:[%s4034_s30 + $0xa8] sm:$0xff] }
  0x29   : > { %6111 = vst [vmem:[#allocation24_spill] sm:$0xff] %v4290_v14  ;;  %v350_v31 = vrot.slane %v4293_v52, 1 }
  0x2a   : > { %6112 = vst [vmem:[#allocation25_spill] sm:$0xff] %v4302_v30 }
  0x2b   : > { %6114 = vst [vmem:[#allocation27_spill] sm:$0xff] %v4308_v41  ;;  %v4339_v35 = vsel %vm314_vm0, %v350_v31, %v351_v42  ;;  %v4351_v41 = vld [vmem:[%s4034_s30 + $0x118] sm:$0x3] }
  0x2c   : > { %6115 = vst [vmem:[#allocation28_spill] sm:$0xff] %v4339_v35  ;;  %v4367_v31 = vld [vmem:[%s4034_s30 + $0x58] sm:$0x3] }
  0x2d   : > { %3642 = vmatmul.msk.f32.gmra.mxu1 %vm397_vm1, %v4187_v1  ;;  %6118 = vst [vmem:[#allocation31_spill] sm:$0xff] %v4351_v41 }
  0x2e   : > { %3650 = vmatmul.msk.f32.gmra.mxu2 %vm397_vm1, %v4190_v2 }
  0x2f   : > { %3658 = vmatmul.msk.f32.gmra.mxu3 %vm397_vm1, %v4193_v3  ;;  %v4305_v3 = vld [vmem:[%s4034_s30 + $0x168] sm:$0xff] }
  0x30   : > { %3634 = vmatmul.msk.f32.gmra.mxu0 %vm397_vm1, %v4216_v16  ;;  %6113 = vst [vmem:[#allocation26_spill] sm:$0xff] %v4305_v3 }
  0x35   : > { %3643 = vmatmul.msk.f32.gmra.mxu1 %vm397_vm1, %v4239_v47 }
  0x36   : > { %3651 = vmatmul.msk.f32.gmra.mxu2 %vm397_vm1, %v4242_v48 }
  0x37   : > { %3659 = vmatmul.msk.f32.gmra.mxu3 %vm397_vm1, %v4245_v49  ;;  %v4284_v49 = vsel %vm314_vm0, %v346_v25, %v348_v63  ;;  %v4313_v25 = vsel %vm314_vm0, %v326_v44, %v328_v15  ;;  %v4322_v63 = vld [vmem:[%s4034_s30 + $0x48] sm:$0xff]  ;;  %v3893_v15 = vld [vmem:[%s6010_s1 + $0x40] sm:$0xff]  ;;  %v370_v44 = vrot.slane %v4299_v22, 1 }
  0x38   : > { %3635 = vmatmul.msk.f32.gmra.mxu0 %vm397_vm1, %v4259_v60  ;;  %6110 = vst [vmem:[#allocation23_spill] sm:$0xff] %v4284_v49  ;;  %v330_v26 = vrot.slane %v4322_v63, 1 }
  0x39   : > { %1846 = vmatpush.msra.mxu0 %v3893_v15  ;;  %v4342_v13 = vsel %vm314_vm0, %v370_v44, %v371_v43  ;;  %v4354_v15 = vld [vmem:[%s4034_s30 + $0x178] sm:$0x3]  ;;  %v373_v44 = vrot.slane %v4351_v41, 1 }
  0x3a   : > { %6116 = vst [vmem:[#allocation29_spill] sm:$0xff] %v4342_v13  ;;  %v4359_v12 = vsel %vm314_vm0, %v330_v26, %v331_v40  ;;  %v393_v30 = vrot.slane %v4354_v15, 1  ;;  %v333_v26 = vrot.slane %v4367_v31, 1 }
  0x3c   : > { %v4386_v41 = vsel %vm314_vm0, %v331_v40, %v333_v26  ;;  %v756_v40 = vrot.slane %v4094_v28, 2  ;;  %v768_v26 = vrot.slane %v4322_v63, 2 }
  0x3d   : > { %3644 = vmatmul.msk.f32.gmra.mxu1 %vm397_vm1, %v4284_v49 }
  0x3e   : > { %3652 = vmatmul.msk.f32.gmra.mxu2 %vm397_vm1, %v4287_v58 }
  0x3f   : > { %3660 = vmatmul.msk.f32.gmra.mxu3 %vm397_vm1, %v4290_v14  ;;  %v390_v14 = vrot.slane %v4305_v3, 1  ;;  %v4348_v3 = vld [vmem:[%s4034_s30 + $0xb8] sm:$0x3] }
  0x40   : > { %3636 = vmatmul.msk.f32.gmra.mxu0 %vm397_vm1, %v4313_v25 }
  0x41   : > { %v4345_v24 = vsel %vm314_vm0, %v390_v14, %v391_v55  ;;  %v353_v14 = vrot.slane %v4348_v3, 1 }
  0x42   : > { %6117 = vst [vmem:[#allocation30_spill] sm:$0xff] %v4345_v24 }
  0x43   : > { %v4375_v51 = vsel %vm314_vm0, %v351_v42, %v353_v14  ;;  %v753_v42 = vrot.slane %v4064_v18, 2  ;;  %v759_v14 = vrot.slane %v4141_v46, 2 }
  0x44   : > { %6119 = vst [vmem:[#allocation32_spill] sm:$0xff] %v4375_v51 }
  0x45   : > { %3645 = vmatmul.msk.f32.gmra.mxu1 %vm397_vm1, %v4339_v35 }
  0x46   : > { %3653 = vmatmul.msk.f32.gmra.mxu2 %vm397_vm1, %v4342_v13  ;;  %v4378_v13 = vsel %vm314_vm0, %v371_v43, %v373_v44  ;;  %v754_v43 = vrot.slane %v4073_v21, 2 }
  0x47   : > { %3661 = vmatmul.msk.f32.gmra.mxu3 %vm397_vm1, %v4345_v24  ;;  %v4381_v24 = vsel %vm314_vm0, %v391_v55, %v393_v30 }
  0x48   : > { %3637 = vmatmul.msk.f32.gmra.mxu0 %vm397_vm1, %v4359_v12  ;;  %6120 = vst [vmem:[#allocation33_spill] sm:$0xff] %v4381_v24  ;;  %v755_v55 = vsel %vm752_vm2, %v753_v42, %v754_v43  ;;  %v757_v30 = vsel %vm752_vm2, %v754_v43, %v756_v40  ;;  %v769_v42 = vrot.slane %v4325_v32, 2  ;;  %v771_v43 = vrot.slane %v4367_v31, 2 }
  0x49   : > { %v773_v40 = vrot.slane %v4037_v5, 2 }
  0x4d   : > { %3646 = vmatmul.msk.f32.gmra.mxu1 %vm397_vm1, %v4375_v51 }
  0x4e   : > { %3654 = vmatmul.msk.f32.gmra.mxu2 %vm397_vm1, %v4378_v13 }
  0x4f   : > { %3662 = vmatmul.msk.f32.gmra.mxu3 %vm397_vm1, %v4381_v24 }
  0x50   : > { %3638 = vmatmul.msk.f32.gmra.mxu0 %vm397_vm1, %v4386_v41 }
  0x55   : > { %3663 = vmatmul.msk.f32.vlgmr.msrb.gmra.mxu1 %vm397_vm1, %v4064_v18  ;;  %v758_v18 = vrot.slane %v4138_v45, 2 }
  0x56   : > { %3696 = vmatmul.msk.f32.vlgmr.msrb.gmra.mxu2 %vm397_vm1, %v755_v55  ;;  %v4478_v55 = vsel %vm752_vm2, %v769_v42, %v771_v43 }
  0x57   : > { %3729 = vmatmul.msk.f32.vlgmr.msrb.gmra.mxu3 %vm397_vm1, %v4138_v45  ;;  %v4416_v28 = vsel %vm752_vm2, %v758_v18, %v759_v14 }
  0x58   : > { %3762 = vmatmul.msk.f32.vlgmr.msrb.gmra.mxu0 %vm397_vm1, %v4171_v59 }
  0x5d   : > { %3664 = vmatmul.msk.f32.gmra.mxu1 %vm397_vm1, %v4073_v21  ;;  %v761_v21 = vrot.slane %v4179_v61, 2 }
  0x5e   : > { %3697 = vmatmul.msk.f32.gmra.mxu2 %vm397_vm1, %v757_v30  ;;  %v774_v30 = vrot.slane %v4040_v6, 2 }
  0x5f   : > { %3730 = vmatmul.msk.f32.gmra.mxu3 %vm397_vm1, %v4141_v46  ;;  %v4428_v59 = vsel %vm752_vm2, %v759_v14, %v761_v21  ;;  %v776_v21 = vrot.slane %v4061_v17, 2  ;;  %v778_v17 = vrot.slane %v4111_v36, 2 }
  0x60   : > { %3763 = vmatmul.msk.f32.gmra.mxu0 %vm397_vm1, %v4216_v16  ;;  %v764_v16 = vrot.slane %v4228_v29, 2  ;;  %v4493_v18 = vsel %vm752_vm2, %v773_v40, %v774_v30 }
  0x61   : > { %6121 = vst [vmem:[#allocation34_spill] sm:$0xff] %v4493_v18 }
  0x65   : > { %3665 = vmatmul.msk.f32.gmra.mxu1 %vm397_vm1, %v4138_v45  ;;  %v763_v45 = vrot.slane %v4225_v27, 2 }
  0x66   : > { %3698 = vmatmul.msk.f32.gmra.mxu2 %vm397_vm1, %v4416_v28 }
  0x67   : > { %3731 = vmatmul.msk.f32.gmra.mxu3 %vm397_vm1, %v4225_v27  ;;  %v4441_v61 = vsel %vm752_vm2, %v763_v45, %v764_v16 }
  0x68   : > { %3764 = vmatmul.msk.f32.gmra.mxu0 %vm397_vm1, %v4259_v60 }
  0x6d   : > { %3666 = vmatmul.msk.f32.gmra.mxu1 %vm397_vm1, %v4141_v46  ;;  %v766_v46 = vrot.slane %v4262_v62, 2  ;;  %v4466_v62 = vsel %vm752_vm2, %v768_v26, %v769_v42  ;;  %v779_v42 = vrot.slane %v4114_v37, 2 }
  0x6e   : > { %3699 = vmatmul.msk.f32.gmra.mxu2 %vm397_vm1, %v4428_v59 }
  0x6f   : > { %3732 = vmatmul.msk.f32.gmra.mxu3 %vm397_vm1, %v4228_v29  ;;  %v4453_v44 = vsel %vm752_vm2, %v764_v16, %v766_v46 }
  0x70   : > { %3765 = vmatmul.msk.f32.gmra.mxu0 %vm397_vm1, %v4313_v25 }
  0x75   : > { %3667 = vmatmul.msk.f32.gmra.mxu1 %vm397_vm1, %v4225_v27 }
  0x76   : > { %3700 = vmatmul.msk.f32.gmra.mxu2 %vm397_vm1, %v4441_v61 }
  0x77   : > { %3733 = vmatmul.msk.f32.gmra.mxu3 %vm397_vm1, %v4322_v63 }
  0x78   : > { %3766 = vmatmul.msk.f32.gmra.mxu0 %vm397_vm1, %v4359_v12 }
  0x7d   : > { %3668 = vmatmul.msk.f32.gmra.mxu1 %vm397_vm1, %v4228_v29 }
  0x7e   : > { %3701 = vmatmul.msk.f32.gmra.mxu2 %vm397_vm1, %v4453_v44 }
  0x7f   : > { %3734 = vmatmul.msk.f32.gmra.mxu3 %vm397_vm1, %v4325_v32 }
  0x80   : > { %3767 = vmatmul.msk.f32.gmra.mxu0 %vm397_vm1, %v4386_v41 }
  0x85   : > { %3669 = vmatmul.msk.f32.gmra.mxu1 %vm397_vm1, %v4322_v63 }
  0x86   : > { %3702 = vmatmul.msk.f32.gmra.mxu2 %vm397_vm1, %v4466_v62 }
  0x87   : > { %3735 = vmatmul.msk.f32.gmra.mxu3 %vm397_vm1, %v4037_v5 }
  0x88   : > { %3768 = vmatmul.msk.f32.gmra.mxu0 %vm397_vm1, %v4067_v19 }
  0x8d   : > { %3670 = vmatmul.msk.f32.gmra.mxu1 %vm397_vm1, %v4325_v32 }
  0x8e   : > { %3703 = vmatmul.msk.f32.gmra.mxu2 %vm397_vm1, %v4478_v55 }
  0x8f   : > { %3736 = vmatmul.msk.f32.gmra.mxu3 %vm397_vm1, %v4040_v6 }
  0x90   : > { %3769 = vmatmul.msk.f32.gmra.mxu0 %vm397_vm1, %v4102_v33 }
  0x92   : > { %v4490_v31 = vpop.f32.mrf.mxu1 }
  0x95   : > { %3671 = vmatmul.msk.f32.gmra.mxu1 %vm397_vm1, %v4037_v5  ;;  %v4497_v14 = vpop.f32.mrf.mxu0  ;;  %v4513_v5 = vsel %vm752_vm2, %v774_v30, %v776_v21  ;;  %v4534_v30 = vsel %vm752_vm2, %v778_v17, %v779_v42 }
  0x96   : > { %3704 = vmatmul.msk.f32.gmra.mxu2 %vm397_vm1, %v4493_v18  ;;  %6123 = vst [vmem:[#allocation36_spill] sm:$0xff] %v4513_v5 }
  0x97   : > { %3737 = vmatmul.msk.f32.gmra.mxu3 %vm397_vm1, %v4111_v36  ;;  %6125 = vst [vmem:[#allocation38_spill] sm:$0xff] %v4534_v30 }
  0x98   : > { %3770 = vmatmul.msk.f32.gmra.mxu0 %vm397_vm1, %v4151_v53 }
  0x99   : > { %v4506_v45 = vpop.f32.mrf.mxu2 }
  0x9a   : > { %v4508_v16 = vpop.f32.mrf.mxu3  ;;  %v4510_v46 = vpop.f32.mrf.mxu1 }
  0x9b   : > { %6122 = vst [vmem:[#allocation35_spill] sm:$0xff] %v4508_v16  ;;  %v781_v16 = vrot.slane %v4160_v56, 2  ;;  %v783_v56 = vrot.slane %v4196_v4, 2 }
  0x9d   : > { %3672 = vmatmul.msk.f32.gmra.mxu1 %vm397_vm1, %v4040_v6  ;;  %v4517_v26 = vpop.f32.mrf.mxu0 }
  0x9e   : > { %3705 = vmatmul.msk.f32.gmra.mxu2 %vm397_vm1, %v4513_v5 }
  0x9f   : > { %3738 = vmatmul.msk.f32.gmra.mxu3 %vm397_vm1, %v4114_v37 }
  0xa0   : > { %3771 = vmatmul.msk.f32.gmra.mxu0 %vm397_vm1, %v4187_v1 }
  0xa1   : > { %v4527_v43 = vpop.f32.mrf.mxu2 }
  0xa2   : > { %v4529_v40 = vpop.f32.mrf.mxu3  ;;  %v4531_v6 = vpop.f32.mrf.mxu1 }
  0xa3   : > { %6124 = vst [vmem:[#allocation37_spill] sm:$0xff] %v4529_v40 }
  0xa5   : > { %3673 = vmatmul.msk.f32.gmra.mxu1 %vm397_vm1, %v4111_v36  ;;  %v4538_v21 = vpop.f32.mrf.mxu0  ;;  %v4554_v36 = vsel %vm752_vm2, %v779_v42, %v781_v16 }
  0xa6   : > { %3706 = vmatmul.msk.f32.gmra.mxu2 %vm397_vm1, %v4534_v30  ;;  %6127 = vst [vmem:[#allocation40_spill] sm:$0xff] %v4554_v36 }
  0xa7   : > { %3739 = vmatmul.msk.f32.gmra.mxu3 %vm397_vm1, %v4196_v4 }
  0xa8   : > { %3772 = vmatmul.msk.f32.gmra.mxu0 %vm397_vm1, %v4239_v47 }
  0xa9   : > { %v4547_v40 = vpop.f32.mrf.mxu2 }
  0xaa   : > { %v4549_v17 = vpop.f32.mrf.mxu3  ;;  %v4551_v1 = vpop.f32.mrf.mxu1 }
  0xab   : > { %6126 = vst [vmem:[#allocation39_spill] sm:$0xff] %v4549_v17  ;;  %v784_v17 = vrot.slane %v4199_v8, 2 }
  0xad   : > { %3674 = vmatmul.msk.f32.gmra.mxu1 %vm397_vm1, %v4114_v37  ;;  %v4558_v30 = vpop.f32.mrf.mxu0  ;;  %v4575_v47 = vsel %vm752_vm2, %v783_v56, %v784_v17 }
  0xae   : > { %3707 = vmatmul.msk.f32.gmra.mxu2 %vm397_vm1, %v4554_v36  ;;  %6129 = vst [vmem:[#allocation42_spill] sm:$0xff] %v4575_v47 }
  0xaf   : > { %3740 = vmatmul.msk.f32.gmra.mxu3 %vm397_vm1, %v4199_v8 }
  0xb0   : > { %3773 = vmatmul.msk.f32.gmra.mxu0 %vm397_vm1, %v4284_v49  ;;  %v786_v49 = vrot.slane %v4248_v50, 2  ;;  %v788_v50 = vrot.slane %v4293_v52, 2 }
  0xb1   : > { %v4568_v16 = vpop.f32.mrf.mxu2 }
  0xb2   : > { %v4570_v42 = vpop.f32.mrf.mxu3  ;;  %v4572_v37 = vpop.f32.mrf.mxu1 }
  0xb3   : > { %6128 = vst [vmem:[#allocation41_spill] sm:$0xff] %v4570_v42 }
  0xb5   : > { %3675 = vmatmul.msk.f32.gmra.mxu1 %vm397_vm1, %v4196_v4  ;;  %v4579_v36 = vpop.f32.mrf.mxu0  ;;  %v4595_v4 = vsel %vm752_vm2, %v784_v17, %v786_v49 }
  0xb6   : > { %3708 = vmatmul.msk.f32.gmra.mxu2 %vm397_vm1, %v4575_v47  ;;  %6131 = vst [vmem:[#allocation44_spill] sm:$0xff] %v4595_v4 }
  0xb7   : > { %3741 = vmatmul.msk.f32.gmra.mxu3 %vm397_vm1, %v4293_v52 }
  0xb8   : > { %3774 = vmatmul.msk.f32.gmra.mxu0 %vm397_vm1, %v4339_v35 }
  0xb9   : > { %v4588_v42 = vpop.f32.mrf.mxu2 }
  0xba   : > { %v4590_v56 = vpop.f32.mrf.mxu3  ;;  %v4592_v53 = vpop.f32.mrf.mxu1 }
  0xbb   : > { %6130 = vst [vmem:[#allocation43_spill] sm:$0xff] %v4590_v56  ;;  %v789_v56 = vrot.slane %v4296_v0, 2 }
  0xbd   : > { %3676 = vmatmul.msk.f32.gmra.mxu1 %vm397_vm1, %v4199_v8  ;;  %v4599_v47 = vpop.f32.mrf.mxu0  ;;  %v4616_v35 = vsel %vm752_vm2, %v788_v50, %v789_v56 }
  0xbe   : > { %3709 = vmatmul.msk.f32.gmra.mxu2 %vm397_vm1, %v4595_v4  ;;  %6134 = vst [vmem:[#allocation47_spill] sm:$0xff] %v4616_v35 }
  0xbf   : > { %3742 = vmatmul.msk.f32.gmra.mxu3 %vm397_vm1, %v4296_v0 }
  0xc0   : > { %3775 = vmatmul.msk.f32.gmra.mxu0 %vm397_vm1, %v4375_v51  ;;  %v791_v51 = vrot.slane %v4348_v3, 2  ;;  %v793_v3 = vrot.slane %v4043_v7, 2 }
  0xc1   : > { %v4609_v49 = vpop.f32.mrf.mxu2 }
  0xc2   : > { %6132 = vst [vmem:[#allocation45_spill] sm:$0xff] %v4609_v49  ;;  %v4611_v17 = vpop.f32.mrf.mxu3  ;;  %v4613_v8 = vpop.f32.mrf.mxu1 }
  0xc3   : > { %6133 = vst [vmem:[#allocation46_spill] sm:$0xff] %v4611_v17 }
  0xc5   : > { %3677 = vmatmul.msk.f32.gmra.mxu1 %vm397_vm1, %v4293_v52  ;;  %v4620_v4 = vpop.f32.mrf.mxu0  ;;  %v4636_v52 = vsel %vm752_vm2, %v789_v56, %v791_v51 }
  0xc6   : > { %3710 = vmatmul.msk.f32.gmra.mxu2 %vm397_vm1, %v4616_v35  ;;  %6137 = vst [vmem:[#allocation50_spill] sm:$0xff] %v4636_v52 }
  0xc7   : > { %3743 = vmatmul.msk.f32.gmra.mxu3 %vm397_vm1, %v4043_v7 }
  0xc8   : > { %3776 = vmatmul.msk.f32.gmra.mxu0 %vm397_vm1, %v4079_v23 }
  0xc9   : > { %v4629_v17 = vpop.f32.mrf.mxu2 }
  0xca   : > { %6135 = vst [vmem:[#allocation48_spill] sm:$0xff] %v4629_v17  ;;  %v4631_v50 = vpop.f32.mrf.mxu3  ;;  %v4633_v5 = vpop.f32.mrf.mxu1 }
  0xcb   : > { %6136 = vst [vmem:[#allocation49_spill] sm:$0xff] %v4631_v50  ;;  %v794_v50 = vrot.slane %v4048_v10, 2 }
  0xcd   : > { %3678 = vmatmul.msk.f32.gmra.mxu1 %vm397_vm1, %v4296_v0  ;;  %v4640_v35 = vpop.f32.mrf.mxu0  ;;  %v4655_v23 = vsel %vm752_vm2, %v793_v3, %v794_v50 }
  0xce   : > { %3711 = vmatmul.msk.f32.gmra.mxu2 %vm397_vm1, %v4636_v52  ;;  %6140 = vst [vmem:[#allocation53_spill] sm:$0xff] %v4655_v23 }
  0xcf   : > { %3744 = vmatmul.msk.f32.gmra.mxu3 %vm397_vm1, %v4048_v10 }
  0xd0   : > { %3777 = vmatmul.msk.f32.gmra.mxu0 %vm397_vm1, %v4105_v34  ;;  %v796_v34 = vrot.slane %v4070_v20, 2  ;;  %v798_v20 = vrot.slane %v4117_v38, 2 }
  0xd1   : > { %v4650_v51 = vpop.f32.mrf.mxu2 }
  0xd2   : > { %6138 = vst [vmem:[#allocation51_spill] sm:$0xff] %v4650_v51  ;;  %v4652_v56 = vpop.f32.mrf.mxu3  ;;  %v656_v0 = vpop.f32.mrf.mxu1 }
  0xd3   : > { %6139 = vst [vmem:[#allocation52_spill] sm:$0xff] %v4652_v56  ;;  %v657_v51 = vadd.f32 %v656_v0, %v4497_v14  ;;  %v799_v14 = vrot.slane %v4120_v39, 2 }
  0xd5   : > { %3679 = vmatmul.msk.f32.gmra.mxu1 %vm397_vm1, %v4043_v7  ;;  %v1226_v52 = vpop.f32.mrf.mxu0  ;;  %v4668_v7 = vsel %vm752_vm2, %v794_v50, %v796_v34 }
  0xd6   : > { %3712 = vmatmul.msk.f32.gmra.mxu2 %vm397_vm1, %v4655_v23 }
  0xd7   : > { %3745 = vmatmul.msk.f32.gmra.mxu3 %vm397_vm1, %v4117_v38 }
  0xd8   : > { %3778 = vmatmul.msk.f32.gmra.mxu0 %vm397_vm1, %v4154_v54 }
  0xd9   : > { %v916_v56 = vpop.f32.mrf.mxu2 }
  0xda   : > { %v1069_v3 = vpop.f32.mrf.mxu3  ;;  %v1012_v17 = vadd.f32 %v916_v56, %v657_v51  ;;  %v659_v49 = vpop.f32.mrf.mxu1 }
  0xdb   : > { %v660_v34 = vadd.f32 %v659_v49, %v4517_v26  ;;  %v801_v26 = vrot.slane %v4163_v57, 2  ;;  %v803_v57 = vrot.slane %v4202_v9, 2 }
  0xdc   : > { %v1165_v33 = vadd.f32 %v1069_v3, %v1012_v17 }
  0xdd   : > { %3680 = vmatmul.msk.f32.gmra.mxu1 %vm397_vm1, %v4048_v10  ;;  %v1229_v23 = vpop.f32.mrf.mxu0 }
  0xde   : > { %v4672_v18 = vadd.f32 %v1226_v52, %v1165_v33  ;;  %3713 = vmatmul.msk.f32.gmra.mxu2 %vm397_vm1, %v4668_v7  ;;  %v4684_v52 = vsel %vm752_vm2, %v798_v20, %v799_v14 }
  0xdf   : > { %3746 = vmatmul.msk.f32.gmra.mxu3 %vm397_vm1, %v4120_v39 }
  0xe0   : > { %3779 = vmatmul.msk.f32.gmra.mxu0 %vm397_vm1, %v4190_v2 }
  0xe1   : > { %v919_v17 = vpop.f32.mrf.mxu2 }
  0xe2   : > { %v1072_v10 = vpop.f32.mrf.mxu3  ;;  %v1013_v50 = vadd.f32 %v919_v17, %v660_v34  ;;  %v662_v33 = vpop.f32.mrf.mxu1 }
  0xe3   : > { %v663_v49 = vadd.f32 %v662_v33, %v4538_v21  ;;  %v804_v21 = vrot.slane %v4205_v11, 2 }
  0xe4   : > { %v1166_v51 = vadd.f32 %v1072_v10, %v1013_v50 }
  0xe5   : > { %3681 = vmatmul.msk.f32.gmra.mxu1 %vm397_vm1, %v4117_v38  ;;  %v1232_v56 = vpop.f32.mrf.mxu0 }
  0xe6   : > { %v4688_v0 = vadd.f32 %v1229_v23, %v1166_v51  ;;  %3714 = vmatmul.msk.f32.gmra.mxu2 %vm397_vm1, %v4684_v52  ;;  %v4699_v23 = vsel %vm752_vm2, %v799_v14, %v801_v26  ;;  %v4715_v26 = vsel %vm752_vm2, %v803_v57, %v804_v21 }
  0xe7   : > { %3747 = vmatmul.msk.f32.gmra.mxu3 %vm397_vm1, %v4202_v9 }
  0xe8   : > { %3780 = vmatmul.msk.f32.gmra.mxu0 %vm397_vm1, %v4242_v48 }
  0xe9   : > { %v922_v3 = vpop.f32.mrf.mxu2 }
  0xea   : > { %v1075_v20 = vpop.f32.mrf.mxu3  ;;  %v1014_v34 = vadd.f32 %v922_v3, %v663_v49  ;;  %v665_v38 = vpop.f32.mrf.mxu1 }
  0xeb   : > { %v666_v14 = vadd.f32 %v665_v38, %v4558_v30  ;;  %v6142_v30 = vld [vmem:[#allocation21_spill] sm:$0xff] }
  0xec   : > { %v1167_v17 = vadd.f32 %v1075_v20, %v1014_v34  ;;  %v806_v34 = vrot.slane %v6142_v30, 2 }
  0xed   : > { %3682 = vmatmul.msk.f32.gmra.mxu1 %vm397_vm1, %v4120_v39  ;;  %v1235_v10 = vpop.f32.mrf.mxu0 }
  0xee   : > { %v4703_v50 = vadd.f32 %v1232_v56, %v1167_v17  ;;  %3715 = vmatmul.msk.f32.gmra.mxu2 %vm397_vm1, %v4699_v23  ;;  %v6143_v17 = vld [vmem:[#allocation29_spill] sm:$0xff] }
  0xef   : > { %3748 = vmatmul.msk.f32.gmra.mxu3 %vm397_vm1, %v4205_v11 }
  0xf0   : > { %3781 = vmatmul.msk.f32.gmra.mxu0 %vm397_vm1, %v4287_v58 }
  0xf1   : > { %v925_v33 = vpop.f32.mrf.mxu2 }
  0xf2   : > { %v1078_v39 = vpop.f32.mrf.mxu3  ;;  %v1015_v51 = vadd.f32 %v925_v33, %v666_v14  ;;  %v668_v56 = vpop.f32.mrf.mxu1 }
  0xf3   : > { %v669_v38 = vadd.f32 %v668_v56, %v4579_v36  ;;  %v6145_v36 = vld [vmem:[#allocation25_spill] sm:$0xff]  ;;  %v808_v56 = vrot.slane %v4299_v22, 2 }
  0xf4   : > { %v1168_v49 = vadd.f32 %v1078_v39, %v1015_v51  ;;  %v809_v30 = vrot.slane %v6145_v36, 2 }
  0xf5   : > { %3683 = vmatmul.msk.f32.gmra.mxu1 %vm397_vm1, %v4202_v9  ;;  %v1238_v3 = vpop.f32.mrf.mxu0 }
  0xf6   : > { %v4719_v20 = vadd.f32 %v1235_v10, %v1168_v49  ;;  %3716 = vmatmul.msk.f32.gmra.mxu2 %vm397_vm1, %v4715_v26  ;;  %v4730_v10 = vsel %vm752_vm2, %v804_v21, %v806_v34 }
  0xf7   : > { %3749 = vmatmul.msk.f32.gmra.mxu3 %vm397_vm1, %v4299_v22 }
  0xf8   : > { %6141 = vst [vmem:[#allocation54_spill] sm:$0xff] %v4719_v20  ;;  %3782 = vmatmul.msk.f32.gmra.mxu0 %vm397_vm1, %v6143_v17 }
  0xf9   : > { %v928_v57 = vpop.f32.mrf.mxu2 }
  0xfa   : > { %v1081_v14 = vpop.f32.mrf.mxu3  ;;  %v1016_v33 = vadd.f32 %v928_v57, %v669_v38  ;;  %v671_v9 = vpop.f32.mrf.mxu1  ;;  %v4746_v57 = vsel %vm752_vm2, %v808_v56, %v809_v30 }
  0xfb   : > { %v672_v21 = vadd.f32 %v671_v9, %v4599_v47  ;;  %v6147_v47 = vld [vmem:[#allocation2_spill] sm:$0xff]  ;;  %v6148_v9 = vld [vmem:[#allocation31_spill] sm:$0xff] }
  0xfc   : > { %v1169_v39 = vadd.f32 %v1081_v14, %v1016_v33 }
  0xfd   : > { %3684 = vmatmul.msk.f32.gmra.mxu1 %vm397_vm1, %v4205_v11  ;;  %v1241_v51 = vpop.f32.mrf.mxu0 }
  0xfe   : > { %v4734_v49 = vadd.f32 %v1238_v3, %v1169_v39  ;;  %3717 = vmatmul.msk.f32.gmra.mxu2 %vm397_vm1, %v4730_v10 }
  0xff   : > { %3750 = vmatmul.msk.f32.gmra.mxu3 %vm397_vm1, %v6145_v36 }
 0x100   : > { %6144 = vst [vmem:[#allocation21_spill] sm:$0xff] %v4734_v49  ;;  %3783 = vmatmul.msk.f32.gmra.mxu0 %vm397_vm1, %v4378_v13  ;;  %v811_v49 = vrot.slane %v6148_v9, 2 }
 0x101   : > { %v931_v34 = vpop.f32.mrf.mxu2 }
 0x102   : > { %v1084_v11 = vpop.f32.mrf.mxu3  ;;  %v1017_v38 = vadd.f32 %v931_v34, %v672_v21  ;;  %v674_v3 = vpop.f32.mrf.mxu1  ;;  %v6149_v34 = vld [vmem:[#allocation5_spill] sm:$0xff] }
 0x103   : > { %v675_v21 = vadd.f32 %v674_v3, %v4620_v4  ;;  %v6151_v4 = vld [vmem:[#allocation3_spill] sm:$0xff]  ;;  %v813_v3 = vrot.slane %v6147_v47, 2 }
 0x104   : > { %v1170_v14 = vadd.f32 %v1084_v11, %v1017_v38  ;;  %v814_v9 = vrot.slane %v6151_v4, 2 }
 0x105   : > { %3685 = vmatmul.msk.f32.gmra.mxu1 %vm397_vm1, %v4299_v22  ;;  %v1244_v33 = vpop.f32.mrf.mxu0 }
 0x106   : > { %v4750_v39 = vadd.f32 %v1241_v51, %v1170_v14  ;;  %3718 = vmatmul.msk.f32.gmra.mxu2 %vm397_vm1, %v4746_v57  ;;  %v4761_v51 = vsel %vm752_vm2, %v809_v30, %v811_v49  ;;  %v6152_v30 = vld [vmem:[#allocation9_spill] sm:$0xff] }
 0x107   : > { %3751 = vmatmul.msk.f32.gmra.mxu3 %vm397_vm1, %v6147_v47 }
 0x108   : > { %6146 = vst [vmem:[#allocation29_spill] sm:$0xff] %v4750_v39  ;;  %3784 = vmatmul.msk.f32.gmra.mxu0 %vm397_vm1, %v6149_v34 }
 0x109   : > { %v934_v56 = vpop.f32.mrf.mxu2 }
 0x10a   : > { %v1087_v11 = vpop.f32.mrf.mxu3  ;;  %v1018_v38 = vadd.f32 %v934_v56, %v675_v21  ;;  %v677_v22 = vpop.f32.mrf.mxu1 }
 0x10b   : > { %v678_v49 = vadd.f32 %v677_v22, %v4640_v35  ;;  %v6155_v35 = vld [vmem:[#allocation10_spill] sm:$0xff] }
 0x10c   : > { %v1171_v14 = vadd.f32 %v1087_v11, %v1018_v38  ;;  %v4777_v11 = vsel %vm752_vm2, %v813_v3, %v814_v9  ;;  %v6156_v22 = vld [vmem:[#allocation6_spill] sm:$0xff] }
 0x10d   : > { %3686 = vmatmul.msk.f32.gmra.mxu1 %vm397_vm1, %v6145_v36  ;;  %v1247_v39 = vpop.f32.mrf.mxu0  ;;  %6153 = vst [vmem:[#allocation2_spill] sm:$0xff] %v4777_v11 }
 0x10e   : > { %v4765_v20 = vadd.f32 %v1244_v33, %v1171_v14  ;;  %3719 = vmatmul.msk.f32.gmra.mxu2 %vm397_vm1, %v4761_v51 }
 0x10f   : > { %3752 = vmatmul.msk.f32.gmra.mxu3 %vm397_vm1, %v6151_v4 }
 0x110   : > { %6150 = vst [vmem:[#allocation25_spill] sm:$0xff] %v4765_v20  ;;  %3785 = vmatmul.msk.f32.gmra.mxu0 %vm397_vm1, %v6152_v30  ;;  %v816_v30 = vrot.slane %v6156_v22, 2 }
 0x111   : > { %v937_v21 = vpop.f32.mrf.mxu2 }
 0x112   : > { %v1090_v36 = vpop.f32.mrf.mxu3  ;;  %v1019_v56 = vadd.f32 %v937_v21, %v678_v49  ;;  %v680_v33 = vpop.f32.mrf.mxu1  ;;  %v6157_v21 = vld [vmem:[#allocation13_spill] sm:$0xff] }
 0x113   : > { %v681_v49 = vadd.f32 %v680_v33, %v4490_v31  ;;  %v6159_v31 = vld [vmem:[#allocation11_spill] sm:$0xff]  ;;  %v818_v33 = vrot.slane %v6155_v35, 2 }
 0x114   : > { %v1172_v38 = vadd.f32 %v1090_v36, %v1019_v56  ;;  %v819_v22 = vrot.slane %v6159_v31, 2 }
 0x115   : > { %3687 = vmatmul.msk.f32.gmra.mxu1 %vm397_vm1, %v6147_v47  ;;  %v1250_v14 = vpop.f32.mrf.mxu0 }
 0x116   : > { %v4781_v20 = vadd.f32 %v1247_v39, %v1172_v38  ;;  %3720 = vmatmul.msk.f32.gmra.mxu2 %vm397_vm1, %v4777_v11  ;;  %v4792_v39 = vsel %vm752_vm2, %v814_v9, %v816_v30  ;;  %v6160_v30 = vld [vmem:[#allocation16_spill] sm:$0xff] }
 0x117   : > { %3753 = vmatmul.msk.f32.gmra.mxu3 %vm397_vm1, %v6155_v35 }
 0x118   : > { %6154 = vst [vmem:[#allocation31_spill] sm:$0xff] %v4781_v20  ;;  %3786 = vmatmul.msk.f32.gmra.mxu0 %vm397_vm1, %v6157_v21 }
 0x119   : > { %v940_v3 = vpop.f32.mrf.mxu2 }
 0x11a   : > { %v1093_v36 = vpop.f32.mrf.mxu3  ;;  %v1020_v56 = vadd.f32 %v940_v3, %v681_v49  ;;  %v683_v47 = vpop.f32.mrf.mxu1 }
 0x11b   : > { %v684_v9 = vadd.f32 %v683_v47, %v4510_v46  ;;  %v6163_v46 = vld [vmem:[#allocation17_spill] sm:$0xff]  ;;  %v6164_v47 = vld [vmem:[#allocation14_spill] sm:$0xff] }
 0x11c   : > { %v1173_v38 = vadd.f32 %v1093_v36, %v1020_v56  ;;  %v4808_v36 = vsel %vm752_vm2, %v818_v33, %v819_v22 }
 0x11d   : > { %3688 = vmatmul.msk.f32.gmra.mxu1 %vm397_vm1, %v6151_v4  ;;  %v1253_v20 = vpop.f32.mrf.mxu0  ;;  %6161 = vst [vmem:[#allocation3_spill] sm:$0xff] %v4808_v36 }
 0x11e   : > { %v4796_v11 = vadd.f32 %v1250_v14, %v1173_v38  ;;  %3721 = vmatmul.msk.f32.gmra.mxu2 %vm397_vm1, %v4792_v39 }
 0x11f   : > { %3754 = vmatmul.msk.f32.gmra.mxu3 %vm397_vm1, %v6159_v31 }
 0x120   : > { %6158 = vst [vmem:[#allocation5_spill] sm:$0xff] %v4796_v11  ;;  %3787 = vmatmul.msk.f32.gmra.mxu0 %vm397_vm1, %v6160_v30  ;;  %v821_v30 = vrot.slane %v6164_v47, 2 }
 0x121   : > { %v943_v49 = vpop.f32.mrf.mxu2 }
 0x122   : > { %v1096_v4 = vpop.f32.mrf.mxu3  ;;  %v1021_v3 = vadd.f32 %v943_v49, %v684_v9  ;;  %v686_v14 = vpop.f32.mrf.mxu1  ;;  %v6165_v49 = vld [vmem:[#allocation20_spill] sm:$0xff] }
 0x123   : > { %v687_v9 = vadd.f32 %v686_v14, %v4531_v6  ;;  %v6167_v6 = vld [vmem:[#allocation18_spill] sm:$0xff]  ;;  %v823_v14 = vrot.slane %v6163_v46, 2 }
 0x124   : > { %v1174_v56 = vadd.f32 %v1096_v4, %v1021_v3  ;;  %v824_v47 = vrot.slane %v6167_v6, 2 }
 0x125   : > { %3689 = vmatmul.msk.f32.gmra.mxu1 %vm397_vm1, %v6155_v35  ;;  %v1256_v38 = vpop.f32.mrf.mxu0 }
 0x126   : > { %v4812_v11 = vadd.f32 %v1253_v20, %v1174_v56  ;;  %3722 = vmatmul.msk.f32.gmra.mxu2 %vm397_vm1, %v4808_v36  ;;  %v4823_v20 = vsel %vm752_vm2, %v819_v22, %v821_v30  ;;  %v6168_v30 = vld [vmem:[#allocation24_spill] sm:$0xff] }
 0x127   : > { %3755 = vmatmul.msk.f32.gmra.mxu3 %vm397_vm1, %v6163_v46 }
 0x128   : > { %6162 = vst [vmem:[#allocation10_spill] sm:$0xff] %v4812_v11  ;;  %3788 = vmatmul.msk.f32.gmra.mxu0 %vm397_vm1, %v6165_v49 }
 0x129   : > { %v946_v33 = vpop.f32.mrf.mxu2 }
 0x12a   : > { %v1099_v4 = vpop.f32.mrf.mxu3  ;;  %v1022_v3 = vadd.f32 %v946_v33, %v687_v9  ;;  %v689_v35 = vpop.f32.mrf.mxu1 }
 0x12b   : > { %v690_v22 = vadd.f32 %v689_v35, %v4551_v1  ;;  %v6171_v1 = vld [vmem:[#allocation26_spill] sm:$0xff] }
 0x12c   : > { %v1175_v56 = vadd.f32 %v1099_v4, %v1022_v3  ;;  %v4839_v4 = vsel %vm752_vm2, %v823_v14, %v824_v47  ;;  %v6172_v35 = vld [vmem:[#allocation22_spill] sm:$0xff] }
 0x12d   : > { %3690 = vmatmul.msk.f32.gmra.mxu1 %vm397_vm1, %v6159_v31  ;;  %v1259_v11 = vpop.f32.mrf.mxu0  ;;  %6169 = vst [vmem:[#allocation13_spill] sm:$0xff] %v4839_v4  ;;  %v6173_v14 = vld [vmem:[#allocation30_spill] sm:$0xff] }
 0x12e   : > { %v4827_v36 = vadd.f32 %v1256_v38, %v1175_v56  ;;  %3723 = vmatmul.msk.f32.gmra.mxu2 %vm397_vm1, %v4823_v20 }
 0x12f   : > { %3756 = vmatmul.msk.f32.gmra.mxu3 %vm397_vm1, %v6167_v6 }
 0x130   : > { %6166 = vst [vmem:[#allocation6_spill] sm:$0xff] %v4827_v36  ;;  %3789 = vmatmul.msk.f32.gmra.mxu0 %vm397_vm1, %v6168_v30 }
 0x131   : > { %v949_v9 = vpop.f32.mrf.mxu2 }
 0x132   : > { %v1102_v31 = vpop.f32.mrf.mxu3  ;;  %v1023_v33 = vadd.f32 %v949_v9, %v690_v22  ;;  %v692_v38 = vpop.f32.mrf.mxu1  ;;  %v826_v22 = vrot.slane %v6172_v35, 2  ;;  %v828_v35 = vrot.slane %v6171_v1, 2 }
 0x133   : > { %v693_v9 = vadd.f32 %v692_v38, %v4572_v37  ;;  %v6176_v37 = vld [vmem:[#allocation27_spill] sm:$0xff] }
 0x134   : > { %v1176_v3 = vadd.f32 %v1102_v31, %v1023_v33  ;;  %v260_v38 = vld [vmem:[%s4034_s30 + $0x188] sm:$0xff] }
 0x135   : > { %3691 = vmatmul.msk.f32.gmra.mxu1 %vm397_vm1, %v6163_v46  ;;  %v1262_v56 = vpop.f32.mrf.mxu0 }
 0x136   : > { %v4843_v36 = vadd.f32 %v1259_v11, %v1176_v3  ;;  %3724 = vmatmul.msk.f32.gmra.mxu2 %vm397_vm1, %v4839_v4  ;;  %v4854_v3 = vsel %vm752_vm2, %v824_v47, %v826_v22  ;;  %v4869_v22 = vld [vmem:[%s4034_s30 + $0x180] sm:$0xff] }
 0x137   : > { %3757 = vmatmul.msk.f32.gmra.mxu3 %vm397_vm1, %v6171_v1  ;;  %6174 = vst [vmem:[#allocation17_spill] sm:$0xff] %v4854_v3 }
 0x138   : > { %6170 = vst [vmem:[#allocation11_spill] sm:$0xff] %v4843_v36  ;;  %3790 = vmatmul.msk.f32.gmra.mxu0 %vm397_vm1, %v6173_v14 }
 0x139   : > { %v952_v31 = vpop.f32.mrf.mxu2 }
 0x13a   : > { %v1105_v46 = vpop.f32.mrf.mxu3  ;;  %v1024_v33 = vadd.f32 %v952_v31, %v693_v9  ;;  %v695_v11 = vpop.f32.mrf.mxu1  ;;  %v829_v9 = vrot.slane %v6176_v37, 2  ;;  %v1199_v31 = vrot.slane %v260_v38, 1 }
 0x13b   : > { %v696_v47 = vadd.f32 %v695_v11, %v4592_v53 }
 0x13c   : > { %v1177_v36 = vadd.f32 %v1105_v46, %v1024_v33 }
 0x13d   : > { %3692 = vmatmul.msk.f32.gmra.mxu1 %vm397_vm1, %v6167_v6  ;;  %v1265_v30 = vpop.f32.mrf.mxu0 }
 0x13e   : > { %v4858_v4 = vadd.f32 %v1262_v56, %v1177_v36  ;;  %3725 = vmatmul.msk.f32.gmra.mxu2 %vm397_vm1, %v4854_v3  ;;  %v1198_v56 = vrot.slane %v4869_v22, 1 }
 0x13f   : > { %3758 = vmatmul.msk.f32.gmra.mxu3 %vm397_vm1, %v6176_v37 }
 0x140   : > { %6175 = vst [vmem:[#allocation14_spill] sm:$0xff] %v4858_v4  ;;  %3791 = vmatmul.msk.f32.gmra.mxu0 %vm397_vm1, %v4381_v24  ;;  %v4875_v4 = vsel %vm752_vm2, %v828_v35, %v829_v9  ;;  %v4880_v11 = vsel %vm314_vm0, %v1198_v56, %v1199_v31  ;;  %v831_v35 = vrot.slane %v4354_v15, 2 }
 0x141   : > { %v955_v36 = vpop.f32.mrf.mxu2 }
 0x142   : > { %v1108_v6 = vpop.f32.mrf.mxu3  ;;  %v1025_v46 = vadd.f32 %v955_v36, %v696_v47  ;;  %v698_v33 = vpop.f32.mrf.mxu1  ;;  %v261_v47 = vld [vmem:[%s4034_s30 + $0x190] sm:$0x3] }
 0x143   : > { %v699_v36 = vadd.f32 %v698_v33, %v4613_v8  ;;  %v1201_v56 = vrot.slane %v261_v47, 1 }
 0x144   : > { %v1178_v14 = vadd.f32 %v1108_v6, %v1025_v46 }
 0x145   : > { %3693 = vmatmul.msk.f32.gmra.mxu1 %vm397_vm1, %v6171_v1  ;;  %v1268_v53 = vpop.f32.mrf.mxu0  ;;  %v4899_v15 = vsel %vm314_vm0, %v1199_v31, %v1201_v56 }
 0x146   : > { %v4882_v3 = vadd.f32 %v1265_v30, %v1178_v14  ;;  %3726 = vmatmul.msk.f32.gmra.mxu2 %vm397_vm1, %v4875_v4  ;;  %v4894_v14 = vsel %vm752_vm2, %v829_v9, %v831_v35 }
 0x147   : > { %3759 = vmatmul.msk.f32.gmra.mxu3 %vm397_vm1, %v4869_v22 }
 0x148   : > { %6177 = vst [vmem:[#allocation20_spill] sm:$0xff] %v4882_v3  ;;  %3792 = vmatmul.msk.f32.gmra.mxu0 %vm397_vm1, %v4880_v11 }
 0x149   : > { %v958_v1 = vpop.f32.mrf.mxu2 }
 0x14a   : > { %v1111_v6 = vpop.f32.mrf.mxu3  ;;  %v1026_v46 = vadd.f32 %v958_v1, %v699_v36  ;;  %v701_v30 = vpop.f32.mrf.mxu1 }
 0x14b   : > { %v702_v33 = vadd.f32 %v701_v30, %v4633_v5 }
 0x14c   : > { %v1179_v3 = vadd.f32 %v1111_v6, %v1026_v46 }
 0x14d   : > { %3694 = vmatmul.msk.f32.gmra.mxu1 %vm397_vm1, %v6176_v37  ;;  %v1271_v24 = vpop.f32.mrf.mxu0 }
 0x14e   : > { %v4901_v8 = vadd.f32 %v1268_v53, %v1179_v3  ;;  %3727 = vmatmul.msk.f32.gmra.mxu2 %vm397_vm1, %v4894_v14 }
 0x14f   : > { %3760 = vmatmul.msk.f32.gmra.mxu3 %vm397_vm1, %v260_v38 }
 0x150   : > { %3793 = vmatmul.msk.f32.gmra.mxu0 %vm397_vm1, %v4899_v15 }
 0x151   : > { %v961_v9 = vpop.f32.mrf.mxu2 }
 0x152   : > { %v1114_v47 = vpop.f32.mrf.mxu3  ;;  %v1027_v35 = vadd.f32 %v961_v9, %v702_v33  ;;  %v704_v37 = vpop.f32.mrf.mxu1 }
 0x153   : > { %v705_v5 = vadd.f32 %v704_v37, %v4506_v45 }
 0x154   : > { %v1180_v36 = vadd.f32 %v1114_v47, %v1027_v35 }
 0x155   : > { %3795 = vmatmul.msk.f32.vlgmr.msra.gmra.mxu1 %vm397_vm1, %v4416_v28  ;;  %v1274_v3 = vpop.f32.mrf.mxu0 }
 0x156   : > { %v4911_v31 = vadd.f32 %v1271_v24, %v1180_v36  ;;  %3828 = vmatmul.msk.f32.vlgmr.msra.gmra.mxu2 %vm397_vm1, %v4225_v27 }
 0x157   : > { %3861 = vmatmul.msk.f32.vlgmr.msra.gmra.mxu3 %vm397_vm1, %v4259_v60 }
 0x158   : > { %3894 = vmatmul.msk.f32.vlgmr.msra.gmra.mxu0 %vm397_vm1, %v4441_v61 }
 0x159   : > { %v964_v38 = vpop.f32.mrf.mxu2 }
 0x15a   : > { %v1117_v53 = vpop.f32.mrf.mxu3  ;;  %v1028_v1 = vadd.f32 %v964_v38, %v705_v5  ;;  %v707_v6 = vpop.f32.mrf.mxu1 }
 0x15b   : > { %v708_v27 = vadd.f32 %v707_v6, %v4527_v43 }
 0x15c   : > { %v1181_v56 = vadd.f32 %v1117_v53, %v1028_v1 }
 0x15d   : > { %3796 = vmatmul.msk.f32.gmra.mxu1 %vm397_vm1, %v4428_v59  ;;  %v1277_v24 = vpop.f32.mrf.mxu0 }
 0x15e   : > { %v4922_v28 = vadd.f32 %v1274_v3, %v1181_v56  ;;  %3829 = vmatmul.msk.f32.gmra.mxu2 %vm397_vm1, %v4228_v29 }
 0x15f   : > { %3862 = vmatmul.msk.f32.gmra.mxu3 %vm397_vm1, %v4313_v25 }
 0x160   : > { %3895 = vmatmul.msk.f32.gmra.mxu0 %vm397_vm1, %v4453_v44 }
 0x161   : > { %v967_v60 = vpop.f32.mrf.mxu2 }
 0x162   : > { %v1120_v45 = vpop.f32.mrf.mxu3  ;;  %v1029_v46 = vadd.f32 %v967_v60, %v708_v27  ;;  %v710_v30 = vpop.f32.mrf.mxu1 }
 0x163   : > { %v711_v29 = vadd.f32 %v710_v30, %v4547_v40  ;;  %v6181_v30 = vld [vmem:[#allocation36_spill] sm:$0xff] }
 0x164   : > { %v1182_v33 = vadd.f32 %v1120_v45, %v1029_v46  ;;  %v3944_v45 = vld [vmem:[%s4034_s30 + $0x68] sm:$0xff] }
 0x165   : > { %3797 = vmatmul.msk.f32.gmra.mxu1 %vm397_vm1, %v4441_v61  ;;  %v1280_v59 = vpop.f32.mrf.mxu0 }
 0x166   : > { %v4933_v9 = vadd.f32 %v1277_v24, %v1182_v33  ;;  %3830 = vmatmul.msk.f32.gmra.mxu2 %vm397_vm1, %v4322_v63 }
 0x167   : > { %3863 = vmatmul.msk.f32.gmra.mxu3 %vm397_vm1, %v4359_v12 }
 0x168   : > { %3896 = vmatmul.msk.f32.gmra.mxu0 %vm397_vm1, %v4466_v62 }
 0x169   : > { %v970_v25 = vpop.f32.mrf.mxu2 }
 0x16a   : > { %v1123_v43 = vpop.f32.mrf.mxu3  ;;  %v1030_v47 = vadd.f32 %v970_v25, %v711_v29  ;;  %v713_v35 = vpop.f32.mrf.mxu1 }
 0x16b   : > { %v714_v12 = vadd.f32 %v713_v35, %v4568_v16  ;;  %v6178_v16 = vld [vmem:[#allocation34_spill] sm:$0xff]  ;;  %v3945_v35 = vld [vmem:[%s4034_s30 + $0x78] sm:$0xff] }
 0x16c   : > { %v1183_v37 = vadd.f32 %v1123_v43, %v1030_v47 }
 0x16d   : > { %3798 = vmatmul.msk.f32.gmra.mxu1 %vm397_vm1, %v4453_v44  ;;  %v1283_v61 = vpop.f32.mrf.mxu0 }
 0x16e   : > { %v4944_v36 = vadd.f32 %v1280_v59, %v1183_v37  ;;  %3831 = vmatmul.msk.f32.gmra.mxu2 %vm397_vm1, %v4325_v32  ;;  %v3943_v32 = vld [vmem:[%s4034_s30 + $0x60] sm:$0xff]  ;;  %v6182_v37 = vld [vmem:[#allocation12_spill] sm:$0xff] }
 0x16f   : > { %3864 = vmatmul.msk.f32.gmra.mxu3 %vm397_vm1, %v4386_v41 }
 0x170   : > { %3897 = vmatmul.msk.f32.gmra.mxu0 %vm397_vm1, %v4478_v55 }
 0x171   : > { %v973_v63 = vpop.f32.mrf.mxu2 }
 0x172   : > { %v1126_v40 = vpop.f32.mrf.mxu3  ;;  %v1031_v3 = vadd.f32 %v973_v63, %v714_v12  ;;  %v716_v5 = vpop.f32.mrf.mxu1  ;;  %v6184_v63 = vld [vmem:[#allocation38_spill] sm:$0xff] }
 0x173   : > { %v717_v41 = vadd.f32 %v716_v5, %v4588_v42  ;;  %v6180_v42 = vld [vmem:[#allocation45_spill] sm:$0xff] }
 0x174   : > { %v1184_v38 = vadd.f32 %v1126_v40, %v1031_v3 }
 0x175   : > { %3799 = vmatmul.msk.f32.gmra.mxu1 %vm397_vm1, %v4466_v62  ;;  %v1286_v44 = vpop.f32.mrf.mxu0 }
 0x176   : > { %v4955_v53 = vadd.f32 %v1283_v61, %v1184_v38  ;;  %3832 = vmatmul.msk.f32.gmra.mxu2 %vm397_vm1, %v3943_v32  ;;  %v6183_v61 = vld [vmem:[#allocation48_spill] sm:$0xff] }
 0x177   : > { %3865 = vmatmul.msk.f32.gmra.mxu3 %vm397_vm1, %v4067_v19  ;;  %v6179_v19 = vld [vmem:[#allocation7_spill] sm:$0xff] }
 0x178   : > { %3898 = vmatmul.msk.f32.gmra.mxu0 %vm397_vm1, %v6178_v16 }
 0x179   : > { %v976_v1 = vpop.f32.mrf.mxu2 }
 0x17a   : > { %v1129_v6 = vpop.f32.mrf.mxu3  ;;  %v1032_v56 = vadd.f32 %v976_v1, %v717_v41  ;;  %v719_v24 = vpop.f32.mrf.mxu1  ;;  %v6185_v1 = vld [vmem:[#allocation15_spill] sm:$0xff] }
 0x17b   : > { %v720_v46 = vadd.f32 %v719_v24, %v6180_v42  ;;  %v6187_v24 = vld [vmem:[#allocation40_spill] sm:$0xff] }
 0x17c   : > { %v1185_v62 = vadd.f32 %v1129_v6, %v1032_v56  ;;  %v6186_v6 = vld [vmem:[#allocation51_spill] sm:$0xff] }
 0x17d   : > { %3800 = vmatmul.msk.f32.gmra.mxu1 %vm397_vm1, %v4478_v55  ;;  %v1289_v27 = vpop.f32.mrf.mxu0 }
 0x17e   : > { %v4966_v60 = vadd.f32 %v1286_v44, %v1185_v62  ;;  %3833 = vmatmul.msk.f32.gmra.mxu2 %vm397_vm1, %v3944_v45 }
 0x17f   : > { %3866 = vmatmul.msk.f32.gmra.mxu3 %vm397_vm1, %v6179_v19 }
 0x180   : > { %3899 = vmatmul.msk.f32.gmra.mxu0 %vm397_vm1, %v6181_v30 }
 0x181   : > { %v979_v33 = vpop.f32.mrf.mxu2 }
 0x182   : > { %v1132_v59 = vpop.f32.mrf.mxu3  ;;  %v1033_v29 = vadd.f32 %v979_v33, %v720_v46  ;;  %v722_v25 = vpop.f32.mrf.mxu1  ;;  %v3947_v33 = vld [vmem:[%s4034_s30 + $0x90] sm:$0xff] }
 0x183   : > { %v723_v12 = vadd.f32 %v722_v25, %v6183_v61 }
 0x184   : > { %v1186_v55 = vadd.f32 %v1132_v59, %v1033_v29  ;;  %v6188_v59 = vld [vmem:[#allocation19_spill] sm:$0xff] }
 0x185   : > { %3801 = vmatmul.msk.f32.gmra.mxu1 %vm397_vm1, %v6178_v16  ;;  %v1292_v43 = vpop.f32.mrf.mxu0  ;;  %v3946_v16 = vld [vmem:[%s4034_s30 + $0x80] sm:$0xff]  ;;  %v6189_v29 = vld [vmem:[#allocation35_spill] sm:$0xff] }
 0x186   : > { %v4977_v47 = vadd.f32 %v1289_v27, %v1186_v55  ;;  %3834 = vmatmul.msk.f32.gmra.mxu2 %vm397_vm1, %v3945_v35  ;;  %v6190_v55 = vld [vmem:[#allocation42_spill] sm:$0xff] }
 0x187   : > { %3867 = vmatmul.msk.f32.gmra.mxu3 %vm397_vm1, %v6182_v37 }
 0x188   : > { %3900 = vmatmul.msk.f32.gmra.mxu0 %vm397_vm1, %v6184_v63 }
 0x189   : > { %v982_v40 = vpop.f32.mrf.mxu2 }
 0x18a   : > { %v1135_v3 = vpop.f32.mrf.mxu3  ;;  %v1034_v5 = vadd.f32 %v982_v40, %v723_v12  ;;  %v725_v38 = vpop.f32.mrf.mxu1 }
 0x18b   : > { %v726_v56 = vadd.f32 %v725_v38, %v6186_v6  ;;  %v6192_v38 = vld [vmem:[#allocation37_spill] sm:$0xff] }
 0x18c   : > { %v1187_v44 = vadd.f32 %v1135_v3, %v1034_v5  ;;  %v3948_v3 = vld [vmem:[%s4034_s30 + $0x98] sm:$0xff]  ;;  %v6191_v5 = vld [vmem:[#allocation23_spill] sm:$0xff] }
 0x18d   : > { %3802 = vmatmul.msk.f32.gmra.mxu1 %vm397_vm1, %v6181_v30  ;;  %v1295_v32 = vpop.f32.mrf.mxu0 }
 0x18e   : > { %v4988_v41 = vadd.f32 %v1292_v43, %v1187_v44  ;;  %3835 = vmatmul.msk.f32.gmra.mxu2 %vm397_vm1, %v3946_v16 }
 0x18f   : > { %3868 = vmatmul.msk.f32.gmra.mxu3 %vm397_vm1, %v6185_v1 }
 0x190   : > { %3901 = vmatmul.msk.f32.gmra.mxu0 %vm397_vm1, %v6187_v24 }
 0x191   : > { %v985_v62 = vpop.f32.mrf.mxu2 }
 0x192   : > { %v1138_v27 = vpop.f32.mrf.mxu3  ;;  %v1035_v45 = vadd.f32 %v985_v62, %v726_v56  ;;  %v728_v19 = vpop.f32.mrf.mxu1 }
 0x193   : > { %v729_v25 = vadd.f32 %v728_v19, %v6189_v29  ;;  %v6194_v19 = vld [vmem:[#allocation28_spill] sm:$0xff] }
 0x194   : > { %v1188_v42 = vadd.f32 %v1138_v27, %v1035_v45  ;;  %v3949_v45 = vld [vmem:[%s4034_s30 + $0xa8] sm:$0xff] }
 0x195   : > { %3803 = vmatmul.msk.f32.gmra.mxu1 %vm397_vm1, %v6184_v63  ;;  %v1298_v46 = vpop.f32.mrf.mxu0 }
 0x196   : > { %v4999_v30 = vadd.f32 %v1295_v32, %v1188_v42  ;;  %3836 = vmatmul.msk.f32.gmra.mxu2 %vm397_vm1, %v3947_v33  ;;  %v6193_v32 = vld [vmem:[#allocation44_spill] sm:$0xff]  ;;  %v6195_v42 = vld [vmem:[#allocation39_spill] sm:$0xff] }
 0x197   : > { %3869 = vmatmul.msk.f32.gmra.mxu3 %vm397_vm1, %v6188_v59  ;;  %v6196_v33 = vld [vmem:[#allocation47_spill] sm:$0xff] }
 0x198   : > { %3902 = vmatmul.msk.f32.gmra.mxu0 %vm397_vm1, %v6190_v55 }
 0x199   : > { %v988_v43 = vpop.f32.mrf.mxu2 }
 0x19a   : > { %v1141_v35 = vpop.f32.mrf.mxu3  ;;  %v1036_v37 = vadd.f32 %v988_v43, %v729_v25  ;;  %v731_v61 = vpop.f32.mrf.mxu1 }
 0x19b   : > { %v732_v44 = vadd.f32 %v731_v61, %v6192_v38  ;;  %v3950_v61 = vld [vmem:[%s4034_s30 + $0xb0] sm:$0xff] }
 0x19c   : > { %v1189_v12 = vadd.f32 %v1141_v35, %v1036_v37 }
 0x19d   : > { %3804 = vmatmul.msk.f32.gmra.mxu1 %vm397_vm1, %v6187_v24  ;;  %v1301_v63 = vpop.f32.mrf.mxu0 }
 0x19e   : > { %v5010_v40 = vadd.f32 %v1298_v46, %v1189_v12  ;;  %3837 = vmatmul.msk.f32.gmra.mxu2 %vm397_vm1, %v3948_v3  ;;  %v6197_v12 = vld [vmem:[#allocation32_spill] sm:$0xff] }
 0x19f   : > { %3870 = vmatmul.msk.f32.gmra.mxu3 %vm397_vm1, %v6191_v5  ;;  %v6199_v5 = vld [vmem:[#allocation50_spill] sm:$0xff] }
 0x1a0   : > { %3903 = vmatmul.msk.f32.gmra.mxu0 %vm397_vm1, %v6193_v32 }
 0x1a1   : > { %v991_v16 = vpop.f32.mrf.mxu2 }
 0x1a2   : > { %v1144_v1 = vpop.f32.mrf.mxu3  ;;  %v1037_v6 = vadd.f32 %v991_v16, %v732_v44  ;;  %v734_v56 = vpop.f32.mrf.mxu1 }
 0x1a3   : > { %v735_v46 = vadd.f32 %v734_v56, %v6195_v42  ;;  %v6202_v42 = vld [vmem:[#allocation53_spill] sm:$0xff] }
 0x1a4   : > { %v1190_v24 = vadd.f32 %v1144_v1, %v1037_v6 }
 0x1a5   : > { %3805 = vmatmul.msk.f32.gmra.mxu1 %vm397_vm1, %v6190_v55  ;;  %v1304_v62 = vpop.f32.mrf.mxu0 }
 0x1a6   : > { %v5021_v27 = vadd.f32 %v1301_v63, %v1190_v24  ;;  %3838 = vmatmul.msk.f32.gmra.mxu2 %vm397_vm1, %v3949_v45  ;;  %v6198_v63 = vld [vmem:[#allocation41_spill] sm:$0xff]  ;;  %v3951_v24 = vld [vmem:[%s4034_s30 + $0xc0] sm:$0xff]  ;;  %v6201_v45 = vld [vmem:[#allocation43_spill] sm:$0xff] }
 0x1a7   : > { %3871 = vmatmul.msk.f32.gmra.mxu3 %vm397_vm1, %v6194_v19 }
 0x1a8   : > { %3904 = vmatmul.msk.f32.gmra.mxu0 %vm397_vm1, %v6196_v33 }
 0x1a9   : > { %v994_v59 = vpop.f32.mrf.mxu2 }
 0x1aa   : > { %v1147_v29 = vpop.f32.mrf.mxu3  ;;  %v1038_v25 = vadd.f32 %v994_v59, %v735_v46  ;;  %v737_v43 = vpop.f32.mrf.mxu1 }
 0x1ab   : > { %v738_v3 = vadd.f32 %v737_v43, %v6198_v63 }
 0x1ac   : > { %v1191_v55 = vadd.f32 %v1147_v29, %v1038_v25 }
 0x1ad   : > { %3806 = vmatmul.msk.f32.gmra.mxu1 %vm397_vm1, %v6193_v32  ;;  %v1307_v35 = vpop.f32.mrf.mxu0 }
 0x1ae   : > { %v5032_v37 = vadd.f32 %v1304_v62, %v1191_v55  ;;  %3839 = vmatmul.msk.f32.gmra.mxu2 %vm397_vm1, %v3950_v61  ;;  %v6200_v62 = vld [vmem:[#allocation4_spill] sm:$0xff] }
 0x1af   : > { %3872 = vmatmul.msk.f32.gmra.mxu3 %vm397_vm1, %v6197_v12  ;;  %v6203_v61 = vld [vmem:[#allocation8_spill] sm:$0xff]  ;;  %v6204_v12 = vld [vmem:[#allocation46_spill] sm:$0xff] }
 0x1b0   : > { %3905 = vmatmul.msk.f32.gmra.mxu0 %vm397_vm1, %v6199_v5 }
 0x1b1   : > { %v997_v38 = vpop.f32.mrf.mxu2 }
 0x1b2   : > { %v1150_v44 = vpop.f32.mrf.mxu3  ;;  %v1039_v16 = vadd.f32 %v997_v38, %v738_v3  ;;  %v740_v1 = vpop.f32.mrf.mxu1 }
 0x1b3   : > { %v741_v19 = vadd.f32 %v740_v1, %v6201_v45 }
 0x1b4   : > { %v1192_v32 = vadd.f32 %v1150_v44, %v1039_v16 }
 0x1b5   : > { %3807 = vmatmul.msk.f32.gmra.mxu1 %vm397_vm1, %v6196_v33  ;;  %v1310_v6 = vpop.f32.mrf.mxu0 }
 0x1b6   : > { %v5043_v56 = vadd.f32 %v1307_v35, %v1192_v32  ;;  %3840 = vmatmul.msk.f32.gmra.mxu2 %vm397_vm1, %v3951_v24  ;;  %v3952_v35 = vld [vmem:[%s4034_s30 + $0xc8] sm:$0xff]  ;;  %v6206_v24 = vld [vmem:[#allocation49_spill] sm:$0xff] }
 0x1b7   : > { %3873 = vmatmul.msk.f32.gmra.mxu3 %vm397_vm1, %v6200_v62 }
 0x1b8   : > { %3906 = vmatmul.msk.f32.gmra.mxu0 %vm397_vm1, %v6202_v42 }
 0x1b9   : > { %v1000_v46 = vpop.f32.mrf.mxu2 }
 0x1ba   : > { %v1153_v59 = vpop.f32.mrf.mxu3  ;;  %v1040_v29 = vadd.f32 %v1000_v46, %v741_v19  ;;  %v743_v25 = vpop.f32.mrf.mxu1 }
 0x1bb   : > { %v744_v63 = vadd.f32 %v743_v25, %v6204_v12  ;;  %v3954_v25 = vld [vmem:[%s4034_s30 + $0xe0] sm:$0xff] }
 0x1bc   : > { %v1193_v33 = vadd.f32 %v1153_v59, %v1040_v29 }
 0x1bd   : > { %3808 = vmatmul.msk.f32.gmra.mxu1 %vm397_vm1, %v6199_v5  ;;  %v1313_v43 = vpop.f32.mrf.mxu0 }
 0x1be   : > { %v5054_v55 = vadd.f32 %v1310_v6, %v1193_v33  ;;  %3841 = vmatmul.msk.f32.gmra.mxu2 %vm397_vm1, %v3952_v35  ;;  %v3953_v6 = vld [vmem:[%s4034_s30 + $0xd8] sm:$0xff]  ;;  %v6208_v33 = vld [vmem:[#allocation52_spill] sm:$0xff] }
 0x1bf   : > { %3874 = vmatmul.msk.f32.gmra.mxu3 %vm397_vm1, %v6203_v61 }
 0x1c0   : > { %3907 = vmatmul.msk.f32.gmra.mxu0 %vm397_vm1, %v4668_v7 }
 0x1c1   : > { %v1003_v3 = vpop.f32.mrf.mxu2 }
 0x1c2   : > { %v1156_v38 = vpop.f32.mrf.mxu3  ;;  %v1041_v44 = vadd.f32 %v1003_v3, %v744_v63  ;;  %v746_v16 = vpop.f32.mrf.mxu1 }
 0x1c3   : > { %v747_v62 = vadd.f32 %v746_v16, %v6206_v24  ;;  %v5099_v24 = vld [vmem:[%s6011_s2] ss:$0 sm:$0xff] }
 0x1c4   : > { %v1194_v5 = vadd.f32 %v1156_v38, %v1041_v44  ;;  %v3955_v38 = vld [vmem:[%s4034_s30 + $0xf0] sm:$0xff] }
 0x1c5   : > { %3809 = vmatmul.msk.f32.gmra.mxu1 %vm397_vm1, %v6202_v42  ;;  %v1316_v1 = vpop.f32.mrf.mxu0 }
 0x1c6   : > { %v5065_v32 = vadd.f32 %v1313_v43, %v1194_v5  ;;  %3842 = vmatmul.msk.f32.gmra.mxu2 %vm397_vm1, %v3953_v6 }
 0x1c7   : > { %3875 = vmatmul.msk.f32.gmra.mxu3 %vm397_vm1, %v4154_v54 }
 0x1c8   : > { %6205 = vst [vmem:[#allocation18_spill] sm:$0xff] %v5065_v32  ;;  %3908 = vmatmul.msk.f32.gmra.mxu0 %vm397_vm1, %v4684_v52 }
 0x1c9   : > { %v1006_v45 = vpop.f32.mrf.mxu2 }
 0x1ca   : > { %v1159_v19 = vpop.f32.mrf.mxu3  ;;  %v1042_v46 = vadd.f32 %v1006_v45, %v747_v62  ;;  %v749_v59 = vpop.f32.mrf.mxu1 }
 0x1cb   : > { %v750_v43 = vadd.f32 %v749_v59, %v6208_v33 }
 0x1cc   : > { %v1195_v29 = vadd.f32 %v1159_v19, %v1042_v46 }
 0x1cd   : > { %3810 = vmatmul.msk.f32.gmra.mxu1 %vm397_vm1, %v4668_v7  ;;  %v1319_v54 = vpop.f32.mrf.mxu0 }
 0x1ce   : > { %v5076_v42 = vadd.f32 %v1316_v1, %v1195_v29  ;;  %3843 = vmatmul.msk.f32.gmra.mxu2 %vm397_vm1, %v3954_v25 }
 0x1cf   : > { %3876 = vmatmul.msk.f32.gmra.mxu3 %vm397_vm1, %v4190_v2 }
 0x1d0   : > { %6207 = vst [vmem:[#allocation26_spill] sm:$0xff] %v5076_v42  ;;  %3909 = vmatmul.msk.f32.gmra.mxu0 %vm397_vm1, %v4699_v23 }
 0x1d1   : > { %v1009_v35 = vpop.f32.mrf.mxu2 }
 0x1d2   : > { %v1162_v61 = vpop.f32.mrf.mxu3  ;;  %v1043_v12 = vadd.f32 %v1009_v35, %v750_v43  ;;  %v1382_v63 = vpop.f32.mrf.mxu1 }
 0x1d3   : > { %v1478_v2 = vadd.f32 %v1382_v63, %v4672_v18  ;;  %v3956_v18 = vld [vmem:[%s4034_s30 + $0xf8] sm:$0xff] }
 0x1d4   : > { %v1196_v3 = vadd.f32 %v1162_v61, %v1043_v12 }
 0x1d5   : > { %3811 = vmatmul.msk.f32.gmra.mxu1 %vm397_vm1, %v4684_v52  ;;  %v1848_v44 = vpop.f32.mrf.mxu0 }
 0x1d6   : > { %v5087_v7 = vadd.f32 %v1319_v54, %v1196_v3  ;;  %3844 = vmatmul.msk.f32.gmra.mxu2 %vm397_vm1, %v3955_v38  ;;  %v3957_v3 = vld [vmem:[%s4034_s30 + $0x108] sm:$0xff] }
 0x1d7   : > { %3877 = vmatmul.msk.f32.gmra.mxu3 %vm397_vm1, %v4242_v48 }
 0x1d8   : > { %6209 = vst [vmem:[#allocation22_spill] sm:$0xff] %v5087_v7  ;;  %3910 = vmatmul.msk.f32.gmra.mxu0 %vm397_vm1, %v4715_v26 }
 0x1d9   : > { %v1535_v16 = vpop.f32.mrf.mxu2 }
 0x1da   : > { %v1692_v5 = vpop.f32.mrf.mxu3  ;;  %v1631_v1 = vadd.f32 %v1535_v16, %v1478_v2  ;;  %v1385_v6 = vpop.f32.mrf.mxu1 }
 0x1db   : > { %v1479_v62 = vadd.f32 %v1385_v6, %v4688_v0 }
 0x1dc   : > { %v1788_v52 = vadd.f32 %v1692_v5, %v1631_v1 }
 0x1dd   : > { %3812 = vmatmul.msk.f32.gmra.mxu1 %vm397_vm1, %v4699_v23  ;;  %v1851_v29 = vpop.f32.mrf.mxu0 }
 0x1de   : > { %v1944_v48 = vadd.f32 %v1848_v44, %v1788_v52  ;;  %3845 = vmatmul.msk.f32.gmra.mxu2 %vm397_vm1, %v3956_v18 }
 0x1df   : > { %3878 = vmatmul.msk.f32.gmra.mxu3 %vm397_vm1, %v4287_v58 }
 0x1e0   : > { %v1980_v45 = vadd.f32 %v5099_v24, %v1944_v48  ;;  %3911 = vmatmul.msk.f32.gmra.mxu0 %vm397_vm1, %v4730_v10 }
 0x1e1   : > { %v1538_v23 = vpop.f32.mrf.mxu2 }
 0x1e2   : > { %v1695_v19 = vpop.f32.mrf.mxu3  ;;  %v2012_v46 = vmax.f32 %v1980_v45, 0.0  ;;  %v1632_v59 = vadd.f32 %v1538_v23, %v1479_v62  ;;  %v1388_v58 = vpop.f32.mrf.mxu1 }
 0x1e3   : > { %v1480_v5 = vadd.f32 %v1388_v58, %v4703_v50 }
 0x1e4   : > { %2044 = vst.msk [vmem:[%s5115_s20] sm:$0xff] %vm397_vm1, %v2012_v46  ;;  %v2108_v0 = vrot.slane %v2012_v46, 2  ;;  %v2109_v25 = vrot.slane %v2012_v46, 4  ;;  %v2110_v54 = vrot.slane %v2012_v46, 6  ;;  %v2301_v33 = vsel %vm2300_vm3, %v2012_v46, -inf }
 0x1e5   : > { %v2302_v43 = vrot.slane %v2301_v33, 4  ;;  %v1789_v35 = vadd.f32 %v1695_v19, %v1632_v59  ;;  %3813 = vmatmul.msk.f32.gmra.mxu1 %vm397_vm1, %v4715_v26 }
 0x1e6   : > { %v2308_v61 = vsel %vm2300_vm3, %v2108_v0, -inf  ;;  %v2315_v12 = vsel %vm2300_vm3, %v2109_v25, -inf  ;;  %v2322_v63 = vsel %vm2300_vm3, %v2110_v54, -inf  ;;  %3846 = vmatmul.msk.f32.gmra.mxu2 %vm397_vm1, %v3957_v3  ;;  %v1854_v54 = vpop.f32.mrf.mxu0 }
 0x1e7   : > { %3879 = vmatmul.msk.f32.gmra.mxu3 %vm397_vm1, %v6143_v17  ;;  %v2303_v38 = vmax.f32 %v2301_v33, %v2302_v43  ;;  %v2309_v2 = vrot.slane %v2308_v61, 4  ;;  %v2316_v44 = vrot.slane %v2315_v12, 4  ;;  %v2323_v16 = vrot.slane %v2322_v63, 4 }
 0x1e8   : > { %v1945_v1 = vadd.f32 %v1851_v29, %v1789_v35  ;;  %3912 = vmatmul.msk.f32.gmra.mxu0 %vm397_vm1, %v4746_v57 }
 0x1e9   : > { %v2304_v26 = vrot.slane %v2303_v38, 2  ;;  %v2310_v6 = vmax.f32 %v2308_v61, %v2309_v2  ;;  %v2317_v52 = vmax.f32 %v2315_v12, %v2316_v44  ;;  %v2324_v48 = vmax.f32 %v2322_v63, %v2323_v16  ;;  %v1541_v18 = vpop.f32.mrf.mxu2  ;;  %v3958_v12 = vld [vmem:[%s4034_s30 + $0x110] sm:$0xff] }
 0x1ea   : > { %v1698_v62 = vpop.f32.mrf.mxu3  ;;  %v1981_v45 = vadd.f32 %v5099_v24, %v1945_v1  ;;  %v1633_v17 = vadd.f32 %v1541_v18, %v1480_v5  ;;  %v1391_v23 = vpop.f32.mrf.mxu1 }
 0x1eb   : > { %v2305_v19 = vmax.f32 %v2303_v38, %v2304_v26  ;;  %v2311_v46 = vrot.slane %v2310_v6, 2  ;;  %v2318_v59 = vrot.slane %v2317_v52, 2  ;;  %v2325_v50 = vrot.slane %v2324_v48, 2 }
 0x1ec   : > { %v2013_v58 = vmax.f32 %v1981_v45, 0.0  ;;  %v1790_v38 = vadd.f32 %v1698_v62, %v1633_v17 }
 0x1ed   : > { %v2312_v29 = vmax.f32 %v2310_v6, %v2311_v46  ;;  %v2319_v0 = vmax.f32 %v2317_v52, %v2318_v59  ;;  %v2326_v25 = vmax.f32 %v2324_v48, %v2325_v50  ;;  %3814 = vmatmul.msk.f32.gmra.mxu1 %vm397_vm1, %v4730_v10  ;;  %v2306_v63 = vrot.slane %v2305_v19, 1  ;;  %v6210_v59 = vld [vmem:[#allocation54_spill] sm:$0xff] }
 0x1ee   : > { %2045 = vst.msk [vmem:[%s5115_s20 + $0x8] sm:$0xff] %vm397_vm1, %v2013_v58  ;;  %v2111_v33 = vrot.slane %v2013_v58, 2  ;;  %v2112_v43 = vrot.slane %v2013_v58, 4  ;;  %v2113_v35 = vrot.slane %v2013_v58, 6  ;;  %v2329_v61 = vsel %vm2300_vm3, %v2013_v58, -inf  ;;  %3847 = vmatmul.msk.f32.gmra.mxu2 %vm397_vm1, %v3958_v12 }
 0x1ef   : > { %3880 = vmatmul.msk.f32.gmra.mxu3 %vm397_vm1, %v4378_v13  ;;  %v2313_v3 = vrot.slane %v2312_v29, 1  ;;  %v2330_v2 = vrot.slane %v2329_v61, 4  ;;  %v2320_v1 = vrot.slane %v2319_v0, 1  ;;  %v2327_v26 = vrot.slane %v2326_v25, 1 }
 0x1f0   : > { %v2336_v44 = vsel %vm2300_vm3, %v2111_v33, -inf  ;;  %v2343_v10 = vsel %vm2300_vm3, %v2112_v43, -inf  ;;  %v2350_v16 = vsel %vm2300_vm3, %v2113_v35, -inf  ;;  %3913 = vmatmul.msk.f32.gmra.mxu0 %vm397_vm1, %v4761_v51  ;;  %v2307_v17 = vmax.f32 %v2305_v19, %v2306_v63  ;;  %v3959_v63 = vld [vmem:[%s4034_s30 + $0x120] sm:$0xff] }
 0x1f1   : > { %v1544_v6 = vpop.f32.mrf.mxu2  ;;  %v2331_v13 = vmax.f32 %v2329_v61, %v2330_v2  ;;  %v2337_v48 = vrot.slane %v2336_v44, 4  ;;  %v2344_v18 = vrot.slane %v2343_v10, 4  ;;  %v2351_v62 = vrot.slane %v2350_v16, 4 }
 0x1f2   : > { %v1701_v52 = vpop.f32.mrf.mxu3  ;;  %v1394_v45 = vpop.f32.mrf.mxu1  ;;  %v2314_v46 = vmax.f32 %v2312_v29, %v2313_v3  ;;  %v1481_v50 = vadd.f32 %v1391_v23, %v6210_v59  ;;  %v1946_v58 = vadd.f32 %v1854_v54, %v1790_v38  ;;  %v2321_v5 = vmax.f32 %v2319_v0, %v2320_v1 }
 0x1f3   : > { %v2332_v33 = vrot.slane %v2331_v13, 2  ;;  %v2338_v43 = vmax.f32 %v2336_v44, %v2337_v48  ;;  %v2345_v35 = vmax.f32 %v2343_v10, %v2344_v18  ;;  %v2352_v12 = vmax.f32 %v2350_v16, %v2351_v62  ;;  %v6211_v16 = vld [vmem:[#allocation2_spill] sm:$0xff] }
 0x1f4   : > { %v2328_v7 = vmax.f32 %v2326_v25, %v2327_v26  ;;  %v1982_v42 = vadd.f32 %v5099_v24, %v1946_v58  ;;  %v1634_v32 = vadd.f32 %v1544_v6, %v1481_v50  ;;  %v5157_v23 = vsel %vm397_vm1, %v2307_v17, -inf }
 0x1f5   : > { %3815 = vmatmul.msk.f32.gmra.mxu1 %vm397_vm1, %v4746_v57  ;;  %v2333_v61 = vmax.f32 %v2331_v13, %v2332_v33  ;;  %v2339_v2 = vrot.slane %v2338_v43, 2  ;;  %v2346_v19 = vrot.slane %v2345_v35, 2  ;;  %v2353_v29 = vrot.slane %v2352_v12, 2  ;;  %v1857_v57 = vpop.f32.mrf.mxu0 }
 0x1f6   : > { %3848 = vmatmul.msk.f32.gmra.mxu2 %vm397_vm1, %v3959_v63  ;;  %v5160_v0 = vsel %vm397_vm1, %v2314_v46, -inf  ;;  %v2014_v25 = vmax.f32 %v1982_v42, 0.0  ;;  %v1791_v54 = vadd.f32 %v1701_v52, %v1634_v32  ;;  %v5171_v58 = vsel %vm397_vm1, %v2321_v5, -inf }
 0x1f7   : > { %3881 = vmatmul.msk.f32.gmra.mxu3 %vm397_vm1, %v6149_v34  ;;  %v2334_v3 = vrot.slane %v2333_v61, 1  ;;  %v2340_v38 = vmax.f32 %v2338_v43, %v2339_v2  ;;  %v2347_v44 = vmax.f32 %v2345_v35, %v2346_v19  ;;  %v2354_v10 = vmax.f32 %v2352_v12, %v2353_v29 }
 0x1f8   : > { %3914 = vmatmul.msk.f32.gmra.mxu0 %vm397_vm1, %v6211_v16  ;;  %2046 = vst.msk [vmem:[%s5115_s20 + $0x10] sm:$0xff] %vm397_vm1, %v2014_v25  ;;  %v2114_v1 = vrot.slane %v2014_v25, 2  ;;  %v2115_v34 = vrot.slane %v2014_v25, 4  ;;  %v2116_v26 = vrot.slane %v2014_v25, 6  ;;  %v2357_v6 = vsel %vm2300_vm3, %v2014_v25, -inf  ;;  %v6212_v25 = vld [vmem:[#allocation21_spill] sm:$0xff] }
 0x1f9   : > { %v1547_v13 = vpop.f32.mrf.mxu2  ;;  %v2335_v48 = vmax.f32 %v2333_v61, %v2334_v3  ;;  %v2341_v18 = vrot.slane %v2340_v38, 1  ;;  %v2348_v42 = vrot.slane %v2347_v44, 1  ;;  %v2355_v32 = vrot.slane %v2354_v10, 1 }
 0x1fa   : > { %v1397_v52 = vpop.f32.mrf.mxu1  ;;  %v1704_v62 = vpop.f32.mrf.mxu3  ;;  %v2358_v17 = vrot.slane %v2357_v6, 4  ;;  %v2364_v46 = vsel %vm2300_vm3, %v2114_v1, -inf  ;;  %v2371_v59 = vsel %vm2300_vm3, %v2115_v34, -inf  ;;  %v2378_v50 = vsel %vm2300_vm3, %v2116_v26, -inf  ;;  %v3960_v1 = vld [vmem:[%s4034_s30 + $0x128] sm:$0xff] }
 0x1fb   : > { %v5174_v33 = vsel %vm397_vm1, %v2328_v7, -inf  ;;  %v2342_v43 = vmax.f32 %v2340_v38, %v2341_v18  ;;  %v2349_v35 = vmax.f32 %v2347_v44, %v2348_v42  ;;  %v2365_v61 = vrot.slane %v2364_v46, 4  ;;  %v6213_v7 = vld [vmem:[#allocation9_spill] sm:$0xff] }
 0x1fc   : > { %v2359_v12 = vmax.f32 %v2357_v6, %v2358_v17  ;;  %v2372_v2 = vrot.slane %v2371_v59, 4  ;;  %v2379_v19 = vrot.slane %v2378_v50, 4  ;;  %v2356_v29 = vmax.f32 %v2354_v10, %v2355_v32 }
 0x1fd   : > { %3816 = vmatmul.msk.f32.gmra.mxu1 %vm397_vm1, %v4761_v51  ;;  %v5179_v63 = vsel %vm397_vm1, %v2335_v48, -inf  ;;  %v1482_v3 = vadd.f32 %v1394_v45, %v6212_v25  ;;  %v1947_v5 = vadd.f32 %v1857_v57, %v1791_v54  ;;  %v2366_v44 = vmax.f32 %v2364_v46, %v2365_v61  ;;  %v1860_v42 = vpop.f32.mrf.mxu0 }
 0x1fe   : > { %3849 = vmatmul.msk.f32.gmra.mxu2 %vm397_vm1, %v3960_v1  ;;  %v2360_v38 = vrot.slane %v2359_v12, 2  ;;  %v2373_v34 = vmax.f32 %v2371_v59, %v2372_v2  ;;  %v2380_v26 = vmax.f32 %v2378_v50, %v2379_v19  ;;  %v5187_v6 = vsel %vm397_vm1, %v2342_v43, -inf  ;;  %v6214_v59 = vld [vmem:[#allocation29_spill] sm:$0xff] }
 0x1ff   : > { %3882 = vmatmul.msk.f32.gmra.mxu3 %vm397_vm1, %v6213_v7  ;;  %v5190_v51 = vsel %vm397_vm1, %v2349_v35, -inf  ;;  %v1983_v10 = vadd.f32 %v5099_v24, %v1947_v5  ;;  %v1635_v45 = vadd.f32 %v1547_v13, %v1482_v3  ;;  %v2367_v57 = vrot.slane %v2366_v44, 2 }
 0x200   : > { %3915 = vmatmul.msk.f32.gmra.mxu0 %vm397_vm1, %v4792_v39  ;;  %v2361_v54 = vmax.f32 %v2359_v12, %v2360_v38  ;;  %v2374_v48 = vrot.slane %v2373_v34, 2  ;;  %v2381_v18 = vrot.slane %v2380_v26, 2  ;;  %v5196_v17 = vsel %vm397_vm1, %v2356_v29, -inf }
 0x201   : > { %v1550_v32 = vpop.f32.mrf.mxu2  ;;  %v2015_v46 = vmax.f32 %v1983_v10, 0.0  ;;  %v1483_v50 = vadd.f32 %v1397_v52, %v6214_v59  ;;  %v1792_v43 = vadd.f32 %v1704_v62, %v1635_v45  ;;  %v2368_v35 = vmax.f32 %v2366_v44, %v2367_v57  ;;  %v3961_v10 = vld [vmem:[%s4034_s30 + $0x138] sm:$0xff] }
 0x202   : > { %v2362_v13 = vrot.slane %v2361_v54, 1  ;;  %v2375_v61 = vmax.f32 %v2373_v34, %v2374_v48  ;;  %v2382_v2 = vmax.f32 %v2380_v26, %v2381_v18  ;;  %v1400_v12 = vpop.f32.mrf.mxu1  ;;  %v1707_v5 = vpop.f32.mrf.mxu3 }
 0x203   : > { %2047 = vst.msk [vmem:[%s5115_s20 + $0x18] sm:$0xff] %vm397_vm1, %v2015_v46  ;;  %v2117_v19 = vrot.slane %v2015_v46, 2  ;;  %v2118_v25 = vrot.slane %v2015_v46, 4  ;;  %v2119_v3 = vrot.slane %v2015_v46, 6  ;;  %v2385_v29 = vsel %vm2300_vm3, %v2015_v46, -inf }
 0x204   : > { %v2363_v1 = vmax.f32 %v2361_v54, %v2362_v13  ;;  %v2369_v7 = vrot.slane %v2368_v35, 1  ;;  %v2376_v38 = vrot.slane %v2375_v61, 1  ;;  %v2383_v52 = vrot.slane %v2382_v2, 1  ;;  %v6215_v13 = vld [vmem:[#allocation3_spill] sm:$0xff] }
 0x205   : > { %3817 = vmatmul.msk.f32.gmra.mxu1 %vm397_vm1, %v6211_v16  ;;  %v2386_v62 = vrot.slane %v2385_v29, 4  ;;  %v2392_v44 = vsel %vm2300_vm3, %v2117_v19, -inf  ;;  %v2399_v34 = vsel %vm2300_vm3, %v2118_v25, -inf  ;;  %v2406_v26 = vsel %vm2300_vm3, %v2119_v3, -inf }
 0x206   : > { %3850 = vmatmul.msk.f32.gmra.mxu2 %vm397_vm1, %v3961_v10  ;;  %v2370_v45 = vmax.f32 %v2368_v35, %v2369_v7  ;;  %v2377_v54 = vmax.f32 %v2375_v61, %v2376_v38  ;;  %v2384_v57 = vmax.f32 %v2382_v2, %v2383_v52  ;;  %v3198_v48 = vsel %vm397_vm1, %v2363_v1, -inf  ;;  %v1863_v52 = vpop.f32.mrf.mxu0 }
 0x207   : > { %3883 = vmatmul.msk.f32.gmra.mxu3 %vm397_vm1, %v6157_v21  ;;  %v3199_v16 = vmax.f32 %v5157_v23, %v3198_v48  ;;  %v2387_v18 = vmax.f32 %v2385_v29, %v2386_v62  ;;  %v2393_v46 = vrot.slane %v2392_v44, 4  ;;  %v2400_v59 = vrot.slane %v2399_v34, 4 }
 0x208   : > { %3916 = vmatmul.msk.f32.gmra.mxu0 %vm397_vm1, %v6215_v13  ;;  %v3201_v19 = vsel %vm397_vm1, %v2370_v45, -inf  ;;  %v3204_v25 = vsel %vm397_vm1, %v2377_v54, -inf  ;;  %v3207_v3 = vsel %vm397_vm1, %v2384_v57, -inf  ;;  %v2407_v21 = vrot.slane %v2406_v26, 4  ;;  %v6216_v57 = vld [vmem:[#allocation25_spill] sm:$0xff] }
 0x209   : > { %v3202_v35 = vmax.f32 %v5160_v0, %v3201_v19  ;;  %v3205_v61 = vmax.f32 %v5171_v58, %v3204_v25  ;;  %v3208_v2 = vmax.f32 %v5174_v33, %v3207_v3  ;;  %v2388_v23 = vrot.slane %v2387_v18, 2  ;;  %v1553_v62 = vpop.f32.mrf.mxu2 }
 0x20a   : > { %v2394_v29 = vmax.f32 %v2392_v44, %v2393_v46  ;;  %v2401_v1 = vmax.f32 %v2399_v34, %v2400_v59  ;;  %v2408_v7 = vmax.f32 %v2406_v26, %v2407_v21  ;;  %v1948_v38 = vadd.f32 %v1860_v42, %v1792_v43  ;;  %v1403_v25 = vpop.f32.mrf.mxu1  ;;  %v6218_v21 = vld [vmem:[#allocation31_spill] sm:$0xff] }
 0x20b   : > { %v3454_v10 = vsel %vm3453_vm4, %v3202_v35, %v3199_v16  ;;  %v2389_v45 = vmax.f32 %v2387_v18, %v2388_v23  ;;  %v1636_v54 = vadd.f32 %v1550_v32, %v1483_v50  ;;  %v1484_v48 = vadd.f32 %v1400_v12, %v6216_v57  ;;  %v1710_v32 = vpop.f32.mrf.mxu3  ;;  %v3962_v50 = vld [vmem:[%s4034_s30 + $0x140] sm:$0xff]  ;;  %v6217_v12 = vld [vmem:[#allocation16_spill] sm:$0xff] }
 0x20c   : > { %v3456_v0 = vsel %vm3455_vm5, %v3205_v61, %v3454_v10  ;;  %v2395_v58 = vrot.slane %v2394_v29, 2  ;;  %v2402_v19 = vrot.slane %v2401_v1, 2  ;;  %v2409_v33 = vrot.slane %v2408_v7, 2 }
 0x20d   : > { %3818 = vmatmul.msk.f32.gmra.mxu1 %vm397_vm1, %v4792_v39  ;;  %v3458_v42 = vsel %vm3457_vm6, %v3208_v2, %v3456_v0  ;;  %v2390_v43 = vrot.slane %v2389_v45, 1  ;;  %v1984_v44 = vadd.f32 %v5099_v24, %v1948_v38  ;;  %v1793_v34 = vadd.f32 %v1707_v5, %v1636_v54 }
 0x20e   : > { %3851 = vmatmul.msk.f32.gmra.mxu2 %vm397_vm1, %v3962_v50  ;;  %v2396_v26 = vmax.f32 %v2394_v29, %v2395_v58  ;;  %v2403_v16 = vmax.f32 %v2401_v1, %v2402_v19  ;;  %v2410_v18 = vmax.f32 %v2408_v7, %v2409_v33  ;;  %v1637_v39 = vadd.f32 %v1553_v62, %v1484_v48 }
 0x20f   : > { %3884 = vmatmul.msk.f32.gmra.mxu3 %vm397_vm1, %v6217_v12  ;;  %v2391_v46 = vmax.f32 %v2389_v45, %v2390_v43  ;;  %v2016_v59 = vmax.f32 %v1984_v44, 0.0  ;;  %v1949_v3 = vadd.f32 %v1863_v52, %v1793_v34  ;;  %v1485_v35 = vadd.f32 %v1403_v25, %v6218_v21  ;;  %v1866_v43 = vpop.f32.mrf.mxu0  ;;  %v3963_v12 = vld [vmem:[%s4034_s30 + $0x150] sm:$0xff] }
 0x210   : > { %3917 = vmatmul.msk.f32.gmra.mxu0 %vm397_vm1, %v4823_v20  ;;  %v2397_v5 = vrot.slane %v2396_v26, 1  ;;  %v2404_v61 = vrot.slane %v2403_v16, 1  ;;  %v2411_v2 = vrot.slane %v2410_v18, 1  ;;  %v1794_v23 = vadd.f32 %v1710_v32, %v1637_v39 }
 0x211   : > { %v3210_v38 = vsel %vm397_vm1, %v2391_v46, -inf  ;;  %2048 = vst.msk [vmem:[%s5115_s20 + $0x20] sm:$0xff] %vm397_vm1, %v2016_v59  ;;  %v2120_v29 = vrot.slane %v2016_v59, 2  ;;  %v2121_v1 = vrot.slane %v2016_v59, 4  ;;  %v2122_v7 = vrot.slane %v2016_v59, 6  ;;  %v6219_v46 = vld [vmem:[#allocation13_spill] sm:$0xff] }
 0x212   : > { %v2398_v62 = vmax.f32 %v2396_v26, %v2397_v5  ;;  %v2405_v10 = vmax.f32 %v2403_v16, %v2404_v61  ;;  %v2412_v52 = vmax.f32 %v2410_v18, %v2411_v2  ;;  %v3211_v45 = vmax.f32 %v5179_v63, %v3210_v38  ;;  %v1556_v63 = vpop.f32.mrf.mxu2  ;;  %v1406_v39 = vpop.f32.mrf.mxu1 }
 0x213   : > { %v2413_v54 = vsel %vm2300_vm3, %v2016_v59, -inf  ;;  %v2420_v57 = vsel %vm2300_vm3, %v2120_v29, -inf  ;;  %v2427_v48 = vsel %vm2300_vm3, %v2121_v1, -inf  ;;  %v2434_v0 = vsel %vm2300_vm3, %v2122_v7, -inf  ;;  %v1713_v5 = vpop.f32.mrf.mxu3  ;;  %v6220_v7 = vld [vmem:[#allocation5_spill] sm:$0xff] }
 0x214   : > { %v3213_v58 = vsel %vm397_vm1, %v2398_v62, -inf  ;;  %v3216_v19 = vsel %vm397_vm1, %v2405_v10, -inf  ;;  %v3219_v33 = vsel %vm397_vm1, %v2412_v52, -inf  ;;  %v3460_v25 = vsel %vm3459_vm7, %v3211_v45, %v3458_v42 }
 0x215   : > { %3819 = vmatmul.msk.f32.gmra.mxu1 %vm397_vm1, %v6215_v13  ;;  %v3214_v44 = vmax.f32 %v5187_v6, %v3213_v58  ;;  %v3217_v34 = vmax.f32 %v5190_v51, %v3216_v19  ;;  %v3220_v32 = vmax.f32 %v5196_v17, %v3219_v33  ;;  %v2414_v50 = vrot.slane %v2413_v54, 4 }
 0x216   : > { %3852 = vmatmul.msk.f32.gmra.mxu2 %vm397_vm1, %v3963_v12  ;;  %v2421_v26 = vrot.slane %v2420_v57, 4  ;;  %v2428_v42 = vrot.slane %v2427_v48, 4  ;;  %v2435_v16 = vrot.slane %v2434_v0, 4  ;;  %v1985_v18 = vadd.f32 %v5099_v24, %v1949_v3 }
 0x217   : > { %3885 = vmatmul.msk.f32.gmra.mxu3 %vm397_vm1, %v6165_v49  ;;  %v3462_v6 = vsel %vm3461_vm8, %v3214_v44, %v3460_v25  ;;  %v2415_v51 = vmax.f32 %v2413_v54, %v2414_v50  ;;  %v1950_v17 = vadd.f32 %v1866_v43, %v1794_v23  ;;  %v5264_v13 = vadd.f32 %v1556_v63, %v1485_v35  ;;  %v3964_v63 = vld [vmem:[%s4034_s30 + $0x158] sm:$0xff]  ;;  %v6221_v44 = vld [vmem:[#allocation24_spill] sm:$0xff] }
 0x218   : > { %3918 = vmatmul.msk.f32.gmra.mxu0 %vm397_vm1, %v6219_v46  ;;  %v3464_v49 = vsel %vm3463_vm9, %v3217_v34, %v3462_v6  ;;  %v2422_v59 = vmax.f32 %v2420_v57, %v2421_v26  ;;  %v2429_v3 = vmax.f32 %v2427_v48, %v2428_v42  ;;  %v2436_v21 = vmax.f32 %v2434_v0, %v2435_v16 }
 0x219   : > { %v3466_v61 = vsel %vm3465_vm10, %v3220_v32, %v3464_v49  ;;  %v2416_v2 = vrot.slane %v2415_v51, 2  ;;  %v2017_v38 = vmax.f32 %v1985_v18, 0.0  ;;  %v1986_v29 = vadd.f32 %v5099_v24, %v1950_v17  ;;  %v6222_v18 = vld [vmem:[#allocation17_spill] sm:$0xff] }
 0x21a   : > { %3524 = vst.msk [vmem:[%s5261_s23] sm:$0xff] %vm397_vm1, %v3466_v61  ;;  %v2423_v35 = vrot.slane %v2422_v59, 2  ;;  %v2430_v23 = vrot.slane %v2429_v3, 2  ;;  %v2437_v1 = vrot.slane %v2436_v21, 2  ;;  %v1486_v62 = vadd.f32 %v1406_v39, %v6220_v7  ;;  %v1559_v49 = vpop.f32.mrf.mxu2 }
 0x21b   : > { %v2417_v10 = vmax.f32 %v2415_v51, %v2416_v2  ;;  %2049 = vst.msk [vmem:[%s5115_s20 + $0x28] sm:$0xff] %vm397_vm1, %v2017_v38  ;;  %v2123_v52 = vrot.slane %v2017_v38, 2  ;;  %v2124_v45 = vrot.slane %v2017_v38, 4  ;;  %v2125_v54 = vrot.slane %v2017_v38, 6  ;;  %v1869_v2 = vpop.f32.mrf.mxu0 }
 0x21c   : > { %v2424_v57 = vmax.f32 %v2422_v59, %v2423_v35  ;;  %v2431_v48 = vmax.f32 %v2429_v3, %v2430_v23  ;;  %v2438_v0 = vmax.f32 %v2436_v21, %v2437_v1  ;;  %v2441_v58 = vsel %vm2300_vm3, %v2017_v38, -inf  ;;  %v1409_v38 = vpop.f32.mrf.mxu1 }
 0x21d   : > { %3820 = vmatmul.msk.f32.gmra.mxu1 %vm397_vm1, %v4823_v20  ;;  %v2418_v19 = vrot.slane %v2417_v10, 1  ;;  %v2442_v33 = vrot.slane %v2441_v58, 4  ;;  %v2448_v25 = vsel %vm2300_vm3, %v2123_v52, -inf  ;;  %v2455_v43 = vsel %vm2300_vm3, %v2124_v45, -inf }
 0x21e   : > { %3853 = vmatmul.msk.f32.gmra.mxu2 %vm397_vm1, %v3964_v63  ;;  %v2425_v34 = vrot.slane %v2424_v57, 1  ;;  %v2432_v32 = vrot.slane %v2431_v48, 1  ;;  %v2439_v50 = vrot.slane %v2438_v0, 1  ;;  %v2449_v12 = vrot.slane %v2448_v25, 4 }
 0x21f   : > { %3886 = vmatmul.msk.f32.gmra.mxu3 %vm397_vm1, %v6221_v44  ;;  %v2419_v26 = vmax.f32 %v2417_v10, %v2418_v19  ;;  %v2443_v42 = vmax.f32 %v2441_v58, %v2442_v33  ;;  %v2456_v16 = vrot.slane %v2455_v43, 4  ;;  %v2462_v20 = vsel %vm2300_vm3, %v2125_v54, -inf  ;;  %v1716_v10 = vpop.f32.mrf.mxu3  ;;  %v6223_v19 = vld [vmem:[#allocation10_spill] sm:$0xff] }
 0x220   : > { %3919 = vmatmul.msk.f32.gmra.mxu0 %vm397_vm1, %v6222_v18  ;;  %v2426_v6 = vmax.f32 %v2424_v57, %v2425_v34  ;;  %v2433_v51 = vmax.f32 %v2431_v48, %v2432_v32  ;;  %v2440_v17 = vmax.f32 %v2438_v0, %v2439_v50  ;;  %v2450_v39 = vmax.f32 %v2448_v25, %v2449_v12  ;;  %v3965_v34 = vld [vmem:[%s4034_s30 + $0x168] sm:$0xff]  ;;  %v6224_v32 = vld [vmem:[#allocation30_spill] sm:$0xff] }
 0x221   : > { %v5289_v59 = vsel %vm397_vm1, %v2419_v26, -inf  ;;  %v2444_v3 = vrot.slane %v2443_v42, 2  ;;  %v2457_v21 = vmax.f32 %v2455_v43, %v2456_v16  ;;  %v2463_v61 = vrot.slane %v2462_v20, 4 }
 0x222   : > { %v5292_v35 = vsel %vm397_vm1, %v2426_v6, -inf  ;;  %v5295_v23 = vsel %vm397_vm1, %v2433_v51, -inf  ;;  %v5298_v1 = vsel %vm397_vm1, %v2440_v17, -inf  ;;  %v2451_v7 = vrot.slane %v2450_v39, 2 }
 0x223   : > { %v2445_v52 = vmax.f32 %v2443_v42, %v2444_v3  ;;  %v2458_v45 = vrot.slane %v2457_v21, 2  ;;  %v2464_v54 = vmax.f32 %v2462_v20, %v2463_v61  ;;  %v2018_v57 = vmax.f32 %v1986_v29, 0.0 }
 0x224   : > { %v2452_v48 = vmax.f32 %v2450_v39, %v2451_v7  ;;  %v1795_v0 = vadd.f32 %v1713_v5, %v5264_v13  ;;  %v1639_v58 = vadd.f32 %v1559_v49, %v1486_v62  ;;  %v1487_v33 = vadd.f32 %v1409_v38, %v6223_v19  ;;  %v1562_v7 = vpop.f32.mrf.mxu2 }
 0x225   : > { %3821 = vmatmul.msk.f32.gmra.mxu1 %vm397_vm1, %v6219_v46  ;;  %v2446_v25 = vrot.slane %v2445_v52, 1  ;;  %v2459_v43 = vmax.f32 %v2457_v21, %v2458_v45  ;;  %v2465_v63 = vrot.slane %v2464_v54, 2  ;;  %2050 = vst.msk [vmem:[%s5115_s20 + $0x30] sm:$0xff] %vm397_vm1, %v2018_v57  ;;  %v2126_v44 = vrot.slane %v2018_v57, 2 }
 0x226   : > { %3854 = vmatmul.msk.f32.gmra.mxu2 %vm397_vm1, %v3965_v34  ;;  %v2453_v29 = vrot.slane %v2452_v48, 1  ;;  %v2127_v13 = vrot.slane %v2018_v57, 4  ;;  %v2128_v5 = vrot.slane %v2018_v57, 6  ;;  %v2469_v62 = vsel %vm2300_vm3, %v2018_v57, -inf }
 0x227   : > { %3887 = vmatmul.msk.f32.gmra.mxu3 %vm397_vm1, %v6224_v32  ;;  %v2447_v50 = vmax.f32 %v2445_v52, %v2446_v25  ;;  %v2460_v12 = vrot.slane %v2459_v43, 1  ;;  %v2466_v46 = vmax.f32 %v2464_v54, %v2465_v63  ;;  %v2470_v26 = vrot.slane %v2469_v62, 4  ;;  %v1719_v34 = vpop.f32.mrf.mxu3 }
 0x228   : > { %3920 = vmatmul.msk.f32.gmra.mxu0 %vm397_vm1, %v4875_v4  ;;  %v2454_v42 = vmax.f32 %v2452_v48, %v2453_v29  ;;  %v2476_v16 = vsel %vm2300_vm3, %v2126_v44, -inf  ;;  %v2483_v20 = vsel %vm2300_vm3, %v2127_v13, -inf  ;;  %v2490_v6 = vsel %vm2300_vm3, %v2128_v5, -inf  ;;  %v1872_v48 = vpop.f32.mrf.mxu0  ;;  %v1412_v44 = vpop.f32.mrf.mxu1 }
 0x229   : > { %v2461_v51 = vmax.f32 %v2459_v43, %v2460_v12  ;;  %v2467_v17 = vrot.slane %v2466_v46, 1  ;;  %v5317_v39 = vsel %vm397_vm1, %v2447_v50, -inf  ;;  %v2471_v49 = vmax.f32 %v2469_v62, %v2470_v26  ;;  %v3966_v62 = vld [vmem:[%s4034_s30 + $0x170] sm:$0xff] }
 0x22a   : > { %v5320_v3 = vsel %vm397_vm1, %v2454_v42, -inf  ;;  %v2477_v21 = vrot.slane %v2476_v16, 4  ;;  %v2484_v61 = vrot.slane %v2483_v20, 4  ;;  %v2491_v38 = vrot.slane %v2490_v6, 4 }
 0x22b   : > { %v2468_v52 = vmax.f32 %v2466_v46, %v2467_v17  ;;  %v5323_v45 = vsel %vm397_vm1, %v2461_v51, -inf  ;;  %v2472_v54 = vrot.slane %v2471_v49, 2  ;;  %v1951_v57 = vadd.f32 %v1869_v2, %v1795_v0  ;;  %v6225_v2 = vld [vmem:[#allocation33_spill] sm:$0xff]  ;;  %v6226_v46 = vld [vmem:[#allocation6_spill] sm:$0xff] }
 0x22c   : > { %v2478_v19 = vmax.f32 %v2476_v16, %v2477_v21  ;;  %v2485_v25 = vmax.f32 %v2483_v20, %v2484_v61  ;;  %v2492_v43 = vmax.f32 %v2490_v6, %v2491_v38  ;;  %v1796_v63 = vadd.f32 %v1716_v10, %v1639_v58 }
 0x22d   : > { %3822 = vmatmul.msk.f32.gmra.mxu1 %vm397_vm1, %v6222_v18  ;;  %v5328_v32 = vsel %vm397_vm1, %v2468_v52, -inf  ;;  %v2473_v29 = vmax.f32 %v2471_v49, %v2472_v54  ;;  %v1987_v13 = vadd.f32 %v5099_v24, %v1951_v57  ;;  %v1640_v5 = vadd.f32 %v1562_v7, %v1487_v33 }
 0x22e   : > { %3855 = vmatmul.msk.f32.gmra.mxu2 %vm397_vm1, %v3966_v62  ;;  %v2479_v10 = vrot.slane %v2478_v19, 2  ;;  %v2486_v0 = vrot.slane %v2485_v25, 2  ;;  %v2493_v58 = vrot.slane %v2492_v43, 2  ;;  %v1952_v50 = vadd.f32 %v1872_v48, %v1796_v63  ;;  %v3967_v62 = vld [vmem:[%s4034_s30 + $0x180] sm:$0xff] }
 0x22f   : > { %3888 = vmatmul.msk.f32.gmra.mxu3 %vm397_vm1, %v6225_v2  ;;  %v2474_v12 = vrot.slane %v2473_v29, 1  ;;  %v2019_v18 = vmax.f32 %v1987_v13, 0.0  ;;  %v1488_v26 = vadd.f32 %v1412_v44, %v6226_v46  ;;  %v1797_v42 = vadd.f32 %v1719_v34, %v1640_v5 }
 0x230   : > { %3921 = vmatmul.msk.f32.gmra.mxu0 %vm397_vm1, %v4894_v14  ;;  %v2480_v33 = vmax.f32 %v2478_v19, %v2479_v10  ;;  %v2487_v16 = vmax.f32 %v2485_v25, %v2486_v0  ;;  %v2494_v20 = vmax.f32 %v2492_v43, %v2493_v58  ;;  %v1988_v6 = vadd.f32 %v5099_v24, %v1952_v50  ;;  %v1875_v58 = vpop.f32.mrf.mxu0 }
 0x231   : > { %v2475_v51 = vmax.f32 %v2473_v29, %v2474_v12  ;;  %2051 = vst.msk [vmem:[%s5115_s20 + $0x38] sm:$0xff] %vm397_vm1, %v2019_v18  ;;  %v2129_v17 = vrot.slane %v2019_v18, 2  ;;  %v2130_v49 = vrot.slane %v2019_v18, 4  ;;  %v2131_v21 = vrot.slane %v2019_v18, 6 }
 0x232   : > { %v2481_v61 = vrot.slane %v2480_v33, 1  ;;  %v2488_v38 = vrot.slane %v2487_v16, 1  ;;  %v2495_v7 = vrot.slane %v2494_v20, 1  ;;  %v2497_v52 = vsel %vm2300_vm3, %v2019_v18, -inf }
 0x233   : > { %v3222_v54 = vsel %vm397_vm1, %v2475_v51, -inf  ;;  %v2498_v57 = vrot.slane %v2497_v52, 4  ;;  %v2504_v48 = vsel %vm2300_vm3, %v2129_v17, -inf  ;;  %v2511_v19 = vsel %vm2300_vm3, %v2130_v49, -inf }
 0x234   : > { %v2482_v25 = vmax.f32 %v2480_v33, %v2481_v61  ;;  %v2489_v43 = vmax.f32 %v2487_v16, %v2488_v38  ;;  %v2496_v63 = vmax.f32 %v2494_v20, %v2495_v7  ;;  %v3223_v44 = vmax.f32 %v5289_v59, %v3222_v54 }
 0x235   : > { %3823 = vmatmul.msk.f32.gmra.mxu1 %vm397_vm1, %v4875_v4  ;;  %v2499_v34 = vmax.f32 %v2497_v52, %v2498_v57  ;;  %v2505_v29 = vrot.slane %v2504_v48, 4  ;;  %v2512_v13 = vrot.slane %v2511_v19, 4  ;;  %v2518_v5 = vsel %vm2300_vm3, %v2131_v21, -inf  ;;  %v1565_v4 = vpop.f32.mrf.mxu2 }
 0x236   : > { %3856 = vmatmul.msk.f32.gmra.mxu2 %vm397_vm1, %v3967_v62  ;;  %v3225_v2 = vsel %vm397_vm1, %v2482_v25, -inf  ;;  %v3228_v10 = vsel %vm397_vm1, %v2489_v43, -inf  ;;  %v3231_v59 = vsel %vm397_vm1, %v2496_v63, -inf  ;;  %v2519_v0 = vrot.slane %v2518_v5, 4  ;;  %v1722_v63 = vpop.f32.mrf.mxu3 }
 0x237   : > { %3889 = vmatmul.msk.f32.gmra.mxu3 %vm397_vm1, %v4880_v11  ;;  %v3226_v50 = vmax.f32 %v5292_v35, %v3225_v2  ;;  %v3229_v12 = vmax.f32 %v5295_v23, %v3228_v10  ;;  %v3232_v18 = vmax.f32 %v5298_v1, %v3231_v59  ;;  %v2500_v46 = vrot.slane %v2499_v34, 2 }
 0x238   : > { %v2506_v33 = vmax.f32 %v2504_v48, %v2505_v29  ;;  %v2513_v16 = vmax.f32 %v2511_v19, %v2512_v13  ;;  %v2520_v11 = vmax.f32 %v2518_v5, %v2519_v0  ;;  %v2020_v20 = vmax.f32 %v1988_v6, 0.0 }
 0x239   : > { %v3467_v51 = vsel %vm3453_vm4, %v3226_v50, %v3223_v44  ;;  %v2501_v17 = vmax.f32 %v2499_v34, %v2500_v46  ;;  %v1953_v49 = vadd.f32 %v1875_v58, %v1797_v42  ;;  %v1641_v21 = vadd.f32 %v1565_v4, %v1488_v26  ;;  %v5370_v44 = vld [vmem:[%s4034_s30 + $0x188] sm:$0xff]  ;;  %v1415_v50 = vpop.f32.mrf.mxu1 }
 0x23a   : > { %v3468_v61 = vsel %vm3455_vm5, %v3229_v12, %v3467_v51  ;;  %v2507_v38 = vrot.slane %v2506_v33, 2  ;;  %v2514_v7 = vrot.slane %v2513_v16, 2  ;;  %v2521_v35 = vrot.slane %v2520_v11, 2  ;;  %2052 = vst.msk [vmem:[%s5115_s20 + $0x40] sm:$0xff] %vm397_vm1, %v2020_v20 }
 0x23b   : > { %v3469_v23 = vsel %vm3457_vm6, %v3232_v18, %v3468_v61  ;;  %v2502_v1 = vrot.slane %v2501_v17, 1  ;;  %v2132_v52 = vrot.slane %v2020_v20, 2  ;;  %v2133_v54 = vrot.slane %v2020_v20, 4 }
 0x23c   : > { %v2508_v57 = vmax.f32 %v2506_v33, %v2507_v38  ;;  %v2515_v6 = vmax.f32 %v2513_v16, %v2514_v7  ;;  %v2522_v48 = vmax.f32 %v2520_v11, %v2521_v35  ;;  %v2134_v19 = vrot.slane %v2020_v20, 6 }
 0x23d   : > { %3824 = vmatmul.msk.f32.gmra.mxu1 %vm397_vm1, %v4894_v14  ;;  %v2503_v26 = vmax.f32 %v2501_v17, %v2502_v1  ;;  %v2525_v42 = vsel %vm2300_vm3, %v2020_v20, -inf  ;;  %v2532_v25 = vsel %vm2300_vm3, %v2132_v52, -inf  ;;  %v2539_v43 = vsel %vm2300_vm3, %v2133_v54, -inf  ;;  %v1568_v38 = vpop.f32.mrf.mxu2 }
 0x23e   : > { %3857 = vmatmul.msk.f32.gmra.mxu2 %vm397_vm1, %v5370_v44  ;;  %v2509_v34 = vrot.slane %v2508_v57, 1  ;;  %v2516_v29 = vrot.slane %v2515_v6, 1  ;;  %v2523_v13 = vrot.slane %v2522_v48, 1  ;;  %v2526_v14 = vrot.slane %v2525_v42, 4 }
 0x23f   : > { %3890 = vmatmul.msk.f32.gmra.mxu3 %vm397_vm1, %v4899_v15  ;;  %v3234_v5 = vsel %vm397_vm1, %v2503_v26, -inf  ;;  %v2533_v62 = vrot.slane %v2532_v25, 4  ;;  %v2540_v2 = vrot.slane %v2539_v43, 4  ;;  %v2546_v10 = vsel %vm2300_vm3, %v2134_v19, -inf }
 0x240   : > { %v2510_v59 = vmax.f32 %v2508_v57, %v2509_v34  ;;  %v2517_v0 = vmax.f32 %v2515_v6, %v2516_v29  ;;  %v2524_v58 = vmax.f32 %v2522_v48, %v2523_v13  ;;  %v3235_v4 = vmax.f32 %v5317_v39, %v3234_v5  ;;  %v1878_v48 = vpop.f32.mrf.mxu0 }
 0x241   : > { %v2527_v12 = vmax.f32 %v2525_v42, %v2526_v14  ;;  %v2534_v18 = vmax.f32 %v2532_v25, %v2533_v62  ;;  %v2541_v46 = vmax.f32 %v2539_v43, %v2540_v2  ;;  %v2547_v15 = vrot.slane %v2546_v10, 4  ;;  %v6227_v43 = vld [vmem:[#allocation11_spill] sm:$0xff] }
 0x242   : > { %v3237_v33 = vsel %vm397_vm1, %v2510_v59, -inf  ;;  %v3240_v16 = vsel %vm397_vm1, %v2517_v0, -inf  ;;  %v3243_v11 = vsel %vm397_vm1, %v2524_v58, -inf  ;;  %v3470_v20 = vsel %vm3459_vm7, %v3235_v4, %v3469_v23  ;;  %v1418_v58 = vpop.f32.mrf.mxu1 }
 0x243   : > { %v3238_v51 = vmax.f32 %v5320_v3, %v3237_v33  ;;  %v3241_v17 = vmax.f32 %v5323_v45, %v3240_v16  ;;  %v3244_v61 = vmax.f32 %v5328_v32, %v3243_v11  ;;  %v2528_v39 = vrot.slane %v2527_v12, 2 }
 0x244   : > { %v2535_v7 = vrot.slane %v2534_v18, 2  ;;  %v2542_v35 = vrot.slane %v2541_v46, 2  ;;  %v2548_v1 = vmax.f32 %v2546_v10, %v2547_v15  ;;  %v1989_v52 = vadd.f32 %v5099_v24, %v1953_v49  ;;  %v1725_v24 = vpop.f32.mrf.mxu3 }
 0x245   : > { %v1355_v54 = vrot.slane %v5370_v44, 2  ;;  %v3471_v57 = vsel %vm3461_vm8, %v3238_v51, %v3470_v20  ;;  %v2529_v6 = vmax.f32 %v2527_v12, %v2528_v39  ;;  %v1798_v23 = vadd.f32 %v1722_v63, %v1641_v21  ;;  %v1571_v39 = vpop.f32.mrf.mxu2 }
 0x246   : > { %v3472_v3 = vsel %vm3463_vm9, %v3241_v17, %v3471_v57  ;;  %v2536_v45 = vmax.f32 %v2534_v18, %v2535_v7  ;;  %v2543_v32 = vmax.f32 %v2541_v46, %v2542_v35  ;;  %v2549_v19 = vrot.slane %v2548_v1, 2  ;;  %v5409_v17 = vld [vmem:[%s6011_s2] ss:$0 sm:$0xff] }
 0x247   : > { %v3473_v26 = vsel %vm3465_vm10, %v3244_v61, %v3472_v3  ;;  %v2530_v42 = vrot.slane %v2529_v6, 1  ;;  %v2021_v25 = vmax.f32 %v1989_v52, 0.0  ;;  %v1489_v34 = vadd.f32 %v1415_v50, %v6227_v43 }
 0x248   : > { %3525 = vst.msk [vmem:[%s5261_s23 + $0x8] sm:$0xff] %vm397_vm1, %v3473_v26  ;;  %v2537_v49 = vrot.slane %v2536_v45, 1  ;;  %v2544_v29 = vrot.slane %v2543_v32, 1  ;;  %v2550_v13 = vmax.f32 %v2548_v1, %v2549_v19  ;;  %v1954_v21 = vadd.f32 %v1878_v48, %v1798_v23  ;;  %v6228_v1 = vld [vmem:[#allocation14_spill] sm:$0xff]  ;;  %v1881_v3 = vpop.f32.mrf.mxu0 }
 0x249   : > { %v2531_v63 = vmax.f32 %v2529_v6, %v2530_v42  ;;  %2053 = vst.msk [vmem:[%s5115_s20 + $0x48] sm:$0xff] %vm397_vm1, %v2021_v25  ;;  %v2135_v14 = vrot.slane %v2021_v25, 2  ;;  %v2136_v5 = vrot.slane %v2021_v25, 4  ;;  %v2137_v62 = vrot.slane %v2021_v25, 6 }
 0x24a   : > { %v2538_v2 = vmax.f32 %v2536_v45, %v2537_v49  ;;  %v2545_v10 = vmax.f32 %v2543_v32, %v2544_v29  ;;  %v2551_v59 = vrot.slane %v2550_v13, 1  ;;  %v2553_v0 = vsel %vm2300_vm3, %v2021_v25, -inf  ;;  %v5422_v29 = vld [vmem:[%s4034_s30 + $0x198] sm:$0xff] }
 0x24b   : > { %v2554_v4 = vrot.slane %v2553_v0, 4  ;;  %v2560_v50 = vsel %vm2300_vm3, %v2135_v14, -inf  ;;  %v2567_v12 = vsel %vm2300_vm3, %v2136_v5, -inf  ;;  %v1642_v18 = vadd.f32 %v1568_v38, %v1489_v34  ;;  %3858 = vmatmul.msk.f32.gmra.mxu2 %vm397_vm1, %v5422_v29 }
 0x24c   : > { %v2552_v46 = vmax.f32 %v2550_v13, %v2551_v59  ;;  %v5400_v15 = vsel %vm397_vm1, %v2531_v63, -inf  ;;  %v5403_v33 = vsel %vm397_vm1, %v2538_v2, -inf  ;;  %v2561_v16 = vrot.slane %v2560_v50, 4  ;;  %v1728_v49 = vpop.f32.mrf.mxu3 }
 0x24d   : > { %v2555_v11 = vmax.f32 %v2553_v0, %v2554_v4  ;;  %v2568_v20 = vrot.slane %v2567_v12, 4  ;;  %v2574_v51 = vsel %vm2300_vm3, %v2137_v62, -inf  ;;  %v1990_v61 = vadd.f32 %v5409_v17, %v1954_v21  ;;  %v1421_v4 = vpop.f32.mrf.mxu1 }
 0x24e   : > { %v5413_v38 = vsel %vm397_vm1, %v2545_v10, -inf  ;;  %v2562_v7 = vmax.f32 %v2560_v50, %v2561_v16  ;;  %v2575_v35 = vrot.slane %v2574_v51, 4  ;;  %v1490_v52 = vadd.f32 %v1418_v58, %v6228_v1 }
 0x24f   : > { %v5417_v57 = vsel %vm397_vm1, %v2552_v46, -inf  ;;  %v2556_v6 = vrot.slane %v2555_v11, 2  ;;  %v2569_v23 = vmax.f32 %v2567_v12, %v2568_v20  ;;  %v2022_v48 = vmax.f32 %v1990_v61, 0.0 }
 0x250   : > { %v2563_v45 = vrot.slane %v2562_v7, 2  ;;  %v2576_v32 = vmax.f32 %v2574_v51, %v2575_v35  ;;  %v1799_v19 = vadd.f32 %v1725_v24, %v1642_v18  ;;  %v1643_v26 = vadd.f32 %v1571_v39, %v1490_v52  ;;  %v6229_v35 = vld [vmem:[#allocation20_spill] sm:$0xff] }
 0x251   : > { %v2557_v42 = vmax.f32 %v2555_v11, %v2556_v6  ;;  %v2570_v25 = vrot.slane %v2569_v23, 2  ;;  %2054 = vst.msk [vmem:[%s5115_s20 + $0x50] sm:$0xff] %vm397_vm1, %v2022_v48  ;;  %v2138_v43 = vrot.slane %v2022_v48, 2  ;;  %v2139_v34 = vrot.slane %v2022_v48, 4 }
 0x252   : > { %v2564_v13 = vmax.f32 %v2562_v7, %v2563_v45  ;;  %v2577_v21 = vrot.slane %v2576_v32, 2  ;;  %v2140_v63 = vrot.slane %v2022_v48, 6  ;;  %v2581_v14 = vsel %vm2300_vm3, %v2022_v48, -inf  ;;  %v1574_v45 = vpop.f32.mrf.mxu2 }
 0x253   : > { %v2558_v5 = vrot.slane %v2557_v42, 1  ;;  %v2571_v24 = vmax.f32 %v2569_v23, %v2570_v25  ;;  %v2582_v62 = vrot.slane %v2581_v14, 4  ;;  %v2588_v2 = vsel %vm2300_vm3, %v2138_v43, -inf }
 0x254   : > { %v2565_v10 = vrot.slane %v2564_v13, 1  ;;  %v2578_v59 = vmax.f32 %v2576_v32, %v2577_v21  ;;  %v2589_v0 = vrot.slane %v2588_v2, 4  ;;  %v2595_v58 = vsel %vm2300_vm3, %v2139_v34, -inf  ;;  %v1884_v34 = vpop.f32.mrf.mxu0 }
 0x255   : > { %v2559_v50 = vmax.f32 %v2557_v42, %v2558_v5  ;;  %v2572_v12 = vrot.slane %v2571_v24, 1  ;;  %v2583_v18 = vmax.f32 %v2581_v14, %v2582_v62  ;;  %v2596_v46 = vrot.slane %v2595_v58, 4 }
 0x256   : > { %v2566_v16 = vmax.f32 %v2564_v13, %v2565_v10  ;;  %v2579_v11 = vrot.slane %v2578_v59, 1  ;;  %v2590_v20 = vmax.f32 %v2588_v2, %v2589_v0  ;;  %v2602_v51 = vsel %vm2300_vm3, %v2140_v63, -inf  ;;  %v5438_v13 = vld [vmem:[%s4034_s30 + $0x1a0] sm:$0xff]  ;;  %v1731_v10 = vpop.f32.mrf.mxu3 }
 0x257   : > { %v2573_v61 = vmax.f32 %v2571_v24, %v2572_v12  ;;  %v2584_v39 = vrot.slane %v2583_v18, 2  ;;  %v2597_v7 = vmax.f32 %v2595_v58, %v2596_v46  ;;  %v1491_v1 = vadd.f32 %v1421_v4, %v6229_v35  ;;  %3859 = vmatmul.msk.f32.gmra.mxu2 %vm397_vm1, %v5438_v13 }
 0x258   : > { %v2580_v52 = vmax.f32 %v2578_v59, %v2579_v11  ;;  %v5432_v6 = vsel %vm397_vm1, %v2559_v50, -inf  ;;  %v2591_v23 = vrot.slane %v2590_v20, 2  ;;  %v2603_v48 = vrot.slane %v2602_v51, 4 }
 0x259   : > { %v5435_v32 = vsel %vm397_vm1, %v2566_v16, -inf  ;;  %v2585_v42 = vmax.f32 %v2583_v18, %v2584_v39  ;;  %v2598_v25 = vrot.slane %v2597_v7, 2  ;;  %v1955_v43 = vadd.f32 %v1881_v3, %v1799_v19 }
 0x25a   : > { %v5441_v21 = vsel %vm397_vm1, %v2573_v61, -inf  ;;  %v2592_v63 = vmax.f32 %v2590_v20, %v2591_v23  ;;  %v2604_v14 = vmax.f32 %v2602_v51, %v2603_v48  ;;  %v1800_v5 = vadd.f32 %v1728_v49, %v1643_v26 }
 0x25b   : > { %v2586_v24 = vrot.slane %v2585_v42, 1  ;;  %v2599_v62 = vmax.f32 %v2597_v7, %v2598_v25  ;;  %v1991_v2 = vadd.f32 %v5409_v17, %v1955_v43  ;;  %v6230_v3 = vrot.slane %v4869_v22, 2 }
 0x25c   : > { %v2593_v59 = vrot.slane %v2592_v63, 1  ;;  %v2605_v0 = vrot.slane %v2604_v14, 2  ;;  %v1956_v58 = vadd.f32 %v1884_v34, %v1800_v5  ;;  %v1644_v26 = vadd.f32 %v1574_v45, %v1491_v1 }
 0x25d   : > { %v1356_v19 = vsel %vm752_vm2, %v6230_v3, %v1355_v54  ;;  %v5454_v49 = vsel %vm397_vm1, %v2580_v52, -inf  ;;  %v2587_v4 = vmax.f32 %v2585_v42, %v2586_v24  ;;  %v2600_v50 = vrot.slane %v2599_v62, 1  ;;  %v5464_v52 = vpop.f32.mrf.mxu1 }
 0x25e   : > { %3922 = vmatmul.msk.f32.gmra.mxu0 %vm397_vm1, %v1356_v19  ;;  %3825 = vmatmul.msk.f32.gmra.mxu1 %vm397_vm1, %v1356_v19  ;;  %v2023_v12 = vmax.f32 %v1991_v2, 0.0  ;;  %v2594_v18 = vmax.f32 %v2592_v63, %v2593_v59  ;;  %v2606_v22 = vmax.f32 %v2604_v14, %v2605_v0  ;;  %v1992_v46 = vadd.f32 %v5409_v17, %v1956_v58 }
 0x25f   : > { %v5457_v16 = vadd.f32 %v1731_v10, %v1644_v26  ;;  %v2601_v11 = vmax.f32 %v2599_v62, %v2600_v50  ;;  %v3246_v20 = vsel %vm397_vm1, %v2587_v4, -inf }
 0x260   : > { %2055 = vst.msk [vmem:[%s5115_s20 + $0x58] sm:$0xff] %vm397_vm1, %v2023_v12  ;;  %v2141_v51 = vrot.slane %v2023_v12, 2  ;;  %v2142_v61 = vrot.slane %v2023_v12, 4  ;;  %v2607_v39 = vrot.slane %v2606_v22, 1  ;;  %v3247_v7 = vmax.f32 %v5400_v15, %v3246_v20  ;;  %v5471_v15 = vpop.f32.mrf.mxu2 }
 0x261   : > { %v3249_v35 = vsel %vm397_vm1, %v2594_v18, -inf  ;;  %v2143_v1 = vrot.slane %v2023_v12, 6  ;;  %v3252_v48 = vsel %vm397_vm1, %v2601_v11, -inf  ;;  %v2609_v45 = vsel %vm2300_vm3, %v2023_v12, -inf }
 0x262   : > { %v3250_v23 = vmax.f32 %v5403_v33, %v3249_v35  ;;  %v2616_v42 = vsel %vm2300_vm3, %v2141_v51, -inf  ;;  %v2608_v25 = vmax.f32 %v2606_v22, %v2607_v39  ;;  %v3253_v43 = vmax.f32 %v5413_v38, %v3252_v48 }
 0x263   : > { %v2610_v34 = vrot.slane %v2609_v45, 4  ;;  %v2617_v63 = vrot.slane %v2616_v42, 4  ;;  %v2623_v5 = vsel %vm2300_vm3, %v2142_v61, -inf  ;;  %v2630_v33 = vsel %vm2300_vm3, %v2143_v1, -inf }
 0x264   : > { %v3474_v14 = vsel %vm3453_vm4, %v3250_v23, %v3247_v7  ;;  %v2024_v24 = vmax.f32 %v1992_v46, 0.0  ;;  %v3255_v62 = vsel %vm397_vm1, %v2608_v25, -inf  ;;  %v2624_v38 = vrot.slane %v2623_v5, 4 }
 0x265   : > { %v3475_v2 = vsel %vm3455_vm5, %v3253_v43, %v3474_v14  ;;  %v2611_v3 = vmax.f32 %v2609_v45, %v2610_v34  ;;  %v2618_v19 = vmax.f32 %v2616_v42, %v2617_v63  ;;  %v3256_v10 = vmax.f32 %v5417_v57, %v3255_v62  ;;  %v5485_v42 = vpop.f32.mrf.mxu1  ;;  %v1887_v14 = vpop.f32.mrf.mxu0 }
 0x266   : > { %v2631_v59 = vrot.slane %v2630_v33, 4  ;;  %2056 = vst.msk [vmem:[%s5115_s20 + $0x60] sm:$0xff] %vm397_vm1, %v2024_v24  ;;  %v2144_v0 = vrot.slane %v2024_v24, 2  ;;  %v2145_v4 = vrot.slane %v2024_v24, 4  ;;  %v2146_v50 = vrot.slane %v2024_v24, 6 }
 0x267   : > { %v2612_v58 = vrot.slane %v2611_v3, 2  ;;  %v2619_v26 = vrot.slane %v2618_v19, 2  ;;  %v3476_v12 = vsel %vm3457_vm6, %v3256_v10, %v3475_v2  ;;  %v2625_v18 = vmax.f32 %v2623_v5, %v2624_v38  ;;  %v5488_v2 = vpop.f32.mrf.mxu3 }
 0x268   : > { %v2632_v22 = vmax.f32 %v2630_v33, %v2631_v59  ;;  %v2637_v46 = vsel %vm2300_vm3, %v2024_v24, -inf  ;;  %v2644_v57 = vsel %vm2300_vm3, %v2144_v0, -inf  ;;  %v2651_v35 = vsel %vm2300_vm3, %v2145_v4, -inf }
 0x269   : > { %v2613_v11 = vmax.f32 %v2611_v3, %v2612_v58  ;;  %v2620_v20 = vmax.f32 %v2618_v19, %v2619_v26  ;;  %v2638_v51 = vrot.slane %v2637_v46, 4  ;;  %v2626_v61 = vrot.slane %v2625_v18, 2  ;;  %v5490_v3 = vpop.f32.mrf.mxu2 }
 0x26a   : > { %v2633_v39 = vrot.slane %v2632_v22, 2  ;;  %v2645_v7 = vrot.slane %v2644_v57, 4  ;;  %v2652_v45 = vrot.slane %v2651_v35, 4  ;;  %v2658_v63 = vsel %vm2300_vm3, %v2146_v50, -inf }
 0x26b   : > { %v2614_v1 = vrot.slane %v2613_v11, 1  ;;  %v2621_v23 = vrot.slane %v2620_v20, 1  ;;  %v2639_v48 = vmax.f32 %v2637_v46, %v2638_v51  ;;  %v2627_v25 = vmax.f32 %v2625_v18, %v2626_v61 }
 0x26c   : > { %v2634_v43 = vmax.f32 %v2632_v22, %v2633_v39  ;;  %v2646_v34 = vmax.f32 %v2644_v57, %v2645_v7  ;;  %v2653_v62 = vmax.f32 %v2651_v35, %v2652_v45  ;;  %v2659_v59 = vrot.slane %v2658_v63, 4 }
 0x26d   : > { %v2615_v5 = vmax.f32 %v2613_v11, %v2614_v1  ;;  %v2622_v33 = vmax.f32 %v2620_v20, %v2621_v23  ;;  %v2640_v24 = vrot.slane %v2639_v48, 2  ;;  %v2628_v19 = vrot.slane %v2627_v25, 1 }
 0x26e   : > { %v2635_v10 = vrot.slane %v2634_v43, 1  ;;  %v2647_v38 = vrot.slane %v2646_v34, 2  ;;  %v2654_v4 = vrot.slane %v2653_v62, 2  ;;  %v2660_v57 = vmax.f32 %v2658_v63, %v2659_v59 }
 0x26f   : > { %v3258_v0 = vsel %vm397_vm1, %v2615_v5, -inf  ;;  %v3261_v58 = vsel %vm397_vm1, %v2622_v33, -inf  ;;  %v2641_v26 = vmax.f32 %v2639_v48, %v2640_v24  ;;  %v2629_v50 = vmax.f32 %v2627_v25, %v2628_v19  ;;  %v1890_v24 = vpop.f32.mrf.mxu0 }
 0x270   : > { %v2636_v18 = vmax.f32 %v2634_v43, %v2635_v10  ;;  %v3259_v22 = vmax.f32 %v5432_v6, %v3258_v0  ;;  %v3262_v46 = vmax.f32 %v5435_v32, %v3261_v58  ;;  %v2648_v20 = vmax.f32 %v2646_v34, %v2647_v38  ;;  %v3970_v10 = vld [vmem:[%s4034_s30 + $0x190] sm:$0x3] }
 0x271   : > { %v2642_v11 = vrot.slane %v2641_v26, 1  ;;  %v2655_v51 = vmax.f32 %v2653_v62, %v2654_v4  ;;  %v3264_v61 = vsel %vm397_vm1, %v2629_v50, -inf  ;;  %v1957_v35 = vadd.f32 %v1887_v14, %v5457_v16  ;;  %v1430_v16 = vpop.f32.mrf.mxu1 }
 0x272   : > { %v3267_v39 = vsel %vm397_vm1, %v2636_v18, -inf  ;;  %v3477_v7 = vsel %vm3459_vm7, %v3259_v22, %v3476_v12  ;;  %v3265_v1 = vmax.f32 %v5441_v21, %v3264_v61  ;;  %v2649_v48 = vrot.slane %v2648_v20, 1 }
 0x273   : > { %v3268_v23 = vmax.f32 %v5454_v49, %v3267_v39  ;;  %v3478_v6 = vsel %vm3461_vm8, %v3262_v46, %v3477_v7  ;;  %v2643_v32 = vmax.f32 %v2641_v26, %v2642_v11  ;;  %v2656_v45 = vrot.slane %v2655_v51, 1 }
 0x274   : > { %v2661_v25 = vrot.slane %v2660_v57, 2  ;;  %v1993_v43 = vadd.f32 %v5409_v17, %v1957_v35  ;;  %v3479_v34 = vsel %vm3463_vm9, %v3265_v1, %v3478_v6  ;;  %v1492_v21 = vadd.f32 %v5464_v52, %v4901_v8  ;;  %v1737_v8 = vpop.f32.mrf.mxu3  ;;  %v5517_v52 = vpop.f32.mrf.mxu2 }
 0x275   : > { %v5506_v12 = vsel %vm397_vm1, %v2643_v32, -inf  ;;  %v1664_v49 = vrot.slane %v5422_v29, 1  ;;  %v3480_v63 = vsel %vm3465_vm10, %v3268_v23, %v3479_v34  ;;  %v2650_v14 = vmax.f32 %v2648_v20, %v2649_v48 }
 0x276   : > { %v2657_v5 = vmax.f32 %v2655_v51, %v2656_v45  ;;  %v2662_v33 = vmax.f32 %v2660_v57, %v2661_v25  ;;  %3526 = vst.msk [vmem:[%s5261_s23 + $0x10] sm:$0xff] %vm397_vm1, %v3480_v63  ;;  %v2025_v62 = vmax.f32 %v1993_v43, 0.0  ;;  %v1665_v19 = vrot.slane %v5438_v13, 1  ;;  %v5534_v57 = vld [vmem:[%s4034_s30 + $0x1a8] sm:$0x3] }
 0x277   : > { %v1357_v38 = vrot.slane %v3970_v10, 2  ;;  %v1645_v59 = vadd.f32 %v5471_v15, %v1492_v21  ;;  %v5520_v58 = vsel %vm397_vm1, %v2650_v14, -inf  ;;  %v1820_v4 = vrot.slane %v5422_v29, 2 }
 0x278   : > { %v2663_v0 = vrot.slane %v2662_v33, 1  ;;  %v5523_v26 = vsel %vm397_vm1, %v2657_v5, -inf  ;;  %2057 = vst.msk [vmem:[%s5115_s20 + $0x68] sm:$0xff] %vm397_vm1, %v2025_v62  ;;  %v2147_v50 = vrot.slane %v2025_v62, 2  ;;  %v2148_v18 = vrot.slane %v2025_v62, 4 }
 0x279   : > { %v2149_v22 = vrot.slane %v2025_v62, 6  ;;  %v2665_v15 = vsel %vm2300_vm3, %v2025_v62, -inf  ;;  %v1666_v20 = vsel %vm314_vm0, %v1664_v49, %v1665_v19  ;;  %v1358_v51 = vsel %vm752_vm2, %v1355_v54, %v1357_v38 }
 0x27a   : > { %v2664_v46 = vmax.f32 %v2662_v33, %v2663_v0  ;;  %v2666_v11 = vrot.slane %v2665_v15, 4  ;;  %v2672_v61 = vsel %vm2300_vm3, %v2147_v50, -inf  ;;  %v2679_v29 = vsel %vm2300_vm3, %v2148_v18, -inf  ;;  %3891 = vmatmul.msk.f32.gmra.mxu3 %vm397_vm1, %v1666_v20  ;;  %3923 = vmatmul.msk.f32.gmra.mxu0 %vm397_vm1, %v1358_v51  ;;  %v1893_v33 = vpop.f32.mrf.mxu0 }
 0x27b   : > { %v2686_v39 = vsel %vm2300_vm3, %v2149_v22, -inf  ;;  %v1802_v7 = vadd.f32 %v5488_v2, %v1645_v59  ;;  %v2673_v1 = vrot.slane %v2672_v61, 4  ;;  %v2680_v23 = vrot.slane %v2679_v29, 4  ;;  %3826 = vmatmul.msk.f32.gmra.mxu1 %vm397_vm1, %v1358_v51 }
 0x27c   : > { %v2667_v35 = vmax.f32 %v2665_v15, %v2666_v11  ;;  %v1493_v44 = vadd.f32 %v5485_v42, %v4911_v31  ;;  %v2687_v54 = vrot.slane %v2686_v39, 4  ;;  %v1667_v32 = vrot.slane %v5534_v57, 1  ;;  %v1433_v42 = vpop.f32.mrf.mxu1  ;;  %v1740_v38 = vpop.f32.mrf.mxu3 }
 0x27d   : > { %v1958_v6 = vadd.f32 %v1890_v24, %v1802_v7  ;;  %v1821_v48 = vrot.slane %v5438_v13, 2  ;;  %v2674_v25 = vmax.f32 %v2672_v61, %v2673_v1  ;;  %v2681_v43 = vmax.f32 %v2679_v29, %v2680_v23  ;;  %v1586_v59 = vpop.f32.mrf.mxu2 }
 0x27e   : > { %v2668_v45 = vrot.slane %v2667_v35, 2  ;;  %v1646_v34 = vadd.f32 %v5490_v3, %v1493_v44  ;;  %v5549_v2 = vsel %vm397_vm1, %v2664_v46, -inf  ;;  %v2688_v21 = vmax.f32 %v2686_v39, %v2687_v54 }
 0x27f   : > { %v1994_v49 = vadd.f32 %v5409_v17, %v1958_v6  ;;  %v1668_v31 = vsel %vm314_vm0, %v1665_v19, %v1667_v32  ;;  %v2675_v14 = vrot.slane %v2674_v25, 2  ;;  %v2682_v5 = vrot.slane %v2681_v43, 2 }
 0x280   : > { %v2669_v63 = vmax.f32 %v2667_v35, %v2668_v45  ;;  %v1822_v13 = vsel %vm752_vm2, %v1820_v4, %v1821_v48  ;;  %v2689_v24 = vrot.slane %v2688_v21, 2  ;;  %v1494_v3 = vadd.f32 %v1430_v16, %v4922_v28 }
 0x281   : > { %v2026_v62 = vmax.f32 %v1994_v49, 0.0  ;;  %v1803_v10 = vadd.f32 %v1737_v8, %v1646_v34  ;;  %v2676_v50 = vmax.f32 %v2674_v25, %v2675_v14  ;;  %v2683_v18 = vmax.f32 %v2681_v43, %v2682_v5 }
 0x282   : > { %v2670_v0 = vrot.slane %v2669_v63, 1  ;;  %v1823_v19 = vrot.slane %v5534_v57, 2  ;;  %v2690_v22 = vmax.f32 %v2688_v21, %v2689_v24  ;;  %3892 = vmatmul.msk.f32.gmra.mxu3 %vm397_vm1, %v1668_v31  ;;  %3924 = vmatmul.msk.f32.gmra.mxu0 %vm397_vm1, %v1822_v13  ;;  %v1647_v35 = vadd.f32 %v5517_v52, %v1494_v3  ;;  %v1896_v13 = vpop.f32.mrf.mxu0 }
 0x283   : > { %2058 = vst.msk [vmem:[%s5115_s20 + $0x70] sm:$0xff] %vm397_vm1, %v2026_v62  ;;  %v2150_v15 = vrot.slane %v2026_v62, 2  ;;  %v2151_v46 = vrot.slane %v2026_v62, 4  ;;  %v2152_v11 = vrot.slane %v2026_v62, 6  ;;  %v2677_v28 = vrot.slane %v2676_v50, 1 }
 0x284   : > { %v2671_v4 = vmax.f32 %v2669_v63, %v2670_v0  ;;  %v2684_v16 = vrot.slane %v2683_v18, 1  ;;  %v2693_v8 = vsel %vm2300_vm3, %v2026_v62, -inf  ;;  %v2691_v20 = vrot.slane %v2690_v22, 1  ;;  %v1436_v49 = vpop.f32.mrf.mxu1 }
 0x285   : > { %v2694_v51 = vrot.slane %v2693_v8, 4  ;;  %v2700_v61 = vsel %vm2300_vm3, %v2150_v15, -inf  ;;  %v2707_v57 = vsel %vm2300_vm3, %v2151_v46, -inf  ;;  %v2678_v29 = vmax.f32 %v2676_v50, %v2677_v28  ;;  %v1743_v50 = vpop.f32.mrf.mxu3 }
 0x286   : > { %v2685_v39 = vmax.f32 %v2683_v18, %v2684_v16  ;;  %v2701_v7 = vrot.slane %v2700_v61, 4  ;;  %v5565_v1 = vsel %vm397_vm1, %v2671_v4, -inf  ;;  %v2708_v44 = vrot.slane %v2707_v57, 4  ;;  %v1589_v18 = vpop.f32.mrf.mxu2 }
 0x287   : > { %v2695_v23 = vmax.f32 %v2693_v8, %v2694_v51  ;;  %v2714_v54 = vsel %vm2300_vm3, %v2152_v11, -inf  ;;  %v5568_v6 = vmax.f32 %v2690_v22, %v2691_v20  ;;  %v5571_v32 = vsel %vm397_vm1, %v2678_v29, -inf }
 0x288   : > { %v2702_v45 = vmax.f32 %v2700_v61, %v2701_v7  ;;  %v2715_v25 = vrot.slane %v2714_v54, 4  ;;  %v5574_v43 = vsel %vm397_vm1, %v2685_v39, -inf  ;;  %v2709_v21 = vmax.f32 %v2707_v57, %v2708_v44 }
 0x289   : > { %v2696_v34 = vrot.slane %v2695_v23, 2  ;;  %v1959_v52 = vadd.f32 %v1893_v33, %v1803_v10  ;;  %v1824_v14 = vsel %vm752_vm2, %v1821_v48, %v1823_v19  ;;  %v1495_v5 = vadd.f32 %v1433_v42, %v4933_v9 }
 0x28a   : > { %v2703_v31 = vrot.slane %v2702_v45, 2  ;;  %v2716_v63 = vmax.f32 %v2714_v54, %v2715_v25  ;;  %v2710_v62 = vrot.slane %v2709_v21, 2  ;;  %3925 = vmatmul.msk.f32.gmra.mxu0 %vm397_vm1, %v1824_v14  ;;  %v1804_v0 = vadd.f32 %v1740_v38, %v1647_v35  ;;  %v1899_v14 = vpop.f32.mrf.mxu0 }
 0x28b   : > { %v2697_v24 = vmax.f32 %v2695_v23, %v2696_v34  ;;  %v1995_v3 = vadd.f32 %v5409_v17, %v1959_v52  ;;  %v1648_v10 = vadd.f32 %v1586_v59, %v1495_v5  ;;  %v1496_v15 = vadd.f32 %v1436_v49, %v4944_v36 }
 0x28c   : > { %v2704_v22 = vmax.f32 %v2702_v45, %v2703_v31  ;;  %v2717_v33 = vrot.slane %v2716_v63, 2  ;;  %v2711_v48 = vmax.f32 %v2709_v21, %v2710_v62  ;;  %v1960_v9 = vadd.f32 %v1896_v13, %v1804_v0 }
 0x28d   : > { %v2698_v46 = vrot.slane %v2697_v24, 1  ;;  %v2027_v19 = vmax.f32 %v1995_v3, 0.0  ;;  %v1805_v4 = vadd.f32 %v1743_v50, %v1648_v10  ;;  %v1649_v28 = vadd.f32 %v1589_v18, %v1496_v15  ;;  %v1439_v50 = vpop.f32.mrf.mxu1  ;;  %v1746_v10 = vpop.f32.mrf.mxu3 }
 0x28e   : > { %v2705_v42 = vrot.slane %v2704_v22, 1  ;;  %v2718_v11 = vmax.f32 %v2716_v63, %v2717_v33  ;;  %v2712_v8 = vrot.slane %v2711_v48, 1 }
 0x28f   : > { %v2699_v16 = vmax.f32 %v2697_v24, %v2698_v46  ;;  %2059 = vst.msk [vmem:[%s5115_s20 + $0x78] sm:$0xff] %vm397_vm1, %v2027_v19  ;;  %v2153_v38 = vrot.slane %v2027_v19, 2  ;;  %v2154_v20 = vrot.slane %v2027_v19, 4  ;;  %v2155_v57 = vrot.slane %v2027_v19, 6 }
 0x290   : > { %v2706_v51 = vmax.f32 %v2704_v22, %v2705_v42  ;;  %v2719_v61 = vrot.slane %v2718_v11, 1  ;;  %v2721_v59 = vsel %vm2300_vm3, %v2027_v19, -inf  ;;  %v2713_v36 = vmax.f32 %v2711_v48, %v2712_v8 }
 0x291   : > { %v3270_v29 = vsel %vm397_vm1, %v2699_v16, -inf  ;;  %v2722_v39 = vrot.slane %v2721_v59, 4  ;;  %v2728_v7 = vsel %vm2300_vm3, %v2153_v38, -inf  ;;  %v2735_v21 = vsel %vm2300_vm3, %v2154_v20, -inf }
 0x292   : > { %v2720_v35 = vmax.f32 %v2718_v11, %v2719_v61  ;;  %v3271_v23 = vmax.f32 %v5506_v12, %v3270_v29  ;;  %v3273_v44 = vsel %vm397_vm1, %v2706_v51, -inf  ;;  %v2729_v54 = vrot.slane %v2728_v7, 4 }
 0x293   : > { %v3274_v45 = vmax.f32 %v5520_v58, %v3273_v44  ;;  %v3276_v25 = vsel %vm397_vm1, %v2713_v36, -inf  ;;  %v2723_v34 = vmax.f32 %v2721_v59, %v2722_v39  ;;  %v2736_v63 = vrot.slane %v2735_v21, 4 }
 0x294   : > { %v3277_v52 = vmax.f32 %v5523_v26, %v3276_v25  ;;  %v3279_v49 = vsel %vm397_vm1, %v2720_v35, -inf  ;;  %v2730_v31 = vmax.f32 %v2728_v7, %v2729_v54  ;;  %v2742_v24 = vsel %vm2300_vm3, %v2155_v57, -inf }
 0x295   : > { %v3280_v5 = vmax.f32 %v5549_v2, %v3279_v49  ;;  %v3481_v12 = vsel %vm3453_vm4, %v3274_v45, %v3271_v23  ;;  %v2724_v13 = vrot.slane %v2723_v34, 2  ;;  %v2737_v3 = vmax.f32 %v2735_v21, %v2736_v63  ;;  %v1902_v45 = vpop.f32.mrf.mxu0 }
 0x296   : > { %v3482_v58 = vsel %vm3455_vm5, %v3277_v52, %v3481_v12  ;;  %v2731_v62 = vrot.slane %v2730_v31, 2  ;;  %v2743_v0 = vrot.slane %v2742_v24, 4  ;;  %v1996_v22 = vadd.f32 %v5409_v17, %v1960_v9 }
 0x297   : > { %v3483_v26 = vsel %vm3457_vm6, %v3280_v5, %v3482_v58  ;;  %v2725_v18 = vmax.f32 %v2723_v34, %v2724_v13  ;;  %v1961_v33 = vadd.f32 %v1899_v14, %v1805_v4  ;;  %v3290_v2 = vsel %vm397_vm1, %v5568_v6, -inf  ;;  %v1592_v5 = vpop.f32.mrf.mxu2  ;;  %v1442_v58 = vpop.f32.mrf.mxu1 }
 0x298   : > { %v2732_v15 = vmax.f32 %v2730_v31, %v2731_v62  ;;  %v2738_v46 = vrot.slane %v2737_v3, 2  ;;  %v2744_v48 = vmax.f32 %v2742_v24, %v2743_v0  ;;  %v2028_v42 = vmax.f32 %v1996_v22, 0.0 }
 0x299   : > { %v2726_v19 = vrot.slane %v2725_v18, 1  ;;  %v1997_v11 = vadd.f32 %v5409_v17, %v1961_v33  ;;  %v5603_v16 = vadd.f32 %v1439_v50, %v4955_v53  ;;  %v5605_v9 = vadd.f32 %v1746_v10, %v1649_v28 }
 0x29a   : > { %v2733_v8 = vrot.slane %v2732_v15, 1  ;;  %v2739_v38 = vmax.f32 %v2737_v3, %v2738_v46  ;;  %v2745_v20 = vrot.slane %v2744_v48, 2  ;;  %2060 = vst.msk [vmem:[%s5115_s20 + $0x80] sm:$0xff] %vm397_vm1, %v2028_v42  ;;  %v2156_v51 = vrot.slane %v2028_v42, 2 }
 0x29b   : > { %v2727_v4 = vmax.f32 %v2725_v18, %v2726_v19  ;;  %v2157_v6 = vrot.slane %v2028_v42, 4  ;;  %v2158_v61 = vrot.slane %v2028_v42, 6  ;;  %v2749_v29 = vsel %vm2300_vm3, %v2028_v42, -inf }
 0x29c   : > { %v2734_v57 = vmax.f32 %v2732_v15, %v2733_v8  ;;  %v2740_v59 = vrot.slane %v2739_v38, 1  ;;  %v2746_v36 = vmax.f32 %v2744_v48, %v2745_v20  ;;  %v2750_v53 = vrot.slane %v2749_v29, 4  ;;  %v1749_v8 = vpop.f32.mrf.mxu3 }
 0x29d   : > { %v3282_v39 = vsel %vm397_vm1, %v2727_v4, -inf  ;;  %v2756_v7 = vsel %vm2300_vm3, %v2156_v51, -inf  ;;  %v2763_v35 = vsel %vm2300_vm3, %v2157_v6, -inf  ;;  %v2770_v14 = vsel %vm2300_vm3, %v2158_v61, -inf }
 0x29e   : > { %v2741_v28 = vmax.f32 %v2739_v38, %v2740_v59  ;;  %v2747_v23 = vrot.slane %v2746_v36, 1  ;;  %v3283_v44 = vmax.f32 %v5565_v1, %v3282_v39  ;;  %v3285_v54 = vsel %vm397_vm1, %v2734_v57, -inf  ;;  %v1905_v39 = vpop.f32.mrf.mxu0 }
 0x29f   : > { %v3286_v25 = vmax.f32 %v5571_v32, %v3285_v54  ;;  %v2751_v34 = vmax.f32 %v2749_v29, %v2750_v53  ;;  %v2757_v21 = vrot.slane %v2756_v7, 4  ;;  %v2764_v52 = vrot.slane %v2763_v35, 4 }
 0x2a0   : > { %v2748_v49 = vmax.f32 %v2746_v36, %v2747_v23  ;;  %v3288_v31 = vsel %vm397_vm1, %v2741_v28, -inf  ;;  %v3484_v63 = vsel %vm3459_vm7, %v3283_v44, %v3483_v26  ;;  %v2771_v3 = vrot.slane %v2770_v14, 4 }
 0x2a1   : > { %v3289_v12 = vmax.f32 %v5574_v43, %v3288_v31  ;;  %v3485_v1 = vsel %vm3461_vm8, %v3286_v25, %v3484_v63  ;;  %v2752_v13 = vrot.slane %v2751_v34, 2  ;;  %v2758_v24 = vmax.f32 %v2756_v7, %v2757_v21  ;;  %v1445_v63 = vpop.f32.mrf.mxu1 }
 0x2a2   : > { %v3291_v32 = vsel %vm397_vm1, %v2748_v49, -inf  ;;  %v2765_v62 = vmax.f32 %v2763_v35, %v2764_v52  ;;  %v2029_v0 = vmax.f32 %v1997_v11, 0.0  ;;  %v2772_v10 = vmax.f32 %v2770_v14, %v2771_v3 }
 0x2a3   : > { %v3292_v50 = vmax.f32 %v3290_v2, %v3291_v32  ;;  %v3486_v26 = vsel %vm3463_vm9, %v3289_v12, %v3485_v1  ;;  %v2753_v18 = vmax.f32 %v2751_v34, %v2752_v13  ;;  %v2759_v22 = vrot.slane %v2758_v24, 2  ;;  %v1595_v34 = vpop.f32.mrf.mxu2 }
 0x2a4   : > { %v2766_v33 = vrot.slane %v2765_v62, 2  ;;  %2061 = vst.msk [vmem:[%s5115_s20 + $0x88] sm:$0xff] %vm397_vm1, %v2029_v0  ;;  %v2159_v43 = vrot.slane %v2029_v0, 2  ;;  %v2160_v15 = vrot.slane %v2029_v0, 4  ;;  %v2161_v42 = vrot.slane %v2029_v0, 6 }
 0x2a5   : > { %v3487_v46 = vsel %vm3465_vm10, %v3292_v50, %v3486_v26  ;;  %v2754_v48 = vrot.slane %v2753_v18, 1  ;;  %v2760_v19 = vmax.f32 %v2758_v24, %v2759_v22  ;;  %v2773_v2 = vrot.slane %v2772_v10, 2  ;;  %v1752_v22 = vpop.f32.mrf.mxu3 }
 0x2a6   : > { %3527 = vst.msk [vmem:[%s5261_s23 + $0x18] sm:$0xff] %vm397_vm1, %v3487_v46  ;;  %v2767_v11 = vmax.f32 %v2765_v62, %v2766_v33  ;;  %v2777_v38 = vsel %vm2300_vm3, %v2029_v0, -inf  ;;  %v2784_v20 = vsel %vm2300_vm3, %v2159_v43, -inf  ;;  %v2791_v36 = vsel %vm2300_vm3, %v2160_v15, -inf }
 0x2a7   : > { %v2755_v4 = vmax.f32 %v2753_v18, %v2754_v48  ;;  %v2761_v51 = vrot.slane %v2760_v19, 1  ;;  %v2778_v6 = vrot.slane %v2777_v38, 4  ;;  %v2785_v61 = vrot.slane %v2784_v20, 4 }
 0x2a8   : > { %v2768_v57 = vrot.slane %v2767_v11, 1  ;;  %v2774_v59 = vmax.f32 %v2772_v10, %v2773_v2  ;;  %v2798_v29 = vsel %vm2300_vm3, %v2161_v42, -inf  ;;  %v1650_v28 = vadd.f32 %v1592_v5, %v5603_v16  ;;  %v5651_v2 = vpop.f32.mrf.mxu0 }
 0x2a9   : > { %v2762_v53 = vmax.f32 %v2760_v19, %v2761_v51  ;;  %v2779_v7 = vmax.f32 %v2777_v38, %v2778_v6  ;;  %v2786_v35 = vmax.f32 %v2784_v20, %v2785_v61  ;;  %v2792_v54 = vrot.slane %v2791_v36, 4 }
 0x2aa   : > { %v2769_v23 = vmax.f32 %v2767_v11, %v2768_v57  ;;  %v2775_v44 = vrot.slane %v2774_v59, 1  ;;  %v2799_v25 = vrot.slane %v2798_v29, 4  ;;  %v5634_v21 = vsel %vm397_vm1, %v2755_v4, -inf }
 0x2ab   : > { %v2780_v52 = vrot.slane %v2779_v7, 2  ;;  %v2787_v49 = vrot.slane %v2786_v35, 2  ;;  %v1962_v31 = vadd.f32 %v1902_v45, %v5605_v9  ;;  %v5638_v12 = vsel %vm397_vm1, %v2762_v53, -inf }
 0x2ac   : > { %v2776_v14 = vmax.f32 %v2774_v59, %v2775_v44  ;;  %v2793_v1 = vmax.f32 %v2791_v36, %v2792_v54  ;;  %v2800_v13 = vmax.f32 %v2798_v29, %v2799_v25  ;;  %v5641_v16 = vsel %vm397_vm1, %v2769_v23, -inf  ;;  %v1598_v36 = vpop.f32.mrf.mxu2 }
 0x2ad   : > { %v2781_v5 = vmax.f32 %v2779_v7, %v2780_v52  ;;  %v2788_v24 = vmax.f32 %v2786_v35, %v2787_v49  ;;  %v1998_v32 = vadd.f32 %v5409_v17, %v1962_v31  ;;  %v1498_v0 = vadd.f32 %v1442_v58, %v4966_v60  ;;  %v1448_v35 = vpop.f32.mrf.mxu1 }
 0x2ae   : > { %v2794_v62 = vrot.slane %v2793_v1, 2  ;;  %v2801_v3 = vrot.slane %v2800_v13, 2  ;;  %v1807_v9 = vadd.f32 %v1749_v8, %v1650_v28  ;;  %v5646_v45 = vsel %vm397_vm1, %v2776_v14, -inf }
 0x2af   : > { %v2782_v50 = vrot.slane %v2781_v5, 1  ;;  %v2789_v26 = vrot.slane %v2788_v24, 1  ;;  %v2030_v18 = vmax.f32 %v1998_v32, 0.0  ;;  %v1651_v15 = vadd.f32 %v1595_v34, %v1498_v0 }
 0x2b0   : > { %v2795_v33 = vmax.f32 %v2793_v1, %v2794_v62  ;;  %v2802_v10 = vmax.f32 %v2800_v13, %v2801_v3  ;;  %v1963_v43 = vadd.f32 %v1905_v39, %v1807_v9  ;;  %v1499_v51 = vadd.f32 %v1445_v63, %v4977_v47 }
 0x2b1   : > { %v2783_v46 = vmax.f32 %v2781_v5, %v2782_v50  ;;  %v2790_v48 = vmax.f32 %v2788_v24, %v2789_v26  ;;  %2062 = vst.msk [vmem:[%s5115_s20 + $0x90] sm:$0xff] %vm397_vm1, %v2030_v18  ;;  %v2162_v19 = vrot.slane %v2030_v18, 2  ;;  %v2163_v42 = vrot.slane %v2030_v18, 4  ;;  %v1755_v24 = vpop.f32.mrf.mxu3 }
 0x2b2   : > { %v2796_v11 = vrot.slane %v2795_v33, 1  ;;  %v2803_v60 = vrot.slane %v2802_v10, 1  ;;  %v2164_v58 = vrot.slane %v2030_v18, 6  ;;  %v2805_v8 = vsel %vm2300_vm3, %v2030_v18, -inf }
 0x2b3   : > { %v5654_v38 = vsel %vm397_vm1, %v2783_v46, -inf  ;;  %v2806_v20 = vrot.slane %v2805_v8, 4  ;;  %v2812_v4 = vsel %vm2300_vm3, %v2162_v19, -inf  ;;  %v5659_v61 = vsel %vm397_vm1, %v2790_v48, -inf }
 0x2b4   : > { %v2797_v6 = vmax.f32 %v2795_v33, %v2796_v11  ;;  %v2813_v57 = vrot.slane %v2812_v4, 4  ;;  %v2819_v59 = vsel %vm2300_vm3, %v2163_v42, -inf  ;;  %v2826_v53 = vsel %vm2300_vm3, %v2164_v58, -inf }
 0x2b5   : > { %v2807_v29 = vmax.f32 %v2805_v8, %v2806_v20  ;;  %v2820_v39 = vrot.slane %v2819_v59, 4  ;;  %v1999_v7 = vadd.f32 %v5409_v17, %v1963_v43  ;;  %v5664_v28 = vmax.f32 %v2802_v10, %v2803_v60  ;;  %v1911_v43 = vpop.f32.mrf.mxu0  ;;  %v1601_v8 = vpop.f32.mrf.mxu2 }
 0x2b6   : > { %v5667_v47 = vsel %vm397_vm1, %v2797_v6, -inf  ;;  %v2814_v23 = vmax.f32 %v2812_v4, %v2813_v57  ;;  %v2827_v44 = vrot.slane %v2826_v53, 4  ;;  %v1808_v52 = vadd.f32 %v1752_v22, %v1651_v15 }
 0x2b7   : > { %v2808_v54 = vrot.slane %v2807_v29, 2  ;;  %v2821_v25 = vmax.f32 %v2819_v59, %v2820_v39  ;;  %v2031_v34 = vmax.f32 %v1999_v7, 0.0  ;;  %v1652_v63 = vadd.f32 %v1598_v36, %v1499_v51 }
 0x2b8   : > { %v2815_v49 = vrot.slane %v2814_v23, 2  ;;  %v2828_v31 = vmax.f32 %v2826_v53, %v2827_v44  ;;  %v5670_v14 = vadd.f32 %v1448_v35, %v4988_v41 }
 0x2b9   : > { %v2809_v17 = vmax.f32 %v2807_v29, %v2808_v54  ;;  %v2822_v1 = vrot.slane %v2821_v25, 2  ;;  %2063 = vst.msk [vmem:[%s5115_s20 + $0x98] sm:$0xff] %vm397_vm1, %v2031_v34  ;;  %v2165_v13 = vrot.slane %v2031_v34, 2  ;;  %v2166_v5 = vrot.slane %v2031_v34, 4 }
 0x2ba   : > { %v2816_v32 = vmax.f32 %v2814_v23, %v2815_v49  ;;  %v2829_v62 = vrot.slane %v2828_v31, 2  ;;  %v2167_v3 = vrot.slane %v2031_v34, 6  ;;  %v2833_v0 = vsel %vm2300_vm3, %v2031_v34, -inf }
 0x2bb   : > { %v2810_v9 = vrot.slane %v2809_v17, 1  ;;  %v2823_v50 = vmax.f32 %v2821_v25, %v2822_v1  ;;  %v2834_v26 = vrot.slane %v2833_v0, 4  ;;  %v2840_v18 = vsel %vm2300_vm3, %v2165_v13, -inf }
 0x2bc   : > { %v2817_v22 = vrot.slane %v2816_v32, 1  ;;  %v2830_v41 = vmax.f32 %v2828_v31, %v2829_v62  ;;  %v2841_v33 = vrot.slane %v2840_v18, 4  ;;  %v2847_v10 = vsel %vm2300_vm3, %v2166_v5, -inf }
 0x2bd   : > { %v2811_v15 = vmax.f32 %v2809_v17, %v2810_v9  ;;  %v2824_v46 = vrot.slane %v2823_v50, 1  ;;  %v2835_v48 = vmax.f32 %v2833_v0, %v2834_v26  ;;  %v2848_v19 = vrot.slane %v2847_v10, 4  ;;  %v1758_v17 = vpop.f32.mrf.mxu3  ;;  %v5690_v0 = vpop.f32.mrf.mxu1 }
 0x2be   : > { %v2818_v42 = vmax.f32 %v2816_v32, %v2817_v22  ;;  %v2831_v11 = vrot.slane %v2830_v41, 1  ;;  %v2842_v60 = vmax.f32 %v2840_v18, %v2841_v33  ;;  %v2854_v58 = vsel %vm2300_vm3, %v2167_v3, -inf  ;;  %v5699_v22 = vpop.f32.mrf.mxu0 }
 0x2bf   : > { %v2825_v20 = vmax.f32 %v2823_v50, %v2824_v46  ;;  %v3294_v4 = vsel %vm397_vm1, %v2811_v15, -inf  ;;  %v2836_v51 = vrot.slane %v2835_v48, 2  ;;  %v2849_v6 = vmax.f32 %v2847_v10, %v2848_v19  ;;  %v5695_v50 = vld [vmem:[%s6011_s2] ss:$0 sm:$0xff]  ;;  %v5706_v46 = vpop.f32.mrf.mxu2 }
 0x2c0   : > { %v2832_v57 = vmax.f32 %v2830_v41, %v2831_v11  ;;  %v3295_v59 = vmax.f32 %v5634_v21, %v3294_v4  ;;  %v3297_v36 = vsel %vm397_vm1, %v2818_v42, -inf  ;;  %v2843_v29 = vrot.slane %v2842_v60, 2 }
 0x2c1   : > { %v3298_v39 = vmax.f32 %v5638_v12, %v3297_v36  ;;  %v3300_v53 = vsel %vm397_vm1, %v2825_v20, -inf  ;;  %v2837_v7 = vmax.f32 %v2835_v48, %v2836_v51  ;;  %v2850_v35 = vrot.slane %v2849_v6, 2 }
 0x2c2   : > { %v3301_v23 = vmax.f32 %v5641_v16, %v3300_v53  ;;  %v3303_v44 = vsel %vm397_vm1, %v2832_v57, -inf  ;;  %v2844_v54 = vmax.f32 %v2842_v60, %v2843_v29  ;;  %v2855_v25 = vrot.slane %v2854_v58, 4 }
 0x2c3   : > { %v3304_v34 = vmax.f32 %v5646_v45, %v3303_v44  ;;  %v3488_v49 = vsel %vm3453_vm4, %v3298_v39, %v3295_v59  ;;  %v2838_v21 = vrot.slane %v2837_v7, 1  ;;  %v2851_v31 = vmax.f32 %v2849_v6, %v2850_v35 }
 0x2c4   : > { %v3489_v1 = vsel %vm3455_vm5, %v3301_v23, %v3488_v49  ;;  %v2845_v12 = vrot.slane %v2844_v54, 1  ;;  %v2856_v13 = vmax.f32 %v2854_v58, %v2855_v25  ;;  %v1964_v5 = vadd.f32 %v5651_v2, %v1808_v52 }
 0x2c5   : > { %v3490_v32 = vsel %vm3457_vm6, %v3304_v34, %v3489_v1  ;;  %v2839_v16 = vmax.f32 %v2837_v7, %v2838_v21  ;;  %v2852_v62 = vrot.slane %v2851_v31, 1  ;;  %v1809_v3 = vadd.f32 %v1755_v24, %v1652_v63  ;;  %v5723_v29 = vpop.f32.mrf.mxu3  ;;  %v1454_v34 = vpop.f32.mrf.mxu1 }
 0x2c6   : > { %v2846_v9 = vmax.f32 %v2844_v54, %v2845_v12  ;;  %v2857_v45 = vrot.slane %v2856_v13, 2  ;;  %v2000_v26 = vadd.f32 %v5695_v50, %v1964_v5  ;;  %v1653_v18 = vadd.f32 %v1601_v8, %v5670_v14  ;;  %v5728_v1 = vpop.f32.mrf.mxu0 }
 0x2c7   : > { %v3314_v2 = vsel %vm397_vm1, %v5664_v28, -inf  ;;  %v2853_v52 = vmax.f32 %v2851_v31, %v2852_v62  ;;  %v3306_v63 = vsel %vm397_vm1, %v2839_v16, -inf  ;;  %v1965_v24 = vadd.f32 %v1911_v43, %v1809_v3 }
 0x2c8   : > { %v2858_v41 = vmax.f32 %v2856_v13, %v2857_v45  ;;  %v3307_v33 = vmax.f32 %v5654_v38, %v3306_v63  ;;  %v3309_v10 = vsel %vm397_vm1, %v2846_v9, -inf  ;;  %v2032_v15 = vmax.f32 %v2000_v26, 0.0  ;;  %v1607_v45 = vpop.f32.mrf.mxu2 }
 0x2c9   : > { %v3310_v14 = vmax.f32 %v5659_v61, %v3309_v10  ;;  %v3312_v48 = vsel %vm397_vm1, %v2853_v52, -inf  ;;  %v2001_v19 = vadd.f32 %v5695_v50, %v1965_v24  ;;  %v5711_v28 = vadd.f32 %v1758_v17, %v1653_v18 }
 0x2ca   : > { %v2859_v42 = vrot.slane %v2858_v41, 1  ;;  %v3313_v11 = vmax.f32 %v5667_v47, %v3312_v48  ;;  %v3491_v43 = vsel %vm3459_vm7, %v3307_v33, %v3490_v32  ;;  %2064 = vst.msk [vmem:[%s5115_s20 + $0xa0] sm:$0xff] %vm397_vm1, %v2032_v15  ;;  %v2168_v38 = vrot.slane %v2032_v15, 2 }
 0x2cb   : > { %v3492_v60 = vsel %vm3461_vm8, %v3310_v14, %v3491_v43  ;;  %v2169_v58 = vrot.slane %v2032_v15, 4  ;;  %v2170_v8 = vrot.slane %v2032_v15, 6  ;;  %v2861_v61 = vsel %vm2300_vm3, %v2032_v15, -inf }
 0x2cc   : > { %v2860_v20 = vmax.f32 %v2858_v41, %v2859_v42  ;;  %v3493_v4 = vsel %vm3463_vm9, %v3313_v11, %v3492_v60  ;;  %v2862_v51 = vrot.slane %v2861_v61, 4  ;;  %v2868_v6 = vsel %vm2300_vm3, %v2168_v38, -inf }
 0x2cd   : > { %v2869_v57 = vrot.slane %v2868_v6, 4  ;;  %v2875_v47 = vsel %vm2300_vm3, %v2169_v58, -inf  ;;  %v2882_v59 = vsel %vm2300_vm3, %v2170_v8, -inf  ;;  %v2033_v36 = vmax.f32 %v2001_v19, 0.0 }
 0x2ce   : > { %v3315_v39 = vsel %vm397_vm1, %v2860_v20, -inf  ;;  %v2863_v53 = vmax.f32 %v2861_v61, %v2862_v51  ;;  %v2876_v7 = vrot.slane %v2875_v47, 4  ;;  %v2883_v35 = vrot.slane %v2882_v59, 4  ;;  %v1764_v61 = vpop.f32.mrf.mxu3 }
 0x2cf   : > { %v3316_v23 = vmax.f32 %v3314_v2, %v3315_v39  ;;  %v2870_v44 = vmax.f32 %v2868_v6, %v2869_v57  ;;  %2065 = vst.msk [vmem:[%s5115_s20 + $0xa8] sm:$0xff] %vm397_vm1, %v2033_v36  ;;  %v2171_v54 = vrot.slane %v2033_v36, 2  ;;  %v2172_v25 = vrot.slane %v2033_v36, 4 }
 0x2d0   : > { %v2864_v49 = vrot.slane %v2863_v53, 2  ;;  %v2877_v21 = vmax.f32 %v2875_v47, %v2876_v7  ;;  %v2884_v31 = vmax.f32 %v2882_v59, %v2883_v35  ;;  %v2173_v17 = vrot.slane %v2033_v36, 6 }
 0x2d1   : > { %v3494_v12 = vsel %vm3465_vm10, %v3316_v23, %v3493_v4  ;;  %v2871_v13 = vrot.slane %v2870_v44, 2  ;;  %v2889_v5 = vsel %vm2300_vm3, %v2033_v36, -inf  ;;  %v2896_v32 = vsel %vm2300_vm3, %v2171_v54, -inf  ;;  %v1457_v36 = vpop.f32.mrf.mxu1  ;;  %v1920_v23 = vpop.f32.mrf.mxu0 }
 0x2d2   : > { %3528 = vst.msk [vmem:[%s5261_s23 + $0x20] sm:$0xff] %vm397_vm1, %v3494_v12  ;;  %v2865_v16 = vmax.f32 %v2863_v53, %v2864_v49  ;;  %v2878_v62 = vrot.slane %v2877_v21, 2  ;;  %v2885_v3 = vrot.slane %v2884_v31, 2  ;;  %v2890_v9 = vrot.slane %v2889_v5, 4 }
 0x2d3   : > { %v2872_v26 = vmax.f32 %v2870_v44, %v2871_v13  ;;  %v2897_v18 = vrot.slane %v2896_v32, 4  ;;  %v2903_v2 = vsel %vm2300_vm3, %v2172_v25, -inf  ;;  %v2910_v52 = vsel %vm2300_vm3, %v2173_v17, -inf  ;;  %v1610_v17 = vpop.f32.mrf.mxu2 }
 0x2d4   : > { %v2866_v63 = vrot.slane %v2865_v16, 1  ;;  %v2879_v24 = vmax.f32 %v2877_v21, %v2878_v62  ;;  %v2886_v41 = vmax.f32 %v2884_v31, %v2885_v3  ;;  %v2891_v33 = vmax.f32 %v2889_v5, %v2890_v9 }
 0x2d5   : > { %v2873_v10 = vrot.slane %v2872_v26, 1  ;;  %v2898_v15 = vmax.f32 %v2896_v32, %v2897_v18  ;;  %v2904_v14 = vrot.slane %v2903_v2, 4  ;;  %v2911_v48 = vrot.slane %v2910_v52, 4 }
 0x2d6   : > { %v2867_v19 = vmax.f32 %v2865_v16, %v2866_v63  ;;  %v2880_v42 = vrot.slane %v2879_v24, 1  ;;  %v2887_v11 = vrot.slane %v2886_v41, 1  ;;  %v2892_v43 = vrot.slane %v2891_v33, 2  ;;  %v1767_v63 = vpop.f32.mrf.mxu3 }
 0x2d7   : > { %v2874_v38 = vmax.f32 %v2872_v26, %v2873_v10  ;;  %v2899_v60 = vrot.slane %v2898_v15, 2  ;;  %v2905_v58 = vmax.f32 %v2903_v2, %v2904_v14  ;;  %v2912_v8 = vmax.f32 %v2910_v52, %v2911_v48 }
 0x2d8   : > { %v2881_v20 = vmax.f32 %v2879_v24, %v2880_v42  ;;  %v2893_v4 = vmax.f32 %v2891_v33, %v2892_v43  ;;  %v1501_v51 = vadd.f32 %v5690_v0, %v4999_v30  ;;  %v2888_v6 = vmax.f32 %v2886_v41, %v2887_v11 }
 0x2d9   : > { %v2900_v57 = vmax.f32 %v2898_v15, %v2899_v60  ;;  %v2906_v47 = vrot.slane %v2905_v58, 2  ;;  %v2913_v59 = vrot.slane %v2912_v8, 2  ;;  %v5740_v39 = vsel %vm397_vm1, %v2867_v19, -inf  ;;  %v5777_v43 = vpop.f32.mrf.mxu1  ;;  %v1923_v60 = vpop.f32.mrf.mxu0 }
 0x2da   : > { %v5743_v53 = vsel %vm397_vm1, %v2874_v38, -inf  ;;  %v2894_v7 = vrot.slane %v2893_v4, 1  ;;  %v1966_v35 = vadd.f32 %v5699_v22, %v5711_v28  ;;  %v1654_v30 = vadd.f32 %v5706_v46, %v1501_v51 }
 0x2db   : > { %v2901_v44 = vrot.slane %v2900_v57, 1  ;;  %v2907_v54 = vmax.f32 %v2905_v58, %v2906_v47  ;;  %v2914_v25 = vmax.f32 %v2912_v8, %v2913_v59  ;;  %v1502_v21 = vadd.f32 %v1454_v34, %v5010_v40 }
 0x2dc   : > { %v2895_v0 = vmax.f32 %v2893_v4, %v2894_v7  ;;  %v2002_v49 = vadd.f32 %v5695_v50, %v1966_v35  ;;  %v1503_v31 = vadd.f32 %v1457_v36, %v5021_v27  ;;  %v1811_v22 = vadd.f32 %v5723_v29, %v1654_v30 }
 0x2dd   : > { %v2902_v12 = vmax.f32 %v2900_v57, %v2901_v44  ;;  %v2908_v13 = vrot.slane %v2907_v54, 1  ;;  %v2915_v5 = vrot.slane %v2914_v25, 1  ;;  %v5753_v28 = vsel %vm397_vm1, %v2881_v20, -inf }
 0x2de   : > { %v5756_v32 = vsel %vm397_vm1, %v2888_v6, -inf  ;;  %v2034_v46 = vmax.f32 %v2002_v49, 0.0  ;;  %v1655_v16 = vadd.f32 %v1607_v45, %v1502_v21  ;;  %v5759_v3 = vsel %vm397_vm1, %v2895_v0, -inf }
 0x2df   : > { %v2909_v62 = vmax.f32 %v2907_v54, %v2908_v13  ;;  %v1967_v40 = vadd.f32 %v5728_v1, %v1811_v22  ;;  %v1656_v27 = vadd.f32 %v1610_v17, %v1503_v31  ;;  %v5765_v18 = vmax.f32 %v2914_v25, %v2915_v5  ;;  %v5785_v13 = vpop.f32.mrf.mxu2 }
 0x2e0   : > { %2066 = vst.msk [vmem:[%s5115_s20 + $0xb0] sm:$0xff] %vm397_vm1, %v2034_v46  ;;  %v2174_v34 = vrot.slane %v2034_v46, 2  ;;  %v2175_v9 = vrot.slane %v2034_v46, 4  ;;  %v2176_v29 = vrot.slane %v2034_v46, 6  ;;  %v2917_v26 = vsel %vm2300_vm3, %v2034_v46, -inf }
 0x2e1   : > { %v5768_v2 = vsel %vm397_vm1, %v2902_v12, -inf  ;;  %v2918_v45 = vrot.slane %v2917_v26, 4  ;;  %v2003_v52 = vadd.f32 %v5695_v50, %v1967_v40  ;;  %v1812_v33 = vadd.f32 %v1764_v61, %v1655_v16 }
 0x2e2   : > { %v2924_v24 = vsel %vm2300_vm3, %v2174_v34, -inf  ;;  %v2931_v1 = vsel %vm2300_vm3, %v2175_v9, -inf  ;;  %v2938_v41 = vsel %vm2300_vm3, %v2176_v29, -inf  ;;  %v5775_v19 = vsel %vm397_vm1, %v2909_v62, -inf  ;;  %v5787_v9 = vpop.f32.mrf.mxu3 }
 0x2e3   : > { %v2919_v10 = vmax.f32 %v2917_v26, %v2918_v45  ;;  %v2925_v15 = vrot.slane %v2924_v24, 4  ;;  %v2932_v14 = vrot.slane %v2931_v1, 4  ;;  %v2939_v48 = vrot.slane %v2938_v41, 4 }
 0x2e4   : > { %v2035_v42 = vmax.f32 %v2003_v52, 0.0  ;;  %v1968_v11 = vadd.f32 %v1920_v23, %v1812_v33  ;;  %v1813_v38 = vadd.f32 %v1767_v63, %v1656_v27  ;;  %v5791_v33 = vpop.f32.mrf.mxu1 }
 0x2e5   : > { %v2920_v58 = vrot.slane %v2919_v10, 2  ;;  %v2926_v8 = vmax.f32 %v2924_v24, %v2925_v15  ;;  %v2933_v20 = vmax.f32 %v2931_v1, %v2932_v14  ;;  %v2940_v4 = vmax.f32 %v2938_v41, %v2939_v48 }
 0x2e6   : > { %2067 = vst.msk [vmem:[%s5115_s20 + $0xb8] sm:$0xff] %vm397_vm1, %v2035_v42  ;;  %v2177_v61 = vrot.slane %v2035_v42, 2  ;;  %v2178_v51 = vrot.slane %v2035_v42, 4  ;;  %v2179_v6 = vrot.slane %v2035_v42, 6  ;;  %v2945_v57 = vsel %vm2300_vm3, %v2035_v42, -inf }
 0x2e7   : > { %v2921_v47 = vmax.f32 %v2919_v10, %v2920_v58  ;;  %v2927_v59 = vrot.slane %v2926_v8, 2  ;;  %v2934_v36 = vrot.slane %v2933_v20, 2  ;;  %v2941_v7 = vrot.slane %v2940_v4, 2  ;;  %v5793_v10 = vpop.f32.mrf.mxu0 }
 0x2e8   : > { %v2946_v35 = vrot.slane %v2945_v57, 4  ;;  %v2952_v23 = vsel %vm2300_vm3, %v2177_v61, -inf  ;;  %v2959_v44 = vsel %vm2300_vm3, %v2178_v51, -inf  ;;  %v2966_v54 = vsel %vm2300_vm3, %v2179_v6, -inf }
 0x2e9   : > { %v2922_v25 = vrot.slane %v2921_v47, 1  ;;  %v2928_v30 = vmax.f32 %v2926_v8, %v2927_v59  ;;  %v2935_v0 = vmax.f32 %v2933_v20, %v2934_v36  ;;  %v2942_v49 = vmax.f32 %v2940_v4, %v2941_v7 }
 0x2ea   : > { %v2947_v21 = vmax.f32 %v2945_v57, %v2946_v35  ;;  %v2953_v31 = vrot.slane %v2952_v23, 4  ;;  %v2960_v17 = vrot.slane %v2959_v44, 4  ;;  %v2967_v12 = vrot.slane %v2966_v54, 4 }
 0x2eb   : > { %v2923_v5 = vmax.f32 %v2921_v47, %v2922_v25  ;;  %v2929_v22 = vrot.slane %v2928_v30, 1  ;;  %v2936_v46 = vrot.slane %v2935_v0, 1  ;;  %v2943_v16 = vrot.slane %v2942_v49, 1 }
 0x2ec   : > { %v2948_v62 = vrot.slane %v2947_v21, 2  ;;  %v2954_v40 = vmax.f32 %v2952_v23, %v2953_v31  ;;  %v2961_v27 = vmax.f32 %v2959_v44, %v2960_v17  ;;  %v2968_v34 = vmax.f32 %v2966_v54, %v2967_v12  ;;  %v5809_v54 = vpop.f32.mrf.mxu2  ;;  %v5815_v31 = vpop.f32.mrf.mxu3 }
 0x2ed   : > { %v2930_v29 = vmax.f32 %v2928_v30, %v2929_v22  ;;  %v2937_v26 = vmax.f32 %v2935_v0, %v2936_v46  ;;  %v2944_v45 = vmax.f32 %v2942_v49, %v2943_v16  ;;  %v3318_v52 = vsel %vm397_vm1, %v2923_v5, -inf }
 0x2ee   : > { %v3319_v63 = vmax.f32 %v5740_v39, %v3318_v52  ;;  %v2949_v24 = vmax.f32 %v2947_v21, %v2948_v62  ;;  %v2955_v1 = vrot.slane %v2954_v40, 2  ;;  %v2962_v41 = vrot.slane %v2961_v27, 2 }
 0x2ef   : > { %v3321_v15 = vsel %vm397_vm1, %v2930_v29, -inf  ;;  %v3324_v14 = vsel %vm397_vm1, %v2937_v26, -inf  ;;  %v3327_v48 = vsel %vm397_vm1, %v2944_v45, -inf  ;;  %v2969_v42 = vrot.slane %v2968_v34, 2 }
 0x2f0   : > { %v3322_v58 = vmax.f32 %v5743_v53, %v3321_v15  ;;  %v3325_v8 = vmax.f32 %v5753_v28, %v3324_v14  ;;  %v3328_v39 = vmax.f32 %v5756_v32, %v3327_v48  ;;  %v2950_v20 = vrot.slane %v2949_v24, 1 }
 0x2f1   : > { %v2956_v4 = vmax.f32 %v2954_v40, %v2955_v1  ;;  %v2963_v61 = vmax.f32 %v2961_v27, %v2962_v41  ;;  %v2970_v51 = vmax.f32 %v2968_v34, %v2969_v42  ;;  %v2004_v6 = vadd.f32 %v5695_v50, %v1968_v11  ;;  %v5823_v40 = vpop.f32.mrf.mxu1  ;;  %v5825_v27 = vpop.f32.mrf.mxu0 }
 0x2f2   : > { %v3338_v57 = vsel %vm397_vm1, %v5765_v18, -inf  ;;  %v3495_v47 = vsel %vm3453_vm4, %v3322_v58, %v3319_v63  ;;  %v2951_v59 = vmax.f32 %v2949_v24, %v2950_v20  ;;  %v1969_v36 = vadd.f32 %v1923_v60, %v1813_v38 }
 0x2f3   : > { %v3496_v53 = vsel %vm3455_vm5, %v3325_v8, %v3495_v47  ;;  %v2957_v7 = vrot.slane %v2956_v4, 1  ;;  %v2964_v28 = vrot.slane %v2963_v61, 1  ;;  %v2971_v35 = vrot.slane %v2970_v51, 1 }
 0x2f4   : > { %v3497_v32 = vsel %vm3457_vm6, %v3328_v39, %v3496_v53  ;;  %v3330_v23 = vsel %vm397_vm1, %v2951_v59, -inf  ;;  %v2036_v44 = vmax.f32 %v2004_v6, 0.0  ;;  %v2005_v11 = vadd.f32 %v5695_v50, %v1969_v36  ;;  %v1619_v47 = vpop.f32.mrf.mxu2 }
 0x2f5   : > { %v2958_v18 = vmax.f32 %v2956_v4, %v2957_v7  ;;  %v2965_v25 = vmax.f32 %v2963_v61, %v2964_v28  ;;  %v2972_v30 = vmax.f32 %v2970_v51, %v2971_v35  ;;  %v3331_v0 = vmax.f32 %v5759_v3, %v3330_v23  ;;  %v1776_v23 = vpop.f32.mrf.mxu3 }
 0x2f6   : > { %2068 = vst.msk [vmem:[%s5115_s20 + $0xc0] sm:$0xff] %vm397_vm1, %v2036_v44  ;;  %v2180_v38 = vrot.slane %v2036_v44, 2  ;;  %v2181_v60 = vrot.slane %v2036_v44, 4  ;;  %v2182_v49 = vrot.slane %v2036_v44, 6  ;;  %v2973_v21 = vsel %vm2300_vm3, %v2036_v44, -inf }
 0x2f7   : > { %v3333_v17 = vsel %vm397_vm1, %v2958_v18, -inf  ;;  %v3336_v12 = vsel %vm397_vm1, %v2965_v25, -inf  ;;  %v3339_v5 = vsel %vm397_vm1, %v2972_v30, -inf  ;;  %v3498_v22 = vsel %vm3459_vm7, %v3331_v0, %v3497_v32 }
 0x2f8   : > { %v3334_v46 = vmax.f32 %v5768_v2, %v3333_v17  ;;  %v3337_v3 = vmax.f32 %v5775_v19, %v3336_v12  ;;  %v3340_v16 = vmax.f32 %v3338_v57, %v3339_v5  ;;  %v2974_v62 = vrot.slane %v2973_v21, 4 }
 0x2f9   : > { %v2980_v34 = vsel %vm2300_vm3, %v2180_v38, -inf  ;;  %v2987_v29 = vsel %vm2300_vm3, %v2181_v60, -inf  ;;  %v2994_v26 = vsel %vm2300_vm3, %v2182_v49, -inf  ;;  %v2037_v45 = vmax.f32 %v2005_v11, 0.0  ;;  %v1469_v60 = vpop.f32.mrf.mxu1  ;;  %v1932_v49 = vpop.f32.mrf.mxu0 }
 0x2fa   : > { %v3499_v52 = vsel %vm3461_vm8, %v3334_v46, %v3498_v22  ;;  %v2975_v2 = vmax.f32 %v2973_v21, %v2974_v62  ;;  %v2981_v63 = vrot.slane %v2980_v34, 4  ;;  %v2988_v24 = vrot.slane %v2987_v29, 4 }
 0x2fb   : > { %v3500_v19 = vsel %vm3463_vm9, %v3337_v3, %v3499_v52  ;;  %v2995_v1 = vrot.slane %v2994_v26, 4  ;;  %2069 = vst.msk [vmem:[%s5115_s20 + $0xc8] sm:$0xff] %vm397_vm1, %v2037_v45  ;;  %v2183_v41 = vrot.slane %v2037_v45, 2  ;;  %v2184_v15 = vrot.slane %v2037_v45, 4 }
 0x2fc   : > { %v3501_v14 = vsel %vm3465_vm10, %v3340_v16, %v3500_v19  ;;  %v2976_v48 = vrot.slane %v2975_v2, 2  ;;  %v2982_v42 = vmax.f32 %v2980_v34, %v2981_v63  ;;  %v2989_v58 = vmax.f32 %v2987_v29, %v2988_v24 }
 0x2fd   : > { %3529 = vst.msk [vmem:[%s5261_s23 + $0x28] sm:$0xff] %vm397_vm1, %v3501_v14  ;;  %v2996_v8 = vmax.f32 %v2994_v26, %v2995_v1  ;;  %v2185_v39 = vrot.slane %v2037_v45, 6  ;;  %v3001_v20 = vsel %vm2300_vm3, %v2037_v45, -inf  ;;  %v3008_v4 = vsel %vm2300_vm3, %v2183_v41, -inf  ;;  %v1622_v41 = vpop.f32.mrf.mxu2 }
 0x2fe   : > { %v2977_v61 = vmax.f32 %v2975_v2, %v2976_v48  ;;  %v2983_v51 = vrot.slane %v2982_v42, 2  ;;  %v2990_v6 = vrot.slane %v2989_v58, 2  ;;  %v3002_v57 = vrot.slane %v3001_v20, 4 }
 0x2ff   : > { %v2997_v59 = vrot.slane %v2996_v8, 2  ;;  %v3009_v36 = vrot.slane %v3008_v4, 4  ;;  %v3015_v53 = vsel %vm2300_vm3, %v2184_v15, -inf  ;;  %v3022_v7 = vsel %vm2300_vm3, %v2185_v39, -inf }
 0x300   : > { %v2984_v28 = vmax.f32 %v2982_v42, %v2983_v51  ;;  %v2991_v35 = vmax.f32 %v2989_v58, %v2990_v6  ;;  %v3003_v32 = vmax.f32 %v3001_v20, %v3002_v57  ;;  %v3016_v18 = vrot.slane %v3015_v53, 4  ;;  %v6231_v42 = vld [vmem:[#allocation18_spill] sm:$0xff]  ;;  %v1779_v20 = vpop.f32.mrf.mxu3 }
 0x301   : > { %v2998_v44 = vmax.f32 %v2996_v8, %v2997_v59  ;;  %v3010_v11 = vmax.f32 %v3008_v4, %v3009_v36  ;;  %v3023_v25 = vrot.slane %v3022_v7, 4  ;;  %v2978_v30 = vrot.slane %v2977_v61, 1  ;;  %v1935_v57 = vpop.f32.mrf.mxu0 }
 0x302   : > { %v1504_v0 = vadd.f32 %v5777_v43, %v5032_v37  ;;  %v3004_v38 = vrot.slane %v3003_v32, 2  ;;  %v2985_v21 = vrot.slane %v2984_v28, 1  ;;  %v3017_v12 = vmax.f32 %v3015_v53, %v3016_v18 }
 0x303   : > { %v3011_v17 = vrot.slane %v3010_v11, 2  ;;  %v3024_v5 = vmax.f32 %v3022_v7, %v3023_v25  ;;  %v2992_v22 = vrot.slane %v2991_v35, 1  ;;  %v2999_v16 = vrot.slane %v2998_v44, 1 }
 0x304   : > { %v3005_v46 = vmax.f32 %v3003_v32, %v3004_v38  ;;  %v1657_v3 = vadd.f32 %v5785_v13, %v1504_v0  ;;  %v3018_v34 = vrot.slane %v3017_v12, 2  ;;  %v2979_v26 = vmax.f32 %v2977_v61, %v2978_v30 }
 0x305   : > { %v3012_v62 = vmax.f32 %v3010_v11, %v3011_v17  ;;  %v3025_v29 = vrot.slane %v3024_v5, 2  ;;  %v1505_v37 = vadd.f32 %v5791_v33, %v5043_v56  ;;  %v2986_v43 = vmax.f32 %v2984_v28, %v2985_v21 }
 0x306   : > { %v3006_v45 = vrot.slane %v3005_v46, 1  ;;  %v3019_v2 = vmax.f32 %v3017_v12, %v3018_v34  ;;  %v2993_v24 = vmax.f32 %v2991_v35, %v2992_v22  ;;  %v1814_v19 = vadd.f32 %v5787_v9, %v1657_v3 }
 0x307   : > { %v3013_v52 = vrot.slane %v3012_v62, 1  ;;  %v3026_v63 = vmax.f32 %v3024_v5, %v3025_v29  ;;  %v1658_v1 = vadd.f32 %v5809_v54, %v1505_v37  ;;  %v1506_v13 = vadd.f32 %v5823_v40, %v5054_v55 }
 0x308   : > { %v3000_v15 = vmax.f32 %v2998_v44, %v2999_v16  ;;  %v3020_v14 = vrot.slane %v3019_v2, 1  ;;  %v1507_v58 = vadd.f32 %v1469_v60, %v6231_v42  ;;  %v3007_v8 = vmax.f32 %v3005_v46, %v3006_v45 }
 0x309   : > { %v3027_v48 = vrot.slane %v3026_v63, 1  ;;  %v1970_v56 = vadd.f32 %v5793_v10, %v1814_v19  ;;  %v1815_v33 = vadd.f32 %v5815_v31, %v1658_v1  ;;  %v1659_v39 = vadd.f32 %v1619_v47, %v1506_v13  ;;  %v1472_v10 = vpop.f32.mrf.mxu1 }
 0x30a   : > { %v5854_v9 = vsel %vm397_vm1, %v2979_v26, -inf  ;;  %v3014_v54 = vmax.f32 %v3012_v62, %v3013_v52  ;;  %v3021_v4 = vmax.f32 %v3019_v2, %v3020_v14  ;;  %v1660_v61 = vadd.f32 %v1622_v41, %v1507_v58 }
 0x30b   : > { %v5857_v55 = vsel %vm397_vm1, %v2986_v43, -inf  ;;  %v2006_v40 = vadd.f32 %v5695_v50, %v1970_v56  ;;  %v1971_v51 = vadd.f32 %v5825_v27, %v1815_v33  ;;  %v1816_v6 = vadd.f32 %v1776_v23, %v1659_v39  ;;  %v6232_v23 = vld [vmem:[#allocation26_spill] sm:$0xff] }
 0x30c   : > { %v5862_v31 = vsel %vm397_vm1, %v2993_v24, -inf  ;;  %v5865_v47 = vsel %vm397_vm1, %v3000_v15, -inf  ;;  %v3028_v59 = vmax.f32 %v3026_v63, %v3027_v48  ;;  %v1817_v36 = vadd.f32 %v1779_v20, %v1660_v61 }
 0x30d   : > { %v5868_v53 = vsel %vm397_vm1, %v3007_v8, -inf  ;;  %v2038_v7 = vmax.f32 %v2006_v40, 0.0  ;;  %v2007_v28 = vadd.f32 %v5695_v50, %v1971_v51  ;;  %v1972_v35 = vadd.f32 %v1932_v49, %v1816_v6 }
 0x30e   : > { %v5872_v27 = vsel %vm397_vm1, %v3014_v54, -inf  ;;  %v5875_v32 = vsel %vm397_vm1, %v3021_v4, -inf  ;;  %v5878_v44 = vadd.f32 %v1472_v10, %v6232_v23  ;;  %v1973_v11 = vadd.f32 %v1935_v57, %v1817_v36 }
 0x30f   : > { %2070 = vst.msk [vmem:[%s5115_s20 + $0xd0] sm:$0xff] %vm397_vm1, %v2038_v7  ;;  %v2186_v18 = vrot.slane %v2038_v7, 2  ;;  %v2187_v25 = vrot.slane %v2038_v7, 4  ;;  %v2188_v30 = vrot.slane %v2038_v7, 6  ;;  %v3029_v0 = vsel %vm2300_vm3, %v2038_v7, -inf }
 0x310   : > { %v5884_v38 = vsel %vm397_vm1, %v3028_v59, -inf  ;;  %v3030_v60 = vrot.slane %v3029_v0, 4  ;;  %v2039_v49 = vmax.f32 %v2007_v28, 0.0  ;;  %v5887_v21 = vadd.f32 %v5695_v50, %v1972_v35 }
 0x311   : > { %v3036_v17 = vsel %vm2300_vm3, %v2186_v18, -inf  ;;  %v3043_v12 = vsel %vm2300_vm3, %v2187_v25, -inf  ;;  %v3050_v5 = vsel %vm2300_vm3, %v2188_v30, -inf  ;;  %v5893_v22 = vadd.f32 %v5695_v50, %v1973_v11 }
 0x312   : > { %v3031_v46 = vmax.f32 %v3029_v0, %v3030_v60  ;;  %v3037_v3 = vrot.slane %v3036_v17, 4  ;;  %v3044_v16 = vrot.slane %v3043_v12, 4  ;;  %v3051_v62 = vrot.slane %v3050_v5, 4  ;;  %2071 = vst.msk [vmem:[%s5115_s20 + $0xd8] sm:$0xff] %vm397_vm1, %v2039_v49 }
 0x313   : > { %v2189_v34 = vrot.slane %v2039_v49, 2  ;;  %v2190_v29 = vrot.slane %v2039_v49, 4  ;;  %v2191_v26 = vrot.slane %v2039_v49, 6  ;;  %v3057_v45 = vsel %vm2300_vm3, %v2039_v49, -inf }
 0x314   : > { %v3032_v37 = vrot.slane %v3031_v46, 2  ;;  %v3038_v43 = vmax.f32 %v3036_v17, %v3037_v3  ;;  %v3045_v52 = vmax.f32 %v3043_v12, %v3044_v16  ;;  %v3052_v2 = vmax.f32 %v3050_v5, %v3051_v62 }
 0x315   : > { %v3058_v63 = vrot.slane %v3057_v45, 4  ;;  %v3064_v24 = vsel %vm2300_vm3, %v2189_v34, -inf  ;;  %v3071_v19 = vsel %vm2300_vm3, %v2190_v29, -inf  ;;  %v3078_v1 = vsel %vm2300_vm3, %v2191_v26, -inf }
 0x316   : > { %v3033_v13 = vmax.f32 %v3031_v46, %v3032_v37  ;;  %v3039_v41 = vrot.slane %v3038_v43, 2  ;;  %v3046_v15 = vrot.slane %v3045_v52, 2  ;;  %v3053_v14 = vrot.slane %v3052_v2, 2  ;;  %v1625_v46 = vpop.f32.mrf.mxu2 }
 0x317   : > { %v3059_v48 = vmax.f32 %v3057_v45, %v3058_v63  ;;  %v3065_v42 = vrot.slane %v3064_v24, 4  ;;  %v3072_v58 = vrot.slane %v3071_v19, 4  ;;  %v3079_v8 = vrot.slane %v3078_v1, 4 }
 0x318   : > { %v3034_v56 = vrot.slane %v3033_v13, 1  ;;  %v3040_v33 = vmax.f32 %v3038_v43, %v3039_v41  ;;  %v3047_v39 = vmax.f32 %v3045_v52, %v3046_v15  ;;  %v3054_v20 = vmax.f32 %v3052_v2, %v3053_v14 }
 0x319   : > { %v3060_v54 = vrot.slane %v3059_v48, 2  ;;  %v3066_v4 = vmax.f32 %v3064_v24, %v3065_v42  ;;  %v3073_v61 = vmax.f32 %v3071_v19, %v3072_v58  ;;  %v3080_v40 = vmax.f32 %v3078_v1, %v3079_v8 }
 0x31a   : > { %v3035_v51 = vmax.f32 %v3033_v13, %v3034_v56  ;;  %v3041_v6 = vrot.slane %v3040_v33, 1  ;;  %v3048_v10 = vrot.slane %v3047_v39, 1  ;;  %v3055_v57 = vrot.slane %v3054_v20, 1 }
 0x31b   : > { %v3061_v59 = vmax.f32 %v3059_v48, %v3060_v54  ;;  %v3067_v36 = vrot.slane %v3066_v4, 2  ;;  %v3074_v7 = vrot.slane %v3073_v61, 2  ;;  %v3081_v28 = vrot.slane %v3080_v40, 2 }
 0x31c   : > { %v3042_v35 = vmax.f32 %v3040_v33, %v3041_v6  ;;  %v3049_v23 = vmax.f32 %v3047_v39, %v3048_v10  ;;  %v3056_v11 = vmax.f32 %v3054_v20, %v3055_v57  ;;  %v3342_v18 = vsel %vm397_vm1, %v3035_v51, -inf }
 0x31d   : > { %v3343_v25 = vmax.f32 %v5854_v9, %v3342_v18  ;;  %v3062_v30 = vrot.slane %v3061_v59, 1  ;;  %v3068_v0 = vmax.f32 %v3066_v4, %v3067_v36  ;;  %v3075_v60 = vmax.f32 %v3073_v61, %v3074_v7  ;;  %v1782_v7 = vpop.f32.mrf.mxu3 }
 0x31e   : > { %v3345_v49 = vsel %vm397_vm1, %v3042_v35, -inf  ;;  %v3348_v17 = vsel %vm397_vm1, %v3049_v23, -inf  ;;  %v3351_v12 = vsel %vm397_vm1, %v3056_v11, -inf  ;;  %v3082_v5 = vmax.f32 %v3080_v40, %v3081_v28 }
 0x31f   : > { %v3346_v3 = vmax.f32 %v5857_v55, %v3345_v49  ;;  %v3349_v16 = vmax.f32 %v5862_v31, %v3348_v17  ;;  %v3352_v62 = vmax.f32 %v5865_v47, %v3351_v12  ;;  %v3063_v34 = vmax.f32 %v3061_v59, %v3062_v30  ;;  %v1938_v17 = vpop.f32.mrf.mxu0 }
 0x320   : > { %v3069_v9 = vrot.slane %v3068_v0, 1  ;;  %v3076_v29 = vrot.slane %v3075_v60, 1  ;;  %v3083_v26 = vrot.slane %v3082_v5, 1  ;;  %v2040_v45 = vmax.f32 %v5887_v21, 0.0 }
 0x321   : > { %v3502_v37 = vsel %vm3453_vm4, %v3346_v3, %v3343_v25  ;;  %v3354_v43 = vsel %vm397_vm1, %v3063_v34, -inf  ;;  %v2041_v52 = vmax.f32 %v5893_v22, 0.0  ;;  %v1661_v55 = vadd.f32 %v1625_v46, %v5878_v44 }
 0x322   : > { %v3503_v2 = vsel %vm3455_vm5, %v3349_v16, %v3502_v37  ;;  %v3070_v31 = vmax.f32 %v3068_v0, %v3069_v9  ;;  %v3077_v63 = vmax.f32 %v3075_v60, %v3076_v29  ;;  %v3084_v47 = vmax.f32 %v3082_v5, %v3083_v26  ;;  %2072 = vst.msk [vmem:[%s5115_s20 + $0xe0] sm:$0xff] %vm397_vm1, %v2040_v45  ;;  %v1475_v29 = vpop.f32.mrf.mxu1 }
 0x323   : > { %v3504_v24 = vsel %vm3457_vm6, %v3352_v62, %v3503_v2  ;;  %v3355_v19 = vmax.f32 %v5868_v53, %v3354_v43  ;;  %v2192_v21 = vrot.slane %v2040_v45, 2  ;;  %v2193_v1 = vrot.slane %v2040_v45, 4  ;;  %2073 = vst.msk [vmem:[%s5115_s20 + $0xe8] sm:$0xff] %vm397_vm1, %v2041_v52  ;;  %v1628_v43 = vpop.f32.mrf.mxu2 }
 0x324   : > { %v3357_v13 = vsel %vm397_vm1, %v3070_v31, -inf  ;;  %v3360_v22 = vsel %vm397_vm1, %v3077_v63, -inf  ;;  %v3363_v44 = vsel %vm397_vm1, %v3084_v47, -inf  ;;  %v2194_v41 = vrot.slane %v2040_v45, 6  ;;  %v6233_v31 = vld [vmem:[#allocation22_spill] sm:$0xff] }
 0x325   : > { %v3358_v15 = vmax.f32 %v5872_v27, %v3357_v13  ;;  %v3361_v14 = vmax.f32 %v5875_v32, %v3360_v22  ;;  %v3364_v48 = vmax.f32 %v5884_v38, %v3363_v44  ;;  %v3505_v42 = vsel %vm3459_vm7, %v3355_v19, %v3504_v24 }
 0x326   : > { %v3085_v53 = vsel %vm2300_vm3, %v2040_v45, -inf  ;;  %v3092_v58 = vsel %vm2300_vm3, %v2192_v21, -inf  ;;  %v3099_v8 = vsel %vm2300_vm3, %v2193_v1, -inf  ;;  %v3106_v56 = vsel %vm2300_vm3, %v2194_v41, -inf  ;;  %v1785_v21 = vpop.f32.mrf.mxu3 }
 0x327   : > { %v3506_v33 = vsel %vm3461_vm8, %v3358_v15, %v3505_v42  ;;  %v3086_v39 = vrot.slane %v3085_v53, 4  ;;  %v3093_v20 = vrot.slane %v3092_v58, 4  ;;  %v3100_v27 = vrot.slane %v3099_v8, 4  ;;  %v1941_v42 = vpop.f32.mrf.mxu0 }
 0x328   : > { %v3507_v32 = vsel %vm3463_vm9, %v3361_v14, %v3506_v33  ;;  %v3107_v54 = vrot.slane %v3106_v56, 4  ;;  %v2195_v38 = vrot.slane %v2041_v52, 2  ;;  %v2196_v4 = vrot.slane %v2041_v52, 4 }
 0x329   : > { %v3508_v61 = vsel %vm3465_vm10, %v3364_v48, %v3507_v32  ;;  %v3087_v40 = vmax.f32 %v3085_v53, %v3086_v39  ;;  %v3094_v51 = vmax.f32 %v3092_v58, %v3093_v20  ;;  %v3101_v6 = vmax.f32 %v3099_v8, %v3100_v27 }
 0x32a   : > { %3530 = vst.msk [vmem:[%s5261_s23 + $0x30] sm:$0xff] %vm397_vm1, %v3508_v61  ;;  %v3108_v10 = vmax.f32 %v3106_v56, %v3107_v54  ;;  %v2197_v57 = vrot.slane %v2041_v52, 6  ;;  %v3113_v59 = vsel %vm2300_vm3, %v2041_v52, -inf  ;;  %v3120_v36 = vsel %vm2300_vm3, %v2195_v38, -inf }
 0x32b   : > { %v3088_v28 = vrot.slane %v3087_v40, 2  ;;  %v3095_v35 = vrot.slane %v3094_v51, 2  ;;  %v3102_v23 = vrot.slane %v3101_v6, 2  ;;  %v3114_v11 = vrot.slane %v3113_v59, 4 }
 0x32c   : > { %v3109_v18 = vrot.slane %v3108_v10, 2  ;;  %v3121_v25 = vrot.slane %v3120_v36, 4  ;;  %v3127_v30 = vsel %vm2300_vm3, %v2196_v4, -inf  ;;  %v3134_v0 = vsel %vm2300_vm3, %v2197_v57, -inf }
 0x32d   : > { %v3089_v60 = vmax.f32 %v3087_v40, %v3088_v28  ;;  %v1818_v49 = vadd.f32 %v1782_v7, %v1661_v55  ;;  %v3096_v12 = vmax.f32 %v3094_v51, %v3095_v35  ;;  %v3128_v5 = vrot.slane %v3127_v30, 4 }
 0x32e   : > { %v3103_v46 = vmax.f32 %v3101_v6, %v3102_v23  ;;  %v3135_v3 = vrot.slane %v3134_v0, 4  ;;  %v3110_v62 = vmax.f32 %v3108_v10, %v3109_v18  ;;  %v3115_v34 = vmax.f32 %v3113_v59, %v3114_v11 }
 0x32f   : > { %v3090_v16 = vrot.slane %v3089_v60, 1  ;;  %v3122_v9 = vmax.f32 %v3120_v36, %v3121_v25  ;;  %v1974_v26 = vadd.f32 %v1938_v17, %v1818_v49  ;;  %v3097_v45 = vrot.slane %v3096_v12, 1 }
 0x330   : > { %v3129_v37 = vmax.f32 %v3127_v30, %v3128_v5  ;;  %v3104_v52 = vrot.slane %v3103_v46, 1  ;;  %v3136_v2 = vmax.f32 %v3134_v0, %v3135_v3  ;;  %v1509_v63 = vadd.f32 %v1475_v29, %v6233_v31 }
 0x331   : > { %v3091_v47 = vmax.f32 %v3089_v60, %v3090_v16  ;;  %v3111_v55 = vrot.slane %v3110_v62, 1  ;;  %v3116_v24 = vrot.slane %v3115_v34, 2  ;;  %v3123_v19 = vrot.slane %v3122_v9, 2 }
 0x332   : > { %v2010_v1 = vadd.f32 %v5695_v50, %v1974_v26  ;;  %v1662_v13 = vadd.f32 %v1628_v43, %v1509_v63  ;;  %v3098_v22 = vmax.f32 %v3096_v12, %v3097_v45  ;;  %v3130_v44 = vrot.slane %v3129_v37, 2 }
 0x333   : > { %v3105_v41 = vmax.f32 %v3103_v46, %v3104_v52  ;;  %v3137_v15 = vrot.slane %v3136_v2, 2  ;;  %v3112_v53 = vmax.f32 %v3110_v62, %v3111_v55  ;;  %v5944_v58 = vsel %vm397_vm1, %v3091_v47, -inf }
 0x334   : > { %v2042_v14 = vmax.f32 %v2010_v1, 0.0  ;;  %v1819_v48 = vadd.f32 %v1785_v21, %v1662_v13  ;;  %v5946_v8 = vmax.f32 %v3115_v34, %v3116_v24  ;;  %v5948_v56 = vmax.f32 %v3122_v9, %v3123_v19 }
 0x335   : > { %v5954_v32 = vsel %vm397_vm1, %v3098_v22, -inf  ;;  %v5956_v54 = vmax.f32 %v3129_v37, %v3130_v44  ;;  %v5958_v61 = vmax.f32 %v3136_v2, %v3137_v15  ;;  %v3371_v7 = vsel %vm397_vm1, %v3105_v41, -inf }
 0x336   : > { %2074 = vst.msk [vmem:[%s5115_s20 + $0xf0] sm:$0xff] %vm397_vm1, %v2042_v14  ;;  %v2198_v33 = vrot.slane %v2042_v14, 2  ;;  %v2199_v39 = vrot.slane %v2042_v14, 4  ;;  %v2200_v20 = vrot.slane %v2042_v14, 6  ;;  %v3141_v27 = vsel %vm2300_vm3, %v2042_v14, -inf }
 0x337   : > { %v3142_v38 = vrot.slane %v3141_v27, 4  ;;  %v1975_v4 = vadd.f32 %v1941_v42, %v1819_v48  ;;  %v5965_v28 = vsel %vm397_vm1, %v3112_v53, -inf  ;;  %v3118_v35 = vrot.slane %v5946_v8, 1 }
 0x338   : > { %v3148_v40 = vsel %vm2300_vm3, %v2198_v33, -inf  ;;  %v3155_v51 = vsel %vm2300_vm3, %v2199_v39, -inf  ;;  %v3162_v6 = vsel %vm2300_vm3, %v2200_v20, -inf  ;;  %v3125_v0 = vrot.slane %v5948_v56, 1 }
 0x339   : > { %v3143_v10 = vmax.f32 %v3141_v27, %v3142_v38  ;;  %v3149_v57 = vrot.slane %v3148_v40, 4  ;;  %v3156_v59 = vrot.slane %v3155_v51, 4  ;;  %v3163_v36 = vrot.slane %v3162_v6, 4 }
 0x33a   : > { %v2011_v23 = vadd.f32 %v5695_v50, %v1975_v4  ;;  %v3132_v60 = vrot.slane %v5956_v54, 1  ;;  %v3139_v49 = vrot.slane %v5958_v61, 1 }
 0x33b   : > { %v3144_v11 = vrot.slane %v3143_v10, 2  ;;  %v3150_v18 = vmax.f32 %v3148_v40, %v3149_v57  ;;  %v3157_v25 = vmax.f32 %v3155_v51, %v3156_v59  ;;  %v3164_v30 = vmax.f32 %v3162_v6, %v3163_v36 }
 0x33c   : > { %v2043_v17 = vmax.f32 %v2011_v23, 0.0  ;;  %v3126_v57 = vmax.f32 %v5948_v56, %v3125_v0 }
 0x33d   : > { %v3145_v12 = vmax.f32 %v3143_v10, %v3144_v11  ;;  %v3151_v5 = vrot.slane %v3150_v18, 2  ;;  %v3158_v46 = vrot.slane %v3157_v25, 2  ;;  %v3165_v3 = vrot.slane %v3164_v30, 2 }
 0x33e   : > { %2075 = vst.msk [vmem:[%s5115_s20 + $0xf8] sm:$0xff] %vm397_vm1, %v2043_v17  ;;  %v2201_v16 = vrot.slane %v2043_v17, 2  ;;  %v2202_v62 = vrot.slane %v2043_v17, 4  ;;  %v2203_v50 = vrot.slane %v2043_v17, 6  ;;  %v3169_v34 = vsel %vm2300_vm3, %v2043_v17, -inf }
 0x33f   : > { %v3146_v9 = vrot.slane %v3145_v12, 1  ;;  %v3152_v29 = vmax.f32 %v3150_v18, %v3151_v5  ;;  %v3159_v26 = vmax.f32 %v3157_v25, %v3158_v46  ;;  %v3166_v45 = vmax.f32 %v3164_v30, %v3165_v3 }
 0x340   : > { %v3170_v37 = vrot.slane %v3169_v34, 4  ;;  %v3176_v43 = vsel %vm2300_vm3, %v2201_v16, -inf  ;;  %v3183_v52 = vsel %vm2300_vm3, %v2202_v62, -inf  ;;  %v3190_v2 = vsel %vm2300_vm3, %v2203_v50, -inf }
 0x341   : > { %v3147_v31 = vmax.f32 %v3145_v12, %v3146_v9  ;;  %v3153_v63 = vrot.slane %v3152_v29, 1  ;;  %v3160_v47 = vrot.slane %v3159_v26, 1  ;;  %v3167_v55 = vrot.slane %v3166_v45, 1 }
 0x342   : > { %v3171_v24 = vmax.f32 %v3169_v34, %v3170_v37  ;;  %v3177_v19 = vrot.slane %v3176_v43, 4  ;;  %v3184_v21 = vrot.slane %v3183_v52, 4  ;;  %v3191_v1 = vrot.slane %v3190_v2, 4 }
 0x343   : > { %v3154_v13 = vmax.f32 %v3152_v29, %v3153_v63  ;;  %v3161_v22 = vmax.f32 %v3159_v26, %v3160_v47  ;;  %v3168_v44 = vmax.f32 %v3166_v45, %v3167_v55  ;;  %v3366_v41 = vsel %vm397_vm1, %v3147_v31, -inf }
 0x344   : > { %v3367_v15 = vmax.f32 %v5944_v58, %v3366_v41  ;;  %v3172_v14 = vrot.slane %v3171_v24, 2  ;;  %v3178_v48 = vmax.f32 %v3176_v43, %v3177_v19  ;;  %v3185_v42 = vmax.f32 %v3183_v52, %v3184_v21 }
 0x345   : > { %v3369_v53 = vsel %vm397_vm1, %v3154_v13, -inf  ;;  %v3372_v33 = vsel %vm397_vm1, %v3161_v22, -inf  ;;  %v3375_v39 = vsel %vm397_vm1, %v3168_v44, -inf  ;;  %v3192_v20 = vmax.f32 %v3190_v2, %v3191_v1 }
 0x346   : > { %v3370_v27 = vmax.f32 %v5954_v32, %v3369_v53  ;;  %v3373_v38 = vmax.f32 %v3371_v7, %v3372_v33  ;;  %v3376_v4 = vmax.f32 %v5965_v28, %v3375_v39  ;;  %v3173_v40 = vmax.f32 %v3171_v24, %v3172_v14 }
 0x347   : > { %v3179_v51 = vrot.slane %v3178_v48, 2  ;;  %v3186_v6 = vrot.slane %v3185_v42, 2  ;;  %v3193_v10 = vrot.slane %v3192_v20, 2  ;;  %v3119_v58 = vmax.f32 %v5946_v8, %v3118_v35 }
 0x348   : > { %v3509_v59 = vsel %vm3453_vm4, %v3370_v27, %v3367_v15  ;;  %v3174_v36 = vrot.slane %v3173_v40, 1  ;;  %v3133_v32 = vmax.f32 %v5956_v54, %v3132_v60  ;;  %v3140_v7 = vmax.f32 %v5958_v61, %v3139_v49 }
 0x349   : > { %v3510_v23 = vsel %vm3455_vm5, %v3373_v38, %v3509_v59  ;;  %v3180_v11 = vmax.f32 %v3178_v48, %v3179_v51  ;;  %v3187_v18 = vmax.f32 %v3185_v42, %v3186_v6  ;;  %v3194_v25 = vmax.f32 %v3192_v20, %v3193_v10 }
 0x34a   : > { %v3511_v28 = vsel %vm3457_vm6, %v3376_v4, %v3510_v23  ;;  %v3175_v30 = vmax.f32 %v3173_v40, %v3174_v36  ;;  %v3377_v56 = vsel %vm397_vm1, %v3119_v58, -inf  ;;  %v3380_v16 = vsel %vm397_vm1, %v3126_v57, -inf }
 0x34b   : > { %v3181_v17 = vrot.slane %v3180_v11, 1  ;;  %v3188_v12 = vrot.slane %v3187_v18, 1  ;;  %v3195_v8 = vrot.slane %v3194_v25, 1  ;;  %v3383_v54 = vsel %vm397_vm1, %v3133_v32, -inf }
 0x34c   : > { %v3378_v35 = vsel %vm397_vm1, %v3175_v30, -inf  ;;  %v3386_v61 = vsel %vm397_vm1, %v3140_v7, -inf }
 0x34d   : > { %v3182_v0 = vmax.f32 %v3180_v11, %v3181_v17  ;;  %v3189_v5 = vmax.f32 %v3187_v18, %v3188_v12  ;;  %v3196_v46 = vmax.f32 %v3194_v25, %v3195_v8  ;;  %v3379_v3 = vmax.f32 %v3377_v56, %v3378_v35 }
 0x34f   : > { %v3381_v60 = vsel %vm397_vm1, %v3182_v0, -inf  ;;  %v3384_v49 = vsel %vm397_vm1, %v3189_v5, -inf  ;;  %v3387_v62 = vsel %vm397_vm1, %v3196_v46, -inf  ;;  %v3512_v50 = vsel %vm3459_vm7, %v3379_v3, %v3511_v28 }
 0x350   : > { %v3382_v34 = vmax.f32 %v3380_v16, %v3381_v60  ;;  %v3385_v9 = vmax.f32 %v3383_v54, %v3384_v49  ;;  %v3388_v29 = vmax.f32 %v3386_v61, %v3387_v62 }
 0x352   : > { %v3513_v26 = vsel %vm3461_vm8, %v3382_v34, %v3512_v50 }
 0x353   : > { %v3514_v45 = vsel %vm3463_vm9, %v3385_v9, %v3513_v26 }
 0x354   : > { %v3515_v37 = vsel %vm3465_vm10, %v3388_v29, %v3514_v45 }
 0x355   : > { %3531 = vst.msk [vmem:[%s5261_s23 + $0x38] sm:$0xff] %vm397_vm1, %v3515_v37 }
 0x356 PF: > { %s15_s15 = sadd.s32 1, %s3978_s15  }
 0x357   : > { %p12_p4 = scmp.ge.s32.totalorder %s15_s15, 4  }
 0x359   :  { %14 = sbr.rel (!%p12_p4) target bundleno = 1 (0x1), region = 82 }

</bundles_post_ra>
